<compile_context>
chip_gen: v7x
topology: tpu7x:2x2x1
jax: 0.10.0
libtpu: 0.0.40
codegen_flags: <defaults>
</compile_context>

<pallas_src>
import jax
import jax.numpy as jnp
from jax.experimental import pallas as pl
from jax.experimental.pallas import tpu as pltpu


def _round_up(x, m):
    return (x + m - 1) // m * m


def _pick_tile_h(H, W_pad, C_in, C_out_pad, budget_bytes=36 * 1024 * 1024):
    """Largest row tile (<= H, ~1024 output pixels target) fitting the VMEM budget."""
    th = max(1, min(H, max(1, 1024 // W_pad)))

    def est(t):
        in_blk = 2 * (t + 2) * (W_pad + 2) * C_in * 2        # bf16 halo tile, 2 bufs
        out_blk = 2 * t * W_pad * C_out_pad * 4              # output tile, 2 bufs
        w_blk = 2 * 9 * C_in * C_out_pad * 2                 # bf16 weights, 2 bufs
        acc = t * W_pad * C_out_pad * 4                      # f32 accumulator scratch
        tap = 2 * t * W_pad * C_in * 2                       # sliced matmul operand
        return in_blk + out_blk + w_blk + acc + tap + (2 << 20)

    while th > 1 and est(th) > budget_bytes:
        th //= 2
    return th


def conv3x3_bn_relu(x_nhwc, w_oihw, bias, gamma, beta,
                    running_mean, running_var, eps=1e-5,
                    out_dtype=jnp.float32):
    """3x3 same-padding conv + folded inference BatchNorm + ReLU (one pallas_call).

    `x_nhwc` may carry more channels than the weight expects (the extra weight
    rows are zero-padded, so extra channels contribute nothing).  Returns
    (N, H, W, C_out_pad) with the channel dim zero-padded to a multiple of 128
    (lane-dense stores; stages chain without slicing).
    """
    N, H, W, C_x = x_nhwc.shape
    C_out, C_in = w_oihw.shape[0], w_oihw.shape[1]
    assert C_x >= C_in

    C_out_pad = _round_up(max(C_out, 128), 128)
    W_pad = _round_up(W, 8)                      # sublane-friendly in-kernel reshape

    # ---- fold conv bias + inference BN into weights / a single shift --------
    scale = (gamma / jnp.sqrt(running_var + eps)).astype(jnp.float32)
    shift = ((bias - running_mean) * scale + beta).astype(jnp.float32)

    # (O, I, kh, kw) -> (kh, kw, I, O) -> (9, I, O); tap order k = dy*3 + dx.
    w = jnp.transpose(w_oihw, (2, 3, 1, 0)).reshape(9, C_in, C_out)
    w = w * scale[None, None, :]                               # fold BN scale
    w = jnp.pad(w, ((0, 0), (0, C_x - C_in), (0, C_out_pad - C_out)))
    w = w.astype(jnp.bfloat16)
    shift = jnp.pad(shift, (0, C_out_pad - C_out)).reshape(1, C_out_pad)

    tile_h = _pick_tile_h(H, W_pad, C_x, C_out_pad)
    num_hb = -(-H // tile_h)
    H_pad = num_hb * tile_h

    # ---- spatial zero pad (1-pixel halo + tile rounding), bf16 operands -----
    xp = jnp.pad(x_nhwc.astype(jnp.bfloat16),
                 ((0, 0), (1, 1 + H_pad - H), (1, 1 + W_pad - W), (0, 0)))
    # Halo row-blocks (N, num_hb, tile_h+2, W_pad+2, C_x): a ~1.1x copy of the
    # input instead of the previous 9x HBM im2col expansion.
    row_idx = jnp.arange(num_hb)[:, None] * tile_h + jnp.arange(tile_h + 2)[None, :]
    xb = jnp.take(xp, row_idx, axis=1)

    def kernel(xb_ref, w_ref, shift_ref, out_ref, acc_ref):
        # xb_ref: (tile_h+2, W_pad+2, C_x) bf16 halo tile (auto-pipelined).
        # 3x3 conv == 9 shifted matmuls accumulated in an f32 VMEM scratch.
        for k in range(9):
            dy, dx = divmod(k, 3)
            v = xb_ref[dy:dy + tile_h, dx:dx + W_pad, :].reshape(
                tile_h * W_pad, C_x)
            p = jnp.dot(v, w_ref[k], preferred_element_type=jnp.float32)
            if k == 0:
                acc_ref[...] = p
            else:
                acc_ref[...] += p
        y = jnp.maximum(acc_ref[...] + shift_ref[...], 0.0)   # BN shift + ReLU (f32)
        out_ref[...] = y.astype(out_ref.dtype).reshape(tile_h, W_pad, C_out_pad)

    out = pl.pallas_call(
        kernel,
        out_shape=jax.ShapeDtypeStruct((N, H_pad, W_pad, C_out_pad), out_dtype),
        grid_spec=pltpu.PrefetchScalarGridSpec(
            num_scalar_prefetch=0,
            grid=(N, num_hb),
            in_specs=[
                pl.BlockSpec((None, None, tile_h + 2, W_pad + 2, C_x),
                             lambda n, hb: (n, hb, 0, 0, 0)),
                pl.BlockSpec((9, C_x, C_out_pad), lambda n, hb: (0, 0, 0)),
                pl.BlockSpec((1, C_out_pad), lambda n, hb: (0, 0)),
            ],
            out_specs=pl.BlockSpec((None, tile_h, W_pad, C_out_pad),
                                   lambda n, hb: (n, hb, 0, 0)),
            scratch_shapes=[pltpu.VMEM((tile_h * W_pad, C_out_pad), jnp.float32)],
        ),
        compiler_params=pltpu.CompilerParams(
            dimension_semantics=("parallel", "parallel"),
            vmem_limit_bytes=48 * 1024 * 1024),
    )(xb, w, shift)

    if H_pad != H or W_pad != W:
        out = out[:, :H, :W]
    return out


def double_conv_forward(x_nchw, params):
    # NCHW in (PyTorch convention) -> NHWC internally -> NCHW out.
    x = jnp.transpose(x_nchw, (0, 2, 3, 1))
    out_ch = params["w2"].shape[0]
    # Stage 1: bf16 intermediate (channel-padded), consumed directly by stage 2.
    y = conv3x3_bn_relu(x, params["w1"], params["b1"], params["g1"],
                        params["be1"], params["m1"], params["v1"],
                        out_dtype=jnp.bfloat16)
    # Stage 2: f32 final output.
    y = conv3x3_bn_relu(y, params["w2"], params["b2"], params["g2"],
                        params["be2"], params["m2"], params["v2"],
                        out_dtype=jnp.float32)
    y = y[..., :out_ch]
    return jnp.transpose(y, (0, 3, 1, 2))


def init_params(key, in_ch, out_ch):
    ks = jax.random.split(key, 8)
    return {
        # conv1: Conv2d(in_ch, out_ch, 3, padding=1) + BatchNorm2d(out_ch)
        "w1": 0.1 * jax.random.normal(ks[0], (out_ch, in_ch, 3, 3), jnp.float32),
        "b1": 0.1 * jax.random.normal(ks[1], (out_ch,), jnp.float32),
        "g1": 1.0 + 0.1 * jax.random.normal(ks[2], (out_ch,), jnp.float32),
        "be1": 0.1 * jax.random.normal(ks[3], (out_ch,), jnp.float32),
        "m1": jnp.zeros((out_ch,), jnp.float32),
        "v1": jnp.ones((out_ch,), jnp.float32),
        # conv2: Conv2d(out_ch, out_ch, 3, padding=1) + BatchNorm2d(out_ch)
        "w2": 0.1 * jax.random.normal(ks[4], (out_ch, out_ch, 3, 3), jnp.float32),
        "b2": 0.1 * jax.random.normal(ks[5], (out_ch,), jnp.float32),
        "g2": 1.0 + 0.1 * jax.random.normal(ks[6], (out_ch,), jnp.float32),
        "be2": 0.1 * jax.random.normal(ks[7], (out_ch,), jnp.float32),
        "m2": jnp.zeros((out_ch,), jnp.float32),
        "v2": jnp.ones((out_ch,), jnp.float32),
    }


def _reference_double_conv(x_nchw, params, eps=1e-5):
    """Pure-JAX f32 reference of (Conv3x3 + bias -> BN (inference) -> ReLU) x 2."""
    def stage(x, w, b, g, be, m, v):
        y = jax.lax.conv_general_dilated(
            x, w, window_strides=(1, 1), padding=((1, 1), (1, 1)),
            dimension_numbers=("NCHW", "OIHW", "NCHW"))
        y = y + b[None, :, None, None]
        y = (y - m[None, :, None, None]) * \
            (g / jnp.sqrt(v + eps))[None, :, None, None] + be[None, :, None, None]
        return jnp.maximum(y, 0.0)

    y = stage(x_nchw, params["w1"], params["b1"], params["g1"], params["be1"],
              params["m1"], params["v1"])
    y = stage(y, params["w2"], params["b2"], params["g2"], params["be2"],
              params["m2"], params["v2"])
    return y


if __name__ == "__main__":
    key = jax.random.PRNGKey(0)
    kx, kp = jax.random.split(key)
    N, in_ch, out_ch, H, W = 2, 4, 8, 16, 16
    x = jax.random.normal(kx, (N, in_ch, H, W), jnp.float32)
    params = init_params(kp, in_ch, out_ch)

    y = jax.jit(double_conv_forward)(x, params)
    jax.block_until_ready(y)

    assert y.shape == (N, out_ch, H, W)
    assert bool(jnp.all(y >= 0.0))          # ReLU output

    ref = _reference_double_conv(x, params)
    err = float(jnp.max(jnp.abs(y - ref)))
    assert err < 5e-2, f"max abs err vs f32 reference: {err}"
    print("KERNEL_OK")
</pallas_src>

<mosaic_0001>
module attributes {stable_mosaic.version = 11 : i64} {
  func.func @kernel(%arg0: i32, %arg1: i32, %arg2: memref<1x1x18x18x4xbf16, #tpu.memory_space<vmem>>, %arg3: memref<9x4x128xbf16, #tpu.memory_space<vmem>>, %arg4: memref<1x128xf32, #tpu.memory_space<vmem>>, %arg5: memref<1x16x16x128xbf16, #tpu.memory_space<vmem>>, %arg6: memref<256x128xf32, #tpu.memory_space<vmem>>) attributes {dimension_semantics = [#tpu.dimension_semantics<parallel>, #tpu.dimension_semantics<parallel>], iteration_bounds = array<i64: 2, 1>, scalar_prefetch = 0 : i64, scratch_operands = 1 : i64, tpu.core_type = #tpu.core_type<tc>, window_params = [{transform_indices = @transform_0, window_bounds = array<i64: 1, 1, 18, 18, 4>}, {pipeline_mode = #tpu.pipeline_mode<synchronous>, transform_indices = @transform_1, window_bounds = array<i64: 9, 4, 128>}, {pipeline_mode = #tpu.pipeline_mode<synchronous>, transform_indices = @transform_2, window_bounds = array<i64: 1, 128>}, {transform_indices = @transform_3, window_bounds = array<i64: 1, 16, 16, 128>}]} {
    %c0 = arith.constant 0 : index
    %c0_0 = arith.constant 0 : index
    %c0_1 = arith.constant 0 : index
    %c0_2 = arith.constant 0 : index
    %c0_3 = arith.constant 0 : index
    %0 = vector.load %arg2[%c0, %c0_0, %c0_1, %c0_2, %c0_3] : memref<1x1x18x18x4xbf16, #tpu.memory_space<vmem>>, vector<1x1x16x16x4xbf16>
    %1 = vector.shape_cast %0 : vector<1x1x16x16x4xbf16> to vector<16x16x4xbf16>
    %2 = vector.shape_cast %1 : vector<16x16x4xbf16> to vector<256x4xbf16>
    %c0_4 = arith.constant 0 : index
    %c0_5 = arith.constant 0 : index
    %c0_6 = arith.constant 0 : index
    %3 = vector.load %arg3[%c0_4, %c0_5, %c0_6] : memref<9x4x128xbf16, #tpu.memory_space<vmem>>, vector<1x4x128xbf16>
    %4 = vector.shape_cast %3 : vector<1x4x128xbf16> to vector<4x128xbf16>
    %cst = arith.constant dense<0.000000e+00> : vector<256x128xf32>
    %5 = tpu.matmul %2, %4, %cst {dimension_numbers = #tpu.dot_dimension_numbers<[1], [0], [0], [1], [0, 0, 1, 1], [], []>} : vector<256x4xbf16>, vector<4x128xbf16>, vector<256x128xf32> -> vector<256x128xf32>
    %c0_7 = arith.constant 0 : index
    %c0_8 = arith.constant 0 : index
    %6 = vector.load %arg6[%c0_7, %c0_8] : memref<256x128xf32, #tpu.memory_space<vmem>>, vector<256x128xf32>
    tpu.vector_store %arg6[%c0_7, %c0_8], %5 {strides = array<i32>} : memref<256x128xf32, #tpu.memory_space<vmem>>, vector<256x128xf32>,
    %c0_9 = arith.constant 0 : index
    %c0_10 = arith.constant 0 : index
    %c0_11 = arith.constant 0 : index
    %c1 = arith.constant 1 : index
    %c0_12 = arith.constant 0 : index
    %7 = vector.load %arg2[%c0_9, %c0_10, %c0_11, %c1, %c0_12] : memref<1x1x18x18x4xbf16, #tpu.memory_space<vmem>>, vector<1x1x16x16x4xbf16>
    %8 = vector.shape_cast %7 : vector<1x1x16x16x4xbf16> to vector<16x16x4xbf16>
    %9 = vector.shape_cast %8 : vector<16x16x4xbf16> to vector<256x4xbf16>
    %c1_13 = arith.constant 1 : index
    %c0_14 = arith.constant 0 : index
    %c0_15 = arith.constant 0 : index
    %10 = vector.load %arg3[%c1_13, %c0_14, %c0_15] : memref<9x4x128xbf16, #tpu.memory_space<vmem>>, vector<1x4x128xbf16>
    %11 = vector.shape_cast %10 : vector<1x4x128xbf16> to vector<4x128xbf16>
    %cst_16 = arith.constant dense<0.000000e+00> : vector<256x128xf32>
    %12 = tpu.matmul %9, %11, %cst_16 {dimension_numbers = #tpu.dot_dimension_numbers<[1], [0], [0], [1], [0, 0, 1, 1], [], []>} : vector<256x4xbf16>, vector<4x128xbf16>, vector<256x128xf32> -> vector<256x128xf32>
    %c0_17 = arith.constant 0 : index
    %c0_18 = arith.constant 0 : index
    %13 = vector.load %arg6[%c0_17, %c0_18] : memref<256x128xf32, #tpu.memory_space<vmem>>, vector<256x128xf32>
    %14 = arith.addf %13, %12 : vector<256x128xf32>
    %c0_19 = arith.constant 0 : index
    %c0_20 = arith.constant 0 : index
    %15 = vector.load %arg6[%c0_19, %c0_20] : memref<256x128xf32, #tpu.memory_space<vmem>>, vector<256x128xf32>
    tpu.vector_store %arg6[%c0_19, %c0_20], %14 {strides = array<i32>} : memref<256x128xf32, #tpu.memory_space<vmem>>, vector<256x128xf32>,
    %c0_21 = arith.constant 0 : index
    %c0_22 = arith.constant 0 : index
    %c0_23 = arith.constant 0 : index
    %c2 = arith.constant 2 : index
    %c0_24 = arith.constant 0 : index
    %16 = vector.load %arg2[%c0_21, %c0_22, %c0_23, %c2, %c0_24] : memref<1x1x18x18x4xbf16, #tpu.memory_space<vmem>>, vector<1x1x16x16x4xbf16>
    %17 = vector.shape_cast %16 : vector<1x1x16x16x4xbf16> to vector<16x16x4xbf16>
    %18 = vector.shape_cast %17 : vector<16x16x4xbf16> to vector<256x4xbf16>
    %c2_25 = arith.constant 2 : index
    %c0_26 = arith.constant 0 : index
    %c0_27 = arith.constant 0 : index
    %19 = vector.load %arg3[%c2_25, %c0_26, %c0_27] : memref<9x4x128xbf16, #tpu.memory_space<vmem>>, vector<1x4x128xbf16>
    %20 = vector.shape_cast %19 : vector<1x4x128xbf16> to vector<4x128xbf16>
    %cst_28 = arith.constant dense<0.000000e+00> : vector<256x128xf32>
    %21 = tpu.matmul %18, %20, %cst_28 {dimension_numbers = #tpu.dot_dimension_numbers<[1], [0], [0], [1], [0, 0, 1, 1], [], []>} : vector<256x4xbf16>, vector<4x128xbf16>, vector<256x128xf32> -> vector<256x128xf32>
    %c0_29 = arith.constant 0 : index
    %c0_30 = arith.constant 0 : index
    %22 = vector.load %arg6[%c0_29, %c0_30] : memref<256x128xf32, #tpu.memory_space<vmem>>, vector<256x128xf32>
    %23 = arith.addf %22, %21 : vector<256x128xf32>
    %c0_31 = arith.constant 0 : index
    %c0_32 = arith.constant 0 : index
    %24 = vector.load %arg6[%c0_31, %c0_32] : memref<256x128xf32, #tpu.memory_space<vmem>>, vector<256x128xf32>
    tpu.vector_store %arg6[%c0_31, %c0_32], %23 {strides = array<i32>} : memref<256x128xf32, #tpu.memory_space<vmem>>, vector<256x128xf32>,
    %c0_33 = arith.constant 0 : index
    %c0_34 = arith.constant 0 : index
    %c1_35 = arith.constant 1 : index
    %c0_36 = arith.constant 0 : index
    %c0_37 = arith.constant 0 : index
    %25 = vector.load %arg2[%c0_33, %c0_34, %c1_35, %c0_36, %c0_37] : memref<1x1x18x18x4xbf16, #tpu.memory_space<vmem>>, vector<1x1x16x16x4xbf16>
    %26 = vector.shape_cast %25 : vector<1x1x16x16x4xbf16> to vector<16x16x4xbf16>
    %27 = vector.shape_cast %26 : vector<16x16x4xbf16> to vector<256x4xbf16>
    %c3 = arith.constant 3 : index
    %c0_38 = arith.constant 0 : index
    %c0_39 = arith.constant 0 : index
    %28 = vector.load %arg3[%c3, %c0_38, %c0_39] : memref<9x4x128xbf16, #tpu.memory_space<vmem>>, vector<1x4x128xbf16>
    %29 = vector.shape_cast %28 : vector<1x4x128xbf16> to vector<4x128xbf16>
    %cst_40 = arith.constant dense<0.000000e+00> : vector<256x128xf32>
    %30 = tpu.matmul %27, %29, %cst_40 {dimension_numbers = #tpu.dot_dimension_numbers<[1], [0], [0], [1], [0, 0, 1, 1], [], []>} : vector<256x4xbf16>, vector<4x128xbf16>, vector<256x128xf32> -> vector<256x128xf32>
    %c0_41 = arith.constant 0 : index
    %c0_42 = arith.constant 0 : index
    %31 = vector.load %arg6[%c0_41, %c0_42] : memref<256x128xf32, #tpu.memory_space<vmem>>, vector<256x128xf32>
    %32 = arith.addf %31, %30 : vector<256x128xf32>
    %c0_43 = arith.constant 0 : index
    %c0_44 = arith.constant 0 : index
    %33 = vector.load %arg6[%c0_43, %c0_44] : memref<256x128xf32, #tpu.memory_space<vmem>>, vector<256x128xf32>
    tpu.vector_store %arg6[%c0_43, %c0_44], %32 {strides = array<i32>} : memref<256x128xf32, #tpu.memory_space<vmem>>, vector<256x128xf32>,
    %c0_45 = arith.constant 0 : index
    %c0_46 = arith.constant 0 : index
    %c1_47 = arith.constant 1 : index
    %c1_48 = arith.constant 1 : index
    %c0_49 = arith.constant 0 : index
    %34 = vector.load %arg2[%c0_45, %c0_46, %c1_47, %c1_48, %c0_49] : memref<1x1x18x18x4xbf16, #tpu.memory_space<vmem>>, vector<1x1x16x16x4xbf16>
    %35 = vector.shape_cast %34 : vector<1x1x16x16x4xbf16> to vector<16x16x4xbf16>
    %36 = vector.shape_cast %35 : vector<16x16x4xbf16> to vector<256x4xbf16>
    %c4 = arith.constant 4 : index
    %c0_50 = arith.constant 0 : index
    %c0_51 = arith.constant 0 : index
    %37 = vector.load %arg3[%c4, %c0_50, %c0_51] : memref<9x4x128xbf16, #tpu.memory_space<vmem>>, vector<1x4x128xbf16>
    %38 = vector.shape_cast %37 : vector<1x4x128xbf16> to vector<4x128xbf16>
    %cst_52 = arith.constant dense<0.000000e+00> : vector<256x128xf32>
    %39 = tpu.matmul %36, %38, %cst_52 {dimension_numbers = #tpu.dot_dimension_numbers<[1], [0], [0], [1], [0, 0, 1, 1], [], []>} : vector<256x4xbf16>, vector<4x128xbf16>, vector<256x128xf32> -> vector<256x128xf32>
    %c0_53 = arith.constant 0 : index
    %c0_54 = arith.constant 0 : index
    %40 = vector.load %arg6[%c0_53, %c0_54] : memref<256x128xf32, #tpu.memory_space<vmem>>, vector<256x128xf32>
    %41 = arith.addf %40, %39 : vector<256x128xf32>
    %c0_55 = arith.constant 0 : index
    %c0_56 = arith.constant 0 : index
    %42 = vector.load %arg6[%c0_55, %c0_56] : memref<256x128xf32, #tpu.memory_space<vmem>>, vector<256x128xf32>
    tpu.vector_store %arg6[%c0_55, %c0_56], %41 {strides = array<i32>} : memref<256x128xf32, #tpu.memory_space<vmem>>, vector<256x128xf32>,
    %c0_57 = arith.constant 0 : index
    %c0_58 = arith.constant 0 : index
    %c1_59 = arith.constant 1 : index
    %c2_60 = arith.constant 2 : index
    %c0_61 = arith.constant 0 : index
    %43 = vector.load %arg2[%c0_57, %c0_58, %c1_59, %c2_60, %c0_61] : memref<1x1x18x18x4xbf16, #tpu.memory_space<vmem>>, vector<1x1x16x16x4xbf16>
    %44 = vector.shape_cast %43 : vector<1x1x16x16x4xbf16> to vector<16x16x4xbf16>
    %45 = vector.shape_cast %44 : vector<16x16x4xbf16> to vector<256x4xbf16>
    %c5 = arith.constant 5 : index
    %c0_62 = arith.constant 0 : index
    %c0_63 = arith.constant 0 : index
    %46 = vector.load %arg3[%c5, %c0_62, %c0_63] : memref<9x4x128xbf16, #tpu.memory_space<vmem>>, vector<1x4x128xbf16>
    %47 = vector.shape_cast %46 : vector<1x4x128xbf16> to vector<4x128xbf16>
    %cst_64 = arith.constant dense<0.000000e+00> : vector<256x128xf32>
    %48 = tpu.matmul %45, %47, %cst_64 {dimension_numbers = #tpu.dot_dimension_numbers<[1], [0], [0], [1], [0, 0, 1, 1], [], []>} : vector<256x4xbf16>, vector<4x128xbf16>, vector<256x128xf32> -> vector<256x128xf32>
    %c0_65 = arith.constant 0 : index
    %c0_66 = arith.constant 0 : index
    %49 = vector.load %arg6[%c0_65, %c0_66] : memref<256x128xf32, #tpu.memory_space<vmem>>, vector<256x128xf32>
    %50 = arith.addf %49, %48 : vector<256x128xf32>
    %c0_67 = arith.constant 0 : index
    %c0_68 = arith.constant 0 : index
    %51 = vector.load %arg6[%c0_67, %c0_68] : memref<256x128xf32, #tpu.memory_space<vmem>>, vector<256x128xf32>
    tpu.vector_store %arg6[%c0_67, %c0_68], %50 {strides = array<i32>} : memref<256x128xf32, #tpu.memory_space<vmem>>, vector<256x128xf32>,
    %c0_69 = arith.constant 0 : index
    %c0_70 = arith.constant 0 : index
    %c2_71 = arith.constant 2 : index
    %c0_72 = arith.constant 0 : index
    %c0_73 = arith.constant 0 : index
    %52 = vector.load %arg2[%c0_69, %c0_70, %c2_71, %c0_72, %c0_73] : memref<1x1x18x18x4xbf16, #tpu.memory_space<vmem>>, vector<1x1x16x16x4xbf16>
    %53 = vector.shape_cast %52 : vector<1x1x16x16x4xbf16> to vector<16x16x4xbf16>
    %54 = vector.shape_cast %53 : vector<16x16x4xbf16> to vector<256x4xbf16>
    %c6 = arith.constant 6 : index
    %c0_74 = arith.constant 0 : index
    %c0_75 = arith.constant 0 : index
    %55 = vector.load %arg3[%c6, %c0_74, %c0_75] : memref<9x4x128xbf16, #tpu.memory_space<vmem>>, vector<1x4x128xbf16>
    %56 = vector.shape_cast %55 : vector<1x4x128xbf16> to vector<4x128xbf16>
    %cst_76 = arith.constant dense<0.000000e+00> : vector<256x128xf32>
    %57 = tpu.matmul %54, %56, %cst_76 {dimension_numbers = #tpu.dot_dimension_numbers<[1], [0], [0], [1], [0, 0, 1, 1], [], []>} : vector<256x4xbf16>, vector<4x128xbf16>, vector<256x128xf32> -> vector<256x128xf32>
    %c0_77 = arith.constant 0 : index
    %c0_78 = arith.constant 0 : index
    %58 = vector.load %arg6[%c0_77, %c0_78] : memref<256x128xf32, #tpu.memory_space<vmem>>, vector<256x128xf32>
    %59 = arith.addf %58, %57 : vector<256x128xf32>
    %c0_79 = arith.constant 0 : index
    %c0_80 = arith.constant 0 : index
    %60 = vector.load %arg6[%c0_79, %c0_80] : memref<256x128xf32, #tpu.memory_space<vmem>>, vector<256x128xf32>
    tpu.vector_store %arg6[%c0_79, %c0_80], %59 {strides = array<i32>} : memref<256x128xf32, #tpu.memory_space<vmem>>, vector<256x128xf32>,
    %c0_81 = arith.constant 0 : index
    %c0_82 = arith.constant 0 : index
    %c2_83 = arith.constant 2 : index
    %c1_84 = arith.constant 1 : index
    %c0_85 = arith.constant 0 : index
    %61 = vector.load %arg2[%c0_81, %c0_82, %c2_83, %c1_84, %c0_85] : memref<1x1x18x18x4xbf16, #tpu.memory_space<vmem>>, vector<1x1x16x16x4xbf16>
    %62 = vector.shape_cast %61 : vector<1x1x16x16x4xbf16> to vector<16x16x4xbf16>
    %63 = vector.shape_cast %62 : vector<16x16x4xbf16> to vector<256x4xbf16>
    %c7 = arith.constant 7 : index
    %c0_86 = arith.constant 0 : index
    %c0_87 = arith.constant 0 : index
    %64 = vector.load %arg3[%c7, %c0_86, %c0_87] : memref<9x4x128xbf16, #tpu.memory_space<vmem>>, vector<1x4x128xbf16>
    %65 = vector.shape_cast %64 : vector<1x4x128xbf16> to vector<4x128xbf16>
    %cst_88 = arith.constant dense<0.000000e+00> : vector<256x128xf32>
    %66 = tpu.matmul %63, %65, %cst_88 {dimension_numbers = #tpu.dot_dimension_numbers<[1], [0], [0], [1], [0, 0, 1, 1], [], []>} : vector<256x4xbf16>, vector<4x128xbf16>, vector<256x128xf32> -> vector<256x128xf32>
    %c0_89 = arith.constant 0 : index
    %c0_90 = arith.constant 0 : index
    %67 = vector.load %arg6[%c0_89, %c0_90] : memref<256x128xf32, #tpu.memory_space<vmem>>, vector<256x128xf32>
    %68 = arith.addf %67, %66 : vector<256x128xf32>
    %c0_91 = arith.constant 0 : index
    %c0_92 = arith.constant 0 : index
    %69 = vector.load %arg6[%c0_91, %c0_92] : memref<256x128xf32, #tpu.memory_space<vmem>>, vector<256x128xf32>
    tpu.vector_store %arg6[%c0_91, %c0_92], %68 {strides = array<i32>} : memref<256x128xf32, #tpu.memory_space<vmem>>, vector<256x128xf32>,
    %c0_93 = arith.constant 0 : index
    %c0_94 = arith.constant 0 : index
    %c2_95 = arith.constant 2 : index
    %c2_96 = arith.constant 2 : index
    %c0_97 = arith.constant 0 : index
    %70 = vector.load %arg2[%c0_93, %c0_94, %c2_95, %c2_96, %c0_97] : memref<1x1x18x18x4xbf16, #tpu.memory_space<vmem>>, vector<1x1x16x16x4xbf16>
    %71 = vector.shape_cast %70 : vector<1x1x16x16x4xbf16> to vector<16x16x4xbf16>
    %72 = vector.shape_cast %71 : vector<16x16x4xbf16> to vector<256x4xbf16>
    %c8 = arith.constant 8 : index
    %c0_98 = arith.constant 0 : index
    %c0_99 = arith.constant 0 : index
    %73 = vector.load %arg3[%c8, %c0_98, %c0_99] : memref<9x4x128xbf16, #tpu.memory_space<vmem>>, vector<1x4x128xbf16>
    %74 = vector.shape_cast %73 : vector<1x4x128xbf16> to vector<4x128xbf16>
    %cst_100 = arith.constant dense<0.000000e+00> : vector<256x128xf32>
    %75 = tpu.matmul %72, %74, %cst_100 {dimension_numbers = #tpu.dot_dimension_numbers<[1], [0], [0], [1], [0, 0, 1, 1], [], []>} : vector<256x4xbf16>, vector<4x128xbf16>, vector<256x128xf32> -> vector<256x128xf32>
    %c0_101 = arith.constant 0 : index
    %c0_102 = arith.constant 0 : index
    %76 = vector.load %arg6[%c0_101, %c0_102] : memref<256x128xf32, #tpu.memory_space<vmem>>, vector<256x128xf32>
    %77 = arith.addf %76, %75 : vector<256x128xf32>
    %c0_103 = arith.constant 0 : index
    %c0_104 = arith.constant 0 : index
    %78 = vector.load %arg6[%c0_103, %c0_104] : memref<256x128xf32, #tpu.memory_space<vmem>>, vector<256x128xf32>
    tpu.vector_store %arg6[%c0_103, %c0_104], %77 {strides = array<i32>} : memref<256x128xf32, #tpu.memory_space<vmem>>, vector<256x128xf32>,
    %c0_105 = arith.constant 0 : index
    %c0_106 = arith.constant 0 : index
    %79 = vector.load %arg6[%c0_105, %c0_106] : memref<256x128xf32, #tpu.memory_space<vmem>>, vector<256x128xf32>
    %c0_107 = arith.constant 0 : index
    %c0_108 = arith.constant 0 : index
    %80 = vector.load %arg4[%c0_107, %c0_108] : memref<1x128xf32, #tpu.memory_space<vmem>>, vector<1x128xf32>
    %81 = vector.broadcast %80 : vector<1x128xf32> to vector<256x128xf32>
    %82 = arith.addf %79, %81 : vector<256x128xf32>
    %cst_109 = arith.constant 0.000000e+00 : f32
    %83 = vector.broadcast %cst_109 : f32 to vector<256x128xf32>
    %84 = arith.maximumf %82, %83 : vector<256x128xf32>
    %85 = arith.truncf %84 : vector<256x128xf32> to vector<256x128xbf16>
    %86 = vector.shape_cast %85 : vector<256x128xbf16> to vector<16x16x128xbf16>
    %c0_110 = arith.constant 0 : index
    %c0_111 = arith.constant 0 : index
    %c0_112 = arith.constant 0 : index
    %c0_113 = arith.constant 0 : index
    %87 = vector.load %arg5[%c0_110, %c0_111, %c0_112, %c0_113] : memref<1x16x16x128xbf16, #tpu.memory_space<vmem>>, vector<1x16x16x128xbf16>
    %88 = vector.shape_cast %87 : vector<1x16x16x128xbf16> to vector<16x16x128xbf16>
    %89 = vector.shape_cast %86 : vector<16x16x128xbf16> to vector<1x16x16x128xbf16>
    tpu.vector_store %arg5[%c0_110, %c0_111, %c0_112, %c0_113], %89 {strides = array<i32>} : memref<1x16x16x128xbf16, #tpu.memory_space<vmem>>, vector<1x16x16x128xbf16>,
    return
  }
  func.func @transform_0(%arg0: i32, %arg1: i32) -> (i32, i32, i32, i32, i32) {
    %c0_i32 = arith.constant 0 : i32
    %c0_i32_0 = arith.constant 0 : i32
    %c0_i32_1 = arith.constant 0 : i32
    %c0_i32_2 = arith.constant 0 : i32
    return %arg0, %arg1, %c0_i32, %c0_i32_0, %c0_i32_1 : i32, i32, i32, i32, i32
  }
  func.func @transform_1(%arg0: i32, %arg1: i32) -> (i32, i32, i32) {
    %c0_i32 = arith.constant 0 : i32
    %c0_i32_0 = arith.constant 0 : i32
    %c0_i32_1 = arith.constant 0 : i32
    %c0_i32_2 = arith.constant 0 : i32
    return %c0_i32, %c0_i32_0, %c0_i32_1 : i32, i32, i32
  }
  func.func @transform_2(%arg0: i32, %arg1: i32) -> (i32, i32) {
    %c0_i32 = arith.constant 0 : i32
    %c0_i32_0 = arith.constant 0 : i32
    %c0_i32_1 = arith.constant 0 : i32
    return %c0_i32, %c0_i32_0 : i32, i32
  }
  func.func @transform_3(%arg0: i32, %arg1: i32) -> (i32, i32, i32, i32) {
    %c0_i32 = arith.constant 0 : i32
    %c0_i32_0 = arith.constant 0 : i32
    %c0_i32_1 = arith.constant 0 : i32
    return %arg0, %arg1, %c0_i32, %c0_i32_0 : i32, i32, i32, i32
  }
}

module attributes {stable_mosaic.version = 11 : i64} {
  func.func @kernel(%arg0: i32, %arg1: i32, %arg2: memref<1x1x18x18x128xbf16, #tpu.memory_space<vmem>>, %arg3: memref<9x128x128xbf16, #tpu.memory_space<vmem>>, %arg4: memref<1x128xf32, #tpu.memory_space<vmem>>, %arg5: memref<1x16x16x128xf32, #tpu.memory_space<vmem>>, %arg6: memref<256x128xf32, #tpu.memory_space<vmem>>) attributes {dimension_semantics = [#tpu.dimension_semantics<parallel>, #tpu.dimension_semantics<parallel>], iteration_bounds = array<i64: 2, 1>, scalar_prefetch = 0 : i64, scratch_operands = 1 : i64, tpu.core_type = #tpu.core_type<tc>, window_params = [{transform_indices = @transform_0, window_bounds = array<i64: 1, 1, 18, 18, 128>}, {pipeline_mode = #tpu.pipeline_mode<synchronous>, transform_indices = @transform_1, window_bounds = array<i64: 9, 128, 128>}, {pipeline_mode = #tpu.pipeline_mode<synchronous>, transform_indices = @transform_2, window_bounds = array<i64: 1, 128>}, {transform_indices = @transform_3, window_bounds = array<i64: 1, 16, 16, 128>}]} {
    %c0 = arith.constant 0 : index
    %c0_0 = arith.constant 0 : index
    %c0_1 = arith.constant 0 : index
    %c0_2 = arith.constant 0 : index
    %c0_3 = arith.constant 0 : index
    %0 = vector.load %arg2[%c0, %c0_0, %c0_1, %c0_2, %c0_3] : memref<1x1x18x18x128xbf16, #tpu.memory_space<vmem>>, vector<1x1x16x16x128xbf16>
    %1 = vector.shape_cast %0 : vector<1x1x16x16x128xbf16> to vector<16x16x128xbf16>
    %2 = vector.shape_cast %1 : vector<16x16x128xbf16> to vector<256x128xbf16>
    %c0_4 = arith.constant 0 : index
    %c0_5 = arith.constant 0 : index
    %c0_6 = arith.constant 0 : index
    %3 = vector.load %arg3[%c0_4, %c0_5, %c0_6] : memref<9x128x128xbf16, #tpu.memory_space<vmem>>, vector<1x128x128xbf16>
    %4 = vector.shape_cast %3 : vector<1x128x128xbf16> to vector<128x128xbf16>
    %cst = arith.constant dense<0.000000e+00> : vector<256x128xf32>
    %5 = tpu.matmul %2, %4, %cst {dimension_numbers = #tpu.dot_dimension_numbers<[1], [0], [0], [1], [0, 0, 1, 1], [], []>} : vector<256x128xbf16>, vector<128x128xbf16>, vector<256x128xf32> -> vector<256x128xf32>
    %c0_7 = arith.constant 0 : index
    %c0_8 = arith.constant 0 : index
    %6 = vector.load %arg6[%c0_7, %c0_8] : memref<256x128xf32, #tpu.memory_space<vmem>>, vector<256x128xf32>
    tpu.vector_store %arg6[%c0_7, %c0_8], %5 {strides = array<i32>} : memref<256x128xf32, #tpu.memory_space<vmem>>, vector<256x128xf32>,
    %c0_9 = arith.constant 0 : index
    %c0_10 = arith.constant 0 : index
    %c0_11 = arith.constant 0 : index
    %c1 = arith.constant 1 : index
    %c0_12 = arith.constant 0 : index
    %7 = vector.load %arg2[%c0_9, %c0_10, %c0_11, %c1, %c0_12] : memref<1x1x18x18x128xbf16, #tpu.memory_space<vmem>>, vector<1x1x16x16x128xbf16>
    %8 = vector.shape_cast %7 : vector<1x1x16x16x128xbf16> to vector<16x16x128xbf16>
    %9 = vector.shape_cast %8 : vector<16x16x128xbf16> to vector<256x128xbf16>
    %c1_13 = arith.constant 1 : index
    %c0_14 = arith.constant 0 : index
    %c0_15 = arith.constant 0 : index
    %10 = vector.load %arg3[%c1_13, %c0_14, %c0_15] : memref<9x128x128xbf16, #tpu.memory_space<vmem>>, vector<1x128x128xbf16>
    %11 = vector.shape_cast %10 : vector<1x128x128xbf16> to vector<128x128xbf16>
    %cst_16 = arith.constant dense<0.000000e+00> : vector<256x128xf32>
    %12 = tpu.matmul %9, %11, %cst_16 {dimension_numbers = #tpu.dot_dimension_numbers<[1], [0], [0], [1], [0, 0, 1, 1], [], []>} : vector<256x128xbf16>, vector<128x128xbf16>, vector<256x128xf32> -> vector<256x128xf32>
    %c0_17 = arith.constant 0 : index
    %c0_18 = arith.constant 0 : index
    %13 = vector.load %arg6[%c0_17, %c0_18] : memref<256x128xf32, #tpu.memory_space<vmem>>, vector<256x128xf32>
    %14 = arith.addf %13, %12 : vector<256x128xf32>
    %c0_19 = arith.constant 0 : index
    %c0_20 = arith.constant 0 : index
    %15 = vector.load %arg6[%c0_19, %c0_20] : memref<256x128xf32, #tpu.memory_space<vmem>>, vector<256x128xf32>
    tpu.vector_store %arg6[%c0_19, %c0_20], %14 {strides = array<i32>} : memref<256x128xf32, #tpu.memory_space<vmem>>, vector<256x128xf32>,
    %c0_21 = arith.constant 0 : index
    %c0_22 = arith.constant 0 : index
    %c0_23 = arith.constant 0 : index
    %c2 = arith.constant 2 : index
    %c0_24 = arith.constant 0 : index
    %16 = vector.load %arg2[%c0_21, %c0_22, %c0_23, %c2, %c0_24] : memref<1x1x18x18x128xbf16, #tpu.memory_space<vmem>>, vector<1x1x16x16x128xbf16>
    %17 = vector.shape_cast %16 : vector<1x1x16x16x128xbf16> to vector<16x16x128xbf16>
    %18 = vector.shape_cast %17 : vector<16x16x128xbf16> to vector<256x128xbf16>
    %c2_25 = arith.constant 2 : index
    %c0_26 = arith.constant 0 : index
    %c0_27 = arith.constant 0 : index
    %19 = vector.load %arg3[%c2_25, %c0_26, %c0_27] : memref<9x128x128xbf16, #tpu.memory_space<vmem>>, vector<1x128x128xbf16>
    %20 = vector.shape_cast %19 : vector<1x128x128xbf16> to vector<128x128xbf16>
    %cst_28 = arith.constant dense<0.000000e+00> : vector<256x128xf32>
    %21 = tpu.matmul %18, %20, %cst_28 {dimension_numbers = #tpu.dot_dimension_numbers<[1], [0], [0], [1], [0, 0, 1, 1], [], []>} : vector<256x128xbf16>, vector<128x128xbf16>, vector<256x128xf32> -> vector<256x128xf32>
    %c0_29 = arith.constant 0 : index
    %c0_30 = arith.constant 0 : index
    %22 = vector.load %arg6[%c0_29, %c0_30] : memref<256x128xf32, #tpu.memory_space<vmem>>, vector<256x128xf32>
    %23 = arith.addf %22, %21 : vector<256x128xf32>
    %c0_31 = arith.constant 0 : index
    %c0_32 = arith.constant 0 : index
    %24 = vector.load %arg6[%c0_31, %c0_32] : memref<256x128xf32, #tpu.memory_space<vmem>>, vector<256x128xf32>
    tpu.vector_store %arg6[%c0_31, %c0_32], %23 {strides = array<i32>} : memref<256x128xf32, #tpu.memory_space<vmem>>, vector<256x128xf32>,
    %c0_33 = arith.constant 0 : index
    %c0_34 = arith.constant 0 : index
    %c1_35 = arith.constant 1 : index
    %c0_36 = arith.constant 0 : index
    %c0_37 = arith.constant 0 : index
    %25 = vector.load %arg2[%c0_33, %c0_34, %c1_35, %c0_36, %c0_37] : memref<1x1x18x18x128xbf16, #tpu.memory_space<vmem>>, vector<1x1x16x16x128xbf16>
    %26 = vector.shape_cast %25 : vector<1x1x16x16x128xbf16> to vector<16x16x128xbf16>
    %27 = vector.shape_cast %26 : vector<16x16x128xbf16> to vector<256x128xbf16>
    %c3 = arith.constant 3 : index
    %c0_38 = arith.constant 0 : index
    %c0_39 = arith.constant 0 : index
    %28 = vector.load %arg3[%c3, %c0_38, %c0_39] : memref<9x128x128xbf16, #tpu.memory_space<vmem>>, vector<1x128x128xbf16>
    %29 = vector.shape_cast %28 : vector<1x128x128xbf16> to vector<128x128xbf16>
    %cst_40 = arith.constant dense<0.000000e+00> : vector<256x128xf32>
    %30 = tpu.matmul %27, %29, %cst_40 {dimension_numbers = #tpu.dot_dimension_numbers<[1], [0], [0], [1], [0, 0, 1, 1], [], []>} : vector<256x128xbf16>, vector<128x128xbf16>, vector<256x128xf32> -> vector<256x128xf32>
    %c0_41 = arith.constant 0 : index
    %c0_42 = arith.constant 0 : index
    %31 = vector.load %arg6[%c0_41, %c0_42] : memref<256x128xf32, #tpu.memory_space<vmem>>, vector<256x128xf32>
    %32 = arith.addf %31, %30 : vector<256x128xf32>
    %c0_43 = arith.constant 0 : index
    %c0_44 = arith.constant 0 : index
    %33 = vector.load %arg6[%c0_43, %c0_44] : memref<256x128xf32, #tpu.memory_space<vmem>>, vector<256x128xf32>
    tpu.vector_store %arg6[%c0_43, %c0_44], %32 {strides = array<i32>} : memref<256x128xf32, #tpu.memory_space<vmem>>, vector<256x128xf32>,
    %c0_45 = arith.constant 0 : index
    %c0_46 = arith.constant 0 : index
    %c1_47 = arith.constant 1 : index
    %c1_48 = arith.constant 1 : index
    %c0_49 = arith.constant 0 : index
    %34 = vector.load %arg2[%c0_45, %c0_46, %c1_47, %c1_48, %c0_49] : memref<1x1x18x18x128xbf16, #tpu.memory_space<vmem>>, vector<1x1x16x16x128xbf16>
    %35 = vector.shape_cast %34 : vector<1x1x16x16x128xbf16> to vector<16x16x128xbf16>
    %36 = vector.shape_cast %35 : vector<16x16x128xbf16> to vector<256x128xbf16>
    %c4 = arith.constant 4 : index
    %c0_50 = arith.constant 0 : index
    %c0_51 = arith.constant 0 : index
    %37 = vector.load %arg3[%c4, %c0_50, %c0_51] : memref<9x128x128xbf16, #tpu.memory_space<vmem>>, vector<1x128x128xbf16>
    %38 = vector.shape_cast %37 : vector<1x128x128xbf16> to vector<128x128xbf16>
    %cst_52 = arith.constant dense<0.000000e+00> : vector<256x128xf32>
    %39 = tpu.matmul %36, %38, %cst_52 {dimension_numbers = #tpu.dot_dimension_numbers<[1], [0], [0], [1], [0, 0, 1, 1], [], []>} : vector<256x128xbf16>, vector<128x128xbf16>, vector<256x128xf32> -> vector<256x128xf32>
    %c0_53 = arith.constant 0 : index
    %c0_54 = arith.constant 0 : index
    %40 = vector.load %arg6[%c0_53, %c0_54] : memref<256x128xf32, #tpu.memory_space<vmem>>, vector<256x128xf32>
    %41 = arith.addf %40, %39 : vector<256x128xf32>
    %c0_55 = arith.constant 0 : index
    %c0_56 = arith.constant 0 : index
    %42 = vector.load %arg6[%c0_55, %c0_56] : memref<256x128xf32, #tpu.memory_space<vmem>>, vector<256x128xf32>
    tpu.vector_store %arg6[%c0_55, %c0_56], %41 {strides = array<i32>} : memref<256x128xf32, #tpu.memory_space<vmem>>, vector<256x128xf32>,
    %c0_57 = arith.constant 0 : index
    %c0_58 = arith.constant 0 : index
    %c1_59 = arith.constant 1 : index
    %c2_60 = arith.constant 2 : index
    %c0_61 = arith.constant 0 : index
    %43 = vector.load %arg2[%c0_57, %c0_58, %c1_59, %c2_60, %c0_61] : memref<1x1x18x18x128xbf16, #tpu.memory_space<vmem>>, vector<1x1x16x16x128xbf16>
    %44 = vector.shape_cast %43 : vector<1x1x16x16x128xbf16> to vector<16x16x128xbf16>
    %45 = vector.shape_cast %44 : vector<16x16x128xbf16> to vector<256x128xbf16>
    %c5 = arith.constant 5 : index
    %c0_62 = arith.constant 0 : index
    %c0_63 = arith.constant 0 : index
    %46 = vector.load %arg3[%c5, %c0_62, %c0_63] : memref<9x128x128xbf16, #tpu.memory_space<vmem>>, vector<1x128x128xbf16>
    %47 = vector.shape_cast %46 : vector<1x128x128xbf16> to vector<128x128xbf16>
    %cst_64 = arith.constant dense<0.000000e+00> : vector<256x128xf32>
    %48 = tpu.matmul %45, %47, %cst_64 {dimension_numbers = #tpu.dot_dimension_numbers<[1], [0], [0], [1], [0, 0, 1, 1], [], []>} : vector<256x128xbf16>, vector<128x128xbf16>, vector<256x128xf32> -> vector<256x128xf32>
    %c0_65 = arith.constant 0 : index
    %c0_66 = arith.constant 0 : index
    %49 = vector.load %arg6[%c0_65, %c0_66] : memref<256x128xf32, #tpu.memory_space<vmem>>, vector<256x128xf32>
    %50 = arith.addf %49, %48 : vector<256x128xf32>
    %c0_67 = arith.constant 0 : index
    %c0_68 = arith.constant 0 : index
    %51 = vector.load %arg6[%c0_67, %c0_68] : memref<256x128xf32, #tpu.memory_space<vmem>>, vector<256x128xf32>
    tpu.vector_store %arg6[%c0_67, %c0_68], %50 {strides = array<i32>} : memref<256x128xf32, #tpu.memory_space<vmem>>, vector<256x128xf32>,
    %c0_69 = arith.constant 0 : index
    %c0_70 = arith.constant 0 : index
    %c2_71 = arith.constant 2 : index
    %c0_72 = arith.constant 0 : index
    %c0_73 = arith.constant 0 : index
    %52 = vector.load %arg2[%c0_69, %c0_70, %c2_71, %c0_72, %c0_73] : memref<1x1x18x18x128xbf16, #tpu.memory_space<vmem>>, vector<1x1x16x16x128xbf16>
    %53 = vector.shape_cast %52 : vector<1x1x16x16x128xbf16> to vector<16x16x128xbf16>
    %54 = vector.shape_cast %53 : vector<16x16x128xbf16> to vector<256x128xbf16>
    %c6 = arith.constant 6 : index
    %c0_74 = arith.constant 0 : index
    %c0_75 = arith.constant 0 : index
    %55 = vector.load %arg3[%c6, %c0_74, %c0_75] : memref<9x128x128xbf16, #tpu.memory_space<vmem>>, vector<1x128x128xbf16>
    %56 = vector.shape_cast %55 : vector<1x128x128xbf16> to vector<128x128xbf16>
    %cst_76 = arith.constant dense<0.000000e+00> : vector<256x128xf32>
    %57 = tpu.matmul %54, %56, %cst_76 {dimension_numbers = #tpu.dot_dimension_numbers<[1], [0], [0], [1], [0, 0, 1, 1], [], []>} : vector<256x128xbf16>, vector<128x128xbf16>, vector<256x128xf32> -> vector<256x128xf32>
    %c0_77 = arith.constant 0 : index
    %c0_78 = arith.constant 0 : index
    %58 = vector.load %arg6[%c0_77, %c0_78] : memref<256x128xf32, #tpu.memory_space<vmem>>, vector<256x128xf32>
    %59 = arith.addf %58, %57 : vector<256x128xf32>
    %c0_79 = arith.constant 0 : index
    %c0_80 = arith.constant 0 : index
    %60 = vector.load %arg6[%c0_79, %c0_80] : memref<256x128xf32, #tpu.memory_space<vmem>>, vector<256x128xf32>
    tpu.vector_store %arg6[%c0_79, %c0_80], %59 {strides = array<i32>} : memref<256x128xf32, #tpu.memory_space<vmem>>, vector<256x128xf32>,
    %c0_81 = arith.constant 0 : index
    %c0_82 = arith.constant 0 : index
    %c2_83 = arith.constant 2 : index
    %c1_84 = arith.constant 1 : index
    %c0_85 = arith.constant 0 : index
    %61 = vector.load %arg2[%c0_81, %c0_82, %c2_83, %c1_84, %c0_85] : memref<1x1x18x18x128xbf16, #tpu.memory_space<vmem>>, vector<1x1x16x16x128xbf16>
    %62 = vector.shape_cast %61 : vector<1x1x16x16x128xbf16> to vector<16x16x128xbf16>
    %63 = vector.shape_cast %62 : vector<16x16x128xbf16> to vector<256x128xbf16>
    %c7 = arith.constant 7 : index
    %c0_86 = arith.constant 0 : index
    %c0_87 = arith.constant 0 : index
    %64 = vector.load %arg3[%c7, %c0_86, %c0_87] : memref<9x128x128xbf16, #tpu.memory_space<vmem>>, vector<1x128x128xbf16>
    %65 = vector.shape_cast %64 : vector<1x128x128xbf16> to vector<128x128xbf16>
    %cst_88 = arith.constant dense<0.000000e+00> : vector<256x128xf32>
    %66 = tpu.matmul %63, %65, %cst_88 {dimension_numbers = #tpu.dot_dimension_numbers<[1], [0], [0], [1], [0, 0, 1, 1], [], []>} : vector<256x128xbf16>, vector<128x128xbf16>, vector<256x128xf32> -> vector<256x128xf32>
    %c0_89 = arith.constant 0 : index
    %c0_90 = arith.constant 0 : index
    %67 = vector.load %arg6[%c0_89, %c0_90] : memref<256x128xf32, #tpu.memory_space<vmem>>, vector<256x128xf32>
    %68 = arith.addf %67, %66 : vector<256x128xf32>
    %c0_91 = arith.constant 0 : index
    %c0_92 = arith.constant 0 : index
    %69 = vector.load %arg6[%c0_91, %c0_92] : memref<256x128xf32, #tpu.memory_space<vmem>>, vector<256x128xf32>
    tpu.vector_store %arg6[%c0_91, %c0_92], %68 {strides = array<i32>} : memref<256x128xf32, #tpu.memory_space<vmem>>, vector<256x128xf32>,
    %c0_93 = arith.constant 0 : index
    %c0_94 = arith.constant 0 : index
    %c2_95 = arith.constant 2 : index
    %c2_96 = arith.constant 2 : index
    %c0_97 = arith.constant 0 : index
    %70 = vector.load %arg2[%c0_93, %c0_94, %c2_95, %c2_96, %c0_97] : memref<1x1x18x18x128xbf16, #tpu.memory_space<vmem>>, vector<1x1x16x16x128xbf16>
    %71 = vector.shape_cast %70 : vector<1x1x16x16x128xbf16> to vector<16x16x128xbf16>
    %72 = vector.shape_cast %71 : vector<16x16x128xbf16> to vector<256x128xbf16>
    %c8 = arith.constant 8 : index
    %c0_98 = arith.constant 0 : index
    %c0_99 = arith.constant 0 : index
    %73 = vector.load %arg3[%c8, %c0_98, %c0_99] : memref<9x128x128xbf16, #tpu.memory_space<vmem>>, vector<1x128x128xbf16>
    %74 = vector.shape_cast %73 : vector<1x128x128xbf16> to vector<128x128xbf16>
    %cst_100 = arith.constant dense<0.000000e+00> : vector<256x128xf32>
    %75 = tpu.matmul %72, %74, %cst_100 {dimension_numbers = #tpu.dot_dimension_numbers<[1], [0], [0], [1], [0, 0, 1, 1], [], []>} : vector<256x128xbf16>, vector<128x128xbf16>, vector<256x128xf32> -> vector<256x128xf32>
    %c0_101 = arith.constant 0 : index
    %c0_102 = arith.constant 0 : index
    %76 = vector.load %arg6[%c0_101, %c0_102] : memref<256x128xf32, #tpu.memory_space<vmem>>, vector<256x128xf32>
    %77 = arith.addf %76, %75 : vector<256x128xf32>
    %c0_103 = arith.constant 0 : index
    %c0_104 = arith.constant 0 : index
    %78 = vector.load %arg6[%c0_103, %c0_104] : memref<256x128xf32, #tpu.memory_space<vmem>>, vector<256x128xf32>
    tpu.vector_store %arg6[%c0_103, %c0_104], %77 {strides = array<i32>} : memref<256x128xf32, #tpu.memory_space<vmem>>, vector<256x128xf32>,
    %c0_105 = arith.constant 0 : index
    %c0_106 = arith.constant 0 : index
    %79 = vector.load %arg6[%c0_105, %c0_106] : memref<256x128xf32, #tpu.memory_space<vmem>>, vector<256x128xf32>
    %c0_107 = arith.constant 0 : index
    %c0_108 = arith.constant 0 : index
    %80 = vector.load %arg4[%c0_107, %c0_108] : memref<1x128xf32, #tpu.memory_space<vmem>>, vector<1x128xf32>
    %81 = vector.broadcast %80 : vector<1x128xf32> to vector<256x128xf32>
    %82 = arith.addf %79, %81 : vector<256x128xf32>
    %cst_109 = arith.constant 0.000000e+00 : f32
    %83 = vector.broadcast %cst_109 : f32 to vector<256x128xf32>
    %84 = arith.maximumf %82, %83 : vector<256x128xf32>
    %85 = vector.shape_cast %84 : vector<256x128xf32> to vector<16x16x128xf32>
    %c0_110 = arith.constant 0 : index
    %c0_111 = arith.constant 0 : index
    %c0_112 = arith.constant 0 : index
    %c0_113 = arith.constant 0 : index
    %86 = vector.load %arg5[%c0_110, %c0_111, %c0_112, %c0_113] : memref<1x16x16x128xf32, #tpu.memory_space<vmem>>, vector<1x16x16x128xf32>
    %87 = vector.shape_cast %86 : vector<1x16x16x128xf32> to vector<16x16x128xf32>
    %88 = vector.shape_cast %85 : vector<16x16x128xf32> to vector<1x16x16x128xf32>
    tpu.vector_store %arg5[%c0_110, %c0_111, %c0_112, %c0_113], %88 {strides = array<i32>} : memref<1x16x16x128xf32, #tpu.memory_space<vmem>>, vector<1x16x16x128xf32>,
    return
  }
  func.func @transform_0(%arg0: i32, %arg1: i32) -> (i32, i32, i32, i32, i32) {
    %c0_i32 = arith.constant 0 : i32
    %c0_i32_0 = arith.constant 0 : i32
    %c0_i32_1 = arith.constant 0 : i32
    %c0_i32_2 = arith.constant 0 : i32
    return %arg0, %arg1, %c0_i32, %c0_i32_0, %c0_i32_1 : i32, i32, i32, i32, i32
  }
  func.func @transform_1(%arg0: i32, %arg1: i32) -> (i32, i32, i32) {
    %c0_i32 = arith.constant 0 : i32
    %c0_i32_0 = arith.constant 0 : i32
    %c0_i32_1 = arith.constant 0 : i32
    %c0_i32_2 = arith.constant 0 : i32
    return %c0_i32, %c0_i32_0, %c0_i32_1 : i32, i32, i32
  }
  func.func @transform_2(%arg0: i32, %arg1: i32) -> (i32, i32) {
    %c0_i32 = arith.constant 0 : i32
    %c0_i32_0 = arith.constant 0 : i32
    %c0_i32_1 = arith.constant 0 : i32
    return %c0_i32, %c0_i32_0 : i32, i32
  }
  func.func @transform_3(%arg0: i32, %arg1: i32) -> (i32, i32, i32, i32) {
    %c0_i32 = arith.constant 0 : i32
    %c0_i32_0 = arith.constant 0 : i32
    %c0_i32_1 = arith.constant 0 : i32
    return %arg0, %arg1, %c0_i32, %c0_i32_0 : i32, i32, i32, i32
  }
}

</mosaic_0001>

<bundles_post_ra>
// kernel: double_conv_forward.2
= control target key start
LH: loop header
LB: loop body
LE: loop exit
PB: predicated region body
PF: predicated region fallthrough
CT: control target
= control target key end

     0   :  { %s7465_s12 = smov 0   ;;  %s7467_s13 = smov 0   ;;  %s8820_s0 = inlined_call_operand.vmem [shape: bf16[2,1,18,18,4], index: 0, kind: input, shape index: {}]   ;;  %s8821_s1 = inlined_call_operand.vmem [shape: bf16[9,4,128], index: 1, kind: input, shape index: {}]   ;;  %s8822_s2 = inlined_call_operand.vmem [shape: f32[1,128], index: 2, kind: input, shape index: {}]   ;;  %s8823_s3 = inlined_call_operand.vmem [shape: bf16[2,16,16,128], index: 3, kind: output, shape index: {}]  }
   0x1   :  { %s7469_s14 = smov 0  }
   0x2 LB: > { %s25_s15 = sadd.s32 1, %s7439_s13  ;;  %p5853_p0 = scmp.ge.s32.totalorder %s7443_s14, 1  ;;  %s7443_s14 = sphi %s7469_s14, %s13_s14   ;;  %s7439_s13 = sphi %s7467_s13, %s8829_s13   ;;  %s7435_s12 = sphi %s7465_s12, %s8828_s12  }
   0x3   : > { %p27_p1 = scmp.ge.s32.totalorder %s25_s15, 2  ;;  %p157_p2 = scmp.lt.s32.totalorder %s7443_s14, 3 }
   0x5   : > { %s8831_s15 = smov (%p27_p1, %s25_s15), 0  ;;  %p158_p3 = pnand %p5853_p0, %p157_p2 }
   0x6   : > { %v243_v0 = vld [vmem:[%s8821_s1] sm:$0x3] (!%p158_p3)  ;;  %vm373_vm0 = vcmask (!%p158_p3), 1041408   ;;  %p190_p4 = scmp.lt.s32.totalorder (!%p158_p3), %s7435_s12, 1  ;;  %v6084_v2 = vld [vmem:[%s8821_s1 + $0x8] sm:$0x3] (!%p158_p3) }
   0x7   : > { %161 = sbr.rel (%p158_p3) target bundleno = 545 (0x221), region = 32  ;;  %7337 = vmatprep.subr.msk.bf16.mxu1 (!%p158_p3), %vm373_vm0, %v243_v0  ;;  %v375_v1 = vsel (!%p158_p3), %vm373_vm0, %v243_v0, 0  ;;  %v5889_v3 = vld [vmem:[%s8821_s1 + $0x2] sm:$0x3] (!%p158_p3)  ;;  %7341 = vmatprep.subr.msk.bf16.mxu0 (!%p158_p3), %vm373_vm0, %v6084_v2  ;;  %v7498_v4 = vsel (!%p158_p3), %vm373_vm0, %v6084_v2, 0  ;;  %vm324_vm1 = vcmask (!%p158_p3), 31744  }
   0x8   : > { %6774 = vmatpush3.bf16.msra.mxu1 (!%p158_p3), %v375_v1  ;;  %6910 = vmatpush3.bf16.msra.mxu0 (!%p158_p3), %v7498_v4  ;;  %v6181_v5 = vld [vmem:[%s8821_s1 + $0xa] sm:$0x3] (!%p158_p3)  ;;  %vm618_vm2 = vsmask.f32 (!%p158_p3), 3328  ;;  %vm619_vm3 = vsmask.f32 (!%p158_p3), 7440 }
   0x9   : > { %7338 = vmatprep.subr.msk.bf16.mxu1 (!%p158_p3), %vm373_vm0, %v5889_v3  ;;  %7343 = vmatprep.subr.msk.bf16.mxu0 (!%p158_p3), %vm373_vm0, %v6181_v5  ;;  %v7515_v6 = vld [vmem:[%s8821_s1 + $0xc] sm:$0x3] (!%p158_p3)  ;;  %v5938_v7 = vld [vmem:[%s8821_s1 + $0x4] sm:$0x3] (!%p158_p3)  ;;  %v7523_v8 = vld [vmem:[%s8821_s1 + $0xe] sm:$0x3] (!%p158_p3) }
   0xa   : > { %v1104_v10 = vsel (!%p158_p3), %vm373_vm0, %v5889_v3, 0  ;;  %v7529_v12 = vsel (!%p158_p3), %vm373_vm0, %v6181_v5, 0  ;;  %v7535_v14 = vsel (!%p158_p3), %vm373_vm0, %v7515_v6, 0  ;;  %v7539_v15 = vsel (!%p158_p3), %vm373_vm0, %v5938_v7, 0  ;;  %vm7557_vm4 = vmor (!%p158_p3), %vm618_vm2, %vm619_vm3 }
   0xb   : > { %v7543_v16 = vsel (!%p158_p3), %vm373_vm0, %v7523_v8, 0  ;;  %vm1459_vm5 = vcmask (!%p158_p3), 1042432   ;;  %vm1460_vm6 = vcmask (!%p158_p3), 1046532  }
   0xc   : > { %vm7632_vm7 = vmor (!%p158_p3), %vm1459_vm5, %vm1460_vm6 }
   0xe   : > { %s8833_s12 = smov (!%p190_p4, %s7435_s12), 1 }
   0xf   : > { %s7347_s24 = smul.u32 216, %s8833_s12  ;;  %s6492_s19 = sshll.u32 %s8833_s12, 7 }
  0x10   : > { %s8761_s22 = scalar_lea.vmem %s8823_s3, %s6492_s19 }
  0x11   : > { %s7510_s27 = scalar_lea.vmem %s8820_s0, %s7347_s24 }
  0x12   : > { %v7372_v9 = vld [vmem:[%s7510_s27] sm:$0xff]   ;;  %v7373_v11 = vld [vmem:[%s7510_s27 + $0xc] sm:$0xff]   ;;  %v7374_v13 = vld [vmem:[%s7510_s27 + $0x18] sm:$0xff]  }
  0x13   : > { %6775 = vmatprep.mubr.msk.bf16.mxu1 %vm324_vm1, %v7372_v9  ;;  %v6036_v17 = vld [vmem:[%s7510_s27 + $0xc] sm:$0xf]  ;;  %v6037_v18 = vld [vmem:[%s7510_s27 + $0x10] sm:$0xf]  ;;  %v6038_v19 = vld [vmem:[%s7510_s27 + $0x14] sm:$0x1] }
  0x14   : > { %6776 = vmatmul.mubr.msk.bf16.vlgmr.msra.gmra.mrb[0].mxu1 %vm324_vm1, %v7373_v11  ;;  %v7375_v20 = vld [vmem:[%s7510_s27 + $0x24] sm:$0xff]   ;;  %v2404_v21 = vshrl.u32 %v6036_v17, 16  ;;  %v2407_v22 = vshll.u32 %v6036_v17, 16  ;;  %v2413_v23 = vshll.u32 %v6037_v18, 16  ;;  %v2417_v24 = vshrl.u32 %v6037_v18, 16  ;;  %v7376_v42 = vld [vmem:[%s7510_s27 + $0x30] sm:$0xff]  }
  0x15   : > { %6779 = vmatprep.mubr.msk.bf16.mxu1 %vm324_vm1, %v7374_v13  ;;  %6808 = vmatpush3.bf16.msra.mxu1 %v1104_v10  ;;  %v6039_v25 = vld [vmem:[%s7510_s27 + $0x18] sm:$0xf]  ;;  %v2423_v26 = vshll.u32 %v6038_v19, 16  ;;  %v6040_v27 = vld [vmem:[%s7510_s27 + $0x1c] sm:$0xf] }
  0x16   : > { %7339 = vmatprep.subr.msk.bf16.mxu1 %vm373_vm0, %v5938_v7  ;;  %v6041_v28 = vld [vmem:[%s7510_s27 + $0x20] sm:$0x1]  ;;  %v2428_v29 = vshrl.u32 %v6039_v25, 16  ;;  %v2406_v30 = vrot.slane %v2404_v21, 4  ;;  %v2409_v31 = vrot.slane %v2407_v22, 5  ;;  %v2415_v32 = vrot.slane %v2413_v23, 5 }
  0x17   : > { %v2419_v33 = vrot.slane %v2417_v24, 4  ;;  %v2425_v34 = vrot.slane %v2423_v26, 5  ;;  %v2431_v36 = vshll.u32 %v6039_v25, 16  ;;  %v2437_v37 = vshll.u32 %v6040_v27, 16  ;;  %v6042_v46 = vld [vmem:[%s7510_s27 + $0x24] sm:$0xf] }
  0x18   : > { %v2430_v35 = vrot.slane %v2428_v29, 4  ;;  %v2410_v38 = vor.u32 %v2409_v31, %v2406_v30  ;;  %v2441_v40 = vshrl.u32 %v6040_v27, 16  ;;  %v2447_v41 = vshll.u32 %v6041_v28, 16  ;;  %v6043_v51 = vld [vmem:[%s7510_s27 + $0x28] sm:$0xf]  ;;  %v7377_v60 = vld [vmem:[%s7510_s27 + $0x3c] sm:$0xff]  }
  0x19   : > { %v2420_v39 = vor.u32 %v2419_v33, %v2415_v32  ;;  %v2433_v44 = vrot.slane %v2431_v36, 5  ;;  %v2439_v45 = vrot.slane %v2437_v37, 5  ;;  %v6044_v53 = vld [vmem:[%s7510_s27 + $0x2c] sm:$0x1]  ;;  %v2452_v54 = vshrl.u32 %v6042_v46, 16 }
  0x1a   : > { %v2411_v47 = vrot.slane %v2410_v38, 4  ;;  %v2443_v49 = vrot.slane %v2441_v40, 4  ;;  %v2449_v50 = vrot.slane %v2447_v41, 5  ;;  %v2455_v55 = vshll.u32 %v6042_v46, 16  ;;  %v6045_v62 = vld [vmem:[%s7510_s27 + $0x30] sm:$0xf] }
  0x1b   : > { %v2421_v48 = vrot.slane %v2420_v39, 4  ;;  %v2434_v52 = vor.u32 %v2433_v44, %v2430_v35  ;;  %v2461_v56 = vshll.u32 %v6043_v51, 16  ;;  %v2465_v61 = vshrl.u32 %v6043_v51, 16  ;;  %v6046_v63 = vld [vmem:[%s7510_s27 + $0x34] sm:$0xf]  ;;  %v7378_v7 = vld [vmem:[%s7510_s27 + $0x48] sm:$0xff]  }
  0x1c   : > { %6780 = vmatmul.mubr.msk.bf16.gmra.mrb[4].mxu1 %vm324_vm1, %v7375_v20  ;;  %v2416_v57 = vsel %vm7557_vm4, %v2411_v47, %v2415_v32  ;;  %v2444_v59 = vor.u32 %v2443_v49, %v2439_v45  ;;  %v2454_v2 = vrot.slane %v2452_v54, 4  ;;  %v2457_v3 = vrot.slane %v2455_v55, 5  ;;  %v6047_v5 = vld [vmem:[%s7510_s27 + $0x38] sm:$0x1]  ;;  %v6048_v25 = vld [vmem:[%s7510_s27 + $0x3c] sm:$0xf] }
  0x1d   : > { %6783 = vmatprep.mubr.msk.bf16.mxu1 %vm324_vm1, %v7376_v42  ;;  %v2426_v58 = vsel %vm7557_vm4, %v2421_v48, %v2425_v34  ;;  %v2435_v1 = vrot.slane %v2434_v52, 4  ;;  %v2463_v10 = vrot.slane %v2461_v56, 5  ;;  %v2467_v11 = vrot.slane %v2465_v61, 4  ;;  %v6049_v30 = vld [vmem:[%s7510_s27 + $0x40] sm:$0xf]  ;;  %v7379_v49 = vld [vmem:[%s7510_s27 + $0x54] sm:$0xff]  }
  0x1e   : > { %v6085_v0 = vcombine.low %v2416_v57, %v2426_v58  ;;  %v2445_v9 = vrot.slane %v2444_v59, 4  ;;  %v2471_v13 = vshll.u32 %v6044_v53, 16  ;;  %v2458_v18 = vor.u32 %v2457_v3, %v2454_v2  ;;  %v6050_v37 = vld [vmem:[%s7510_s27 + $0x44] sm:$0x1]  ;;  %v6051_v40 = vld [vmem:[%s7510_s27 + $0x48] sm:$0xf] }
  0x1f   : > { %v2440_v17 = vsel %vm7557_vm4, %v2435_v1, %v2439_v45  ;;  %v2476_v19 = vshrl.u32 %v6045_v62, 16  ;;  %v2479_v20 = vshll.u32 %v6045_v62, 16  ;;  %v2468_v22 = vor.u32 %v2467_v11, %v2463_v10  ;;  %v6052_v46 = vld [vmem:[%s7510_s27 + $0x4c] sm:$0xf]  ;;  %v6053_v52 = vld [vmem:[%s7510_s27 + $0x50] sm:$0x1] }
  0x20   : > { %6911 = vmatprep.mubr.msk.bf16.mxu0 %vm324_vm1, %v6085_v0  ;;  %v2450_v21 = vsel %vm7557_vm4, %v2445_v9, %v2449_v50  ;;  %v2473_v23 = vrot.slane %v2471_v13, 5  ;;  %v2485_v24 = vshll.u32 %v6046_v63, 16  ;;  %v2459_v27 = vrot.slane %v2458_v18, 4  ;;  %v7380_v56 = vld [vmem:[%s7510_s27 + $0x60] sm:$0xff]   ;;  %v6055_v13 = vld [vmem:[%s7510_s27 + $0x58] sm:$0xf] }
  0x21   : > { %v6086_v26 = vcombine.low %v2440_v17, %v2450_v21  ;;  %v2478_v28 = vrot.slane %v2476_v19, 4  ;;  %v2481_v29 = vrot.slane %v2479_v20, 5  ;;  %v2469_v31 = vrot.slane %v2468_v22, 4  ;;  %v6056_v21 = vld [vmem:[%s7510_s27 + $0x5c] sm:$0x1] }
  0x22   : > { %v2487_v32 = vrot.slane %v2485_v24, 5  ;;  %v2489_v33 = vshrl.u32 %v6046_v63, 16  ;;  %v2495_v34 = vshll.u32 %v6047_v5, 16  ;;  %v2464_v35 = vsel %vm7557_vm4, %v2459_v27, %v2463_v10  ;;  %v6054_v5 = vld [vmem:[%s7510_s27 + $0x54] sm:$0xf] }
  0x23   : > { %6912 = vmatmul.mubr.msk.bf16.vlgmr.msra.gmra.mrb[0].mxu0 %vm324_vm1, %v6086_v26  ;;  %v2482_v36 = vor.u32 %v2481_v29, %v2478_v28  ;;  %v2500_v38 = vshrl.u32 %v6048_v25, 16  ;;  %v2503_v39 = vshll.u32 %v6048_v25, 16  ;;  %v2474_v41 = vsel %vm7557_vm4, %v2469_v31, %v2473_v23  ;;  %v6057_v22 = vld [vmem:[%s7510_s27 + $0x60] sm:$0xf]  ;;  %v6058_v27 = vld [vmem:[%s7510_s27 + $0x64] sm:$0xf] }
  0x24   : > { %6784 = vmatmul.mubr.msk.bf16.gmra.mrb[8].mxu1 %vm324_vm1, %v7377_v60  ;;  %6944 = vmatpush3.bf16.msra.mxu0 %v7529_v12  ;;  %v2491_v42 = vrot.slane %v2489_v33, 4  ;;  %v2497_v44 = vrot.slane %v2495_v34, 5  ;;  %v2509_v45 = vshll.u32 %v6049_v30, 16  ;;  %v6087_v47 = vcombine.low %v2464_v35, %v2474_v41 }
  0x25   : > { %6787 = vmatprep.mubr.msk.bf16.mxu1 %vm324_vm1, %v7378_v7  ;;  %v2483_v48 = vrot.slane %v2482_v36, 4  ;;  %v2502_v50 = vrot.slane %v2500_v38, 4  ;;  %v2505_v51 = vrot.slane %v2503_v39, 5  ;;  %7344 = vmatprep.subr.msk.bf16.mxu0 %vm373_vm0, %v7515_v6  ;;  %v2513_v12 = vshrl.u32 %v6049_v30, 16  ;;  %v7381_v30 = vld [vmem:[%s7510_s27 + $0x6c] sm:$0xff]   ;;  %v7382_v38 = vld [vmem:[%s7510_s27 + $0x78] sm:$0xff]  }
  0x26   : > { %v2492_v53 = vor.u32 %v2491_v42, %v2487_v32  ;;  %v2511_v54 = vrot.slane %v2509_v45, 5  ;;  %v2519_v55 = vshll.u32 %v6050_v37, 16  ;;  %6915 = vmatprep.mubr.msk.bf16.mxu0 %vm324_vm1, %v6087_v47  ;;  %v2524_v59 = vshrl.u32 %v6051_v40, 16  ;;  %v6059_v37 = vld [vmem:[%s7510_s27 + $0x68] sm:$0x1] }
  0x27   : > { %v2488_v57 = vsel %vm7557_vm4, %v2483_v48, %v2487_v32  ;;  %v2506_v58 = vor.u32 %v2505_v51, %v2502_v50  ;;  %v2527_v60 = vshll.u32 %v6051_v40, 16  ;;  %v2515_v62 = vrot.slane %v2513_v12, 4 }
  0x28   : > { %v2493_v61 = vrot.slane %v2492_v53, 4  ;;  %v2521_v63 = vrot.slane %v2519_v55, 5  ;;  %v2533_v0 = vshll.u32 %v6052_v46, 16  ;;  %v2526_v1 = vrot.slane %v2524_v59, 4  ;;  %v6121_v59 = vld [vmem:[%s7510_s27 + $0x1c] sm:$0xf] }
  0x29   : > { %v2507_v6 = vrot.slane %v2506_v58, 4  ;;  %v2529_v2 = vrot.slane %v2527_v60, 5  ;;  %v2537_v3 = vshrl.u32 %v6052_v46, 16  ;;  %v2516_v9 = vor.u32 %v2515_v62, %v2511_v54  ;;  %v6120_v58 = vld [vmem:[%s7510_s27 + $0x18] sm:$0xe] }
  0x2a   : > { %v2498_v7 = vsel %vm7557_vm4, %v2493_v61, %v2497_v44  ;;  %v2535_v10 = vrot.slane %v2533_v0, 5  ;;  %v2543_v11 = vshll.u32 %v6053_v52, 16  ;;  %v2548_v25 = vshrl.u32 %v6054_v5, 16  ;;  %v6117_v44 = vld [vmem:[%s7510_s27 + $0xc] sm:$0xe] }
  0x2b   : > { %v6088_v17 = vcombine.low %v2488_v57, %v2498_v7  ;;  %v2512_v18 = vsel %vm7557_vm4, %v2507_v6, %v2511_v54  ;;  %v2530_v19 = vor.u32 %v2529_v2, %v2526_v1  ;;  %v2539_v20 = vrot.slane %v2537_v3, 4  ;;  %v6119_v54 = vld [vmem:[%s7510_s27 + $0x14] sm:$0x1]  ;;  %v6122_v6 = vld [vmem:[%s7510_s27 + $0x20] sm:$0x1]  ;;  %v7383_v3 = vld [vmem:[%s7510_s27 + $0x84] sm:$0xff]  }
  0x2c   : > { %6788 = vmatmul.mubr.msk.bf16.gmra.mrb[12].mxu1 %vm324_vm1, %v7379_v49  ;;  %v2517_v23 = vrot.slane %v2516_v9, 4  ;;  %v2545_v24 = vrot.slane %v2543_v11, 5  ;;  %v2551_v26 = vshll.u32 %v6054_v5, 16  ;;  %v2557_v31 = vshll.u32 %v6055_v13, 16  ;;  %v6118_v49 = vld [vmem:[%s7510_s27 + $0x10] sm:$0xf] }
  0x2d   : > { %6791 = vmatprep.mubr.msk.bf16.mxu1 %vm324_vm1, %v7380_v56  ;;  %6916 = vmatmul.mubr.msk.bf16.gmra.mrb[4].mxu0 %vm324_vm1, %v6088_v17  ;;  %v2531_v28 = vrot.slane %v2530_v19, 4  ;;  %v2540_v29 = vor.u32 %v2539_v20, %v2535_v10  ;;  %v2561_v32 = vshrl.u32 %v6055_v13, 16  ;;  %v2550_v34 = vrot.slane %v2548_v25, 4 }
  0x2e   : > { %v2522_v33 = vsel %vm7557_vm4, %v2517_v23, %v2521_v63  ;;  %v2553_v35 = vrot.slane %v2551_v26, 5  ;;  %v2567_v36 = vshll.u32 %v6056_v21, 16  ;;  %v2559_v42 = vrot.slane %v2557_v31, 5  ;;  %v6123_v21 = vld [vmem:[%s7510_s27 + $0x24] sm:$0xe]  ;;  %v7384_v26 = vld [vmem:[%s7510_s27 + $0x90] sm:$0xff]  }
  0x2f   : > { %v6089_v39 = vcombine.low %v2512_v18, %v2522_v33  ;;  %v2536_v40 = vsel %vm7557_vm4, %v2531_v28, %v2535_v10  ;;  %v2541_v41 = vrot.slane %v2540_v29, 4  ;;  %v2563_v46 = vrot.slane %v2561_v32, 4 }
  0x30   : > { %v2554_v45 = vor.u32 %v2553_v35, %v2550_v34  ;;  %v2569_v47 = vrot.slane %v2567_v36, 5  ;;  %v2572_v48 = vshrl.u32 %v6057_v22, 16  ;;  %v2575_v51 = vshll.u32 %v6057_v22, 16  ;;  %v6126_v36 = vld [vmem:[%s7510_s27 + $0x30] sm:$0xe] }
  0x31   : > { %6919 = vmatprep.mubr.msk.bf16.mxu0 %vm324_vm1, %v6089_v39  ;;  %v2546_v50 = vsel %vm7557_vm4, %v2541_v41, %v2545_v24  ;;  %v2581_v52 = vshll.u32 %v6058_v27, 16  ;;  %v2585_v53 = vshrl.u32 %v6058_v27, 16  ;;  %v2564_v56 = vor.u32 %v2563_v46, %v2559_v42  ;;  %v6124_v27 = vld [vmem:[%s7510_s27 + $0x28] sm:$0xf] }
  0x32   : > { %v6090_v12 = vcombine.low %v2536_v40, %v2546_v50  ;;  %v2555_v55 = vrot.slane %v2554_v45, 4  ;;  %v2574_v57 = vrot.slane %v2572_v48, 4  ;;  %v2577_v60 = vrot.slane %v2575_v51, 5  ;;  %v6129_v50 = vld [vmem:[%s7510_s27 + $0x3c] sm:$0xe] }
  0x33   : > { %v2583_v61 = vrot.slane %v2581_v52, 5  ;;  %v2587_v62 = vrot.slane %v2585_v53, 4  ;;  %v2591_v63 = vshll.u32 %v6059_v37, 16  ;;  %v2565_v2 = vrot.slane %v2564_v56, 4  ;;  %v6127_v37 = vld [vmem:[%s7510_s27 + $0x34] sm:$0xf] }
  0x34   : > { %6792 = vmatmul.mubr.msk.bf16.gmra.mrb[16].mxu1 %vm324_vm1, %v7381_v30  ;;  %v2560_v1 = vsel %vm7557_vm4, %v2555_v55, %v2559_v42  ;;  %v6165_v5 = vrot.slane %v6117_v44, 9  ;;  %v3243_v7 = vrot.slane %v6118_v49, 5  ;;  %v2578_v9 = vor.u32 %v2577_v60, %v2574_v57  ;;  %v6125_v30 = vld [vmem:[%s7510_s27 + $0x2c] sm:$0x1]  ;;  %v6130_v51 = vld [vmem:[%s7510_s27 + $0x40] sm:$0xf] }
  0x35   : > { %6795 = vmatprep.mubr.msk.bf16.mxu1 %vm324_vm1, %v7382_v38  ;;  %6920 = vmatmul.mubr.msk.bf16.gmra.mrb[8].mxu0 %vm324_vm1, %v6090_v12  ;;  %v2588_v10 = vor.u32 %v2587_v62, %v2583_v61  ;;  %v2593_v11 = vrot.slane %v2591_v63, 5  ;;  %v3246_v13 = vrot.slane %v6119_v54, 5  ;;  %v2570_v17 = vsel %vm7557_vm4, %v2565_v2, %v2569_v47  ;;  %v6128_v38 = vld [vmem:[%s7510_s27 + $0x38] sm:$0x1]  ;;  %v7385_v52 = vld [vmem:[%s7510_s27 + $0x9c] sm:$0xff]  }
  0x36   : > { %v3244_v18 = vsel %vm7632_vm7, %v6165_v5, %v3243_v7  ;;  %v3245_v19 = vrot.slane %v3243_v7, 4  ;;  %v6166_v20 = vrot.slane %v6120_v58, 9  ;;  %v6091_v22 = vcombine.low %v2560_v1, %v2570_v17  ;;  %v6131_v55 = vld [vmem:[%s7510_s27 + $0x44] sm:$0x1]  ;;  %v6132_v56 = vld [vmem:[%s7510_s27 + $0x48] sm:$0xe] }
  0x37   : > { %v2579_v23 = vrot.slane %v2578_v9, 4  ;;  %v2589_v24 = vrot.slane %v2588_v10, 4  ;;  %v3250_v25 = vrot.slane %v6121_v59, 5  ;;  %v3253_v29 = vrot.slane %v6122_v6, 5  ;;  %v7386_v58 = vld [vmem:[%s7510_s27 + $0xa8] sm:$0xff]  }
  0x38   : > { %v3247_v28 = vsel %vm7632_vm7, %v3245_v19, %v3246_v13  ;;  %v6167_v31 = vrot.slane %v6123_v21, 9  ;;  %v3257_v32 = vrot.slane %v6124_v27, 5  ;;  %6923 = vmatprep.mubr.msk.bf16.mxu0 %vm324_vm1, %v6091_v22  ;;  %v3260_v44 = vrot.slane %v6125_v30, 5  ;;  %v6133_v62 = vld [vmem:[%s7510_s27 + $0x4c] sm:$0xf] }
  0x39   : > { %v2584_v33 = vsel %vm7557_vm4, %v2579_v23, %v2583_v61  ;;  %v2594_v34 = vsel %vm7557_vm4, %v2589_v24, %v2593_v11  ;;  %v6182_v35 = vcombine.low %v3244_v18, %v3247_v28  ;;  %v3251_v40 = vsel %vm7632_vm7, %v6166_v20, %v3250_v25  ;;  %v6134_v1 = vld [vmem:[%s7510_s27 + $0x50] sm:$0x1]  ;;  %v570_v5 = vld [vmem:[%s7510_s27] sm:$0xf]  ;;  %v571_v13 = vld [vmem:[%s7510_s27 + $0x4] sm:$0xf] }
  0x3a   : > { %v6092_v39 = vcombine.low %v2584_v33, %v2594_v34  ;;  %v3252_v41 = vrot.slane %v3250_v25, 4  ;;  %v3259_v42 = vrot.slane %v3257_v32, 4  ;;  %v6168_v45 = vrot.slane %v6126_v36, 9  ;;  %v572_v17 = vld [vmem:[%s7510_s27 + $0x8] sm:$0x1] }
  0x3b   : > { %v3264_v46 = vrot.slane %v6127_v37, 5  ;;  %v3267_v47 = vrot.slane %v6128_v38, 5  ;;  %v3258_v49 = vsel %vm7632_vm7, %v6167_v31, %v3257_v32  ;;  %v6169_v59 = vrot.slane %v6129_v50, 9  ;;  %v573_v22 = vld [vmem:[%s7510_s27 + $0xc] sm:$0xf] }
  0x3c   : > { %6796 = vmatmul.mubr.msk.bf16.gmra.mrb[20].mxu1 %vm324_vm1, %v7383_v3  ;;  %v3254_v48 = vsel %vm7632_vm7, %v3252_v41, %v3253_v29  ;;  %v3261_v53 = vsel %vm7632_vm7, %v3259_v42, %v3260_v44  ;;  %v3271_v60 = vrot.slane %v6130_v51, 5  ;;  %v3274_v61 = vrot.slane %v6131_v55, 5  ;;  %v574_v27 = vld [vmem:[%s7510_s27 + $0x10] sm:$0xf]  ;;  %v575_v32 = vld [vmem:[%s7510_s27 + $0x14] sm:$0x1] }
  0x3d   : > { %6799 = vmatprep.mubr.msk.bf16.mxu1 %vm324_vm1, %v7384_v26  ;;  %6924 = vmatmul.mubr.msk.bf16.gmra.mrb[12].mxu0 %vm324_vm1, %v6092_v39  ;;  %v7675_v54 = vsel %vm7632_vm7, %v6168_v45, %v3264_v46  ;;  %v3266_v12 = vrot.slane %v3264_v46, 4  ;;  %v6183_v57 = vcombine.low %v3251_v40, %v3254_v48  ;;  %v6184_v63 = vcombine.low %v3258_v49, %v3261_v53  ;;  %v6135_v33 = vld [vmem:[%s7510_s27 + $0x54] sm:$0xe]  ;;  %v6136_v38 = vld [vmem:[%s7510_s27 + $0x58] sm:$0xf] }
  0x3e   : > { %6945 = vmatprep.mubr.msk.bf16.mxu0 %vm324_vm1, %v6182_v35  ;;  %v6170_v2 = vrot.slane %v6132_v56, 9  ;;  %v3278_v3 = vrot.slane %v6133_v62, 5  ;;  %v7692_v9 = vsel %vm7632_vm7, %v6169_v59, %v3271_v60  ;;  %v3273_v10 = vrot.slane %v3271_v60, 4  ;;  %v6137_v44 = vld [vmem:[%s7510_s27 + $0x5c] sm:$0x1]  ;;  %v7387_v45 = vld [vmem:[%s7510_s27 + $0xb4] sm:$0xff]  }
  0x3f   : > { %v7684_v6 = vsel %vm7632_vm7, %v3266_v12, %v3267_v47  ;;  %v3281_v11 = vrot.slane %v6134_v1, 5  ;;  %v622_v20 = vshrl.u32 %v570_v5, 16  ;;  %v625_v21 = vshll.u32 %v570_v5, 16  ;;  %v6138_v50 = vld [vmem:[%s7510_s27 + $0x60] sm:$0xe] }
  0x40   : > { %v6185_v7 = vcombine.low %v7675_v54, %v7684_v6  ;;  %v7698_v18 = vsel %vm7632_vm7, %v6170_v2, %v3278_v3  ;;  %v3280_v19 = vrot.slane %v3278_v3, 4  ;;  %v7704_v23 = vsel %vm7632_vm7, %v3273_v10, %v3274_v61  ;;  %v6139_v55 = vld [vmem:[%s7510_s27 + $0x64] sm:$0xf]  ;;  %v6140_v59 = vld [vmem:[%s7510_s27 + $0x68] sm:$0x1] }
  0x41   : > { %v631_v24 = vshll.u32 %v571_v13, 16  ;;  %v635_v25 = vshrl.u32 %v571_v13, 16  ;;  %v641_v26 = vshll.u32 %v572_v17, 16  ;;  %v6186_v28 = vcombine.low %v7692_v9, %v7704_v23  ;;  %v576_v1 = vld [vmem:[%s7510_s27 + $0x18] sm:$0xf] }
  0x42   : > { %v7712_v29 = vsel %vm7632_vm7, %v3280_v19, %v3281_v11  ;;  %v624_v30 = vrot.slane %v622_v20, 4  ;;  %v627_v31 = vrot.slane %v625_v21, 5  ;;  %v646_v40 = vshrl.u32 %v573_v22, 16  ;;  %v577_v19 = vld [vmem:[%s7510_s27 + $0x1c] sm:$0xf] }
  0x43   : > { %v6187_v34 = vcombine.low %v7698_v18, %v7712_v29  ;;  %v633_v35 = vrot.slane %v631_v24, 5  ;;  %v637_v36 = vrot.slane %v635_v25, 4  ;;  %v643_v37 = vrot.slane %v641_v26, 5  ;;  %v581_v9 = vld [vmem:[%s7510_s27 + $0x2c] sm:$0x1] }
  0x44   : > { %6800 = vmatmul.mubr.msk.bf16.gmra.mrb[24].mxu1 %vm324_vm1, %v7385_v52  ;;  %v628_v39 = vor.u32 %v627_v31, %v624_v30  ;;  %v649_v41 = vshll.u32 %v573_v22, 16  ;;  %v655_v42 = vshll.u32 %v574_v27, 16  ;;  %v659_v47 = vshrl.u32 %v574_v27, 16  ;;  %v578_v22 = vld [vmem:[%s7510_s27 + $0x20] sm:$0x1] }
  0x45   : > { %6803 = vmatprep.mubr.msk.bf16.mxu1 %vm324_vm1, %v7386_v58  ;;  %6946 = vmatmul.mubr.msk.bf16.vlgmr.msra.gmra.mrb[0].mxu0 %vm324_vm1, %v6183_v57  ;;  %v638_v46 = vor.u32 %v637_v36, %v633_v35  ;;  %v665_v48 = vshll.u32 %v575_v32, 16  ;;  %v6171_v49 = vrot.slane %v6135_v33, 9  ;;  %v648_v52 = vrot.slane %v646_v40, 4  ;;  %v579_v32 = vld [vmem:[%s7510_s27 + $0x24] sm:$0xf] }
  0x46   : > { %6978 = vmatpush3.bf16.msra.mxu0 %v7535_v14  ;;  %6949 = vmatprep.mubr.msk.bf16.mxu0 %vm324_vm1, %v6184_v63  ;;  %v629_v51 = vrot.slane %v628_v39, 4  ;;  %v651_v53 = vrot.slane %v649_v41, 5  ;;  %v657_v12 = vrot.slane %v655_v42, 5  ;;  %v661_v14 = vrot.slane %v659_v47, 4  ;;  %v6141_v23 = vld [vmem:[%s7510_s27 + $0x6c] sm:$0xe] }
  0x47   : > { %7345 = vmatprep.subr.msk.bf16.mxu0 %vm373_vm0, %v7523_v8  ;;  %v639_v56 = vrot.slane %v638_v46, 4  ;;  %v667_v57 = vrot.slane %v665_v48, 5  ;;  %v3285_v58 = vrot.slane %v6136_v38, 5  ;;  %v3288_v62 = vrot.slane %v6137_v44, 5  ;;  %v6142_v44 = vld [vmem:[%s7510_s27 + $0x70] sm:$0xf] }
  0x48   : > { %v634_v60 = vsel %vm7557_vm4, %v629_v51, %v633_v35  ;;  %v652_v61 = vor.u32 %v651_v53, %v648_v52  ;;  %v6172_v63 = vrot.slane %v6138_v50, 9  ;;  %v662_v8 = vor.u32 %v661_v14, %v657_v12  ;;  %v580_v35 = vld [vmem:[%s7510_s27 + $0x28] sm:$0xf]  ;;  %v6144_v50 = vld [vmem:[%s7510_s27 + $0x78] sm:$0xe] }
  0x49   : > { %v644_v2 = vsel %vm7557_vm4, %v639_v56, %v643_v37  ;;  %v7737_v3 = vsel %vm7632_vm7, %v6171_v49, %v3285_v58  ;;  %v3287_v5 = vrot.slane %v3285_v58, 4  ;;  %v3292_v13 = vrot.slane %v6139_v55, 5  ;;  %v6145_v55 = vld [vmem:[%s7510_s27 + $0x7c] sm:$0xf] }
  0x4a   : > { %v5890_v10 = vcombine.low %v634_v60, %v644_v2  ;;  %v653_v11 = vrot.slane %v652_v61, 4  ;;  %v3295_v17 = vrot.slane %v6140_v59, 5  ;;  %v663_v20 = vrot.slane %v662_v8, 4  ;;  %v6146_v59 = vld [vmem:[%s7510_s27 + $0x80] sm:$0x1] }
  0x4b   : > { %v3289_v21 = vsel %vm7632_vm7, %v3287_v5, %v3288_v62  ;;  %v670_v24 = vshrl.u32 %v576_v1, 16  ;;  %v673_v25 = vshll.u32 %v576_v1, 16  ;;  %v7753_v30 = vsel %vm7632_vm7, %v6172_v63, %v3292_v13  ;;  %v582_v1 = vld [vmem:[%s7510_s27 + $0x30] sm:$0xf] }
  0x4c   : > { %6804 = vmatmul.mubr.msk.bf16.gmra.mrb[28].mxu1 %vm324_vm1, %v7387_v45  ;;  %v658_v26 = vsel %vm7557_vm4, %v653_v11, %v657_v12  ;;  %v6188_v27 = vcombine.low %v7737_v3, %v3289_v21  ;;  %v3294_v31 = vrot.slane %v3292_v13, 4  ;;  %v668_v54 = vsel %vm7557_vm4, %v663_v20, %v667_v57  ;;  %v6143_v45 = vld [vmem:[%s7510_s27 + $0x74] sm:$0x1] }
  0x4d   : > { %6950 = vmatmul.mubr.msk.bf16.gmra.mrb[4].mxu0 %vm324_vm1, %v6185_v7  ;;  %6809 = vmatprep.mubr.msk.bf16.mxu1 %vm324_vm1, %v5890_v10  ;;  %v672_v6 = vrot.slane %v670_v24, 4  ;;  %v675_v7 = vrot.slane %v673_v25, 5  ;;  %v679_v33 = vshll.u32 %v577_v19, 16  ;;  %v5891_v36 = vcombine.low %v658_v26, %v668_v54  ;;  %v584_v25 = vld [vmem:[%s7510_s27 + $0x38] sm:$0x1] }
  0x4e   : > { %6953 = vmatprep.mubr.msk.bf16.mxu0 %vm324_vm1, %v6186_v28  ;;  %v7765_v37 = vsel %vm7632_vm7, %v3294_v31, %v3295_v17  ;;  %v683_v38 = vshrl.u32 %v577_v19, 16  ;;  %v689_v39 = vshll.u32 %v578_v22, 16  ;;  %v694_v42 = vshrl.u32 %v579_v32, 16  ;;  %v585_v26 = vld [vmem:[%s7510_s27 + $0x3c] sm:$0xf] }
  0x4f   : > { %v6189_v28 = vcombine.low %v7753_v30, %v7765_v37  ;;  %v676_v40 = vor.u32 %v675_v7, %v672_v6  ;;  %v681_v41 = vrot.slane %v679_v33, 5  ;;  %v697_v48 = vshll.u32 %v579_v32, 16 }
  0x50   : > { %v685_v46 = vrot.slane %v683_v38, 4  ;;  %v691_v47 = vrot.slane %v689_v39, 5  ;;  %v703_v49 = vshll.u32 %v580_v35, 16  ;;  %v696_v52 = vrot.slane %v694_v42, 4 }
  0x51   : > { %v677_v51 = vrot.slane %v676_v40, 4  ;;  %v707_v53 = vshrl.u32 %v580_v35, 16  ;;  %v713_v12 = vshll.u32 %v581_v9, 16  ;;  %v699_v14 = vrot.slane %v697_v48, 5 }
  0x52   : > { %v686_v56 = vor.u32 %v685_v46, %v681_v41  ;;  %v705_v57 = vrot.slane %v703_v49, 5  ;;  %v6173_v58 = vrot.slane %v6141_v23, 9  ;;  %v3299_v63 = vrot.slane %v6142_v44, 5  ;;  %v587_v23 = vld [vmem:[%s7510_s27 + $0x44] sm:$0x1] }
  0x53   : > { %v682_v60 = vsel %vm7557_vm4, %v677_v51, %v681_v41  ;;  %v709_v61 = vrot.slane %v707_v53, 4  ;;  %v715_v62 = vrot.slane %v713_v12, 5  ;;  %v700_v8 = vor.u32 %v699_v14, %v696_v52  ;;  %v6147_v41 = vld [vmem:[%s7510_s27 + $0x84] sm:$0xe] }
  0x54   : > { %6810 = vmatmul.mubr.msk.bf16.vlgmr.msra.gmra.mrb[0].mxu1 %vm324_vm1, %v5891_v36  ;;  %v687_v2 = vrot.slane %v686_v56, 4  ;;  %v3302_v3 = vrot.slane %v6143_v45, 5  ;;  %v6174_v5 = vrot.slane %v6144_v50, 9  ;;  %v3300_v10 = vsel %vm7632_vm7, %v6173_v58, %v3299_v63  ;;  %v586_v36 = vld [vmem:[%s7510_s27 + $0x40] sm:$0xf] }
  0x55   : > { %6842 = vmatpush3.bf16.msra.mxu1 %v7539_v15  ;;  %6954 = vmatmul.mubr.msk.bf16.gmra.mrb[8].mxu0 %vm324_vm1, %v6187_v34  ;;  %v710_v15 = vor.u32 %v709_v61, %v705_v57  ;;  %v3301_v11 = vrot.slane %v3299_v63, 4  ;;  %v3306_v13 = vrot.slane %v6145_v55, 5  ;;  %v701_v18 = vrot.slane %v700_v8, 4  ;;  %v583_v34 = vld [vmem:[%s7510_s27 + $0x34] sm:$0xf] }
  0x56   : > { %6957 = vmatprep.mubr.msk.bf16.mxu0 %vm324_vm1, %v6188_v27  ;;  %v692_v17 = vsel %vm7557_vm4, %v687_v2, %v691_v47  ;;  %v3309_v29 = vrot.slane %v6146_v59, 5  ;;  %v718_v19 = vshrl.u32 %v582_v1, 16  ;;  %v721_v7 = vshll.u32 %v582_v1, 16  ;;  %v6148_v47 = vld [vmem:[%s7510_s27 + $0x88] sm:$0xf] }
  0x57   : > { %v5892_v20 = vcombine.low %v682_v60, %v692_v17  ;;  %v711_v21 = vrot.slane %v710_v15, 4  ;;  %v3303_v22 = vsel %vm7632_vm7, %v3301_v11, %v3302_v3  ;;  %v7795_v24 = vsel %vm7632_vm7, %v6174_v5, %v3306_v13  ;;  %v6149_v56 = vld [vmem:[%s7510_s27 + $0x8c] sm:$0x1]  ;;  %v6152_v3 = vld [vmem:[%s7510_s27 + $0x98] sm:$0x1] }
  0x58   : > { %v706_v27 = vsel %vm7557_vm4, %v701_v18, %v705_v57  ;;  %v6190_v31 = vcombine.low %v3300_v10, %v3303_v22  ;;  %v3308_v32 = vrot.slane %v3306_v13, 4  ;;  %v720_v54 = vrot.slane %v718_v19, 4  ;;  %v6150_v57 = vld [vmem:[%s7510_s27 + $0x90] sm:$0xe]  ;;  %v588_v5 = vld [vmem:[%s7510_s27 + $0x48] sm:$0xf] }
  0x59   : > { %6813 = vmatprep.mubr.msk.bf16.mxu1 %vm324_vm1, %v5892_v20  ;;  %v716_v6 = vsel %vm7557_vm4, %v711_v21, %v715_v62  ;;  %v727_v33 = vshll.u32 %v583_v34, 16  ;;  %v731_v35 = vshrl.u32 %v583_v34, 16  ;;  %v737_v9 = vshll.u32 %v584_v25, 16  ;;  %v6151_v62 = vld [vmem:[%s7510_s27 + $0x94] sm:$0xf] }
  0x5a   : > { %v5893_v38 = vcombine.low %v706_v27, %v716_v6  ;;  %v3310_v39 = vsel %vm7632_vm7, %v3308_v32, %v3309_v29  ;;  %v742_v40 = vshrl.u32 %v585_v26, 16  ;;  %v723_v44 = vrot.slane %v721_v7, 5  ;;  %v589_v19 = vld [vmem:[%s7510_s27 + $0x4c] sm:$0xf] }
  0x5b   : > { %v6191_v42 = vcombine.low %v7795_v24, %v3310_v39  ;;  %v729_v45 = vrot.slane %v727_v33, 5  ;;  %v733_v46 = vrot.slane %v731_v35, 4  ;;  %v739_v48 = vrot.slane %v737_v9, 5  ;;  %v590_v24 = vld [vmem:[%s7510_s27 + $0x50] sm:$0x1] }
  0x5c   : > { %6814 = vmatmul.mubr.msk.bf16.gmra.mrb[4].mxu1 %vm324_vm1, %v5893_v38  ;;  %v744_v49 = vrot.slane %v742_v40, 4  ;;  %v745_v50 = vshll.u32 %v585_v26, 16  ;;  %v751_v51 = vshll.u32 %v586_v36, 16  ;;  %v724_v52 = vor.u32 %v723_v44, %v720_v54  ;;  %v591_v54 = vld [vmem:[%s7510_s27 + $0x54] sm:$0xf] }
  0x5d   : > { %6958 = vmatmul.mubr.msk.bf16.gmra.mrb[12].mxu0 %vm324_vm1, %v6189_v28  ;;  %v734_v53 = vor.u32 %v733_v46, %v729_v45  ;;  %v755_v12 = vshrl.u32 %v586_v36, 16  ;;  %v761_v55 = vshll.u32 %v587_v23, 16  ;;  %v6175_v28 = vrot.slane %v6147_v41, 9  ;;  %v592_v36 = vld [vmem:[%s7510_s27 + $0x58] sm:$0xf] }
  0x5e   : > { %6961 = vmatprep.mubr.msk.bf16.mxu0 %vm324_vm1, %v6190_v31  ;;  %v747_v30 = vrot.slane %v745_v50, 5  ;;  %v753_v37 = vrot.slane %v751_v51, 5  ;;  %v3313_v14 = vrot.slane %v6148_v47, 5  ;;  %v725_v58 = vrot.slane %v724_v52, 4  ;;  %v593_v40 = vld [vmem:[%s7510_s27 + $0x5c] sm:$0x1] }
  0x5f   : > { %v735_v59 = vrot.slane %v734_v53, 4  ;;  %v757_v60 = vrot.slane %v755_v12, 4  ;;  %v763_v61 = vrot.slane %v761_v55, 5  ;;  %v3316_v8 = vrot.slane %v6149_v56, 5  ;;  %v6153_v41 = vld [vmem:[%s7510_s27 + $0x9c] sm:$0xe] }
  0x60   : > { %v748_v63 = vor.u32 %v747_v30, %v744_v49  ;;  %v3314_v1 = vsel %vm7632_vm7, %v6175_v28, %v3313_v14  ;;  %v3315_v2 = vrot.slane %v3313_v14, 4  ;;  %v730_v15 = vsel %vm7557_vm4, %v725_v58, %v729_v45  ;;  %v6154_v47 = vld [vmem:[%s7510_s27 + $0xa0] sm:$0xf]  ;;  %v6155_v52 = vld [vmem:[%s7510_s27 + $0xa4] sm:$0x1] }
  0x61   : > { %v740_v10 = vsel %vm7557_vm4, %v735_v59, %v739_v48  ;;  %v758_v11 = vor.u32 %v757_v60, %v753_v37  ;;  %v6176_v13 = vrot.slane %v6150_v57, 9  ;;  %v3320_v34 = vrot.slane %v6151_v62, 5  ;;  %v6156_v30 = vld [vmem:[%s7510_s27 + $0xa8] sm:$0xe]  ;;  %v6157_v58 = vld [vmem:[%s7510_s27 + $0xac] sm:$0xf] }
  0x62   : > { %v5894_v17 = vcombine.low %v730_v15, %v740_v10  ;;  %v749_v18 = vrot.slane %v748_v63, 4  ;;  %v3317_v29 = vsel %vm7632_vm7, %v3315_v2, %v3316_v8  ;;  %v3323_v22 = vrot.slane %v6152_v3, 5  ;;  %v6158_v63 = vld [vmem:[%s7510_s27 + $0xb0] sm:$0x1]  ;;  %v595_v15 = vld [vmem:[%s7510_s27 + $0x64] sm:$0xf] }
  0x63   : > { %v759_v20 = vrot.slane %v758_v11, 4  ;;  %v6192_v21 = vcombine.low %v3314_v1, %v3317_v29  ;;  %v766_v25 = vshrl.u32 %v588_v5, 16  ;;  %v3321_v27 = vsel %vm7632_vm7, %v6176_v13, %v3320_v34 }
  0x64   : > { %6817 = vmatprep.mubr.msk.bf16.mxu1 %vm324_vm1, %v5894_v17  ;;  %v754_v26 = vsel %vm7557_vm4, %v749_v18, %v753_v37  ;;  %v3322_v31 = vrot.slane %v3320_v34, 4  ;;  %v769_v32 = vshll.u32 %v588_v5, 16  ;;  %v775_v33 = vshll.u32 %v589_v19, 16  ;;  %v594_v5 = vld [vmem:[%s7510_s27 + $0x60] sm:$0xf] }
  0x65   : > { %6962 = vmatmul.mubr.msk.bf16.gmra.mrb[16].mxu0 %vm324_vm1, %v6191_v42  ;;  %v764_v6 = vsel %vm7557_vm4, %v759_v20, %v763_v61  ;;  %v768_v7 = vrot.slane %v766_v25, 4  ;;  %v779_v35 = vshrl.u32 %v589_v19, 16  ;;  %v785_v23 = vshll.u32 %v590_v24, 16  ;;  %v596_v18 = vld [vmem:[%s7510_s27 + $0x68] sm:$0x1] }
  0x66   : > { %6965 = vmatprep.mubr.msk.bf16.mxu0 %vm324_vm1, %v6192_v21  ;;  %v5895_v38 = vcombine.low %v754_v26, %v764_v6  ;;  %v3324_v39 = vsel %vm7632_vm7, %v3322_v31, %v3323_v22  ;;  %v771_v9 = vrot.slane %v769_v32, 5  ;;  %v777_v44 = vrot.slane %v775_v33, 5  ;;  %v597_v21 = vld [vmem:[%s7510_s27 + $0x6c] sm:$0xf]  ;;  %v598_v6 = vld [vmem:[%s7510_s27 + $0x70] sm:$0xf] }
  0x67   : > { %v6193_v42 = vcombine.low %v3321_v27, %v3324_v39  ;;  %v781_v45 = vrot.slane %v779_v35, 4  ;;  %v790_v46 = vshrl.u32 %v591_v54, 16  ;;  %v787_v49 = vrot.slane %v785_v23, 5 }
  0x68   : > { %6818 = vmatmul.mubr.msk.bf16.gmra.mrb[8].mxu1 %vm324_vm1, %v5895_v38  ;;  %v772_v48 = vor.u32 %v771_v9, %v768_v7  ;;  %v793_v50 = vshll.u32 %v591_v54, 16  ;;  %v799_v51 = vshll.u32 %v592_v36, 16  ;;  %v803_v55 = vshrl.u32 %v592_v36, 16  ;;  %v599_v38 = vld [vmem:[%s7510_s27 + $0x74] sm:$0x1] }
  0x69   : > { %v782_v53 = vor.u32 %v781_v45, %v777_v44  ;;  %v792_v12 = vrot.slane %v790_v46, 4  ;;  %v809_v56 = vshll.u32 %v593_v40, 16  ;;  %v6177_v57 = vrot.slane %v6153_v41, 9  ;;  %v6159_v41 = vld [vmem:[%s7510_s27 + $0xb4] sm:$0xe] }
  0x6a   : > { %v773_v37 = vrot.slane %v772_v48, 4  ;;  %v795_v28 = vrot.slane %v793_v50, 5  ;;  %v801_v14 = vrot.slane %v799_v51, 5  ;;  %v805_v60 = vrot.slane %v803_v55, 4  ;;  %v6161_v48 = vld [vmem:[%s7510_s27 + $0xbc] sm:$0x1] }
  0x6b   : > { %v783_v59 = vrot.slane %v782_v53, 4  ;;  %v811_v61 = vrot.slane %v809_v56, 5  ;;  %v3327_v62 = vrot.slane %v6154_v47, 5  ;;  %v3330_v8 = vrot.slane %v6155_v52, 5 }
  0x6c   : > { %v778_v1 = vsel %vm7557_vm4, %v773_v37, %v777_v44  ;;  %v796_v2 = vor.u32 %v795_v28, %v792_v12  ;;  %v6178_v3 = vrot.slane %v6156_v30, 9  ;;  %v806_v11 = vor.u32 %v805_v60, %v801_v14  ;;  %v6163_v12 = vld [vmem:[%s7510_s27 + $0xc4] sm:$0xf]  ;;  %v6164_v28 = vld [vmem:[%s7510_s27 + $0xc8] sm:$0x1] }
  0x6d   : > { %6966 = vmatmul.mubr.msk.bf16.gmra.mrb[20].mxu0 %vm324_vm1, %v6193_v42  ;;  %v788_v10 = vsel %vm7557_vm4, %v783_v59, %v787_v49  ;;  %v3328_v13 = vsel %vm7632_vm7, %v6177_v57, %v3327_v62  ;;  %v3329_v17 = vrot.slane %v3327_v62, 4  ;;  %v3334_v19 = vrot.slane %v6157_v58, 5  ;;  %v6160_v42 = vld [vmem:[%s7510_s27 + $0xb8] sm:$0xf]  ;;  %v6162_v49 = vld [vmem:[%s7510_s27 + $0xc0] sm:$0xe] }
  0x6e   : > { %v5896_v29 = vcombine.low %v778_v1, %v788_v10  ;;  %v797_v34 = vrot.slane %v796_v2, 4  ;;  %v3337_v20 = vrot.slane %v6158_v63, 5  ;;  %v807_v22 = vrot.slane %v806_v11, 4 }
  0x6f   : > { %v3331_v24 = vsel %vm7632_vm7, %v3329_v17, %v3330_v8  ;;  %v814_v25 = vshrl.u32 %v594_v5, 16  ;;  %v817_v26 = vshll.u32 %v594_v5, 16  ;;  %v3335_v32 = vsel %vm7632_vm7, %v6178_v3, %v3334_v19  ;;  %v601_v17 = vld [vmem:[%s7510_s27 + $0x7c] sm:$0xf] }
  0x70   : > { %6821 = vmatprep.mubr.msk.bf16.mxu1 %vm324_vm1, %v5896_v29  ;;  %v802_v27 = vsel %vm7557_vm4, %v797_v34, %v801_v14  ;;  %v6194_v31 = vcombine.low %v3328_v13, %v3331_v24  ;;  %v3336_v54 = vrot.slane %v3334_v19, 4  ;;  %v812_v7 = vsel %vm7557_vm4, %v807_v22, %v811_v61  ;;  %v600_v14 = vld [vmem:[%s7510_s27 + $0x78] sm:$0xf]  ;;  %v602_v19 = vld [vmem:[%s7510_s27 + $0x80] sm:$0x1] }
  0x71   : > { %v816_v33 = vrot.slane %v814_v25, 4  ;;  %v819_v35 = vrot.slane %v817_v26, 5  ;;  %v823_v36 = vshll.u32 %v595_v15, 16  ;;  %v5897_v39 = vcombine.low %v802_v27, %v812_v7  ;;  %v603_v26 = vld [vmem:[%s7510_s27 + $0x84] sm:$0xf] }
  0x72   : > { %6969 = vmatprep.mubr.msk.bf16.mxu0 %vm324_vm1, %v6194_v31  ;;  %v3338_v9 = vsel %vm7632_vm7, %v3336_v54, %v3337_v20  ;;  %v827_v23 = vshrl.u32 %v595_v15, 16  ;;  %v833_v40 = vshll.u32 %v596_v18, 16  ;;  %v838_v47 = vshrl.u32 %v597_v21, 16  ;;  %v604_v27 = vld [vmem:[%s7510_s27 + $0x88] sm:$0xf] }
  0x73   : > { %v6195_v44 = vcombine.low %v3335_v32, %v3338_v9  ;;  %v820_v45 = vor.u32 %v819_v35, %v816_v33  ;;  %v825_v46 = vrot.slane %v823_v36, 5  ;;  %6822 = vmatmul.mubr.msk.bf16.gmra.mrb[12].mxu1 %vm324_vm1, %v5897_v39  ;;  %v841_v52 = vshll.u32 %v597_v21, 16 }
  0x74   : > { %v829_v50 = vrot.slane %v827_v23, 4  ;;  %v835_v51 = vrot.slane %v833_v40, 5  ;;  %v847_v53 = vshll.u32 %v598_v6, 16  ;;  %v840_v56 = vrot.slane %v838_v47, 4  ;;  %v605_v40 = vld [vmem:[%s7510_s27 + $0x8c] sm:$0x1] }
  0x75   : > { %6970 = vmatmul.mubr.msk.bf16.gmra.mrb[24].mxu0 %vm324_vm1, %v6195_v44  ;;  %v821_v55 = vrot.slane %v820_v45, 4  ;;  %v851_v30 = vshrl.u32 %v598_v6, 16  ;;  %v857_v37 = vshll.u32 %v599_v38, 16  ;;  %v843_v58 = vrot.slane %v841_v52, 5  ;;  %v7388_v38 = vld [vmem:[%s7510_s27 + $0x18] sm:$0xff]  }
  0x76   : > { %v830_v57 = vor.u32 %v829_v50, %v825_v46  ;;  %v849_v59 = vrot.slane %v847_v53, 5  ;;  %v6179_v60 = vrot.slane %v6159_v41, 9  ;;  %v3341_v1 = vrot.slane %v6160_v42, 5  ;;  %v606_v47 = vld [vmem:[%s7510_s27 + $0x90] sm:$0xf] }
  0x77   : > { %v826_v61 = vsel %vm7557_vm4, %v821_v55, %v825_v46  ;;  %v853_v62 = vrot.slane %v851_v30, 4  ;;  %v859_v63 = vrot.slane %v857_v37, 5  ;;  %v844_v8 = vor.u32 %v843_v58, %v840_v56  ;;  %v607_v56 = vld [vmem:[%s7510_s27 + $0x94] sm:$0xf]  ;;  %v609_v58 = vld [vmem:[%s7510_s27 + $0x9c] sm:$0xf] }
  0x78   : > { %v831_v2 = vrot.slane %v830_v57, 4  ;;  %v3344_v3 = vrot.slane %v6161_v48, 5  ;;  %v6180_v5 = vrot.slane %v6162_v49, 9  ;;  %v3342_v10 = vsel %vm7632_vm7, %v6179_v60, %v3341_v1 }
  0x79   : > { %v854_v15 = vor.u32 %v853_v62, %v849_v59  ;;  %v3343_v11 = vrot.slane %v3341_v1, 4  ;;  %v3348_v13 = vrot.slane %v6163_v12, 5  ;;  %v845_v29 = vrot.slane %v844_v8, 4 }
  0x7a   : > { %v836_v18 = vsel %vm7557_vm4, %v831_v2, %v835_v51  ;;  %v3351_v34 = vrot.slane %v6164_v28, 5  ;;  %v862_v20 = vshrl.u32 %v600_v14, 16  ;;  %v865_v33 = vshll.u32 %v600_v14, 16  ;;  %v608_v28 = vld [vmem:[%s7510_s27 + $0x98] sm:$0x1] }
  0x7b   : > { %v5898_v21 = vcombine.low %v826_v61, %v836_v18  ;;  %v855_v22 = vrot.slane %v854_v15, 4  ;;  %v3345_v24 = vsel %vm7632_vm7, %v3343_v11, %v3344_v3  ;;  %v3349_v25 = vsel %vm7632_vm7, %v6180_v5, %v3348_v13  ;;  %v7389_v11 = vld [vmem:[%s7510_s27 + $0x24] sm:$0xff]  }
  0x7c   : > { %v850_v31 = vsel %vm7557_vm4, %v845_v29, %v849_v59  ;;  %v6196_v32 = vcombine.low %v3342_v10, %v3345_v24  ;;  %v3350_v54 = vrot.slane %v3348_v13, 4  ;;  %v864_v6 = vrot.slane %v862_v20, 4  ;;  %v611_v24 = vld [vmem:[%s7510_s27 + $0xa4] sm:$0x1] }
  0x7d   : > { %6825 = vmatprep.mubr.msk.bf16.mxu1 %vm324_vm1, %v5898_v21  ;;  %v860_v7 = vsel %vm7557_vm4, %v855_v22, %v859_v63  ;;  %v871_v35 = vshll.u32 %v601_v17, 16  ;;  %v875_v36 = vshrl.u32 %v601_v17, 16  ;;  %v881_v23 = vshll.u32 %v602_v19, 16  ;;  %v610_v63 = vld [vmem:[%s7510_s27 + $0xa0] sm:$0xf]  ;;  %v7390_v19 = vld [vmem:[%s7510_s27 + $0x30] sm:$0xff]  }
  0x7e   : > { %v5899_v39 = vcombine.low %v850_v31, %v860_v7  ;;  %6973 = vmatprep.mubr.msk.bf16.mxu0 %vm324_vm1, %v6196_v32  ;;  %v3352_v9 = vsel %vm7632_vm7, %v3350_v54, %v3351_v34  ;;  %v886_v41 = vshrl.u32 %v603_v26, 16  ;;  %v867_v44 = vrot.slane %v865_v33, 5  ;;  %v612_v54 = vld [vmem:[%s7510_s27 + $0xa8] sm:$0xf] }
  0x7f   : > { %v6197_v42 = vcombine.low %v3349_v25, %v3352_v9  ;;  %v873_v45 = vrot.slane %v871_v35, 5  ;;  %v877_v46 = vrot.slane %v875_v36, 4  ;;  %v883_v48 = vrot.slane %v881_v23, 5  ;;  %v613_v36 = vld [vmem:[%s7510_s27 + $0xac] sm:$0xf] }
  0x80   : > { %6826 = vmatmul.mubr.msk.bf16.gmra.mrb[16].mxu1 %vm324_vm1, %v5899_v39  ;;  %v888_v49 = vrot.slane %v886_v41, 4  ;;  %v889_v50 = vshll.u32 %v603_v26, 16  ;;  %v895_v51 = vshll.u32 %v604_v27, 16  ;;  %v868_v52 = vor.u32 %v867_v44, %v864_v6  ;;  %v615_v41 = vld [vmem:[%s7510_s27 + $0xb4] sm:$0xf] }
  0x81   : > { %6974 = vmatmul.mubr.msk.bf16.gmra.mrb[28].mxu0 %vm324_vm1, %v6197_v42  ;;  %v878_v53 = vor.u32 %v877_v46, %v873_v45  ;;  %v899_v12 = vshrl.u32 %v604_v27, 16  ;;  %v905_v55 = vshll.u32 %v605_v40, 16  ;;  %v910_v14 = vshrl.u32 %v606_v47, 16  ;;  %v614_v40 = vld [vmem:[%s7510_s27 + $0xb0] sm:$0x1] }
  0x82   : > { %v891_v30 = vrot.slane %v889_v50, 5  ;;  %v897_v37 = vrot.slane %v895_v51, 5  ;;  %6979 = vmatprep.mubr.msk.bf16.mxu0 %vm324_vm1, %v7388_v38  ;;  %v913_v57 = vshll.u32 %v606_v47, 16  ;;  %v869_v59 = vrot.slane %v868_v52, 4  ;;  %v7943_v42 = vld [vmem:[%s8821_s1 + $0x6] sm:$0x3] }
  0x83   : > { %v879_v60 = vrot.slane %v878_v53, 4  ;;  %v901_v61 = vrot.slane %v899_v12, 4  ;;  %v907_v62 = vrot.slane %v905_v55, 5  ;;  %v912_v2 = vrot.slane %v910_v14, 4  ;;  %7340 = vmatprep.subr.msk.bf16.mxu1 %vm373_vm0, %v7943_v42  ;;  %v7391_v55 = vld [vmem:[%s7510_s27 + $0x3c] sm:$0xff]  }
  0x84   : > { %v892_v1 = vor.u32 %v891_v30, %v888_v49  ;;  %v915_v8 = vrot.slane %v913_v57, 5  ;;  %v919_v3 = vshll.u32 %v607_v56, 16  ;;  %v874_v5 = vsel %vm7557_vm4, %v869_v59, %v873_v45  ;;  %v617_v57 = vld [vmem:[%s7510_s27 + $0xbc] sm:$0x1] }
  0x85   : > { %v884_v15 = vsel %vm7557_vm4, %v879_v60, %v883_v48  ;;  %v902_v10 = vor.u32 %v901_v61, %v897_v37  ;;  %v923_v13 = vshrl.u32 %v607_v56, 16  ;;  %v929_v22 = vshll.u32 %v608_v28, 16 }
  0x86   : > { %v5900_v17 = vcombine.low %v874_v5, %v884_v15  ;;  %v893_v18 = vrot.slane %v892_v1, 4  ;;  %v916_v29 = vor.u32 %v915_v8, %v912_v2  ;;  %v921_v34 = vrot.slane %v919_v3, 5  ;;  %v1364_v5 = vld [vmem:[%s7510_s27 + $0x4] sm:$0xf]  ;;  %v1365_v15 = vld [vmem:[%s7510_s27 + $0x8] sm:$0x1] }
  0x87   : > { %v903_v20 = vrot.slane %v902_v10, 4  ;;  %v925_v21 = vrot.slane %v923_v13, 4  ;;  %v934_v25 = vshrl.u32 %v609_v58, 16  ;;  %v937_v31 = vshll.u32 %v609_v58, 16  ;;  %v7392_v58 = vld [vmem:[%s7510_s27 + $0x48] sm:$0xff]  }
  0x88   : > { %6829 = vmatprep.mubr.msk.bf16.mxu1 %vm324_vm1, %v5900_v17  ;;  %v898_v26 = vsel %vm7557_vm4, %v893_v18, %v897_v37  ;;  %v917_v27 = vrot.slane %v916_v29, 4  ;;  %v943_v32 = vshll.u32 %v610_v63, 16  ;;  %v931_v33 = vrot.slane %v929_v22, 5  ;;  %v1366_v18 = vld [vmem:[%s7510_s27 + $0xc] sm:$0xe] }
  0x89   : > { %v908_v6 = vsel %vm7557_vm4, %v903_v20, %v907_v62  ;;  %6980 = vmatmul.mubr.msk.bf16.vlgmr.msra.gmra.mrb[0].mxu0 %vm324_vm1, %v7389_v11  ;;  %v926_v7 = vor.u32 %v925_v21, %v921_v34  ;;  %v936_v35 = vrot.slane %v934_v25, 4  ;;  %v939_v9 = vrot.slane %v937_v31, 5  ;;  %v1367_v21 = vld [vmem:[%s7510_s27 + $0x10] sm:$0xf]  ;;  %v1368_v22 = vld [vmem:[%s7510_s27 + $0x14] sm:$0x1] }
  0x8a   : > { %v5901_v38 = vcombine.low %v898_v26, %v908_v6  ;;  %7012 = vmatpush3.bf16.msra.mxu0 %v7543_v16  ;;  %v922_v39 = vsel %vm7557_vm4, %v917_v27, %v921_v34  ;;  %v945_v23 = vrot.slane %v943_v32, 5  ;;  %6983 = vmatprep.mubr.msk.bf16.mxu0 %vm324_vm1, %v7390_v19  ;;  %v947_v45 = vshrl.u32 %v610_v63, 16  ;;  %v616_v16 = vld [vmem:[%s7510_s27 + $0xb8] sm:$0xf]  ;;  %v1363_v63 = vld [vmem:[%s7510_s27] sm:$0xe] }
  0x8b   : > { %v927_v44 = vrot.slane %v926_v7, 4  ;;  %v953_v46 = vshll.u32 %v611_v24, 16  ;;  %v958_v47 = vshrl.u32 %v612_v54, 16  ;;  %v940_v48 = vor.u32 %v939_v9, %v936_v35  ;;  %v1369_v31 = vld [vmem:[%s7510_s27 + $0x18] sm:$0xe] }
  0x8c   : > { %6830 = vmatmul.mubr.msk.bf16.gmra.mrb[20].mxu1 %vm324_vm1, %v5901_v38  ;;  %v961_v49 = vshll.u32 %v612_v54, 16  ;;  %v967_v50 = vshll.u32 %v613_v36, 16  ;;  %v971_v51 = vshrl.u32 %v613_v36, 16  ;;  %v949_v53 = vrot.slane %v947_v45, 4  ;;  %v1370_v32 = vld [vmem:[%s7510_s27 + $0x1c] sm:$0xf] }
  0x8d   : > { %v932_v52 = vsel %vm7557_vm4, %v927_v44, %v931_v33  ;;  %v955_v12 = vrot.slane %v953_v46, 5  ;;  %v960_v56 = vrot.slane %v958_v47, 4  ;;  %v941_v37 = vrot.slane %v940_v48, 4  ;;  %v7393_v35 = vld [vmem:[%s7510_s27 + $0x54] sm:$0xff]   ;;  %v1371_v36 = vld [vmem:[%s7510_s27 + $0x20] sm:$0x1] }
  0x8e   : > { %v5902_v30 = vcombine.low %v922_v39, %v932_v52  ;;  %v963_v28 = vrot.slane %v961_v49, 5  ;;  %v969_v14 = vrot.slane %v967_v50, 5  ;;  %v950_v59 = vor.u32 %v949_v53, %v945_v23  ;;  %v1372_v47 = vld [vmem:[%s7510_s27 + $0x24] sm:$0xe]  ;;  %v1374_v52 = vld [vmem:[%s7510_s27 + $0x2c] sm:$0x1] }
  0x8f   : > { %v973_v60 = vrot.slane %v971_v51, 4  ;;  %v977_v61 = vshll.u32 %v614_v40, 16  ;;  %v982_v62 = vshrl.u32 %v615_v41, 16  ;;  %v946_v1 = vsel %vm7557_vm4, %v941_v37, %v945_v23  ;;  %v7394_v40 = vld [vmem:[%s7510_s27 + $0x60] sm:$0xff]  }
  0x90   : > { %6833 = vmatprep.mubr.msk.bf16.mxu1 %vm324_vm1, %v5902_v30  ;;  %v964_v2 = vor.u32 %v963_v28, %v960_v56  ;;  %v985_v8 = vshll.u32 %v615_v41, 16  ;;  %v991_v3 = vshll.u32 %v616_v16, 16  ;;  %v951_v10 = vrot.slane %v950_v59, 4  ;;  %v1375_v30 = vld [vmem:[%s7510_s27 + $0x30] sm:$0xe] }
  0x91   : > { %6984 = vmatmul.mubr.msk.bf16.gmra.mrb[4].mxu0 %vm324_vm1, %v7391_v55  ;;  %v974_v11 = vor.u32 %v973_v60, %v969_v14  ;;  %v979_v13 = vrot.slane %v977_v61, 5  ;;  %v984_v17 = vrot.slane %v982_v62, 4  ;;  %v995_v20 = vshrl.u32 %v616_v16, 16  ;;  %v1373_v16 = vld [vmem:[%s7510_s27 + $0x28] sm:$0xf] }
  0x92   : > { %v965_v29 = vrot.slane %v964_v2, 4  ;;  %v987_v34 = vrot.slane %v985_v8, 5  ;;  %v993_v19 = vrot.slane %v991_v3, 5  ;;  %6987 = vmatprep.mubr.msk.bf16.mxu0 %vm324_vm1, %v7392_v58  ;;  %v956_v24 = vsel %vm7557_vm4, %v951_v10, %v955_v12  ;;  %v1376_v58 = vld [vmem:[%s7510_s27 + $0x34] sm:$0xf]  ;;  %v7395_v10 = vld [vmem:[%s7510_s27 + $0x6c] sm:$0xff]  }
  0x93   : > { %v975_v25 = vrot.slane %v974_v11, 4  ;;  %v1001_v26 = vshll.u32 %v617_v57, 16  ;;  %v5922_v27 = vrot.slane %v1363_v63, 9  ;;  %v5903_v54 = vcombine.low %v946_v1, %v956_v24  ;;  %v1377_v59 = vld [vmem:[%s7510_s27 + $0x38] sm:$0x1] }
  0x94   : > { %v970_v6 = vsel %vm7557_vm4, %v965_v29, %v969_v14  ;;  %v988_v7 = vor.u32 %v987_v34, %v984_v17  ;;  %v997_v33 = vrot.slane %v995_v20, 4  ;;  %v1464_v9 = vrot.slane %v1364_v5, 5  ;;  %v1378_v60 = vld [vmem:[%s7510_s27 + $0x3c] sm:$0xe]  ;;  %v1379_v61 = vld [vmem:[%s7510_s27 + $0x40] sm:$0xf] }
  0x95   : > { %v980_v38 = vsel %vm7557_vm4, %v975_v25, %v979_v13  ;;  %v1003_v39 = vrot.slane %v1001_v26, 5  ;;  %v1467_v23 = vrot.slane %v1365_v15, 5  ;;  %6834 = vmatmul.mubr.msk.bf16.gmra.mrb[24].mxu1 %vm324_vm1, %v5903_v54  ;;  %v5923_v46 = vrot.slane %v1366_v18, 9  ;;  %v1380_v8 = vld [vmem:[%s7510_s27 + $0x44] sm:$0x1]  ;;  %v7396_v34 = vld [vmem:[%s7510_s27 + $0x78] sm:$0xff]  }
  0x96   : > { %v5904_v41 = vcombine.low %v970_v6, %v980_v38  ;;  %v989_v44 = vrot.slane %v988_v7, 4  ;;  %v998_v45 = vor.u32 %v997_v33, %v993_v19  ;;  %v1465_v48 = vsel %vm7632_vm7, %v5922_v27, %v1464_v9  ;;  %v1381_v3 = vld [vmem:[%s7510_s27 + $0x48] sm:$0xe]  ;;  %v1382_v20 = vld [vmem:[%s7510_s27 + $0x4c] sm:$0xf] }
  0x97   : > { %v1466_v49 = vrot.slane %v1464_v9, 4  ;;  %v1471_v50 = vrot.slane %v1367_v21, 5  ;;  %v1474_v51 = vrot.slane %v1368_v22, 5  ;;  %v5924_v55 = vrot.slane %v1369_v31, 9  ;;  %v1383_v21 = vld [vmem:[%s7510_s27 + $0x50] sm:$0x1] }
  0x98   : > { %6837 = vmatprep.mubr.msk.bf16.mxu1 %vm324_vm1, %v5904_v41  ;;  %v994_v53 = vsel %vm7557_vm4, %v989_v44, %v993_v19  ;;  %v999_v12 = vrot.slane %v998_v45, 4  ;;  %v1478_v56 = vrot.slane %v1370_v32, 5  ;;  %v1481_v57 = vrot.slane %v1371_v36, 5  ;;  %v1384_v27 = vld [vmem:[%s7510_s27 + $0x54] sm:$0xe] }
  0x99   : > { %6988 = vmatmul.mubr.msk.bf16.gmra.mrb[8].mxu0 %vm324_vm1, %v7393_v35  ;;  %v1468_v37 = vsel %vm7632_vm7, %v1466_v49, %v1467_v23  ;;  %v7991_v28 = vsel %vm7632_vm7, %v5923_v46, %v1471_v50  ;;  %v1473_v14 = vrot.slane %v1471_v50, 4  ;;  %v5925_v11 = vrot.slane %v1372_v47, 9  ;;  %v1385_v31 = vld [vmem:[%s7510_s27 + $0x58] sm:$0xf]  ;;  %v1386_v7 = vld [vmem:[%s7510_s27 + $0x5c] sm:$0x1] }
  0x9a   : > { %v1004_v62 = vsel %vm7557_vm4, %v999_v12, %v1003_v39  ;;  %v5939_v63 = vcombine.low %v1465_v48, %v1468_v37  ;;  %6991 = vmatprep.mubr.msk.bf16.mxu0 %vm324_vm1, %v7394_v40  ;;  %v8002_v1 = vsel %vm7632_vm7, %v5924_v55, %v1478_v56  ;;  %v1480_v2 = vrot.slane %v1478_v56, 4  ;;  %v1387_v39 = vld [vmem:[%s7510_s27 + $0x60] sm:$0xe]  ;;  %v1388_v44 = vld [vmem:[%s7510_s27 + $0x64] sm:$0xf] }
  0x9b   : > { %v5905_v5 = vcombine.low %v994_v53, %v1004_v62  ;;  %v8008_v15 = vsel %vm7632_vm7, %v1473_v14, %v1474_v51  ;;  %v1485_v13 = vrot.slane %v1373_v16, 5  ;;  %v1488_v29 = vrot.slane %v1374_v52, 5  ;;  %v1389_v45 = vld [vmem:[%s7510_s27 + $0x68] sm:$0x1]  ;;  %v1390_v46 = vld [vmem:[%s7510_s27 + $0x6c] sm:$0xe] }
  0x9c   : > { %v5940_v17 = vcombine.low %v7991_v28, %v8008_v15  ;;  %v8015_v18 = vsel %vm7632_vm7, %v1480_v2, %v1481_v57  ;;  %v8020_v19 = vsel %vm373_vm0, %v7943_v42, 0  ;;  %v5926_v26 = vrot.slane %v1375_v30, 9  ;;  %v1391_v47 = vld [vmem:[%s7510_s27 + $0x70] sm:$0xf]  ;;  %v1392_v51 = vld [vmem:[%s7510_s27 + $0x74] sm:$0x1] }
  0x9d   : > { %v5941_v22 = vcombine.low %v8002_v1, %v8015_v18  ;;  %v8028_v24 = vsel %vm7632_vm7, %v5925_v11, %v1485_v13  ;;  %v1487_v25 = vrot.slane %v1485_v13, 4  ;;  %6838 = vmatmul.mubr.msk.bf16.gmra.mrb[28].mxu1 %vm324_vm1, %v5905_v5  ;;  %v1492_v32 = vrot.slane %v1376_v58, 5  ;;  %v1393_v14 = vld [vmem:[%s7510_s27 + $0x78] sm:$0xe]  ;;  %v1394_v57 = vld [vmem:[%s7510_s27 + $0x7c] sm:$0xf] }
  0x9e   : > { %v1495_v42 = vrot.slane %v1377_v59, 5  ;;  %v5927_v54 = vrot.slane %v1378_v60, 9  ;;  %v1499_v6 = vrot.slane %v1379_v61, 5  ;;  %6843 = vmatprep.mubr.msk.bf16.mxu1 %vm324_vm1, %v5939_v63  ;;  %v1502_v35 = vrot.slane %v1380_v8, 5  ;;  %v7397_v58 = vld [vmem:[%s7510_s27 + $0x84] sm:$0xff]  }
  0x9f   : > { %v8037_v33 = vsel %vm7632_vm7, %v1487_v25, %v1488_v29  ;;  %v5928_v36 = vrot.slane %v1381_v3, 9  ;;  %v1506_v38 = vrot.slane %v1382_v20, 5  ;;  %v8044_v23 = vsel %vm7632_vm7, %v5926_v26, %v1492_v32  ;;  %v1395_v63 = vld [vmem:[%s7510_s27 + $0x80] sm:$0x1]  ;;  %v1396_v1 = vld [vmem:[%s7510_s27 + $0x84] sm:$0xe] }
  0xa0   : > { %v5942_v9 = vcombine.low %v8028_v24, %v8037_v33  ;;  %v1494_v40 = vrot.slane %v1492_v32, 4  ;;  %v8048_v41 = vsel %vm7632_vm7, %v5927_v54, %v1499_v6  ;;  %v1501_v16 = vrot.slane %v1499_v6, 4  ;;  %v1397_v15 = vld [vmem:[%s7510_s27 + $0x88] sm:$0xf]  ;;  %v6279_v26 = vld [vmem:[%s7510_s27 + $0x18] sm:$0xf] }
  0xa1   : > { %6992 = vmatmul.mubr.msk.bf16.gmra.mrb[12].mxu0 %vm324_vm1, %v7395_v10  ;;  %v8057_v48 = vsel %vm7632_vm7, %v5928_v36, %v1506_v38  ;;  %v1508_v49 = vrot.slane %v1506_v38, 4  ;;  %v1509_v50 = vrot.slane %v1383_v21, 5  ;;  %v5929_v53 = vrot.slane %v1384_v27, 9  ;;  %v7398_v10 = vld [vmem:[%s7510_s27 + $0x90] sm:$0xff]   ;;  %v6280_v32 = vld [vmem:[%s7510_s27 + $0x1c] sm:$0xf] }
  0xa2   : > { %6995 = vmatprep.mubr.msk.bf16.mxu0 %vm324_vm1, %v7396_v34  ;;  %v8063_v52 = vsel %vm7632_vm7, %v1494_v40, %v1495_v42  ;;  %v1513_v12 = vrot.slane %v1385_v31, 5  ;;  %v1516_v55 = vrot.slane %v1386_v7, 5  ;;  %v8069_v30 = vsel %vm7632_vm7, %v1501_v16, %v1502_v35  ;;  %v1398_v34 = vld [vmem:[%s7510_s27 + $0x8c] sm:$0x1]  ;;  %v7420_v42 = vld [vmem:[%s8821_s1 + $0x8] sm:$0x3] }
  0xa3   : > { %v5943_v56 = vcombine.low %v8044_v23, %v8063_v52  ;;  %v8073_v37 = vsel %vm7632_vm7, %v1508_v49, %v1509_v50  ;;  %v5930_v28 = vrot.slane %v1387_v39, 9  ;;  %v5944_v59 = vcombine.low %v8048_v41, %v8069_v30  ;;  %v6424_v36 = vld [vmem:[%s8821_s1 + $0x10] sm:$0x3] }
  0xa4   : > { %v5945_v60 = vcombine.low %v8057_v48, %v8073_v37  ;;  %v8084_v61 = vsel %vm7632_vm7, %v5929_v53, %v1513_v12  ;;  %v1515_v62 = vrot.slane %v1513_v12, 4  ;;  %v1520_v2 = vrot.slane %v1388_v44, 5  ;;  %v6281_v44 = vld [vmem:[%s7510_s27 + $0x20] sm:$0x1]  ;;  %7346 = vmatprep.subr.msk.bf16.mxu0 %vm373_vm0, %v6424_v36 }
  0xa5   : > { %v1523_v8 = vrot.slane %v1389_v45, 5  ;;  %v5931_v3 = vrot.slane %v1390_v46, 9  ;;  %v1527_v5 = vrot.slane %v1391_v47, 5  ;;  %6844 = vmatmul.mubr.msk.bf16.vlgmr.msra.gmra.mrb[0].mxu1 %vm324_vm1, %v5940_v17  ;;  %v1530_v13 = vrot.slane %v1392_v51, 5  ;;  %v6282_v46 = vld [vmem:[%s7510_s27 + $0x24] sm:$0xf] }
  0xa6   : > { %v8093_v11 = vsel %vm7632_vm7, %v1515_v62, %v1516_v55  ;;  %v5932_v18 = vrot.slane %v1393_v14, 9  ;;  %v1534_v29 = vrot.slane %v1394_v57, 5  ;;  %6847 = vmatprep.mubr.msk.bf16.mxu1 %vm324_vm1, %v5941_v22  ;;  %6876 = vmatpush3.bf16.msra.mxu1 %v8020_v19  ;;  %v8102_v17 = vsel %vm7632_vm7, %v5930_v28, %v1520_v2  ;;  %v6283_v28 = vld [vmem:[%s7510_s27 + $0x28] sm:$0xf]  ;;  %v7399_v14 = vld [vmem:[%s7510_s27 + $0x9c] sm:$0xff]  }
  0xa7   : > { %v5946_v20 = vcombine.low %v8084_v61, %v8093_v11  ;;  %v1522_v21 = vrot.slane %v1520_v2, 4  ;;  %v8106_v25 = vsel %vm7632_vm7, %v5931_v3, %v1527_v5  ;;  %v1529_v27 = vrot.slane %v1527_v5, 4  ;;  %7342 = vmatprep.subr.msk.bf16.mxu1 %vm373_vm0, %v7420_v42  ;;  %v6284_v62 = vld [vmem:[%s7510_s27 + $0x2c] sm:$0x1] }
  0xa8   : > { %v8111_v31 = vsel %vm7632_vm7, %v5932_v18, %v1534_v29  ;;  %v1536_v19 = vrot.slane %v1534_v29, 4  ;;  %v1537_v22 = vrot.slane %v1395_v63, 5  ;;  %v5933_v6 = vrot.slane %v1396_v1, 9  ;;  %v7400_v2 = vld [vmem:[%s7510_s27 + $0xa8] sm:$0xff]   ;;  %v1400_v18 = vld [vmem:[%s7510_s27 + $0x94] sm:$0xf] }
  0xa9   : > { %6996 = vmatmul.mubr.msk.bf16.gmra.mrb[16].mxu0 %vm324_vm1, %v7397_v58  ;;  %v8121_v54 = vsel %vm7632_vm7, %v1522_v21, %v1523_v8  ;;  %v1541_v7 = vrot.slane %v1397_v15, 5  ;;  %v1544_v35 = vrot.slane %v1398_v34, 5  ;;  %v8131_v39 = vsel %vm7632_vm7, %v1529_v27, %v1530_v13  ;;  %v1401_v27 = vld [vmem:[%s7510_s27 + $0x98] sm:$0x1] }
  0xaa   : > { %6999 = vmatprep.mubr.msk.bf16.mxu0 %vm324_vm1, %v7398_v10  ;;  %v5947_v38 = vcombine.low %v8102_v17, %v8121_v54  ;;  %v8135_v40 = vsel %vm7632_vm7, %v1536_v19, %v1537_v22  ;;  %v4183_v45 = vshrl.u32 %v6279_v26, 16  ;;  %v5948_v47 = vcombine.low %v8106_v25, %v8131_v39  ;;  %v1399_v10 = vld [vmem:[%s7510_s27 + $0x90] sm:$0xe]  ;;  %v1402_v19 = vld [vmem:[%s7510_s27 + $0x9c] sm:$0xe] }
  0xab   : > { %v5949_v16 = vcombine.low %v8111_v31, %v8135_v40  ;;  %v8146_v49 = vsel %vm7632_vm7, %v5933_v6, %v1541_v7  ;;  %v1543_v50 = vrot.slane %v1541_v7, 4  ;;  %v4186_v53 = vshll.u32 %v6279_v26, 16  ;;  %v6292_v17 = vld [vmem:[%s7510_s27 + $0x4c] sm:$0xf]  ;;  %v6298_v39 = vld [vmem:[%s7510_s27 + $0x64] sm:$0xf] }
  0xac   : > { %v4185_v51 = vrot.slane %v4183_v45, 4  ;;  %v4192_v12 = vshll.u32 %v6280_v32, 16  ;;  %v4196_v55 = vshrl.u32 %v6280_v32, 16  ;;  %v4202_v58 = vshll.u32 %v6281_v44, 16 }
  0xad   : > { %v8152_v57 = vsel %vm7632_vm7, %v1543_v50, %v1544_v35  ;;  %v4207_v63 = vshrl.u32 %v6282_v46, 16  ;;  %v4210_v1 = vshll.u32 %v6282_v46, 16  ;;  %6848 = vmatmul.mubr.msk.bf16.gmra.mrb[4].mxu1 %vm324_vm1, %v5942_v9  ;;  %v4188_v3 = vrot.slane %v4186_v53, 5  ;;  %v1404_v50 = vld [vmem:[%s7510_s27 + $0xa4] sm:$0x1] }
  0xae   : > { %v5950_v8 = vcombine.low %v8146_v49, %v8152_v57  ;;  %v4194_v5 = vrot.slane %v4192_v12, 5  ;;  %v4198_v15 = vrot.slane %v4196_v55, 4  ;;  %6851 = vmatprep.mubr.msk.bf16.mxu1 %vm324_vm1, %v5943_v56  ;;  %v4204_v13 = vrot.slane %v4202_v58, 5  ;;  %v1403_v56 = vld [vmem:[%s7510_s27 + $0xa0] sm:$0xf]  ;;  %v7401_v58 = vld [vmem:[%s7510_s27 + $0xb4] sm:$0xff]  }
  0xaf   : > { %v4209_v24 = vrot.slane %v4207_v63, 4  ;;  %v4212_v33 = vrot.slane %v4210_v1, 5  ;;  %v4216_v9 = vshll.u32 %v6283_v28, 16  ;;  %v4189_v29 = vor.u32 %v4188_v3, %v4185_v51  ;;  %v7402_v3 = vld [vmem:[%s7510_s27 + $0xc0] sm:$0xff]  }
  0xb0   : > { %v4199_v34 = vor.u32 %v4198_v15, %v4194_v5  ;;  %v4220_v21 = vshrl.u32 %v6283_v28, 16  ;;  %v4226_v26 = vshll.u32 %v6284_v62, 16  ;;  %v8172_v23 = vsel %vm373_vm0, %v6424_v36, 0  ;;  %v6285_v28 = vld [vmem:[%s7510_s27 + $0x30] sm:$0xf] }
  0xb1   : > { %7000 = vmatmul.mubr.msk.bf16.gmra.mrb[20].mxu0 %vm324_vm1, %v7399_v14  ;;  %v4213_v22 = vor.u32 %v4212_v33, %v4209_v24  ;;  %v4218_v32 = vrot.slane %v4216_v9, 5  ;;  %v5934_v52 = vrot.slane %v1399_v10, 9  ;;  %v4190_v42 = vrot.slane %v4189_v29, 4  ;;  %v6286_v14 = vld [vmem:[%s7510_s27 + $0x34] sm:$0xf] }
  0xb2   : > { %7003 = vmatprep.mubr.msk.bf16.mxu0 %vm324_vm1, %v7400_v2  ;;  %v4200_v6 = vrot.slane %v4199_v34, 4  ;;  %v4222_v7 = vrot.slane %v4220_v21, 4  ;;  %v4228_v35 = vrot.slane %v4226_v26, 5  ;;  %v1548_v45 = vrot.slane %v1400_v18, 5  ;;  %v6287_v24 = vld [vmem:[%s7510_s27 + $0x38] sm:$0x1] }
  0xb3   : > { %v4214_v44 = vrot.slane %v4213_v22, 4  ;;  %v1551_v46 = vrot.slane %v1401_v27, 5  ;;  %v5935_v51 = vrot.slane %v1402_v19, 9  ;;  %v4195_v36 = vsel %vm7557_vm4, %v4190_v42, %v4194_v5  ;;  %v6288_v9 = vld [vmem:[%s7510_s27 + $0x3c] sm:$0xf] }
  0xb4   : > { %v4205_v53 = vsel %vm7557_vm4, %v4200_v6, %v4204_v13  ;;  %v4223_v12 = vor.u32 %v4222_v7, %v4218_v32  ;;  %v1555_v55 = vrot.slane %v1403_v56, 5  ;;  %v8190_v1 = vsel %vm7632_vm7, %v5934_v52, %v1548_v45  ;;  %v6290_v34 = vld [vmem:[%s7510_s27 + $0x44] sm:$0x1]  ;;  %v1405_v22 = vld [vmem:[%s7510_s27 + $0xa8] sm:$0xe] }
  0xb5   : > { %v8184_v62 = vcombine.low %v4195_v36, %v4205_v53  ;;  %v4219_v63 = vsel %vm7557_vm4, %v4214_v44, %v4218_v32  ;;  %v1550_v2 = vrot.slane %v1548_v45, 4  ;;  %6852 = vmatmul.mubr.msk.bf16.gmra.mrb[8].mxu1 %vm324_vm1, %v5944_v59  ;;  %v1558_v13 = vrot.slane %v1404_v50, 5  ;;  %v1406_v32 = vld [vmem:[%s7510_s27 + $0xac] sm:$0xf]  ;;  %v1407_v7 = vld [vmem:[%s7510_s27 + $0xb0] sm:$0x1] }
  0xb6   : > { %v4224_v5 = vrot.slane %v4223_v12, 4  ;;  %v8199_v15 = vsel %vm7632_vm7, %v5935_v51, %v1555_v55  ;;  %v1557_v10 = vrot.slane %v1555_v55, 4  ;;  %6855 = vmatprep.mubr.msk.bf16.mxu1 %vm324_vm1, %v5945_v60  ;;  %v4231_v30 = vshrl.u32 %v6285_v28, 16  ;;  %v6289_v60 = vld [vmem:[%s7510_s27 + $0x40] sm:$0xf]  ;;  %v7403_v51 = vld [vmem:[%s7510_s27 + $0xcc] sm:$0xff]  }
  0xb7   : > { %v8208_v41 = vsel %vm7632_vm7, %v1550_v2, %v1551_v46  ;;  %v4234_v59 = vshll.u32 %v6285_v28, 16  ;;  %v4240_v33 = vshll.u32 %v6286_v14, 16  ;;  %v4244_v37 = vshrl.u32 %v6286_v14, 16  ;;  %v1408_v50 = vld [vmem:[%s7510_s27 + $0xb4] sm:$0xe] }
  0xb8   : > { %v4229_v18 = vsel %vm7557_vm4, %v4224_v5, %v4228_v35  ;;  %v5951_v29 = vcombine.low %v8190_v1, %v8208_v41  ;;  %v8217_v48 = vsel %vm7632_vm7, %v1557_v10, %v1558_v13  ;;  %v4233_v27 = vrot.slane %v4231_v30, 4  ;;  %v1409_v28 = vld [vmem:[%s7510_s27 + $0xb8] sm:$0xf]  ;;  %v6291_v5 = vld [vmem:[%s7510_s27 + $0x48] sm:$0xf] }
  0xb9   : > { %7004 = vmatmul.mubr.msk.bf16.gmra.mrb[24].mxu0 %vm324_vm1, %v7401_v58  ;;  %v8222_v21 = vcombine.low %v4219_v63, %v4229_v18  ;;  %v5952_v26 = vcombine.low %v8199_v15, %v8217_v48  ;;  %v4236_v19 = vrot.slane %v4234_v59, 5  ;;  %v4242_v52 = vrot.slane %v4240_v33, 5 }
  0xba   : > { %7007 = vmatprep.mubr.msk.bf16.mxu0 %vm324_vm1, %v7402_v3  ;;  %v4246_v56 = vrot.slane %v4244_v37, 4  ;;  %v4250_v42 = vshll.u32 %v6287_v24, 16  ;;  %v4255_v6 = vshrl.u32 %v6288_v9, 16  ;;  %v4258_v44 = vshll.u32 %v6288_v9, 16  ;;  %v1410_v3 = vld [vmem:[%s7510_s27 + $0xbc] sm:$0x1] }
  0xbb   : > { %v4237_v35 = vor.u32 %v4236_v19, %v4233_v27  ;;  %v4264_v45 = vshll.u32 %v6289_v60, 16  ;;  %v4268_v46 = vshrl.u32 %v6289_v60, 16  ;;  %v4274_v55 = vshll.u32 %v6290_v34, 16  ;;  %v6293_v27 = vld [vmem:[%s7510_s27 + $0x50] sm:$0x1] }
  0xbc   : > { %v4247_v36 = vor.u32 %v4246_v56, %v4242_v52  ;;  %v4252_v53 = vrot.slane %v4250_v42, 5  ;;  %v4257_v12 = vrot.slane %v4255_v6, 4  ;;  %v4260_v58 = vrot.slane %v4258_v44, 5  ;;  %v6294_v56 = vld [vmem:[%s7510_s27 + $0x54] sm:$0xf] }
  0xbd   : > { %v4238_v14 = vrot.slane %v4237_v35, 4  ;;  %v4266_v63 = vrot.slane %v4264_v45, 5  ;;  %v4270_v2 = vrot.slane %v4268_v46, 4  ;;  %6856 = vmatmul.mubr.msk.bf16.gmra.mrb[12].mxu1 %vm324_vm1, %v5946_v20  ;;  %v4276_v13 = vrot.slane %v4274_v55, 5  ;;  %v6295_v35 = vld [vmem:[%s7510_s27 + $0x58] sm:$0xf] }
  0xbe   : > { %v4248_v10 = vrot.slane %v4247_v36, 4  ;;  %v5936_v24 = vrot.slane %v1405_v22, 9  ;;  %v1562_v30 = vrot.slane %v1406_v32, 5  ;;  %6859 = vmatprep.mubr.msk.bf16.mxu1 %vm324_vm1, %v5947_v38  ;;  %v4261_v33 = vor.u32 %v4260_v58, %v4257_v12  ;;  %v6297_v36 = vld [vmem:[%s7510_s27 + $0x60] sm:$0xf] }
  0xbf   : > { %v4243_v59 = vsel %vm7557_vm4, %v4238_v14, %v4242_v52  ;;  %v4271_v9 = vor.u32 %v4270_v2, %v4266_v63  ;;  %v1565_v18 = vrot.slane %v1407_v7, 5  ;;  %v5937_v37 = vrot.slane %v1408_v50, 9 }
  0xc0   : > { %v4253_v61 = vsel %vm7557_vm4, %v4248_v10, %v4252_v53  ;;  %v8249_v11 = vsel %vm7632_vm7, %v5936_v24, %v1562_v30  ;;  %v1564_v20 = vrot.slane %v1562_v30, 4  ;;  %v4262_v38 = vrot.slane %v4261_v33, 4 }
  0xc1   : > { %7008 = vmatmul.mubr.msk.bf16.gmra.mrb[28].mxu0 %vm324_vm1, %v7403_v51  ;;  %v6330_v54 = vcombine.low %v4243_v59, %v4253_v61  ;;  %v4272_v60 = vrot.slane %v4271_v9, 4  ;;  %v1569_v34 = vrot.slane %v1409_v28, 5  ;;  %v1572_v22 = vrot.slane %v1410_v3, 5  ;;  %v6296_v51 = vld [vmem:[%s7510_s27 + $0x5c] sm:$0x1] }
  0xc2   : > { %7013 = vmatprep.mubr.msk.bf16.mxu0 %vm324_vm1, %v8184_v62  ;;  %v8258_v19 = vsel %vm7632_vm7, %v1564_v20, %v1565_v18  ;;  %v4279_v32 = vshrl.u32 %v6291_v5, 16  ;;  %v4282_v52 = vshll.u32 %v6291_v5, 16  ;;  %v4267_v42 = vsel %vm7557_vm4, %v4262_v38, %v4266_v63  ;;  %v6299_v18 = vld [vmem:[%s7510_s27 + $0x68] sm:$0x1] }
  0xc3   : > { %v4277_v6 = vsel %vm7557_vm4, %v4272_v60, %v4276_v13  ;;  %v5953_v7 = vcombine.low %v8249_v11, %v8258_v19  ;;  %v8269_v62 = vsel %vm7632_vm7, %v5937_v37, %v1569_v34  ;;  %v1571_v45 = vrot.slane %v1569_v34, 4  ;;  %v6300_v37 = vld [vmem:[%s7510_s27 + $0x6c] sm:$0xf]  ;;  %v6301_v34 = vld [vmem:[%s7510_s27 + $0x70] sm:$0xf] }
  0xc4   : > { %v8272_v44 = vcombine.low %v4267_v42, %v4277_v6  ;;  %v4281_v46 = vrot.slane %v4279_v32, 4  ;;  %v4284_v50 = vrot.slane %v4282_v52, 5  ;;  %v4288_v53 = vshll.u32 %v6292_v17, 16 }
  0xc5   : > { %v4292_v12 = vshrl.u32 %v6292_v17, 16  ;;  %v4298_v55 = vshll.u32 %v6293_v27, 16  ;;  %v4303_v28 = vshrl.u32 %v6294_v56, 16  ;;  %6860 = vmatmul.mubr.msk.bf16.gmra.mrb[16].mxu1 %vm324_vm1, %v5948_v47  ;;  %v8282_v14 = vsel %vm7632_vm7, %v1571_v45, %v1572_v22 }
  0xc6   : > { %v4285_v58 = vor.u32 %v4284_v50, %v4281_v46  ;;  %v4306_v63 = vshll.u32 %v6294_v56, 16  ;;  %v4312_v2 = vshll.u32 %v6295_v35, 16  ;;  %6863 = vmatprep.mubr.msk.bf16.mxu1 %vm324_vm1, %v5949_v16  ;;  %v5954_v3 = vcombine.low %v8269_v62, %v8282_v14 }
  0xc7   : > { %v4290_v5 = vrot.slane %v4288_v53, 5  ;;  %v4294_v10 = vrot.slane %v4292_v12, 4  ;;  %v4300_v25 = vrot.slane %v4298_v55, 5  ;;  %v4305_v13 = vrot.slane %v4303_v28, 4 }
  0xc8   : > { %v4286_v47 = vrot.slane %v4285_v58, 4  ;;  %v4308_v24 = vrot.slane %v4306_v63, 5  ;;  %v4314_v30 = vrot.slane %v4312_v2, 5  ;;  %v4316_v31 = vshrl.u32 %v6295_v35, 16 }
  0xc9   : > { %7014 = vmatmul.mubr.msk.bf16.vlgmr.msra.gmra.mrb[0].mxu0 %vm324_vm1, %v8222_v21  ;;  %v4295_v59 = vor.u32 %v4294_v10, %v4290_v5  ;;  %v4322_v40 = vshll.u32 %v6296_v51, 16  ;;  %v4327_v16 = vshrl.u32 %v6297_v36, 16  ;;  %v4330_v61 = vshll.u32 %v6297_v36, 16  ;;  %v6303_v51 = vld [vmem:[%s7510_s27 + $0x78] sm:$0xf] }
  0xca   : > { %7046 = vmatpush3.bf16.msra.mxu0 %v8172_v23  ;;  %7017 = vmatprep.mubr.msk.bf16.mxu0 %vm324_vm1, %v6330_v54  ;;  %v4291_v33 = vsel %vm7557_vm4, %v4286_v47, %v4290_v5  ;;  %v4309_v9 = vor.u32 %v4308_v24, %v4305_v13  ;;  %v4336_v20 = vshll.u32 %v6298_v39, 16  ;;  %v4318_v21 = vrot.slane %v4316_v31, 4  ;;  %v6302_v54 = vld [vmem:[%s7510_s27 + $0x74] sm:$0x1]  ;;  %v6306_v47 = vld [vmem:[%s7510_s27 + $0x84] sm:$0xf] }
  0xcb   : > { %v4296_v17 = vrot.slane %v4295_v59, 4  ;;  %v4324_v38 = vrot.slane %v4322_v40, 5  ;;  %v4329_v60 = vrot.slane %v4327_v16, 4  ;;  %v4332_v22 = vrot.slane %v4330_v61, 5  ;;  %v6307_v59 = vld [vmem:[%s7510_s27 + $0x88] sm:$0xf] }
  0xcc   : > { %v4310_v27 = vrot.slane %v4309_v9, 4  ;;  %v4338_v23 = vrot.slane %v4336_v20, 5  ;;  %v4340_v32 = vshrl.u32 %v6298_v39, 16  ;;  %v4319_v56 = vor.u32 %v4318_v21, %v4314_v30  ;;  %v6305_v39 = vld [vmem:[%s7510_s27 + $0x80] sm:$0x1] }
  0xcd   : > { %v4301_v52 = vsel %vm7557_vm4, %v4296_v17, %v4300_v25  ;;  %v4346_v42 = vshll.u32 %v6299_v18, 16  ;;  %v4351_v6 = vshrl.u32 %v6300_v37, 16  ;;  %6864 = vmatmul.mubr.msk.bf16.gmra.mrb[20].mxu1 %vm324_vm1, %v5950_v8  ;;  %v4333_v46 = vor.u32 %v4332_v22, %v4329_v60 }
  0xce   : > { %v6332_v35 = vcombine.low %v4291_v33, %v4301_v52  ;;  %v4315_v45 = vsel %vm7557_vm4, %v4310_v27, %v4314_v30  ;;  %v4342_v50 = vrot.slane %v4340_v32, 4  ;;  %6867 = vmatprep.mubr.msk.bf16.mxu1 %vm324_vm1, %v5951_v29  ;;  %v4320_v36 = vrot.slane %v4319_v56, 4  ;;  %v6304_v29 = vld [vmem:[%s7510_s27 + $0x7c] sm:$0xf]  ;;  %v6310_v52 = vld [vmem:[%s7510_s27 + $0x94] sm:$0xf] }
  0xcf   : > { %v4348_v53 = vrot.slane %v4346_v42, 5  ;;  %v4353_v12 = vrot.slane %v4351_v6, 4  ;;  %v4354_v55 = vshll.u32 %v6300_v37, 16  ;;  %v4334_v49 = vrot.slane %v4333_v46, 4  ;;  %v6311_v42 = vld [vmem:[%s7510_s27 + $0x98] sm:$0x1] }
  0xd0   : > { %v4343_v57 = vor.u32 %v4342_v50, %v4338_v23  ;;  %v4360_v8 = vshll.u32 %v6301_v34, 16  ;;  %v4364_v28 = vshrl.u32 %v6301_v34, 16  ;;  %v4325_v58 = vsel %vm7557_vm4, %v4320_v36, %v4324_v38  ;;  %v6308_v38 = vld [vmem:[%s7510_s27 + $0x8c] sm:$0x1]  ;;  %v6312_v50 = vld [vmem:[%s7510_s27 + $0x9c] sm:$0xf] }
  0xd1   : > { %7018 = vmatmul.mubr.msk.bf16.gmra.mrb[4].mxu0 %vm324_vm1, %v8272_v44  ;;  %v4356_v1 = vrot.slane %v4354_v55, 5  ;;  %v4370_v41 = vshll.u32 %v6302_v54, 16  ;;  %v4375_v63 = vshrl.u32 %v6303_v51, 16  ;;  %v6333_v2 = vcombine.low %v4315_v45, %v4325_v58  ;;  %v6309_v54 = vld [vmem:[%s7510_s27 + $0x90] sm:$0xf] }
  0xd2   : > { %7021 = vmatprep.mubr.msk.bf16.mxu0 %vm324_vm1, %v6332_v35  ;;  %v4339_v5 = vsel %vm7557_vm4, %v4334_v49, %v4338_v23  ;;  %v4344_v10 = vrot.slane %v4343_v57, 4  ;;  %v4362_v25 = vrot.slane %v4360_v8, 5  ;;  %v4366_v44 = vrot.slane %v4364_v28, 4 }
  0xd3   : > { %v4357_v13 = vor.u32 %v4356_v1, %v4353_v12  ;;  %v4372_v24 = vrot.slane %v4370_v41, 5  ;;  %v4377_v30 = vrot.slane %v4375_v63, 4  ;;  %v4378_v40 = vshll.u32 %v6303_v51, 16  ;;  %v7404_v51 = vld [vmem:[%s7510_s27 + $0xc] sm:$0xff]   ;;  %v6313_v63 = vld [vmem:[%s7510_s27 + $0xa0] sm:$0xf] }
  0xd4   : > { %v4349_v31 = vsel %vm7557_vm4, %v4344_v10, %v4348_v53  ;;  %v4384_v16 = vshll.u32 %v6304_v29, 16  ;;  %v4388_v33 = vshrl.u32 %v6304_v29, 16  ;;  %v4367_v61 = vor.u32 %v4366_v44, %v4362_v25 }
  0xd5   : > { %v6334_v9 = vcombine.low %v4339_v5, %v4349_v31  ;;  %v4358_v18 = vrot.slane %v4357_v13, 4  ;;  %v4394_v20 = vshll.u32 %v6305_v39, 16  ;;  %6868 = vmatmul.mubr.msk.bf16.gmra.mrb[24].mxu1 %vm324_vm1, %v5952_v26  ;;  %v4380_v37 = vrot.slane %v4378_v40, 5  ;;  %v6314_v13 = vld [vmem:[%s7510_s27 + $0xa4] sm:$0x1]  ;;  %v7405_v31 = vld [vmem:[%s7510_s27 + $0x18] sm:$0xff]  }
  0xd6   : > { %v4386_v17 = vrot.slane %v4384_v16, 5  ;;  %v4390_v21 = vrot.slane %v4388_v33, 4  ;;  %v4399_v60 = vshrl.u32 %v6306_v47, 16  ;;  %6871 = vmatprep.mubr.msk.bf16.mxu1 %vm324_vm1, %v5953_v7  ;;  %v4368_v27 = vrot.slane %v4367_v61, 4 }
  0xd7   : > { %v4363_v34 = vsel %vm7557_vm4, %v4358_v18, %v4362_v25  ;;  %v4396_v15 = vrot.slane %v4394_v20, 5  ;;  %v4402_v48 = vshll.u32 %v6306_v47, 16  ;;  %v4381_v22 = vor.u32 %v4380_v37, %v4377_v30  ;;  %v6316_v18 = vld [vmem:[%s7510_s27 + $0xac] sm:$0xf] }
  0xd8   : > { %v4391_v26 = vor.u32 %v4390_v21, %v4386_v17  ;;  %v4401_v23 = vrot.slane %v4399_v60, 4  ;;  %v4408_v32 = vshll.u32 %v6307_v59, 16  ;;  %v4373_v11 = vsel %vm7557_vm4, %v4368_v27, %v4372_v24  ;;  %v6317_v21 = vld [vmem:[%s7510_s27 + $0xb0] sm:$0x1] }
  0xd9   : > { %7022 = vmatmul.mubr.msk.bf16.gmra.mrb[8].mxu0 %vm324_vm1, %v6333_v2  ;;  %v4404_v19 = vrot.slane %v4402_v48, 5  ;;  %v4412_v7 = vshrl.u32 %v6307_v59, 16  ;;  %v4418_v56 = vshll.u32 %v6308_v38, 16  ;;  %v6335_v6 = vcombine.low %v4363_v34, %v4373_v11  ;;  %v6315_v59 = vld [vmem:[%s7510_s27 + $0xa8] sm:$0xf] }
  0xda   : > { %7025 = vmatprep.mubr.msk.bf16.mxu0 %vm324_vm1, %v6334_v9  ;;  %v4382_v35 = vrot.slane %v4381_v22, 4  ;;  %v4392_v45 = vrot.slane %v4391_v26, 4  ;;  %v4410_v46 = vrot.slane %v4408_v32, 5  ;;  %v4423_v55 = vshrl.u32 %v6309_v54, 16  ;;  %v7406_v38 = vld [vmem:[%s7510_s27 + $0x24] sm:$0xff]  }
  0xdb   : > { %v4405_v36 = vor.u32 %v4404_v19, %v4401_v23  ;;  %v4414_v53 = vrot.slane %v4412_v7, 4  ;;  %v4420_v12 = vrot.slane %v4418_v56, 5  ;;  %v4426_v8 = vshll.u32 %v6309_v54, 16  ;;  %v6318_v48 = vld [vmem:[%s7510_s27 + $0xb4] sm:$0xf] }
  0xdc   : > { %v4387_v49 = vsel %vm7557_vm4, %v4382_v35, %v4386_v17  ;;  %v4397_v57 = vsel %vm7557_vm4, %v4392_v45, %v4396_v15  ;;  %v4432_v28 = vshll.u32 %v6310_v52, 16  ;;  %v4425_v29 = vrot.slane %v4423_v55, 4  ;;  %v6319_v35 = vld [vmem:[%s7510_s27 + $0xb8] sm:$0xf]  ;;  %v6320_v55 = vld [vmem:[%s7510_s27 + $0xbc] sm:$0x1] }
  0xdd   : > { %v6336_v58 = vcombine.low %v4387_v49, %v4397_v57  ;;  %v4406_v1 = vrot.slane %v4405_v36, 4  ;;  %v4415_v41 = vor.u32 %v4414_v53, %v4410_v46  ;;  %6872 = vmatmul.mubr.msk.bf16.gmra.mrb[28].mxu1 %vm324_vm1, %v5954_v3  ;;  %v4428_v2 = vrot.slane %v4426_v8, 5  ;;  %v7407_v36 = vld [vmem:[%s7510_s27 + $0x30] sm:$0xff]   ;;  %v7408_v8 = vld [vmem:[%s7510_s27 + $0x3c] sm:$0xff]  }
  0xde   : > { %v4434_v5 = vrot.slane %v4432_v28, 5  ;;  %v4436_v10 = vshrl.u32 %v6310_v52, 16  ;;  %v4442_v25 = vshll.u32 %v6311_v42, 16  ;;  %6877 = vmatprep.mubr.msk.bf16.mxu1 %vm324_vm1, %v7404_v51  ;;  %v4447_v44 = vshrl.u32 %v6312_v50, 16 }
  0xdf   : > { %v4411_v39 = vsel %vm7557_vm4, %v4406_v1, %v4410_v46  ;;  %v4416_v47 = vrot.slane %v4415_v41, 4  ;;  %v4450_v24 = vshll.u32 %v6312_v50, 16  ;;  %v4429_v30 = vor.u32 %v4428_v2, %v4425_v29  ;;  %v6321_v41 = vld [vmem:[%s7510_s27 + $0xc0] sm:$0xf] }
  0xe0   : > { %v4438_v62 = vrot.slane %v4436_v10, 4  ;;  %v4444_v14 = vrot.slane %v4442_v25, 5  ;;  %v4456_v3 = vshll.u32 %v6313_v63, 16  ;;  %v4449_v16 = vrot.slane %v4447_v44, 4  ;;  %v6322_v10 = vld [vmem:[%s7510_s27 + $0xc4] sm:$0xf] }
  0xe1   : > { %7026 = vmatmul.mubr.msk.bf16.gmra.mrb[12].mxu0 %vm324_vm1, %v6335_v6  ;;  %v4421_v40 = vsel %vm7557_vm4, %v4416_v47, %v4420_v12  ;;  %v4452_v33 = vrot.slane %v4450_v24, 5  ;;  %v4460_v9 = vshrl.u32 %v6313_v63, 16  ;;  %v4430_v20 = vrot.slane %v4429_v30, 4  ;;  %v6323_v44 = vld [vmem:[%s7510_s27 + $0xc8] sm:$0x1] }
  0xe2   : > { %7029 = vmatprep.mubr.msk.bf16.mxu0 %vm324_vm1, %v6336_v58  ;;  %v6337_v61 = vcombine.low %v4411_v39, %v4421_v40  ;;  %v4439_v37 = vor.u32 %v4438_v62, %v4434_v5  ;;  %v4458_v17 = vrot.slane %v4456_v3, 5  ;;  %v4466_v27 = vshll.u32 %v6314_v13, 16 }
  0xe3   : > { %v4453_v60 = vor.u32 %v4452_v33, %v4449_v16  ;;  %v4462_v34 = vrot.slane %v4460_v9, 4  ;;  %v4471_v15 = vshrl.u32 %v6315_v59, 16  ;;  %v4435_v22 = vsel %vm7557_vm4, %v4430_v20, %v4434_v5  ;;  %v6324_v16 = vld [vmem:[%s7510_s27 + $0xcc] sm:$0xf]  ;;  %v6325_v20 = vld [vmem:[%s7510_s27 + $0xd0] sm:$0xf] }
  0xe4   : > { %v4440_v26 = vrot.slane %v4439_v37, 4  ;;  %v4474_v23 = vshll.u32 %v6315_v59, 16  ;;  %v4480_v32 = vshll.u32 %v6316_v18, 16  ;;  %v4468_v11 = vrot.slane %v4466_v27, 5 }
  0xe5   : > { %v4454_v54 = vrot.slane %v4453_v60, 4  ;;  %v4463_v52 = vor.u32 %v4462_v34, %v4458_v17  ;;  %v4473_v19 = vrot.slane %v4471_v15, 4  ;;  %6878 = vmatmul.mubr.msk.bf16.vlgmr.msra.gmra.mrb[0].mxu1 %vm324_vm1, %v7405_v31  ;;  %v4484_v6 = vshrl.u32 %v6316_v18, 16  ;;  %v6326_v60 = vld [vmem:[%s7510_s27 + $0xd4] sm:$0x1]  ;;  %v7409_v34 = vld [vmem:[%s7510_s27 + $0x48] sm:$0xff]  }
  0xe6   : > { %v4445_v7 = vsel %vm7557_vm4, %v4440_v26, %v4444_v14  ;;  %v4476_v56 = vrot.slane %v4474_v23, 5  ;;  %v4482_v42 = vrot.slane %v4480_v32, 5  ;;  %6881 = vmatprep.mubr.msk.bf16.mxu1 %vm324_vm1, %v7406_v38  ;;  %7080 = vmatpush3.bf16.msra.mxu1 %v7498_v4  ;;  %v4490_v51 = vshll.u32 %v6317_v21, 16  ;;  %v6360_v26 = vld [vmem:[%s7510_s27 + $0x18] sm:$0xe] }
  0xe7   : > { %v6338_v45 = vcombine.low %v4435_v22, %v4445_v7  ;;  %v4459_v46 = vsel %vm7557_vm4, %v4454_v54, %v4458_v17  ;;  %v4464_v50 = vrot.slane %v4463_v52, 4  ;;  %v4486_v12 = vrot.slane %v4484_v6, 4  ;;  %v6361_v23 = vld [vmem:[%s7510_s27 + $0x1c] sm:$0xf]  ;;  %v7410_v32 = vld [vmem:[%s7510_s27 + $0x54] sm:$0xff]  }
  0xe8   : > { %v4477_v53 = vor.u32 %v4476_v56, %v4473_v19  ;;  %v4495_v49 = vshrl.u32 %v6318_v48, 16  ;;  %v4498_v57 = vshll.u32 %v6318_v48, 16  ;;  %v4492_v28 = vrot.slane %v4490_v51, 5  ;;  %v6362_v7 = vld [vmem:[%s7510_s27 + $0x20] sm:$0x1] }
  0xe9   : > { %7030 = vmatmul.mubr.msk.bf16.gmra.mrb[16].mxu0 %vm324_vm1, %v6337_v61  ;;  %v4469_v4 = vsel %vm7557_vm4, %v4464_v50, %v4468_v11  ;;  %v4504_v58 = vshll.u32 %v6319_v35, 16  ;;  %v4508_v1 = vshrl.u32 %v6319_v35, 16  ;;  %v4487_v2 = vor.u32 %v4486_v12, %v4482_v42  ;;  %v6364_v56 = vld [vmem:[%s7510_s27 + $0x28] sm:$0xf] }
  0xea   : > { %7033 = vmatprep.mubr.msk.bf16.mxu0 %vm324_vm1, %v6338_v45  ;;  %v6339_v29 = vcombine.low %v4459_v46, %v4469_v4  ;;  %v4478_v63 = vrot.slane %v4477_v53, 4  ;;  %v4497_v5 = vrot.slane %v4495_v49, 4  ;;  %v4500_v25 = vrot.slane %v4498_v57, 5  ;;  %v6363_v45 = vld [vmem:[%s7510_s27 + $0x24] sm:$0xe] }
  0xeb   : > { %v4506_v39 = vrot.slane %v4504_v58, 5  ;;  %v4510_v47 = vrot.slane %v4508_v1, 4  ;;  %v4514_v13 = vshll.u32 %v6320_v55, 16  ;;  %v4488_v30 = vrot.slane %v4487_v2, 4  ;;  %v6365_v57 = vld [vmem:[%s7510_s27 + $0x2c] sm:$0x1] }
  0xec   : > { %v4483_v24 = vsel %vm7557_vm4, %v4478_v63, %v4482_v42  ;;  %v4519_v62 = vshrl.u32 %v6321_v41, 16  ;;  %v4522_v14 = vshll.u32 %v6321_v41, 16  ;;  %v4501_v3 = vor.u32 %v4500_v25, %v4497_v5  ;;  %v6366_v1 = vld [vmem:[%s7510_s27 + $0x30] sm:$0xe]  ;;  %v6367_v5 = vld [vmem:[%s7510_s27 + $0x34] sm:$0xf] }
  0xed   : > { %v4511_v59 = vor.u32 %v4510_v47, %v4506_v39  ;;  %v4516_v31 = vrot.slane %v4514_v13, 5  ;;  %v4528_v40 = vshll.u32 %v6322_v10, 16  ;;  %6882 = vmatmul.mubr.msk.bf16.gmra.mrb[4].mxu1 %vm324_vm1, %v7407_v36  ;;  %v4493_v33 = vsel %vm7557_vm4, %v4488_v30, %v4492_v28  ;;  %v6368_v13 = vld [vmem:[%s7510_s27 + $0x38] sm:$0x1] }
  0xee   : > { %v4521_v9 = vrot.slane %v4519_v62, 4  ;;  %v4524_v18 = vrot.slane %v4522_v14, 5  ;;  %v4532_v61 = vshrl.u32 %v6322_v10, 16  ;;  %6885 = vmatprep.mubr.msk.bf16.mxu1 %vm324_vm1, %v7408_v8  ;;  %v6340_v37 = vcombine.low %v4483_v24, %v4493_v33  ;;  %v6369_v62 = vld [vmem:[%s7510_s27 + $0x3c] sm:$0xe]  ;;  %v7411_v14 = vld [vmem:[%s7510_s27 + $0x60] sm:$0xff]  }
  0xef   : > { %v4502_v17 = vrot.slane %v4501_v3, 4  ;;  %v4512_v21 = vrot.slane %v4511_v59, 4  ;;  %v4530_v38 = vrot.slane %v4528_v40, 5  ;;  %v4538_v48 = vshll.u32 %v6323_v44, 16  ;;  %v7412_v33 = vld [vmem:[%s7510_s27 + $0x6c] sm:$0xff]  }
  0xf0   : > { %v4525_v27 = vor.u32 %v4524_v18, %v4521_v9  ;;  %v4534_v15 = vrot.slane %v4532_v61, 4  ;;  %v4543_v22 = vshrl.u32 %v6324_v16, 16  ;;  %v4546_v11 = vshll.u32 %v6324_v16, 16  ;;  %v6370_v16 = vld [vmem:[%s7510_s27 + $0x40] sm:$0xf] }
  0xf1   : > { %7034 = vmatmul.mubr.msk.bf16.gmra.mrb[20].mxu0 %vm324_vm1, %v6339_v29  ;;  %v4507_v54 = vsel %vm7557_vm4, %v4502_v17, %v4506_v39  ;;  %v4517_v52 = vsel %vm7557_vm4, %v4512_v21, %v4516_v31  ;;  %v4552_v19 = vshll.u32 %v6325_v20, 16  ;;  %v4540_v35 = vrot.slane %v4538_v48, 5 }
  0xf2   : > { %7037 = vmatprep.mubr.msk.bf16.mxu0 %vm324_vm1, %v6340_v37  ;;  %v4526_v42 = vrot.slane %v4525_v27, 4  ;;  %v4535_v6 = vor.u32 %v4534_v15, %v4530_v38  ;;  %v4545_v46 = vrot.slane %v4543_v22, 4  ;;  %v4548_v50 = vrot.slane %v4546_v11, 5  ;;  %v6373_v37 = vld [vmem:[%s7510_s27 + $0x4c] sm:$0xf] }
  0xf3   : > { %v4554_v51 = vrot.slane %v4552_v19, 5  ;;  %v4556_v36 = vshrl.u32 %v6325_v20, 16  ;;  %v6341_v53 = vcombine.low %v4507_v54, %v4517_v52  ;;  %v4562_v49 = vshll.u32 %v6326_v60, 16  ;;  %v6372_v20 = vld [vmem:[%s7510_s27 + $0x48] sm:$0xe] }
  0xf4   : > { %v4531_v12 = vsel %vm7557_vm4, %v4526_v42, %v4530_v38  ;;  %v4536_v55 = vrot.slane %v4535_v6, 4  ;;  %v4549_v8 = vor.u32 %v4548_v50, %v4545_v46  ;;  %v6408_v28 = vrot.slane %v6360_v26, 9  ;;  %v6371_v60 = vld [vmem:[%s7510_s27 + $0x44] sm:$0x1]  ;;  %v6375_v27 = vld [vmem:[%s7510_s27 + $0x54] sm:$0xe] }
  0xf5   : > { %v4558_v4 = vrot.slane %v4556_v36, 4  ;;  %v5022_v58 = vrot.slane %v6361_v23, 5  ;;  %6886 = vmatmul.mubr.msk.bf16.gmra.mrb[8].mxu1 %vm324_vm1, %v7409_v34  ;;  %v4564_v29 = vrot.slane %v4562_v49, 5  ;;  %v5025_v63 = vrot.slane %v6362_v7, 5  ;;  %v6374_v34 = vld [vmem:[%s7510_s27 + $0x50] sm:$0x1] }
  0xf6   : > { %v4541_v41 = vsel %vm7557_vm4, %v4536_v55, %v4540_v35  ;;  %v5029_v2 = vrot.slane %v6364_v56, 5  ;;  %6889 = vmatprep.mubr.msk.bf16.mxu1 %vm324_vm1, %v7410_v32  ;;  %v4550_v25 = vrot.slane %v4549_v8, 4  ;;  %v6409_v47 = vrot.slane %v6363_v45, 9  ;;  %v6376_v23 = vld [vmem:[%s7510_s27 + $0x58] sm:$0xf] }
  0xf7   : > { %v6342_v10 = vcombine.low %v4531_v12, %v4541_v41  ;;  %v4559_v39 = vor.u32 %v4558_v4, %v4554_v51  ;;  %v5024_v44 = vrot.slane %v5022_v58, 4  ;;  %v5032_v30 = vrot.slane %v6365_v57, 5  ;;  %v6377_v19 = vld [vmem:[%s7510_s27 + $0x5c] sm:$0x1]  ;;  %v6060_v7 = vld [vmem:[%s7510_s27 + $0x6c] sm:$0xf] }
  0xf8   : > { %v5031_v24 = vrot.slane %v5029_v2, 4  ;;  %v5023_v59 = vsel %vm7632_vm7, %v6408_v28, %v5022_v58  ;;  %v6410_v31 = vrot.slane %v6366_v1, 9  ;;  %v5036_v40 = vrot.slane %v6367_v5, 5  ;;  %v6061_v45 = vld [vmem:[%s7510_s27 + $0x70] sm:$0xf]  ;;  %v7413_v41 = vld [vmem:[%s7510_s27 + $0x78] sm:$0xff]  }
  0xf9   : > { %7038 = vmatmul.mubr.msk.bf16.gmra.mrb[24].mxu0 %vm324_vm1, %v6341_v53  ;;  %v4560_v3 = vrot.slane %v4559_v39, 4  ;;  %v4555_v9 = vsel %vm7557_vm4, %v4550_v25, %v4554_v51  ;;  %v5026_v18 = vsel %vm7632_vm7, %v5024_v44, %v5025_v63  ;;  %v5039_v61 = vrot.slane %v6368_v13, 5  ;;  %v6062_v55 = vld [vmem:[%s7510_s27 + $0x74] sm:$0x1]  ;;  %v6063_v57 = vld [vmem:[%s7510_s27 + $0x78] sm:$0xf] }
  0xfa   : > { %7041 = vmatprep.mubr.msk.bf16.mxu0 %vm324_vm1, %v6342_v10  ;;  %v8440_v21 = vsel %vm7632_vm7, %v6409_v47, %v5029_v2  ;;  %v8444_v38 = vsel %vm7632_vm7, %v5031_v24, %v5032_v30  ;;  %v6425_v15 = vcombine.low %v5023_v59, %v5026_v18  ;;  %v5038_v48 = vrot.slane %v5036_v40, 4  ;;  %v6064_v1 = vld [vmem:[%s7510_s27 + $0x7c] sm:$0xf]  ;;  %v7414_v10 = vld [vmem:[%s7510_s27 + $0x84] sm:$0xff]   ;;  %v6065_v24 = vld [vmem:[%s7510_s27 + $0x80] sm:$0x1] }
  0xfb   : > { %v4565_v17 = vsel %vm7557_vm4, %v4560_v3, %v4564_v29  ;;  %v6411_v22 = vrot.slane %v6369_v62, 9  ;;  %v5043_v26 = vrot.slane %v6370_v16, 5  ;;  %v8452_v54 = vsel %vm7632_vm7, %v6410_v31, %v5036_v40  ;;  %v6378_v16 = vld [vmem:[%s7510_s27 + $0x60] sm:$0xe] }
  0xfc   : > { %v6343_v32 = vcombine.low %v4555_v9, %v4565_v17  ;;  %v6412_v52 = vrot.slane %v6372_v20, 9  ;;  %v5050_v11 = vrot.slane %v6373_v37, 5  ;;  %v8459_v56 = vsel %vm7632_vm7, %v5038_v48, %v5039_v61  ;;  %v6382_v37 = vld [vmem:[%s7510_s27 + $0x70] sm:$0xf]  ;;  %v6380_v48 = vld [vmem:[%s7510_s27 + $0x68] sm:$0x1] }
  0xfd   : > { %6890 = vmatmul.mubr.msk.bf16.gmra.mrb[12].mxu1 %vm324_vm1, %v7411_v14  ;;  %v5045_v42 = vrot.slane %v5043_v26, 4  ;;  %v5046_v6 = vrot.slane %v6371_v60, 5  ;;  %v6413_v35 = vrot.slane %v6375_v27, 9  ;;  %v6426_v46 = vcombine.low %v8440_v21, %v8444_v38 }
  0xfe   : > { %6893 = vmatprep.mubr.msk.bf16.mxu1 %vm324_vm1, %v7412_v33  ;;  %v5053_v50 = vrot.slane %v6374_v34, 5  ;;  %v5057_v51 = vrot.slane %v6376_v23, 5  ;;  %v6427_v36 = vcombine.low %v8452_v54, %v8459_v56  ;;  %v8469_v53 = vsel %vm7632_vm7, %v6411_v22, %v5043_v26  ;;  %v6379_v33 = vld [vmem:[%s7510_s27 + $0x64] sm:$0xf]  ;;  %v6381_v34 = vld [vmem:[%s7510_s27 + $0x6c] sm:$0xe] }
  0xff   : > { %v8473_v12 = vsel %vm7632_vm7, %v6412_v52, %v5050_v11  ;;  %v2596_v49 = vshrl.u32 %v6060_v7, 16  ;;  %v5052_v8 = vrot.slane %v5050_v11, 4  ;;  %v5060_v4 = vrot.slane %v6377_v19, 5  ;;  %v7415_v23 = vld [vmem:[%s7510_s27 + $0x90] sm:$0xff]   ;;  %v6066_v19 = vld [vmem:[%s7510_s27 + $0x84] sm:$0xf] }
 0x100   : > { %v2599_v28 = vshll.u32 %v6060_v7, 16  ;;  %v2605_v58 = vshll.u32 %v6061_v45, 16  ;;  %v8483_v29 = vsel %vm7632_vm7, %v5045_v42, %v5046_v6  ;;  %v8487_v63 = vsel %vm7632_vm7, %v6413_v35, %v5057_v51  ;;  %v6383_v6 = vld [vmem:[%s7510_s27 + $0x74] sm:$0x1] }
 0x101   : > { %7042 = vmatmul.mubr.msk.bf16.gmra.mrb[28].mxu0 %vm324_vm1, %v6343_v32  ;;  %v2598_v2 = vrot.slane %v2596_v49, 4  ;;  %v2609_v5 = vshrl.u32 %v6061_v45, 16  ;;  %v5059_v25 = vrot.slane %v5057_v51, 4  ;;  %v2615_v13 = vshll.u32 %v6062_v55, 16  ;;  %v6067_v45 = vld [vmem:[%s7510_s27 + $0x88] sm:$0xf] }
 0x102   : > { %7047 = vmatprep.mubr.msk.bf16.mxu0 %vm324_vm1, %v6425_v15  ;;  %v2601_v39 = vrot.slane %v2599_v28, 5  ;;  %v2607_v47 = vrot.slane %v2605_v58, 5  ;;  %v2620_v30 = vshrl.u32 %v6063_v57, 16  ;;  %v2623_v62 = vshll.u32 %v6063_v57, 16  ;;  %v6068_v57 = vld [vmem:[%s7510_s27 + $0x8c] sm:$0x1] }
 0x103   : > { %v2611_v44 = vrot.slane %v2609_v5, 4  ;;  %v2629_v14 = vshll.u32 %v6064_v1, 16  ;;  %v8493_v3 = vsel %vm7632_vm7, %v5052_v8, %v5053_v50  ;;  %v2617_v31 = vrot.slane %v2615_v13, 5 }
 0x104   : > { %v2602_v59 = vor.u32 %v2601_v39, %v2598_v2  ;;  %v2633_v40 = vshrl.u32 %v6064_v1, 16  ;;  %v2622_v18 = vrot.slane %v2620_v30, 4  ;;  %v2625_v61 = vrot.slane %v2623_v62, 5  ;;  %v6071_v39 = vld [vmem:[%s7510_s27 + $0x98] sm:$0x1] }
 0x105   : > { %6894 = vmatmul.mubr.msk.bf16.gmra.mrb[16].mxu1 %vm324_vm1, %v7413_v41  ;;  %v2612_v9 = vor.u32 %v2611_v44, %v2607_v47  ;;  %v8498_v20 = vrot.slane %v2629_v14, 5  ;;  %v8504_v17 = vsel %vm7632_vm7, %v5059_v25, %v5060_v4  ;;  %v2639_v60 = vshll.u32 %v6065_v24, 16  ;;  %v6069_v4 = vld [vmem:[%s7510_s27 + $0x90] sm:$0xf]  ;;  %v6384_v30 = vld [vmem:[%s7510_s27 + $0x78] sm:$0xe] }
 0x106   : > { %6897 = vmatprep.mubr.msk.bf16.mxu1 %vm324_vm1, %v7414_v10  ;;  %v2603_v21 = vrot.slane %v2602_v59, 4  ;;  %v2635_v38 = vrot.slane %v2633_v40, 4  ;;  %v2626_v15 = vor.u32 %v2625_v61, %v2622_v18  ;;  %v6414_v22 = vrot.slane %v6378_v16, 9  ;;  %v6386_v18 = vld [vmem:[%s7510_s27 + $0x80] sm:$0x1] }
 0x107   : > { %v2613_v27 = vrot.slane %v2612_v9, 4  ;;  %v5064_v26 = vrot.slane %v6379_v33, 5  ;;  %v6428_v32 = vcombine.low %v8469_v53, %v8483_v29  ;;  %v5071_v11 = vrot.slane %v6382_v37, 5  ;;  %v6070_v29 = vld [vmem:[%s7510_s27 + $0x94] sm:$0xf]  ;;  %v7417_v37 = vld [vmem:[%s7510_s27 + $0xa8] sm:$0xff]  }
 0x108   : > { %v2608_v54 = vsel %vm7557_vm4, %v2603_v21, %v2607_v47  ;;  %v2636_v52 = vor.u32 %v2635_v38, %v8498_v20  ;;  %v6429_v7 = vcombine.low %v8473_v12, %v8493_v3  ;;  %v8521_v42 = vrot.slane %v2626_v15, 4  ;;  %v6387_v61 = vld [vmem:[%s7510_s27 + $0x84] sm:$0xe]  ;;  %v7418_v15 = vld [vmem:[%s7510_s27 + $0xb4] sm:$0xff]  }
 0x109   : > { %7048 = vmatmul.mubr.msk.bf16.vlgmr.msra.gmra.mrb[0].mxu0 %vm324_vm1, %v6426_v46  ;;  %v2618_v56 = vsel %vm7557_vm4, %v2613_v27, %v2617_v31  ;;  %v6415_v35 = vrot.slane %v6381_v34, 9  ;;  %v7416_v46 = vld [vmem:[%s7510_s27 + $0x9c] sm:$0xff]   ;;  %v6430_v50 = vcombine.low %v8487_v63, %v8504_v17  ;;  %v8528_v51 = vrot.slane %v2639_v60, 5  ;;  %v6388_v27 = vld [vmem:[%s7510_s27 + $0x88] sm:$0xf] }
 0x10a   : > { %7051 = vmatprep.mubr.msk.bf16.mxu0 %vm324_vm1, %v6427_v36  ;;  %v5066_v36 = vrot.slane %v5064_v26, 4  ;;  %v5067_v53 = vrot.slane %v6380_v48, 5  ;;  %v8530_v55 = vcombine.low %v2608_v54, %v2618_v56  ;;  %v8532_v12 = vrot.slane %v2636_v52, 4  ;;  %v6385_v31 = vld [vmem:[%s7510_s27 + $0x7c] sm:$0xf] }
 0x10b   : > { %v8536_v49 = vsel %vm7632_vm7, %v6414_v22, %v5064_v26  ;;  %v2644_v8 = vshrl.u32 %v6066_v19, 16  ;;  %v5073_v28 = vrot.slane %v5071_v11, 4  ;;  %v5074_v58 = vrot.slane %v6383_v6, 5  ;;  %v6389_v56 = vld [vmem:[%s7510_s27 + $0x8c] sm:$0x1] }
 0x10c   : > { %v2647_v1 = vshll.u32 %v6066_v19, 16  ;;  %v2653_v41 = vshll.u32 %v6067_v45, 16  ;;  %v2632_v2 = vsel %vm7557_vm4, %v8521_v42, %v8498_v20  ;;  %v8548_v5 = vsel %vm7632_vm7, %v6415_v35, %v5071_v11 }
 0x10d   : > { %6898 = vmatmul.mubr.msk.bf16.gmra.mrb[20].mxu1 %vm324_vm1, %v7415_v23  ;;  %v2646_v10 = vrot.slane %v2644_v8, 4  ;;  %v2657_v25 = vshrl.u32 %v6067_v45, 16  ;;  %v8554_v47 = vsel %vm7632_vm7, %v5066_v36, %v5067_v53  ;;  %v2663_v24 = vshll.u32 %v6068_v57, 16  ;;  %v6072_v45 = vld [vmem:[%s7510_s27 + $0x9c] sm:$0xf] }
 0x10e   : > { %6901 = vmatprep.mubr.msk.bf16.mxu1 %vm324_vm1, %v7416_v46  ;;  %v2649_v13 = vrot.slane %v2647_v1, 5  ;;  %v8556_v44 = vrot.slane %v2653_v41, 5  ;;  %v2668_v14 = vshrl.u32 %v6069_v4, 16  ;;  %v2671_v3 = vshll.u32 %v6069_v4, 16  ;;  %v6073_v8 = vld [vmem:[%s7510_s27 + $0xa0] sm:$0xf] }
 0x10f   : > { %v2659_v62 = vrot.slane %v2657_v25, 4  ;;  %v2677_v59 = vshll.u32 %v6070_v29, 16  ;;  %v8563_v40 = vsel %vm7632_vm7, %v5073_v28, %v5074_v58  ;;  %v2681_v33 = vshrl.u32 %v6070_v29, 16  ;;  %v6075_v25 = vld [vmem:[%s7510_s27 + $0xa8] sm:$0xf] }
 0x110   : > { %v2650_v16 = vor.u32 %v2649_v13, %v2646_v10  ;;  %v2687_v9 = vshll.u32 %v6071_v39, 16  ;;  %v2670_v38 = vrot.slane %v2668_v14, 4  ;;  %v2673_v60 = vrot.slane %v2671_v3, 5 }
 0x111   : > { %7052 = vmatmul.mubr.msk.bf16.gmra.mrb[4].mxu0 %vm324_vm1, %v6428_v32  ;;  %v2660_v21 = vor.u32 %v2659_v62, %v8556_v44  ;;  %v8570_v34 = vrot.slane %v2677_v59, 5  ;;  %v8576_v22 = vrot.slane %v2663_v24, 5  ;;  %v2683_v26 = vrot.slane %v2681_v33, 4  ;;  %v6076_v24 = vld [vmem:[%s7510_s27 + $0xac] sm:$0xf] }
 0x112   : > { %7055 = vmatprep.mubr.msk.bf16.mxu0 %vm324_vm1, %v6429_v7  ;;  %v8574_v48 = vrot.slane %v2650_v16, 4  ;;  %v6416_v23 = vrot.slane %v6384_v30, 9  ;;  %v2674_v54 = vor.u32 %v2673_v60, %v2670_v38  ;;  %v5078_v52 = vrot.slane %v6385_v31, 5  ;;  %v7419_v30 = vld [vmem:[%s7510_s27 + $0xc0] sm:$0xff]  }
 0x113   : > { %v8578_v32 = vrot.slane %v2660_v21, 4  ;;  %v5081_v11 = vrot.slane %v6386_v18, 5  ;;  %v2642_v19 = vsel %vm7557_vm4, %v8532_v12, %v8528_v51  ;;  %v2684_v7 = vor.u32 %v2683_v26, %v8570_v34  ;;  %v6079_v12 = vld [vmem:[%s7510_s27 + $0xb8] sm:$0xf] }
 0x114   : > { %v6417_v6 = vrot.slane %v6387_v61, 9  ;;  %v5085_v35 = vrot.slane %v6388_v27, 5  ;;  %v6431_v46 = vcombine.low %v8536_v49, %v8554_v47  ;;  %v8590_v36 = vrot.slane %v2674_v54, 4  ;;  %v6390_v61 = vld [vmem:[%s7510_s27 + $0x90] sm:$0xe] }
 0x115   : > { %6902 = vmatmul.mubr.msk.bf16.gmra.mrb[24].mxu1 %vm324_vm1, %v7417_v37  ;;  %v8592_v53 = vrot.slane %v2687_v9, 5  ;;  %v5080_v57 = vrot.slane %v5078_v52, 4  ;;  %v6432_v4 = vcombine.low %v8548_v5, %v8563_v40  ;;  %v2656_v28 = vsel %vm7557_vm4, %v8574_v48, %v8556_v44  ;;  %v6074_v5 = vld [vmem:[%s7510_s27 + $0xa4] sm:$0x1]  ;;  %v6077_v40 = vld [vmem:[%s7510_s27 + $0xb0] sm:$0x1] }
 0x116   : > { %6905 = vmatprep.mubr.msk.bf16.mxu1 %vm324_vm1, %v7418_v15  ;;  %v2666_v49 = vsel %vm7557_vm4, %v8578_v32, %v8576_v22  ;;  %v2685_v58 = vrot.slane %v2684_v7, 4  ;;  %v5079_v1 = vsel %vm7632_vm7, %v6416_v23, %v5078_v52  ;;  %v8612_v29 = vsel %vm7632_vm7, %v6417_v6, %v5085_v35  ;;  %v6392_v27 = vld [vmem:[%s7510_s27 + $0x98] sm:$0x1]  ;;  %v6394_v23 = vld [vmem:[%s7510_s27 + $0xa0] sm:$0xf] }
 0x117   : > { %v5082_v41 = vsel %vm7632_vm7, %v5080_v57, %v5081_v11  ;;  %v2692_v10 = vshrl.u32 %v6072_v45, 16  ;;  %v5087_v39 = vrot.slane %v5085_v35, 4  ;;  %v5088_v47 = vrot.slane %v6389_v56, 5  ;;  %v6078_v57 = vld [vmem:[%s7510_s27 + $0xb4] sm:$0xf] }
 0x118   : > { %v2695_v13 = vshll.u32 %v6072_v45, 16  ;;  %v2701_v44 = vshll.u32 %v6073_v8, 16  ;;  %v2680_v62 = vsel %vm7557_vm4, %v8590_v36, %v8570_v34  ;;  %v2690_v63 = vsel %vm7557_vm4, %v2685_v58, %v8592_v53  ;;  %v6391_v34 = vld [vmem:[%s7510_s27 + $0x94] sm:$0xf]  ;;  %v6393_v45 = vld [vmem:[%s7510_s27 + $0x9c] sm:$0xe] }
 0x119   : > { %7056 = vmatmul.mubr.msk.bf16.gmra.mrb[8].mxu0 %vm324_vm1, %v6430_v50  ;;  %v2694_v17 = vrot.slane %v2692_v10, 4  ;;  %v2705_v50 = vshrl.u32 %v6073_v8, 16  ;;  %v6433_v14 = vcombine.low %v5079_v1, %v5082_v41  ;;  %v2711_v31 = vshll.u32 %v6074_v5, 16  ;;  %v6080_v5 = vld [vmem:[%s7510_s27 + $0xbc] sm:$0x1] }
 0x11a   : > { %7059 = vmatprep.mubr.msk.bf16.mxu0 %vm324_vm1, %v6431_v46  ;;  %v2697_v3 = vrot.slane %v2695_v13, 5  ;;  %v2703_v59 = vrot.slane %v2701_v44, 5  ;;  %v2716_v33 = vshrl.u32 %v6075_v25, 16  ;;  %v2719_v9 = vshll.u32 %v6075_v25, 16  ;;  %v6081_v25 = vld [vmem:[%s7510_s27 + $0xc0] sm:$0xf] }
 0x11b   : > { %v2707_v16 = vrot.slane %v2705_v50, 4  ;;  %v2725_v18 = vshll.u32 %v6076_v24, 16  ;;  %v8634_v37 = vsel %vm7632_vm7, %v5087_v39, %v5088_v47  ;;  %v2713_v38 = vrot.slane %v2711_v31, 5 }
 0x11c   : > { %v2698_v21 = vor.u32 %v2697_v3, %v2694_v17  ;;  %v2729_v60 = vshrl.u32 %v6076_v24, 16  ;;  %v2718_v48 = vrot.slane %v2716_v33, 4  ;;  %v2721_v22 = vrot.slane %v2719_v9, 5  ;;  %v6396_v33 = vld [vmem:[%s7510_s27 + $0xa8] sm:$0xe] }
 0x11d   : > { %6906 = vmatmul.mubr.msk.bf16.gmra.mrb[28].mxu1 %vm324_vm1, %v7419_v30  ;;  %v2708_v15 = vor.u32 %v2707_v16, %v2703_v59  ;;  %v8639_v26 = vrot.slane %v2725_v18, 5  ;;  %v2735_v52 = vshll.u32 %v6077_v40, 16  ;;  %v6418_v11 = vrot.slane %v6390_v61, 9 }
 0x11e   : > { %6927 = vmatprep.mubr.msk.bf16.mxu1 %vm324_vm1, %v8530_v55  ;;  %v2699_v32 = vrot.slane %v2698_v21, 4  ;;  %v2731_v54 = vrot.slane %v2729_v60, 4  ;;  %v2722_v56 = vor.u32 %v2721_v22, %v2718_v48  ;;  %v5092_v6 = vrot.slane %v6391_v34, 5  ;;  %v6397_v21 = vld [vmem:[%s7510_s27 + $0xac] sm:$0xf] }
 0x11f   : > { %v2709_v7 = vrot.slane %v2708_v15, 4  ;;  %v5095_v35 = vrot.slane %v6392_v27, 5  ;;  %v6094_v55 = vcombine.low %v2632_v2, %v2642_v19  ;;  %v5099_v53 = vrot.slane %v6394_v23, 5  ;;  %v6083_v27 = vld [vmem:[%s7510_s27 + $0xc8] sm:$0x1] }
 0x120   : > { %v2704_v46 = vsel %vm7557_vm4, %v2699_v32, %v2703_v59  ;;  %v2732_v36 = vor.u32 %v2731_v54, %v8639_v26  ;;  %v6095_v8 = vcombine.low %v2656_v28, %v2666_v49  ;;  %v8660_v51 = vcombine.low %v2680_v62, %v2690_v63  ;;  %v6395_v28 = vld [vmem:[%s7510_s27 + $0xa4] sm:$0x1]  ;;  %v6400_v22 = vld [vmem:[%s7510_s27 + $0xb8] sm:$0xf] }
 0x121   : > { %7060 = vmatmul.mubr.msk.bf16.gmra.mrb[12].mxu0 %vm324_vm1, %v6432_v4  ;;  %v2714_v20 = vsel %vm7557_vm4, %v2709_v7, %v2713_v38  ;;  %v5094_v42 = vrot.slane %v5092_v6, 4  ;;  %v6434_v2 = vcombine.low %v8612_v29, %v8634_v37  ;;  %v8668_v19 = vrot.slane %v2735_v52, 5  ;;  %v6082_v29 = vld [vmem:[%s7510_s27 + $0xc4] sm:$0xf]  ;;  %v6398_v38 = vld [vmem:[%s7510_s27 + $0xb0] sm:$0x1] }
 0x122   : > { %7063 = vmatprep.mubr.msk.bf16.mxu0 %vm324_vm1, %v6433_v14  ;;  %v5093_v4 = vsel %vm7632_vm7, %v6418_v11, %v5092_v6  ;;  %v6419_v49 = vrot.slane %v6393_v45, 9  ;;  %v6097_v58 = vcombine.low %v2704_v46, %v2714_v20  ;;  %v2723_v1 = vrot.slane %v2722_v56, 4  ;;  %v6399_v52 = vld [vmem:[%s7510_s27 + $0xb4] sm:$0xe] }
 0x123   : > { %v5096_v41 = vsel %vm7632_vm7, %v5094_v42, %v5095_v35  ;;  %v2740_v10 = vshrl.u32 %v6078_v57, 16  ;;  %v2733_v39 = vrot.slane %v2732_v36, 4  ;;  %v5101_v47 = vrot.slane %v5099_v53, 4  ;;  %v6402_v36 = vld [vmem:[%s7510_s27 + $0xc0] sm:$0xe] }
 0x124   : > { %v2743_v13 = vshll.u32 %v6078_v57, 16  ;;  %v2749_v44 = vshll.u32 %v6079_v12, 16  ;;  %v6435_v24 = vcombine.low %v5093_v4, %v5096_v41  ;;  %v5102_v30 = vrot.slane %v6395_v28, 5  ;;  %v6403_v42 = vld [vmem:[%s7510_s27 + $0xc4] sm:$0xf] }
 0x125   : > { %6928 = vmatmul.mubr.msk.bf16.vlgmr.msra.gmra.mrb[16].mxu1 %vm324_vm1, %v6094_v55  ;;  %v2742_v62 = vrot.slane %v2740_v10, 4  ;;  %v2753_v63 = vshrl.u32 %v6079_v12, 16  ;;  %v5100_v17 = vsel %vm7632_vm7, %v6419_v49, %v5099_v53  ;;  %v2759_v3 = vshll.u32 %v6080_v5, 16  ;;  %v6401_v55 = vld [vmem:[%s7510_s27 + $0xbc] sm:$0x1] }
 0x126   : > { %6931 = vmatprep.mubr.msk.bf16.mxu1 %vm324_vm1, %v6095_v8  ;;  %v2745_v50 = vrot.slane %v2743_v13, 5  ;;  %v2751_v14 = vrot.slane %v2749_v44, 5  ;;  %v2764_v31 = vshrl.u32 %v6081_v25, 16  ;;  %v2767_v40 = vshll.u32 %v6081_v25, 16  ;;  %v6404_v12 = vld [vmem:[%s7510_s27 + $0xc8] sm:$0x1] }
 0x127   : > { %v2755_v59 = vrot.slane %v2753_v63, 4  ;;  %v2773_v16 = vshll.u32 %v6082_v29, 16  ;;  %v2728_v9 = vsel %vm7557_vm4, %v2723_v1, %v8639_v26  ;;  %v2738_v18 = vsel %vm7557_vm4, %v2733_v39, %v8668_v19  ;;  %v6406_v49 = vld [vmem:[%s7510_s27 + $0xd0] sm:$0xf] }
 0x128   : > { %v2746_v61 = vor.u32 %v2745_v50, %v2742_v62  ;;  %v2777_v37 = vshrl.u32 %v6082_v29, 16  ;;  %v5103_v60 = vsel %vm7632_vm7, %v5101_v47, %v5102_v30  ;;  %v2766_v15 = vrot.slane %v2764_v31, 4  ;;  %v6407_v50 = vld [vmem:[%s7510_s27 + $0xd4] sm:$0x1] }
 0x129   : > { %7064 = vmatmul.mubr.msk.bf16.gmra.mrb[16].mxu0 %vm324_vm1, %v6434_v2  ;;  %v2756_v34 = vor.u32 %v2755_v59, %v2751_v14  ;;  %v2769_v48 = vrot.slane %v2767_v40, 5  ;;  %v2775_v23 = vrot.slane %v2773_v16, 5  ;;  %v6420_v54 = vrot.slane %v6396_v33, 9 }
 0x12a   : > { %7067 = vmatprep.mubr.msk.bf16.mxu0 %vm324_vm1, %v6435_v24  ;;  %v2747_v26 = vrot.slane %v2746_v61, 4  ;;  %v2779_v32 = vrot.slane %v2777_v37, 4  ;;  %v2761_v7 = vrot.slane %v2759_v3, 5  ;;  %v5106_v56 = vrot.slane %v6397_v21, 5 }
 0x12b   : > { %v2757_v11 = vrot.slane %v2756_v34, 4  ;;  %v5109_v6 = vrot.slane %v6398_v38, 5  ;;  %v6436_v35 = vcombine.low %v5100_v17, %v5103_v60  ;;  %v2783_v45 = vshll.u32 %v6083_v27, 16  ;;  %v6405_v17 = vld [vmem:[%s7510_s27 + $0xcc] sm:$0xe] }
 0x12c   : > { %v5113_v46 = vrot.slane %v6400_v22, 5  ;;  %v2770_v53 = vor.u32 %v2769_v48, %v2766_v15  ;;  %v5107_v57 = vsel %vm7632_vm7, %v6420_v54, %v5106_v56  ;;  %v5108_v8 = vrot.slane %v5106_v56, 4 }
 0x12d   : > { %6932 = vmatmul.mubr.msk.bf16.gmra.mrb[20].mxu1 %vm324_vm1, %v8660_v51  ;;  %v6421_v20 = vrot.slane %v6399_v52, 9  ;;  %v6098_v2 = vcombine.low %v2728_v9, %v2738_v18  ;;  %v2752_v19 = vsel %vm7557_vm4, %v2747_v26, %v2751_v14  ;;  %v2780_v4 = vor.u32 %v2779_v32, %v2775_v23 }
 0x12e   : > { %6935 = vmatprep.mubr.msk.bf16.mxu1 %vm324_vm1, %v6097_v58  ;;  %v5115_v28 = vrot.slane %v5113_v46, 4  ;;  %v2762_v51 = vsel %vm7557_vm4, %v2757_v11, %v2761_v7  ;;  %v5110_v1 = vsel %vm7632_vm7, %v5108_v8, %v5109_v6  ;;  %v5116_v41 = vrot.slane %v6401_v55, 5  ;;  %v8751_v6 = vld [vmem:[%s8822_s2] ss:$0 sm:$0xff] }
 0x12f   : > { %v6422_v5 = vrot.slane %v6402_v36, 9  ;;  %v2785_v58 = vrot.slane %v2783_v45, 5  ;;  %v6437_v10 = vcombine.low %v5107_v57, %v5110_v1  ;;  %v5120_v25 = vrot.slane %v6403_v42, 5 }
 0x130   : > { %v5123_v39 = vrot.slane %v6404_v12, 5  ;;  %v2771_v47 = vrot.slane %v2770_v53, 4  ;;  %v5114_v13 = vsel %vm7632_vm7, %v6421_v20, %v5113_v46  ;;  %v5117_v44 = vsel %vm7632_vm7, %v5115_v28, %v5116_v41 }
 0x131   : > { %7068 = vmatmul.mubr.msk.bf16.gmra.mrb[20].mxu0 %vm324_vm1, %v6436_v35  ;;  %v5127_v29 = vrot.slane %v6406_v49, 5  ;;  %v6099_v24 = vcombine.low %v2752_v19, %v2762_v51  ;;  %v2781_v30 = vrot.slane %v2780_v4, 4  ;;  %v5121_v62 = vsel %vm7632_vm7, %v6422_v5, %v5120_v25 }
 0x132   : > { %7071 = vmatprep.mubr.msk.bf16.mxu0 %vm324_vm1, %v6437_v10  ;;  %v5122_v63 = vrot.slane %v5120_v25, 4  ;;  %v6438_v14 = vcombine.low %v5114_v13, %v5117_v44  ;;  %v6423_v31 = vrot.slane %v6405_v17, 9  ;;  %v5130_v16 = vrot.slane %v6407_v50, 5 }
 0x133   : > { %v5129_v40 = vrot.slane %v5127_v29, 4  ;;  %v2776_v33 = vsel %vm7557_vm4, %v2771_v47, %v2775_v23  ;;  %v2786_v9 = vsel %vm7557_vm4, %v2781_v30, %v2785_v58 }
 0x134   : > { %v5124_v3 = vsel %vm7632_vm7, %v5122_v63, %v5123_v39  ;;  %v6100_v18 = vcombine.low %v2776_v33, %v2786_v9  ;;  %v5128_v61 = vsel %vm7632_vm7, %v6423_v31, %v5127_v29 }
 0x135   : > { %6936 = vmatmul.mubr.msk.bf16.gmra.mrb[24].mxu1 %vm324_vm1, %v6098_v2  ;;  %v6439_v59 = vcombine.low %v5121_v62, %v5124_v3  ;;  %v5131_v37 = vsel %vm7632_vm7, %v5129_v40, %v5130_v16 }
 0x136   : > { %6939 = vmatprep.mubr.msk.bf16.mxu1 %vm324_vm1, %v6099_v24  ;;  %v6440_v21 = vcombine.low %v5128_v61, %v5131_v37 }
 0x139   : > { %7072 = vmatmul.mubr.msk.bf16.gmra.mrb[24].mxu0 %vm324_vm1, %v6438_v14 }
 0x13a   : > { %7075 = vmatprep.mubr.msk.bf16.mxu0 %vm324_vm1, %v6439_v59 }
 0x13d   : > { %6940 = vmatmul.mubr.msk.bf16.gmra.mrb[28].mxu1 %vm324_vm1, %v6100_v18 }
 0x141   : > { %7076 = vmatmul.mubr.msk.bf16.gmra.mrb[28].mxu0 %vm324_vm1, %v6440_v21 }
 0x1b8   : > { %v6879_v38 = vpop.f32.mrb[0].mxu1 }
 0x1b9   : > { %v2132_v60 = vpop.f32.mrb[1].mxu1 }
 0x1ba   : > { %v6880_v43 = vpop.f32.mrb[2].mxu1 }
 0x1bb   : > { %v2135_v34 = vpop.f32.mrb[3].mxu1 }
 0x1c0   : > { %v6883_v27 = vpop.f32.mrb[4].mxu1 }
 0x1c1   : > { %v2148_v15 = vpop.f32.mrb[5].mxu1 }
 0x1c2   : > { %v6884_v48 = vpop.f32.mrb[6].mxu1 }
 0x1c3   : > { %v2151_v22 = vpop.f32.mrb[7].mxu1 }
 0x1c8   : > { %v6887_v26 = vpop.f32.mrb[8].mxu1 }
 0x1c9   : > { %v2164_v23 = vpop.f32.mrb[9].mxu1 }
 0x1ca   : > { %v6888_v32 = vpop.f32.mrb[10].mxu1 }
 0x1cb   : > { %v2167_v54 = vpop.f32.mrb[11].mxu1 }
 0x1d0   : > { %v8740_v0 = vpop.f32.mrb[12].mxu1 }
 0x1d1   : > { %v8742_v52 = vpop.f32.mrb[13].mxu1 }
 0x1d2   : > { %v8744_v11 = vpop.f32.mrb[14].mxu1 }
 0x1d3   : > { %v8746_v7 = vpop.f32.mrb[15].mxu1 }
 0x1dc   : > { %v7049_v56 = vpop.f32.mrb[0].mxu0 }
 0x1dd   : > { %v7081_v35 = vadd.f32 %v7049_v56, %v6879_v38  ;;  %v5267_v45 = vpop.f32.mrb[1].mxu0 }
 0x1de   : > { %v7082_v55 = vadd.f32 %v5267_v45, %v2132_v60  ;;  %v7050_v46 = vpop.f32.mrb[2].mxu0 }
 0x1df   : > { %v5531_v36 = vadd.f32 %v7081_v35, %v8751_v6  ;;  %v7083_v53 = vadd.f32 %v7050_v46, %v6880_v43  ;;  %v5270_v57 = vpop.f32.mrb[3].mxu0 }
 0x1e0   : > { %v5529_v8 = vadd.f32 %v7082_v55, %v8751_v6  ;;  %v7084_v20 = vadd.f32 %v5270_v57, %v2135_v34 }
 0x1e1   : > { %v5532_v42 = vadd.f32 %v7083_v53, %v8751_v6  ;;  %v5563_v2 = vmax.f32 %v5531_v36, 0.0 }
 0x1e2   : > { %v5530_v12 = vadd.f32 %v7084_v20, %v8751_v6  ;;  %v5561_v4 = vmax.f32 %v5529_v8, 0.0 }
 0x1e3   : > { %v5564_v19 = vmax.f32 %v5532_v42, 0.0 }
 0x1e4   : > { %v5562_v28 = vmax.f32 %v5530_v12, 0.0  ;;  %v7053_v49 = vpop.f32.mrb[4].mxu0 }
 0x1e5   : > { %v6533_v51 = vpack.c.bf16 %v5564_v19, %v5563_v2  ;;  %v7085_v1 = vadd.f32 %v7053_v49, %v6883_v27  ;;  %v5283_v41 = vpop.f32.mrb[5].mxu0 }
 0x1e6   : > { %v6528_v5 = vpack.c.bf16 %v5562_v28, %v5561_v4  ;;  %v7086_v58 = vadd.f32 %v5283_v41, %v2148_v15  ;;  %v7054_v10 = vpop.f32.mrb[6].mxu0 }
 0x1e7   : > { %6605 = vst [vmem:[%s8761_s22 + $0x8] sm:$0xff] %v6533_v51   ;;  %v5535_v25 = vadd.f32 %v7085_v1, %v8751_v6  ;;  %v7087_v39 = vadd.f32 %v7054_v10, %v6884_v48  ;;  %v5286_v47 = vpop.f32.mrb[7].mxu0 }
 0x1e8   : > { %6529 = vst [vmem:[%s8761_s22] sm:$0xff] %v6528_v5   ;;  %v5533_v13 = vadd.f32 %v7086_v58, %v8751_v6  ;;  %v7088_v44 = vadd.f32 %v5286_v47, %v2151_v22 }
 0x1e9   : > { %v5536_v29 = vadd.f32 %v7087_v39, %v8751_v6  ;;  %v5567_v30 = vmax.f32 %v5535_v25, 0.0 }
 0x1ea   : > { %v5534_v24 = vadd.f32 %v7088_v44, %v8751_v6  ;;  %v5565_v63 = vmax.f32 %v5533_v13, 0.0 }
 0x1eb   : > { %v5568_v62 = vmax.f32 %v5536_v29, 0.0 }
 0x1ec   : > { %v5566_v17 = vmax.f32 %v5534_v24, 0.0  ;;  %v7057_v50 = vpop.f32.mrb[8].mxu0 }
 0x1ed   : > { %v6543_v14 = vpack.c.bf16 %v5568_v62, %v5567_v30  ;;  %v7089_v3 = vadd.f32 %v7057_v50, %v6887_v26  ;;  %v5299_v59 = vpop.f32.mrb[9].mxu0 }
 0x1ee   : > { %v6538_v31 = vpack.c.bf16 %v5566_v17, %v5565_v63  ;;  %v7090_v40 = vadd.f32 %v5299_v59, %v2164_v23  ;;  %v7058_v16 = vpop.f32.mrb[10].mxu0 }
 0x1ef   : > { %6607 = vst [vmem:[%s8761_s22 + $0x18] sm:$0xff] %v6543_v14   ;;  %v5539_v33 = vadd.f32 %v7089_v3, %v8751_v6  ;;  %v7091_v9 = vadd.f32 %v7058_v16, %v6888_v32  ;;  %v5302_v18 = vpop.f32.mrb[11].mxu0 }
 0x1f0   : > { %6606 = vst [vmem:[%s8761_s22 + $0x10] sm:$0xff] %v6538_v31   ;;  %v5537_v61 = vadd.f32 %v7090_v40, %v8751_v6  ;;  %v7092_v37 = vadd.f32 %v5302_v18, %v2167_v54 }
 0x1f1   : > { %v5540_v21 = vadd.f32 %v7091_v9, %v8751_v6  ;;  %v5571_v60 = vmax.f32 %v5539_v33, 0.0 }
 0x1f2   : > { %v5538_v38 = vadd.f32 %v7092_v37, %v8751_v6  ;;  %v5569_v34 = vmax.f32 %v5537_v61, 0.0 }
 0x1f3   : > { %v5572_v43 = vmax.f32 %v5540_v21, 0.0 }
 0x1f4   : > { %v5570_v27 = vmax.f32 %v5538_v38, 0.0  ;;  %v7061_v15 = vpop.f32.mrb[12].mxu0 }
 0x1f5   : > { %v6553_v48 = vpack.c.bf16 %v5572_v43, %v5571_v60  ;;  %v7093_v22 = vadd.f32 %v7061_v15, %v8740_v0  ;;  %v5315_v26 = vpop.f32.mrb[13].mxu0 }
 0x1f6   : > { %v6548_v23 = vpack.c.bf16 %v5570_v27, %v5569_v34  ;;  %v7094_v32 = vadd.f32 %v5315_v26, %v8742_v52  ;;  %v7062_v56 = vpop.f32.mrb[14].mxu0 }
 0x1f7   : > { %6609 = vst [vmem:[%s8761_s22 + $0x28] sm:$0xff] %v6553_v48   ;;  %v5543_v54 = vadd.f32 %v7093_v22, %v8751_v6  ;;  %v7095_v35 = vadd.f32 %v7062_v56, %v8744_v11  ;;  %v5318_v45 = vpop.f32.mrb[15].mxu0 }
 0x1f8   : > { %6608 = vst [vmem:[%s8761_s22 + $0x20] sm:$0xff] %v6548_v23   ;;  %v5541_v55 = vadd.f32 %v7094_v32, %v8751_v6  ;;  %v7096_v46 = vadd.f32 %v5318_v45, %v8746_v7  ;;  %v6929_v36 = vpop.f32.mrb[16].mxu1 }
 0x1f9   : > { %v5544_v53 = vadd.f32 %v7095_v35, %v8751_v6  ;;  %v2986_v0 = vpop.f32.mrb[17].mxu1  ;;  %v5575_v52 = vmax.f32 %v5543_v54, 0.0 }
 0x1fa   : > { %v5542_v57 = vadd.f32 %v7096_v46, %v8751_v6  ;;  %v6930_v8 = vpop.f32.mrb[18].mxu1  ;;  %v5573_v42 = vmax.f32 %v5541_v55, 0.0 }
 0x1fb   : > { %v5576_v20 = vmax.f32 %v5544_v53, 0.0  ;;  %v2989_v12 = vpop.f32.mrb[19].mxu1 }
 0x1fc   : > { %v5574_v11 = vmax.f32 %v5542_v57, 0.0  ;;  %v7065_v2 = vpop.f32.mrb[16].mxu0 }
 0x1fd   : > { %v6563_v19 = vpack.c.bf16 %v5576_v20, %v5575_v52  ;;  %v7097_v4 = vadd.f32 %v7065_v2, %v6929_v36  ;;  %v5331_v28 = vpop.f32.mrb[17].mxu0 }
 0x1fe   : > { %v6558_v49 = vpack.c.bf16 %v5574_v11, %v5573_v42  ;;  %v7098_v7 = vadd.f32 %v5331_v28, %v2986_v0  ;;  %v7066_v51 = vpop.f32.mrb[18].mxu0 }
 0x1ff   : > { %6611 = vst [vmem:[%s8761_s22 + $0x38] sm:$0xff] %v6563_v19   ;;  %v5547_v1 = vadd.f32 %v7097_v4, %v8751_v6  ;;  %v7099_v41 = vadd.f32 %v7066_v51, %v6930_v8  ;;  %v5334_v5 = vpop.f32.mrb[19].mxu0 }
 0x200   : > { %6610 = vst [vmem:[%s8761_s22 + $0x30] sm:$0xff] %v6558_v49   ;;  %v5545_v58 = vadd.f32 %v7098_v7, %v8751_v6  ;;  %v7100_v10 = vadd.f32 %v5334_v5, %v2989_v12  ;;  %v6933_v25 = vpop.f32.mrb[20].mxu1 }
 0x201   : > { %v5548_v39 = vadd.f32 %v7099_v41, %v8751_v6  ;;  %v3002_v47 = vpop.f32.mrb[21].mxu1  ;;  %v5579_v44 = vmax.f32 %v5547_v1, 0.0 }
 0x202   : > { %v5546_v13 = vadd.f32 %v7100_v10, %v8751_v6  ;;  %v6934_v29 = vpop.f32.mrb[22].mxu1  ;;  %v5577_v30 = vmax.f32 %v5545_v58, 0.0 }
 0x203   : > { %v5580_v24 = vmax.f32 %v5548_v39, 0.0  ;;  %v3005_v62 = vpop.f32.mrb[23].mxu1 }
 0x204   : > { %v5578_v63 = vmax.f32 %v5546_v13, 0.0  ;;  %v7069_v17 = vpop.f32.mrb[20].mxu0 }
 0x205   : > { %v6573_v50 = vpack.c.bf16 %v5580_v24, %v5579_v44  ;;  %v7101_v14 = vadd.f32 %v7069_v17, %v6933_v25  ;;  %v5347_v3 = vpop.f32.mrb[21].mxu0 }
 0x206   : > { %v6568_v59 = vpack.c.bf16 %v5578_v63, %v5577_v30  ;;  %v7102_v31 = vadd.f32 %v5347_v3, %v3002_v47  ;;  %v7070_v40 = vpop.f32.mrb[22].mxu0 }
 0x207   : > { %6613 = vst [vmem:[%s8761_s22 + $0x48] sm:$0xff] %v6573_v50   ;;  %v5551_v16 = vadd.f32 %v7101_v14, %v8751_v6  ;;  %v7103_v33 = vadd.f32 %v7070_v40, %v6934_v29  ;;  %v5350_v9 = vpop.f32.mrb[23].mxu0 }
 0x208   : > { %6612 = vst [vmem:[%s8761_s22 + $0x40] sm:$0xff] %v6568_v59   ;;  %v5549_v18 = vadd.f32 %v7102_v31, %v8751_v6  ;;  %v7104_v61 = vadd.f32 %v5350_v9, %v3005_v62  ;;  %v6937_v37 = vpop.f32.mrb[24].mxu1 }
 0x209   : > { %v5552_v21 = vadd.f32 %v7103_v33, %v8751_v6  ;;  %v3018_v38 = vpop.f32.mrb[25].mxu1  ;;  %v5583_v43 = vmax.f32 %v5551_v16, 0.0 }
 0x20a   : > { %v5550_v60 = vadd.f32 %v7104_v61, %v8751_v6  ;;  %v6938_v34 = vpop.f32.mrb[26].mxu1  ;;  %v5581_v15 = vmax.f32 %v5549_v18, 0.0 }
 0x20b   : > { %v5584_v27 = vmax.f32 %v5552_v21, 0.0  ;;  %v3021_v48 = vpop.f32.mrb[27].mxu1 }
 0x20c   : > { %v5582_v22 = vmax.f32 %v5550_v60, 0.0  ;;  %v7073_v26 = vpop.f32.mrb[24].mxu0 }
 0x20d   : > { %v6583_v23 = vpack.c.bf16 %v5584_v27, %v5583_v43  ;;  %v7105_v32 = vadd.f32 %v7073_v26, %v6937_v37  ;;  %v5363_v56 = vpop.f32.mrb[25].mxu0 }
 0x20e   : > { %v6578_v54 = vpack.c.bf16 %v5582_v22, %v5581_v15  ;;  %v7106_v35 = vadd.f32 %v5363_v56, %v3018_v38  ;;  %v7074_v45 = vpop.f32.mrb[26].mxu0 }
 0x20f   : > { %6615 = vst [vmem:[%s8761_s22 + $0x58] sm:$0xff] %v6583_v23   ;;  %v5555_v55 = vadd.f32 %v7105_v32, %v8751_v6  ;;  %v7107_v46 = vadd.f32 %v7074_v45, %v6938_v34  ;;  %v5366_v36 = vpop.f32.mrb[27].mxu0 }
 0x210   : > { %6614 = vst [vmem:[%s8761_s22 + $0x50] sm:$0xff] %v6578_v54   ;;  %v5553_v53 = vadd.f32 %v7106_v35, %v8751_v6  ;;  %v7108_v0 = vadd.f32 %v5366_v36, %v3021_v48  ;;  %v6941_v57 = vpop.f32.mrb[28].mxu1 }
 0x211   : > { %v5556_v52 = vadd.f32 %v7107_v46, %v8751_v6  ;;  %v3034_v8 = vpop.f32.mrb[29].mxu1  ;;  %v5587_v42 = vmax.f32 %v5555_v55, 0.0 }
 0x212   : > { %v5554_v20 = vadd.f32 %v7108_v0, %v8751_v6  ;;  %v6942_v12 = vpop.f32.mrb[30].mxu1  ;;  %v5585_v2 = vmax.f32 %v5553_v53, 0.0 }
 0x213   : > { %v5588_v11 = vmax.f32 %v5556_v52, 0.0  ;;  %v3037_v19 = vpop.f32.mrb[31].mxu1 }
 0x214   : > { %v5586_v4 = vmax.f32 %v5554_v20, 0.0  ;;  %v7077_v28 = vpop.f32.mrb[28].mxu0 }
 0x215   : > { %v6593_v49 = vpack.c.bf16 %v5588_v11, %v5587_v42  ;;  %v7109_v7 = vadd.f32 %v7077_v28, %v6941_v57  ;;  %v5379_v51 = vpop.f32.mrb[29].mxu0 }
 0x216   : > { %v6588_v1 = vpack.c.bf16 %v5586_v4, %v5585_v2  ;;  %v7110_v41 = vadd.f32 %v5379_v51, %v3034_v8  ;;  %v7078_v5 = vpop.f32.mrb[30].mxu0 }
 0x217   : > { %6617 = vst [vmem:[%s8761_s22 + $0x68] sm:$0xff] %v6593_v49   ;;  %v5559_v58 = vadd.f32 %v7109_v7, %v8751_v6  ;;  %v7111_v10 = vadd.f32 %v7078_v5, %v6942_v12  ;;  %v5382_v25 = vpop.f32.mrb[31].mxu0 }
 0x218   : > { %6616 = vst [vmem:[%s8761_s22 + $0x60] sm:$0xff] %v6588_v1   ;;  %v5557_v39 = vadd.f32 %v7110_v41, %v8751_v6  ;;  %v7112_v47 = vadd.f32 %v5382_v25, %v3037_v19 }
 0x219   : > { %v5560_v13 = vadd.f32 %v7111_v10, %v8751_v6  ;;  %v5591_v29 = vmax.f32 %v5559_v58, 0.0 }
 0x21a   : > { %v5558_v44 = vadd.f32 %v7112_v47, %v8751_v6  ;;  %v5589_v30 = vmax.f32 %v5557_v39, 0.0 }
 0x21b   : > { %v5592_v24 = vmax.f32 %v5560_v13, 0.0 }
 0x21c   : > { %v5590_v62 = vmax.f32 %v5558_v44, 0.0 }
 0x21d   : > { %v6603_v63 = vpack.c.bf16 %v5592_v24, %v5591_v29 }
 0x21e   : > { %v6598_v17 = vpack.c.bf16 %v5590_v62, %v5589_v30 }
 0x21f   : > { %6619 = vst [vmem:[%s8761_s22 + $0x78] sm:$0xff] %v6603_v63  }
 0x220   : > { %6618 = vst [vmem:[%s8761_s22 + $0x70] sm:$0xff] %v6598_v17  }
 0x221 PF: > { %s13_s14 = sadd.s32 1, %s7443_s14   ;;  %s8828_s12 = smov %s7439_s13 }
 0x222   : > { %p10_p5 = scmp.ge.s32.totalorder %s13_s14, 4   ;;  %s8829_s13 = smov %s8831_s15 }
 0x224   :  { %12 = sbr.rel (!%p10_p5) target bundleno = 2 (0x2), region = 72 }

// kernel: double_conv_forward.3
= control target key start
LH: loop header
LB: loop body
LE: loop exit
PB: predicated region body
PF: predicated region fallthrough
CT: control target
= control target key end

     0   :  { %s7748_s12 = smov 0   ;;  %s7750_s13 = smov 0   ;;  %s8943_s0 = inlined_call_operand.vmem [shape: bf16[2,1,18,18,128], index: 0, kind: input, shape index: {}]   ;;  %s8944_s1 = inlined_call_operand.vmem [shape: bf16[9,128,128], index: 1, kind: input, shape index: {}]   ;;  %s8945_s2 = inlined_call_operand.vmem [shape: f32[1,128], index: 2, kind: input, shape index: {}]   ;;  %s8946_s3 = inlined_call_operand.vmem [shape: f32[2,16,16,128], index: 3, kind: output, shape index: {}]  }
   0x1   :  { %s7752_s14 = smov 0  }
   0x2 LB: > { %s25_s15 = sadd.s32 1, %s7722_s13  ;;  %p5975_p0 = scmp.ge.s32.totalorder %s7726_s14, 1  ;;  %s7726_s14 = sphi %s7752_s14, %s13_s14   ;;  %s7722_s13 = sphi %s7750_s13, %s8952_s13   ;;  %s7718_s12 = sphi %s7748_s12, %s8951_s12  }
   0x3   : > { %p27_p1 = scmp.ge.s32.totalorder %s25_s15, 2  ;;  %p157_p2 = scmp.lt.s32.totalorder %s7726_s14, 3 }
   0x5   : > { %s8954_s15 = smov (%p27_p1, %s25_s15), 0  ;;  %p158_p3 = pnand %p5975_p0, %p157_p2 }
   0x6   : > { %v7576_v0 = vld [vmem:[%s8944_s1] sm:$0xff] (!%p158_p3)   ;;  %v7578_v2 = vld [vmem:[%s8944_s1 + $0x8] sm:$0xff] (!%p158_p3)   ;;  %p190_p4 = scmp.lt.s32.totalorder (!%p158_p3), %s7718_s12, 1  ;;  %v7580_v4 = vld [vmem:[%s8944_s1 + $0x10] sm:$0xff] (!%p158_p3)   ;;  %vm644_vm0 = vsmask.f32 (!%p158_p3), 3328 }
   0x7   : > { %161 = sbr.rel (%p158_p3) target bundleno = 556 (0x22c), region = 32  ;;  %v7577_v1 = vld [vmem:[%s8944_s1 + $0x100] sm:$0xff] (!%p158_p3)   ;;  %6847 = vmatprep.subr.bf16.mxu1 (!%p158_p3), %v7576_v0  ;;  %v7579_v3 = vld [vmem:[%s8944_s1 + $0x108] sm:$0xff] (!%p158_p3)   ;;  %v7581_v5 = vld [vmem:[%s8944_s1 + $0x110] sm:$0xff] (!%p158_p3)   ;;  %vm645_vm1 = vsmask.f32 (!%p158_p3), 7440 }
   0x8   : > { %7039 = vmatprep.subr.bf16.mxu0 (!%p158_p3), %v7577_v1  ;;  %6848 = vmatpush3.bf16.msra.mxu1 (!%p158_p3), %v7576_v0  ;;  %v7582_v6 = vld [vmem:[%s8944_s1 + $0x18] sm:$0xff] (!%p158_p3)   ;;  %v7584_v8 = vld [vmem:[%s8944_s1 + $0x20] sm:$0xff] (!%p158_p3)   ;;  %v7586_v10 = vld [vmem:[%s8944_s1 + $0x28] sm:$0xff] (!%p158_p3)   ;;  %vm1513_vm3 = vcmask (!%p158_p3), 1042432   ;;  %vm1514_vm4 = vcmask (!%p158_p3), 1046532  }
   0x9   : > { %7040 = vmatpush3.bf16.msra.mxu0 (!%p158_p3), %v7577_v1  ;;  %6849 = vmatprep.subr.bf16.mxu1 (!%p158_p3), %v7578_v2  ;;  %v7583_v7 = vld [vmem:[%s8944_s1 + $0x118] sm:$0xff] (!%p158_p3)   ;;  %v7585_v9 = vld [vmem:[%s8944_s1 + $0x120] sm:$0xff] (!%p158_p3)   ;;  %v7587_v11 = vld [vmem:[%s8944_s1 + $0x128] sm:$0xff] (!%p158_p3)  }
   0xa   : > { %7041 = vmatprep.subr.bf16.mxu0 (!%p158_p3), %v7579_v3  ;;  %v7588_v18 = vld [vmem:[%s8944_s1 + $0x30] sm:$0xff] (!%p158_p3)   ;;  %v7590_v32 = vld [vmem:[%s8944_s1 + $0x38] sm:$0xff] (!%p158_p3)   ;;  %vm7828_vm2 = vmor (!%p158_p3), %vm644_vm0, %vm645_vm1 }
   0xb   : > { %v7589_v24 = vld [vmem:[%s8944_s1 + $0x130] sm:$0xff] (!%p158_p3)   ;;  %v7591_v38 = vld [vmem:[%s8944_s1 + $0x138] sm:$0xff] (!%p158_p3)   ;;  %v7594_v47 = vld [vmem:[%s8944_s1 + $0x40] sm:$0xff] (!%p158_p3)  }
   0xc   : > { %6850 = vmatpush3.bf16.msra.mxu1 (!%p158_p3), %v7578_v2  ;;  %v7595_v52 = vld [vmem:[%s8944_s1 + $0x140] sm:$0xff] (!%p158_p3)   ;;  %vm7928_vm5 = vmor (!%p158_p3), %vm1513_vm3, %vm1514_vm4 }
   0xd   : > { %7042 = vmatpush3.bf16.msra.mxu0 (!%p158_p3), %v7579_v3  ;;  %6851 = vmatprep.subr.bf16.mxu1 (!%p158_p3), %v7580_v4 }
   0xe   : > { %s8956_s12 = smov (!%p190_p4, %s7718_s12), 1  ;;  %7043 = vmatprep.subr.bf16.mxu0 %v7581_v5 }
   0xf   : > { %s7551_s5 = smul.u32 216, %s8956_s12  ;;  %s6630_s26 = sshll.u32 %s8956_s12, 8 }
  0x10   : > { %6852 = vmatpush3.bf16.msra.mxu1 %v7580_v4  ;;  %s8865_s29 = scalar_lea.vmem %s8946_s3, %s6630_s26 }
  0x11   : > { %7044 = vmatpush3.bf16.msra.mxu0 %v7581_v5  ;;  %6853 = vmatprep.subr.bf16.mxu1 %v7582_v6  ;;  %s7805_s18 = scalar_lea.vmem %s8943_s0, %s7551_s5 }
  0x12   : > { %7045 = vmatprep.subr.bf16.mxu0 %v7583_v7  ;;  %v7592_v12 = vld [vmem:[%s7805_s18] sm:$0xff]   ;;  %v6171_v13 = vld [vmem:[%s7805_s18 + $0xc] sm:$0xf]  ;;  %v6172_v14 = vld [vmem:[%s7805_s18 + $0x10] sm:$0xf] }
  0x13   : > { %6863 = vmatprep.mubr.bf16.mxu1 %v7592_v12  ;;  %v6173_v15 = vld [vmem:[%s7805_s18 + $0x14] sm:$0x1]  ;;  %v2514_v16 = vshrl.u32 %v6171_v13, 16  ;;  %v2517_v17 = vshll.u32 %v6171_v13, 16  ;;  %v2523_v19 = vshll.u32 %v6172_v14, 16  ;;  %v2527_v20 = vshrl.u32 %v6172_v14, 16 }
  0x14   : > { %6854 = vmatpush3.bf16.msra.mxu1 %v7582_v6  ;;  %v2533_v21 = vshll.u32 %v6173_v15, 16  ;;  %v6174_v29 = vld [vmem:[%s7805_s18 + $0x18] sm:$0xf]  ;;  %v6175_v30 = vld [vmem:[%s7805_s18 + $0x1c] sm:$0xf]  ;;  %v7593_v55 = vld [vmem:[%s7805_s18 + $0xc] sm:$0xff]  }
  0x15   : > { %7046 = vmatpush3.bf16.msra.mxu0 %v7583_v7  ;;  %6855 = vmatprep.subr.bf16.mxu1 %v7584_v8  ;;  %v2516_v22 = vrot.slane %v2514_v16, 4  ;;  %v2519_v23 = vrot.slane %v2517_v17, 5  ;;  %v2525_v25 = vrot.slane %v2523_v19, 5  ;;  %v2529_v26 = vrot.slane %v2527_v20, 4  ;;  %v6176_v31 = vld [vmem:[%s7805_s18 + $0x20] sm:$0x1] }
  0x16   : > { %7047 = vmatprep.subr.bf16.mxu0 %v7585_v9  ;;  %v2535_v27 = vrot.slane %v2533_v21, 5  ;;  %v2538_v35 = vshrl.u32 %v6174_v29, 16  ;;  %v2541_v36 = vshll.u32 %v6174_v29, 16  ;;  %v2547_v37 = vshll.u32 %v6175_v30, 16  ;;  %v6177_v53 = vld [vmem:[%s7805_s18 + $0x24] sm:$0xf] }
  0x17   : > { %v2520_v28 = vor.u32 %v2519_v23, %v2516_v22  ;;  %v2530_v34 = vor.u32 %v2529_v26, %v2525_v25  ;;  %v2551_v40 = vshrl.u32 %v6175_v30, 16  ;;  %v2557_v41 = vshll.u32 %v6176_v31, 16  ;;  %v6178_v57 = vld [vmem:[%s7805_s18 + $0x28] sm:$0xf]  ;;  %v6179_v58 = vld [vmem:[%s7805_s18 + $0x2c] sm:$0x1] }
  0x18   : > { %6856 = vmatpush3.bf16.msra.mxu1 %v7584_v8  ;;  %v2540_v43 = vrot.slane %v2538_v35, 4  ;;  %v2543_v44 = vrot.slane %v2541_v36, 5  ;;  %v2549_v45 = vrot.slane %v2547_v37, 5  ;;  %v2562_v59 = vshrl.u32 %v6177_v53, 16  ;;  %v7597_v2 = vld [vmem:[%s7805_s18 + $0x18] sm:$0xff]   ;;  %v7596_v6 = vld [vmem:[%s8944_s1 + $0x148] sm:$0xff]  }
  0x19   : > { %7048 = vmatpush3.bf16.msra.mxu0 %v7585_v9  ;;  %6857 = vmatprep.subr.bf16.mxu1 %v7586_v10  ;;  %v2521_v39 = vrot.slane %v2520_v28, 4  ;;  %v2531_v42 = vrot.slane %v2530_v34, 4  ;;  %v2553_v48 = vrot.slane %v2551_v40, 4  ;;  %v2559_v51 = vrot.slane %v2557_v41, 5  ;;  %v6180_v13 = vld [vmem:[%s7805_s18 + $0x30] sm:$0xf] }
  0x1a   : > { %7049 = vmatprep.subr.bf16.mxu0 %v7587_v11  ;;  %v2544_v50 = vor.u32 %v2543_v44, %v2540_v43  ;;  %v2565_v60 = vshll.u32 %v6177_v53, 16  ;;  %v2571_v62 = vshll.u32 %v6178_v57, 16  ;;  %v2575_v63 = vshrl.u32 %v6178_v57, 16  ;;  %v6181_v14 = vld [vmem:[%s7805_s18 + $0x34] sm:$0xf]  ;;  %v7598_v28 = vld [vmem:[%s7805_s18 + $0x24] sm:$0xff]  }
  0x1b   : > { %v2526_v46 = vsel %vm7828_vm2, %v2521_v39, %v2525_v25  ;;  %v2536_v49 = vsel %vm7828_vm2, %v2531_v42, %v2535_v27  ;;  %v2554_v56 = vor.u32 %v2553_v48, %v2549_v45  ;;  %v2581_v0 = vshll.u32 %v6179_v58, 16  ;;  %v6182_v17 = vld [vmem:[%s7805_s18 + $0x38] sm:$0x1]  ;;  %v7600_v31 = vld [vmem:[%s8944_s1 + $0x150] sm:$0xff]   ;;  %v6183_v39 = vld [vmem:[%s7805_s18 + $0x3c] sm:$0xf] }
  0x1c   : > { %6858 = vmatpush3.bf16.msra.mxu1 %v7586_v10  ;;  %v6235_v54 = vcombine.low %v2526_v46, %v2536_v49  ;;  %v2545_v61 = vrot.slane %v2544_v50, 4  ;;  %v2564_v3 = vrot.slane %v2562_v59, 4  ;;  %v2567_v4 = vrot.slane %v2565_v60, 5  ;;  %v7599_v10 = vld [vmem:[%s8944_s1 + $0x48] sm:$0xff]   ;;  %v7602_v36 = vld [vmem:[%s7805_s18 + $0x30] sm:$0xff]  }
  0x1d   : > { %7050 = vmatpush3.bf16.msra.mxu0 %v7587_v11  ;;  %6859 = vmatprep.subr.bf16.mxu1 %v7588_v18  ;;  %v2555_v1 = vrot.slane %v2554_v56, 4  ;;  %v2573_v7 = vrot.slane %v2571_v62, 5  ;;  %v2577_v8 = vrot.slane %v2575_v63, 4  ;;  %v2583_v9 = vrot.slane %v2581_v0, 5  ;;  %v6184_v40 = vld [vmem:[%s7805_s18 + $0x40] sm:$0xf] }
  0x1e   : > { %7051 = vmatprep.subr.bf16.mxu0 %v7589_v24  ;;  %7055 = vmatprep.mubr.bf16.mxu0 %v6235_v54  ;;  %v2550_v5 = vsel %vm7828_vm2, %v2545_v61, %v2549_v45  ;;  %v2568_v12 = vor.u32 %v2567_v4, %v2564_v3  ;;  %v2589_v19 = vshll.u32 %v6180_v13, 16  ;;  %v2595_v21 = vshll.u32 %v6181_v14, 16  ;;  %v6185_v41 = vld [vmem:[%s7805_s18 + $0x44] sm:$0x1]  ;;  %v7604_v54 = vld [vmem:[%s8944_s1 + $0x50] sm:$0xff]  }
  0x1f   : > { %v2560_v11 = vsel %vm7828_vm2, %v2555_v1, %v2559_v51  ;;  %v2578_v16 = vor.u32 %v2577_v8, %v2573_v7  ;;  %v2599_v22 = vshrl.u32 %v6181_v14, 16  ;;  %v2605_v23 = vshll.u32 %v6182_v17, 16  ;;  %v6186_v58 = vld [vmem:[%s7805_s18 + $0x48] sm:$0xf]  ;;  %v6187_v61 = vld [vmem:[%s7805_s18 + $0x4c] sm:$0xf] }
  0x20   : > { %6860 = vmatpush3.bf16.msra.mxu1 %v7588_v18  ;;  %v6236_v15 = vcombine.low %v2550_v5, %v2560_v11  ;;  %v2586_v18 = vshrl.u32 %v6180_v13, 16  ;;  %v2569_v20 = vrot.slane %v2568_v12, 4  ;;  %v2591_v26 = vrot.slane %v2589_v19, 5  ;;  %v6188_v62 = vld [vmem:[%s7805_s18 + $0x50] sm:$0x1]  ;;  %v7605_v8 = vld [vmem:[%s8944_s1 + $0x160] sm:$0xff]  }
  0x21   : > { %7052 = vmatpush3.bf16.msra.mxu0 %v7589_v24  ;;  %6861 = vmatprep.subr.bf16.mxu1 %v7590_v32  ;;  %v2579_v24 = vrot.slane %v2578_v16, 4  ;;  %v2597_v29 = vrot.slane %v2595_v21, 5  ;;  %v2601_v30 = vrot.slane %v2599_v22, 4  ;;  %v2607_v35 = vrot.slane %v2605_v23, 5  ;;  %v6189_v19 = vld [vmem:[%s7805_s18 + $0x54] sm:$0xf] }
  0x22   : > { %7053 = vmatprep.subr.bf16.mxu0 %v7591_v38  ;;  %v2588_v25 = vrot.slane %v2586_v18, 4  ;;  %v2574_v27 = vsel %vm7828_vm2, %v2569_v20, %v2573_v7  ;;  %v2610_v43 = vshrl.u32 %v6183_v39, 16  ;;  %v2613_v44 = vshll.u32 %v6183_v39, 16  ;;  %v7607_v18 = vld [vmem:[%s7805_s18 + $0x48] sm:$0xff]   ;;  %v6190_v20 = vld [vmem:[%s7805_s18 + $0x58] sm:$0xf] }
  0x23   : > { %v2619_v45 = vshll.u32 %v6184_v40, 16  ;;  %v2623_v48 = vshrl.u32 %v6184_v40, 16  ;;  %v2629_v49 = vshll.u32 %v6185_v41, 16  ;;  %v2634_v63 = vshrl.u32 %v6186_v58, 16  ;;  %v7606_v23 = vld [vmem:[%s8944_s1 + $0x168] sm:$0xff]   ;;  %v7608_v39 = vld [vmem:[%s7805_s18 + $0x54] sm:$0xff]  }
  0x24   : > { %6862 = vmatpush3.bf16.msra.mxu1 %v7590_v32  ;;  %v2584_v32 = vsel %vm7828_vm2, %v2579_v24, %v2583_v9  ;;  %v2592_v34 = vor.u32 %v2591_v26, %v2588_v25  ;;  %v2612_v51 = vrot.slane %v2610_v43, 4  ;;  %v2637_v0 = vshll.u32 %v6186_v58, 16  ;;  %v6191_v24 = vld [vmem:[%s7805_s18 + $0x5c] sm:$0x1]  ;;  %v6192_v43 = vld [vmem:[%s7805_s18 + $0x60] sm:$0xf] }
  0x25   : > { %7054 = vmatpush3.bf16.msra.mxu0 %v7591_v38  ;;  %6895 = vmatprep.subr.bf16.mxu1 %v7594_v47  ;;  %v6237_v37 = vcombine.low %v2574_v27, %v2584_v32  ;;  %v2602_v38 = vor.u32 %v2601_v30, %v2597_v29  ;;  %v2621_v53 = vrot.slane %v2619_v45, 5  ;;  %v2625_v56 = vrot.slane %v2623_v48, 4  ;;  %v7609_v40 = vld [vmem:[%s8944_s1 + $0x58] sm:$0xff]   ;;  %v6194_v45 = vld [vmem:[%s7805_s18 + $0x68] sm:$0x1] }
  0x26   : > { %7087 = vmatprep.subr.bf16.mxu0 %v7595_v52  ;;  %v2593_v42 = vrot.slane %v2592_v34, 4  ;;  %v2631_v57 = vrot.slane %v2629_v49, 5  ;;  %v2647_v3 = vshrl.u32 %v6187_v61, 16  ;;  %v2653_v4 = vshll.u32 %v6188_v62, 16 }
  0x27   : > { %6864 = vmatmul.mubr.bf16.vlgmr.msra.gmra.mrb[0].mxu1 %v7593_v55  ;;  %v2603_v46 = vrot.slane %v2602_v38, 4  ;;  %v2626_v1 = vor.u32 %v2625_v56, %v2621_v53  ;;  %v2639_v7 = vrot.slane %v2637_v0, 5  ;;  %v2658_v25 = vshrl.u32 %v6189_v19, 16  ;;  %v6259_v0 = vld [vmem:[%s7805_s18 + $0xc] sm:$0xe] }
  0x28   : > { %7056 = vmatmul.mubr.bf16.vlgmr.msra.gmra.mrb[0].mxu0 %v6236_v15  ;;  %6896 = vmatpush3.bf16.msra.mxu1 %v7594_v47  ;;  %v7601_v47 = vld [vmem:[%s8944_s1 + $0x158] sm:$0xff]   ;;  %v2598_v50 = vsel %vm7828_vm2, %v2593_v42, %v2597_v29  ;;  %v2649_v12 = vrot.slane %v2647_v3, 4  ;;  %v2655_v17 = vrot.slane %v2653_v4, 5  ;;  %v2661_v26 = vshll.u32 %v6189_v19, 16 }
  0x29   : > { %7088 = vmatpush3.bf16.msra.mxu0 %v7595_v52  ;;  %6867 = vmatprep.mubr.bf16.mxu1 %v7597_v2  ;;  %v2615_v52 = vrot.slane %v2613_v44, 5  ;;  %v2608_v55 = vsel %vm7828_vm2, %v2603_v46, %v2607_v35  ;;  %v2643_v2 = vshll.u32 %v6187_v61, 16  ;;  %v2627_v9 = vrot.slane %v2626_v1, 4  ;;  %v6193_v44 = vld [vmem:[%s7805_s18 + $0x64] sm:$0xf] }
  0x2a   : > { %7089 = vmatprep.subr.bf16.mxu0 %v7596_v6  ;;  %6897 = vmatprep.subr.bf16.mxu1 %v7599_v10  ;;  %v6238_v59 = vcombine.low %v2598_v50, %v2608_v55  ;;  %v2671_v29 = vshrl.u32 %v6190_v20, 16  ;;  %v2677_v30 = vshll.u32 %v6191_v24, 16  ;;  %v2660_v32 = vrot.slane %v2658_v25, 4  ;;  %v7610_v50 = vld [vmem:[%s8944_s1 + $0x170] sm:$0xff]  }
  0x2b   : > { %7059 = vmatprep.mubr.bf16.mxu0 %v6237_v37  ;;  %v2616_v60 = vor.u32 %v2615_v52, %v2612_v51  ;;  %v2645_v11 = vrot.slane %v2643_v2, 5  ;;  %v2632_v15 = vsel %vm7828_vm2, %v2627_v9, %v2631_v57  ;;  %v2663_v34 = vrot.slane %v2661_v26, 5 }
  0x2c   : > { %6898 = vmatpush3.bf16.msra.mxu1 %v7599_v10  ;;  %v7603_v10 = vld [vmem:[%s7805_s18 + $0x3c] sm:$0xff]   ;;  %v2673_v37 = vrot.slane %v2671_v29, 4  ;;  %v2679_v38 = vrot.slane %v2677_v30, 5  ;;  %v2685_v48 = vshll.u32 %v6192_v43, 16  ;;  %v2691_v49 = vshll.u32 %v6193_v44, 16 }
  0x2d   : > { %7090 = vmatpush3.bf16.msra.mxu0 %v7596_v6  ;;  %6899 = vmatprep.subr.bf16.mxu1 %v7604_v54  ;;  %v2617_v5 = vrot.slane %v2616_v60, 4  ;;  %v2636_v6 = vrot.slane %v2634_v63, 4  ;;  %v2650_v16 = vor.u32 %v2649_v12, %v2645_v11  ;;  %v2664_v42 = vor.u32 %v2663_v34, %v2660_v32  ;;  %v7611_v60 = vld [vmem:[%s8944_s1 + $0x178] sm:$0xff]   ;;  %v7612_v63 = vld [vmem:[%s7805_s18 + $0x60] sm:$0xff]   ;;  %v6267_v32 = vld [vmem:[%s7805_s18 + $0x2c] sm:$0x1] }
  0x2e   : > { %7091 = vmatprep.subr.bf16.mxu0 %v7600_v31  ;;  %v2695_v52 = vshrl.u32 %v6193_v44, 16  ;;  %v2687_v56 = vrot.slane %v2685_v48, 5  ;;  %v2693_v57 = vrot.slane %v2691_v49, 5  ;;  %v6265_v29 = vld [vmem:[%s7805_s18 + $0x24] sm:$0xe]  ;;  %v7619_v48 = vld [vmem:[%s8944_s1 + $0x188] sm:$0xff]  }
  0x2f   : > { %6868 = vmatmul.mubr.bf16.gmra.mrb[4].mxu1 %v7598_v28  ;;  %v2622_v13 = vsel %vm7828_vm2, %v2617_v5, %v2621_v53  ;;  %v2640_v14 = vor.u32 %v2639_v7, %v2636_v6  ;;  %v2651_v27 = vrot.slane %v2650_v16, 4  ;;  %v2667_v28 = vshll.u32 %v6190_v20, 16  ;;  %v6260_v5 = vld [vmem:[%s7805_s18 + $0x10] sm:$0xf]  ;;  %v6261_v6 = vld [vmem:[%s7805_s18 + $0x14] sm:$0x1] }
  0x30   : > { %6871 = vmatprep.mubr.bf16.mxu1 %v7602_v36  ;;  %6900 = vmatpush3.bf16.msra.mxu1 %v7604_v54  ;;  %v6239_v21 = vcombine.low %v2622_v13, %v2632_v15  ;;  %v2665_v51 = vrot.slane %v2664_v42, 4  ;;  %v2701_v53 = vshll.u32 %v6194_v45, 16  ;;  %v6307_v7 = vrot.slane %v6259_v0, 9  ;;  %v7615_v13 = vld [vmem:[%s8944_s1 + $0x180] sm:$0xff]   ;;  %v6263_v20 = vld [vmem:[%s7805_s18 + $0x1c] sm:$0xf] }
  0x31   : > { %7092 = vmatpush3.bf16.msra.mxu0 %v7600_v31  ;;  %v2641_v22 = vrot.slane %v2640_v14, 4  ;;  %v2656_v35 = vsel %vm7828_vm2, %v2651_v27, %v2655_v17  ;;  %v2669_v36 = vrot.slane %v2667_v28, 5  ;;  %6901 = vmatprep.subr.bf16.mxu1 %v7609_v40  ;;  %v3381_v9 = vrot.slane %v6260_v5, 5  ;;  %v7613_v17 = vld [vmem:[%s7805_s18 + $0x6c] sm:$0xff]   ;;  %v7617_v42 = vld [vmem:[%s7805_s18 + $0x84] sm:$0xff]  }
  0x32   : > { %7060 = vmatmul.mubr.bf16.gmra.mrb[4].mxu0 %v6238_v59  ;;  %7093 = vmatprep.subr.bf16.mxu0 %v7601_v47  ;;  %v2697_v59 = vrot.slane %v2695_v52, 4  ;;  %v2703_v3 = vrot.slane %v2701_v53, 5  ;;  %v3388_v26 = vrot.slane %v6263_v20, 5  ;;  %v6309_v34 = vrot.slane %v6265_v29, 9  ;;  %v6269_v44 = vld [vmem:[%s7805_s18 + $0x34] sm:$0xf] }
  0x33   : > { %7063 = vmatprep.mubr.bf16.mxu0 %v6239_v21  ;;  %v2646_v31 = vsel %vm7828_vm2, %v2641_v22, %v2645_v11  ;;  %v2674_v46 = vor.u32 %v2673_v37, %v2669_v36  ;;  %v2670_v58 = vsel %vm7828_vm2, %v2665_v51, %v2669_v36  ;;  %v7614_v11 = vld [vmem:[%s8944_s1 + $0x60] sm:$0xff]   ;;  %v3382_v15 = vsel %vm7928_vm5, %v6307_v7, %v3381_v9  ;;  %v6274_v0 = vld [vmem:[%s7805_s18 + $0x48] sm:$0xe]  ;;  %v6275_v5 = vld [vmem:[%s7805_s18 + $0x4c] sm:$0xf] }
  0x34   : > { %v6240_v41 = vcombine.low %v2646_v31, %v2656_v35  ;;  %6902 = vmatpush3.bf16.msra.mxu1 %v7609_v40  ;;  %v2698_v2 = vor.u32 %v2697_v59, %v2693_v57  ;;  %v3383_v16 = vrot.slane %v3381_v9, 4  ;;  %v6264_v21 = vld [vmem:[%s7805_s18 + $0x20] sm:$0x1]  ;;  %v3390_v30 = vrot.slane %v3388_v26, 4  ;;  %v6266_v31 = vld [vmem:[%s7805_s18 + $0x28] sm:$0xf] }
  0x35   : > { %7094 = vmatpush3.bf16.msra.mxu0 %v7601_v47  ;;  %v2682_v47 = vshrl.u32 %v6192_v43, 16  ;;  %v2675_v54 = vrot.slane %v2674_v46, 4  ;;  %6903 = vmatprep.subr.bf16.mxu1 %v7614_v11  ;;  %v3391_v27 = vrot.slane %v6264_v21, 5  ;;  %v3395_v36 = vrot.slane %v6266_v31, 5  ;;  %v6268_v43 = vld [vmem:[%s7805_s18 + $0x30] sm:$0xe] }
  0x36   : > { %7095 = vmatprep.subr.bf16.mxu0 %v7605_v8  ;;  %v2699_v12 = vrot.slane %v2698_v2, 4  ;;  %v3398_v37 = vrot.slane %v6267_v32, 5  ;;  %v6270_v46 = vld [vmem:[%s7805_s18 + $0x38] sm:$0x1]  ;;  %v7622_v59 = vld [vmem:[%s8944_s1 + $0x70] sm:$0xff]   ;;  %v6312_v7 = vrot.slane %v6274_v0, 9 }
  0x37   : > { %6872 = vmatmul.mubr.bf16.gmra.mrb[8].mxu1 %v7603_v10  ;;  %v2684_v55 = vrot.slane %v2682_v47, 4  ;;  %v2680_v61 = vsel %vm7828_vm2, %v2675_v54, %v2679_v38  ;;  %v3384_v10 = vrot.slane %v6261_v6, 5  ;;  %v3392_v38 = vsel %vm7928_vm5, %v3390_v30, %v3391_v27  ;;  %v7620_v54 = vld [vmem:[%s7805_s18 + $0x90] sm:$0xff]   ;;  %v6280_v27 = vld [vmem:[%s7805_s18 + $0x60] sm:$0xe]  ;;  %v7627_v31 = vld [vmem:[%s8944_s1 + $0x198] sm:$0xff]  }
  0x38   : > { %6875 = vmatprep.mubr.bf16.mxu1 %v7607_v18  ;;  %v6241_v1 = vcombine.low %v2670_v58, %v2680_v61  ;;  %v6262_v18 = vld [vmem:[%s7805_s18 + $0x18] sm:$0xe]  ;;  %v2704_v19 = vsel %vm7828_vm2, %v2699_v12, %v2703_v3  ;;  %6904 = vmatpush3.bf16.msra.mxu1 %v7614_v11  ;;  %v3396_v40 = vsel %vm7928_vm5, %v6309_v34, %v3395_v36  ;;  %v3402_v47 = vrot.slane %v6269_v44, 5  ;;  %v7621_v3 = vld [vmem:[%s7805_s18 + $0x9c] sm:$0xff]   ;;  %v6276_v6 = vld [vmem:[%s7805_s18 + $0x50] sm:$0x1] }
  0x39   : > { %7096 = vmatpush3.bf16.msra.mxu0 %v7605_v8  ;;  %v2688_v62 = vor.u32 %v2687_v56, %v2684_v55  ;;  %v6308_v22 = vrot.slane %v6262_v18, 9  ;;  %v3385_v25 = vsel %vm7928_vm5, %v3383_v16, %v3384_v10  ;;  %v3405_v51 = vrot.slane %v6270_v46, 5  ;;  %v6271_v55 = vld [vmem:[%s7805_s18 + $0x3c] sm:$0xe]  ;;  %v6272_v56 = vld [vmem:[%s7805_s18 + $0x40] sm:$0xf] }
  0x3a   : > { %7097 = vmatprep.subr.bf16.mxu0 %v7606_v23  ;;  %7064 = vmatmul.mubr.bf16.gmra.mrb[8].mxu0 %v6240_v41  ;;  %v6339_v28 = vcombine.low %v3382_v15, %v3385_v25  ;;  %v3397_v41 = vrot.slane %v3395_v36, 4  ;;  %v3404_v53 = vrot.slane %v3402_v47, 4  ;;  %v6311_v58 = vrot.slane %v6271_v55, 9  ;;  %v7623_v12 = vld [vmem:[%s8944_s1 + $0x190] sm:$0xff]   ;;  %v7624_v15 = vld [vmem:[%s7805_s18 + $0xa8] sm:$0xff]  }
  0x3b   : > { %v2689_v8 = vrot.slane %v2688_v62, 4  ;;  %7067 = vmatprep.mubr.bf16.mxu0 %v6241_v1  ;;  %v3389_v35 = vsel %vm7928_vm5, %v6308_v22, %v3388_v26  ;;  %v3419_v11 = vrot.slane %v6276_v6, 5  ;;  %v6277_v16 = vld [vmem:[%s7805_s18 + $0x54] sm:$0xe]  ;;  %v6279_v18 = vld [vmem:[%s7805_s18 + $0x5c] sm:$0x1] }
  0x3c   : > { %v6340_v45 = vcombine.low %v3389_v35, %v3392_v38  ;;  %v3399_v49 = vsel %vm7928_vm5, %v3397_v41, %v3398_v37  ;;  %v3426_v21 = vrot.slane %v6279_v18, 5  ;;  %v7626_v26 = vld [vmem:[%s8944_s1 + $0x78] sm:$0xff]   ;;  %v6282_v29 = vld [vmem:[%s7805_s18 + $0x68] sm:$0x1]  ;;  %v6314_v30 = vrot.slane %v6280_v27, 9 }
  0x3d   : > { %7098 = vmatpush3.bf16.msra.mxu0 %v7606_v23  ;;  %v2694_v14 = vsel %vm7828_vm2, %v2689_v8, %v2693_v57  ;;  %v7616_v23 = vld [vmem:[%s7805_s18 + $0x78] sm:$0xff]   ;;  %v6341_v52 = vcombine.low %v3396_v40, %v3399_v49  ;;  %v6273_v57 = vld [vmem:[%s7805_s18 + $0x44] sm:$0x1]  ;;  %v3416_v8 = vrot.slane %v6275_v5, 5  ;;  %v3433_v36 = vrot.slane %v6282_v29, 5 }
  0x3e   : > { %7099 = vmatprep.subr.bf16.mxu0 %v7610_v50  ;;  %v6242_v24 = vcombine.low %v2694_v14, %v2704_v19  ;;  %v3412_v61 = vrot.slane %v6273_v57, 5  ;;  %v6313_v19 = vrot.slane %v6277_v16, 9  ;;  %v7625_v34 = vld [vmem:[%s7805_s18 + $0xb4] sm:$0xff]   ;;  %v597_v40 = vld [vmem:[%s7805_s18 + $0x4] sm:$0xf] }
  0x3f   : > { %6876 = vmatmul.mubr.bf16.gmra.mrb[12].mxu1 %v7608_v39  ;;  %v7618_v39 = vld [vmem:[%s8944_s1 + $0x68] sm:$0xff]   ;;  %v3418_v14 = vrot.slane %v3416_v8, 4  ;;  %v3417_v22 = vsel %vm7928_vm5, %v6312_v7, %v3416_v8  ;;  %v661_v49 = vshrl.u32 %v597_v40, 16  ;;  %v600_v5 = vld [vmem:[%s7805_s18 + $0x10] sm:$0xf] }
  0x40   : > { %6879 = vmatprep.mubr.bf16.mxu1 %v7612_v63  ;;  %6905 = vmatprep.subr.bf16.mxu1 %v7618_v39  ;;  %v3406_v63 = vsel %vm7928_vm5, %v3404_v53, %v3405_v51  ;;  %v598_v41 = vld [vmem:[%s7805_s18 + $0x8] sm:$0x1]  ;;  %v6283_v46 = vld [vmem:[%s7805_s18 + $0x6c] sm:$0xe]  ;;  %v6284_v51 = vld [vmem:[%s7805_s18 + $0x70] sm:$0xf] }
  0x41   : > { %7100 = vmatpush3.bf16.msra.mxu0 %v7610_v50  ;;  %v6310_v50 = vrot.slane %v6268_v43, 9  ;;  %6906 = vmatpush3.bf16.msra.mxu1 %v7618_v39  ;;  %v596_v39 = vld [vmem:[%s7805_s18] sm:$0xf]  ;;  %v3437_v57 = vrot.slane %v6284_v51, 5  ;;  %v601_v6 = vld [vmem:[%s7805_s18 + $0x14] sm:$0x1] }
  0x42   : > { %7101 = vmatprep.subr.bf16.mxu0 %v7611_v60  ;;  %7068 = vmatmul.mubr.bf16.gmra.mrb[12].mxu0 %v6242_v24  ;;  %v648_v44 = vshrl.u32 %v596_v39, 16  ;;  %v6288_v29 = vld [vmem:[%s7805_s18 + $0x80] sm:$0x1] }
  0x43   : > { %7103 = vmatprep.mubr.bf16.mxu0 %v6339_v28  ;;  %v3403_v62 = vsel %vm7928_vm5, %v6310_v50, %v3402_v47  ;;  %6907 = vmatprep.subr.bf16.mxu1 %v7622_v59  ;;  %v6281_v28 = vld [vmem:[%s7805_s18 + $0x64] sm:$0xf]  ;;  %v667_v50 = vshll.u32 %v598_v41, 16  ;;  %v603_v41 = vld [vmem:[%s7805_s18 + $0x1c] sm:$0xf] }
  0x44   : > { %v6342_v9 = vcombine.low %v3403_v62, %v3406_v63  ;;  %v3430_v35 = vrot.slane %v6281_v28, 5  ;;  %v8029_v47 = vld [vmem:[%s8944_s1 + $0x80] sm:$0xff]   ;;  %v599_v63 = vld [vmem:[%s7805_s18 + $0xc] sm:$0xf]  ;;  %v709_v51 = vshrl.u32 %v603_v41, 16 }
  0x45   : > { %7102 = vmatpush3.bf16.msra.mxu0 %v7611_v60  ;;  %v3409_v60 = vrot.slane %v6272_v56, 5  ;;  %6908 = vmatpush3.bf16.msra.mxu1 %v7622_v59  ;;  %v6285_v56 = vld [vmem:[%s7805_s18 + $0x74] sm:$0x1]  ;;  %v669_v62 = vrot.slane %v667_v50, 5  ;;  %v672_v8 = vshrl.u32 %v599_v63, 16 }
  0x46   : > { %7135 = vmatprep.subr.bf16.mxu0 %v7615_v13  ;;  %6909 = vmatprep.subr.bf16.mxu1 %v7626_v26  ;;  %v3432_v43 = vrot.slane %v3430_v35, 4 }
  0x47   : > { %6880 = vmatmul.mubr.bf16.gmra.mrb[16].mxu1 %v7613_v17  ;;  %v3410_v1 = vsel %vm7928_vm5, %v6311_v58, %v3409_v60  ;;  %v3411_v2 = vrot.slane %v3409_v60, 4  ;;  %v6278_v17 = vld [vmem:[%s7805_s18 + $0x58] sm:$0xf]  ;;  %v7629_v58 = vld [vmem:[%s8944_s1 + $0x1a0] sm:$0xff]   ;;  %v674_v18 = vrot.slane %v672_v8, 4 }
  0x48   : > { %6883 = vmatprep.mubr.bf16.mxu1 %v7616_v23  ;;  %v3423_v20 = vrot.slane %v6278_v17, 5  ;;  %v3420_v23 = vsel %vm7928_vm5, %v3418_v14, %v3419_v11  ;;  %v3434_v53 = vsel %vm7928_vm5, %v3432_v43, %v3433_v36  ;;  %v7631_v11 = vld [vmem:[%s8944_s1 + $0x1a8] sm:$0xff]   ;;  %v685_v14 = vshrl.u32 %v600_v5, 16  ;;  %v602_v36 = vld [vmem:[%s7805_s18 + $0x18] sm:$0xf] }
  0x49   : > { %v3413_v10 = vsel %vm7928_vm5, %v3411_v2, %v3412_v61  ;;  %v6344_v37 = vcombine.low %v3417_v22, %v3420_v23  ;;  %6910 = vmatpush3.bf16.msra.mxu1 %v7626_v26  ;;  %v663_v61 = vrot.slane %v661_v49, 4  ;;  %v3439_v2 = vrot.slane %v3437_v57, 4  ;;  %v6287_v26 = vld [vmem:[%s7805_s18 + $0x7c] sm:$0xf] }
  0x4a   : > { %7104 = vmatmul.mubr.bf16.vlgmr.msra.gmra.mrb[0].mxu0 %v6340_v45  ;;  %v3424_v24 = vsel %vm7928_vm5, %v6313_v19, %v3423_v20  ;;  %v3425_v25 = vrot.slane %v3423_v20, 4  ;;  %v651_v45 = vshll.u32 %v596_v39, 16  ;;  %6943 = vmatprep.subr.bf16.mxu1 %v8029_v47  ;;  %v6286_v20 = vld [vmem:[%s7805_s18 + $0x78] sm:$0xe] }
  0x4b   : > { %7136 = vmatpush3.bf16.msra.mxu0 %v7615_v13  ;;  %7107 = vmatprep.mubr.bf16.mxu0 %v6341_v52  ;;  %v6343_v13 = vcombine.low %v3410_v1, %v3413_v10  ;;  %v6315_v52 = vrot.slane %v6283_v46, 9  ;;  %v681_v10 = vshll.u32 %v600_v5, 16  ;;  %v705_v46 = vshll.u32 %v603_v41, 16 }
  0x4c   : > { %7137 = vmatprep.subr.bf16.mxu0 %v7619_v48  ;;  %v3427_v32 = vsel %vm7928_vm5, %v3425_v25, %v3426_v21  ;;  %v653_v55 = vrot.slane %v651_v45, 5  ;;  %v7633_v21 = vld [vmem:[%s8944_s1 + $0x1b0] sm:$0xff]   ;;  %v699_v45 = vshll.u32 %v602_v36, 16 }
  0x4d   : > { %v6345_v38 = vcombine.low %v3424_v24, %v3427_v32  ;;  %v3438_v1 = vsel %vm7928_vm5, %v6315_v52, %v3437_v57  ;;  %v683_v23 = vrot.slane %v681_v10, 5  ;;  %v687_v24 = vrot.slane %v685_v14, 4 }
  0x4f   : > { %6884 = vmatmul.mubr.bf16.gmra.mrb[20].mxu1 %v7617_v42  ;;  %7138 = vmatpush3.bf16.msra.mxu0 %v7619_v48  ;;  %v8023_v42 = vsel %vm7928_vm5, %v6314_v30, %v3430_v35  ;;  %v657_v48 = vshll.u32 %v597_v40, 16  ;;  %v6316_v30 = vrot.slane %v6286_v20, 9  ;;  %v3447_v35 = vrot.slane %v6288_v29, 5 }
  0x50   : > { %6887 = vmatprep.mubr.bf16.mxu1 %v7620_v54  ;;  %7139 = vmatprep.subr.bf16.mxu0 %v7623_v12  ;;  %v650_v54 = vrot.slane %v648_v44, 4  ;;  %v6346_v59 = vcombine.low %v8023_v42, %v3434_v53  ;;  %v604_v42 = vld [vmem:[%s7805_s18 + $0x20] sm:$0x1]  ;;  %v696_v44 = vshrl.u32 %v602_v36, 16  ;;  %v6290_v53 = vld [vmem:[%s7805_s18 + $0x88] sm:$0xf] }
  0x51   : > { %v659_v60 = vrot.slane %v657_v48, 5  ;;  %v6289_v48 = vld [vmem:[%s7805_s18 + $0x84] sm:$0xe]  ;;  %v715_v52 = vshll.u32 %v604_v42, 16 }
  0x52   : > { %7108 = vmatmul.mubr.bf16.gmra.mrb[4].mxu0 %v6342_v9  ;;  %v654_v0 = vor.u32 %v653_v55, %v650_v54  ;;  %v675_v9 = vshll.u32 %v599_v63, 16  ;;  %v6291_v54 = vld [vmem:[%s7805_s18 + $0x8c] sm:$0x1]  ;;  %v698_v57 = vrot.slane %v696_v44, 4  ;;  %v711_v63 = vrot.slane %v709_v51, 4 }
  0x53   : > { %7111 = vmatprep.mubr.bf16.mxu0 %v6343_v13  ;;  %7140 = vmatpush3.bf16.msra.mxu0 %v7623_v12  ;;  %v664_v7 = vor.u32 %v663_v61, %v659_v60  ;;  %v6317_v5 = vrot.slane %v6289_v48, 9  ;;  %v6296_v51 = vld [vmem:[%s7805_s18 + $0xa0] sm:$0xf] }
  0x54   : > { %7141 = vmatprep.subr.bf16.mxu0 %v7627_v31  ;;  %v655_v12 = vrot.slane %v654_v0, 4  ;;  %v677_v19 = vrot.slane %v675_v9, 5  ;;  %v717_v0 = vrot.slane %v715_v52, 5 }
  0x55   : > { %v665_v16 = vrot.slane %v664_v7, 4  ;;  %v3454_v7 = vrot.slane %v6291_v54, 5 }
  0x56   : > { %v660_v22 = vsel %vm7828_vm2, %v655_v12, %v659_v60  ;;  %v678_v28 = vor.u32 %v677_v19, %v674_v18  ;;  %v606_v60 = vld [vmem:[%s7805_s18 + $0x28] sm:$0xf]  ;;  %v7632_v12 = vld [vmem:[%s8944_s1 + $0x90] sm:$0xff]   ;;  %v8093_v18 = vld [vmem:[%s8944_s1 + $0x1c0] sm:$0xff]  }
  0x57   : > { %6888 = vmatmul.mubr.bf16.gmra.mrb[24].mxu1 %v7621_v3  ;;  %7142 = vmatpush3.bf16.msra.mxu0 %v7627_v31  ;;  %v3440_v3 = vrot.slane %v6285_v56, 5  ;;  %v670_v27 = vsel %vm7828_vm2, %v665_v16, %v669_v62  ;;  %v3444_v31 = vrot.slane %v6287_v26, 5  ;;  %v707_v62 = vrot.slane %v705_v46, 5 }
  0x58   : > { %6891 = vmatprep.mubr.bf16.mxu1 %v7624_v15  ;;  %7143 = vmatprep.subr.bf16.mxu0 %v7629_v58  ;;  %v691_v15 = vshll.u32 %v601_v6, 16  ;;  %v6019_v32 = vcombine.low %v660_v22, %v670_v27  ;;  %v3451_v6 = vrot.slane %v6290_v53, 5  ;;  %v733_v16 = vshrl.u32 %v606_v60, 16  ;;  %v6294_v27 = vld [vmem:[%s7805_s18 + $0x98] sm:$0x1] }
  0x59   : > { %v3441_v13 = vsel %vm7928_vm5, %v3439_v2, %v3440_v3  ;;  %v3445_v39 = vsel %vm7928_vm5, %v6316_v30, %v3444_v31  ;;  %v3446_v40 = vrot.slane %v3444_v31, 4  ;;  %v7630_v2 = vld [vmem:[%s8944_s1 + $0x88] sm:$0xff]   ;;  %v712_v8 = vor.u32 %v711_v63, %v707_v62 }
  0x5a   : > { %7112 = vmatmul.mubr.bf16.gmra.mrb[8].mxu0 %v6344_v37  ;;  %v6347_v17 = vcombine.low %v3438_v1, %v3441_v13  ;;  %v693_v25 = vrot.slane %v691_v15, 5  ;;  %v7635_v37 = vld [vmem:[%s8944_s1 + $0x1b8] sm:$0xff]   ;;  %v607_v1 = vld [vmem:[%s7805_s18 + $0x2c] sm:$0x1]  ;;  %v3452_v14 = vsel %vm7928_vm5, %v6317_v5, %v3451_v6  ;;  %v3453_v15 = vrot.slane %v3451_v6, 4  ;;  %v7637_v5 = vld [vmem:[%s8944_s1 + $0xa0] sm:$0xff]  }
  0x5b   : > { %7115 = vmatprep.mubr.bf16.mxu0 %v6345_v38  ;;  %7144 = vmatpush3.bf16.msra.mxu0 %v7629_v58  ;;  %v679_v38 = vrot.slane %v678_v28, 4  ;;  %v3448_v50 = vsel %vm7928_vm5, %v3446_v40, %v3447_v35  ;;  %v701_v58 = vrot.slane %v699_v45, 5  ;;  %v713_v19 = vrot.slane %v712_v8, 4  ;;  %v610_v40 = vld [vmem:[%s7805_s18 + $0x38] sm:$0x1] }
  0x5c   : > { %7145 = vmatprep.subr.bf16.mxu0 %v7631_v11  ;;  %v6348_v56 = vcombine.low %v3445_v39, %v3448_v50  ;;  %v739_v26 = vshll.u32 %v607_v1, 16  ;;  %v609_v39 = vld [vmem:[%s7805_s18 + $0x34] sm:$0xf]  ;;  %v3461_v42 = vrot.slane %v6294_v27, 5  ;;  %v6295_v45 = vld [vmem:[%s7805_s18 + $0x9c] sm:$0xe] }
  0x5d   : > { %v684_v49 = vsel %vm7828_vm2, %v679_v38, %v683_v23  ;;  %v702_v3 = vor.u32 %v701_v58, %v698_v57  ;;  %v718_v28 = vsel %vm7828_vm2, %v713_v19, %v717_v0  ;;  %v753_v50 = vshll.u32 %v609_v39, 16 }
  0x5e   : > { %v3465_v8 = vrot.slane %v6296_v51, 5 }
  0x5f   : > { %6892 = vmatmul.mubr.bf16.gmra.mrb[28].mxu1 %v7625_v34  ;;  %v688_v34 = vor.u32 %v687_v24, %v683_v23  ;;  %7146 = vmatpush3.bf16.msra.mxu0 %v7631_v11  ;;  %v729_v11 = vshll.u32 %v606_v60, 16  ;;  %v703_v13 = vrot.slane %v702_v3, 4  ;;  %v3455_v24 = vsel %vm7928_vm5, %v3453_v15, %v3454_v7  ;;  %v613_v3 = vld [vmem:[%s7805_s18 + $0x44] sm:$0x1] }
  0x60   : > { %7147 = vmatprep.subr.bf16.mxu0 %v7633_v21  ;;  %6911 = vmatprep.mubr.bf16.mxu1 %v6019_v32  ;;  %v6349_v29 = vcombine.low %v3452_v14, %v3455_v24  ;;  %v608_v32 = vld [vmem:[%s7805_s18 + $0x30] sm:$0xf]  ;;  %v763_v60 = vshll.u32 %v610_v40, 16  ;;  %v6319_v7 = vrot.slane %v6295_v45, 9  ;;  %v6298_v14 = vld [vmem:[%s7805_s18 + $0xa8] sm:$0xe] }
  0x61   : > { %v689_v43 = vrot.slane %v688_v34, 4  ;;  %v731_v22 = vrot.slane %v729_v11, 5  ;;  %v708_v23 = vsel %vm7828_vm2, %v703_v13, %v707_v62  ;;  %v7634_v34 = vld [vmem:[%s8944_s1 + $0x98] sm:$0xff]   ;;  %v747_v44 = vshll.u32 %v608_v32, 16  ;;  %v612_v62 = vld [vmem:[%s7805_s18 + $0x40] sm:$0xf] }
  0x62   : > { %7116 = vmatmul.mubr.bf16.gmra.mrb[12].mxu0 %v6346_v59  ;;  %v605_v59 = vld [vmem:[%s7805_s18 + $0x24] sm:$0xf]  ;;  %v6021_v35 = vcombine.low %v708_v23, %v718_v28  ;;  %v765_v6 = vrot.slane %v763_v60, 5  ;;  %v3466_v15 = vsel %vm7928_vm5, %v6319_v7, %v3465_v8  ;;  %v781_v19 = vshrl.u32 %v612_v62, 16  ;;  %v6300_v24 = vld [vmem:[%s7805_s18 + $0xb0] sm:$0x1] }
  0x63   : > { %7119 = vmatprep.mubr.bf16.mxu0 %v6347_v17  ;;  %v694_v55 = vsel %vm7828_vm2, %v689_v43, %v693_v25  ;;  %7148 = vmatpush3.bf16.msra.mxu0 %v7633_v21  ;;  %v720_v9 = vshrl.u32 %v605_v59, 16  ;;  %v723_v10 = vshll.u32 %v605_v59, 16  ;;  %v6292_v17 = vld [vmem:[%s7805_s18 + $0x90] sm:$0xe]  ;;  %v735_v25 = vrot.slane %v733_v16, 4  ;;  %v7649_v7 = vld [vmem:[%s8944_s1 + $0xb8] sm:$0xff]  }
  0x64   : > { %v6020_v61 = vcombine.low %v684_v49, %v694_v55  ;;  %7149 = vmatprep.subr.bf16.mxu0 %v7635_v37  ;;  %v6318_v31 = vrot.slane %v6292_v17, 9  ;;  %v744_v43 = vshrl.u32 %v608_v32, 16  ;;  %v749_v54 = vrot.slane %v747_v44, 5 }
  0x65   : > { %v722_v20 = vrot.slane %v720_v9, 4  ;;  %v725_v21 = vrot.slane %v723_v10, 5  ;;  %v736_v36 = vor.u32 %v735_v25, %v731_v22  ;;  %v757_v55 = vshrl.u32 %v609_v39, 16  ;;  %v7641_v25 = vld [vmem:[%s8944_s1 + $0xa8] sm:$0xff]  }
  0x66   : > { %v746_v53 = vrot.slane %v744_v43, 4  ;;  %v755_v59 = vrot.slane %v753_v50, 5  ;;  %v3467_v16 = vrot.slane %v3465_v8, 4  ;;  %v777_v17 = vshll.u32 %v612_v62, 16 }
  0x67   : > { %6912 = vmatmul.mubr.bf16.vlgmr.msra.gmra.mrb[0].mxu1 %v6020_v61  ;;  %7150 = vmatpush3.bf16.msra.mxu0 %v7635_v37  ;;  %v726_v30 = vor.u32 %v725_v21, %v722_v20  ;;  %v741_v37 = vrot.slane %v739_v26, 5  ;;  %v737_v46 = vrot.slane %v736_v36, 4  ;;  %v611_v61 = vld [vmem:[%s7805_s18 + $0x3c] sm:$0xf]  ;;  %v6299_v20 = vld [vmem:[%s7805_s18 + $0xac] sm:$0xf] }
  0x68   : > { %6944 = vmatpush3.bf16.msra.mxu1 %v8029_v47  ;;  %v6293_v47 = vld [vmem:[%s7805_s18 + $0x94] sm:$0xf]  ;;  %7183 = vmatprep.subr.bf16.mxu0 %v8093_v18  ;;  %v750_v1 = vor.u32 %v749_v54, %v746_v53  ;;  %v771_v13 = vshll.u32 %v611_v61, 16  ;;  %v779_v27 = vrot.slane %v777_v17, 5  ;;  %v783_v28 = vrot.slane %v781_v19, 4 }
  0x69   : > { %6945 = vmatprep.subr.bf16.mxu1 %v7630_v2  ;;  %v3458_v38 = vrot.slane %v6293_v47, 5  ;;  %v727_v41 = vrot.slane %v726_v30, 4  ;;  %6915 = vmatprep.mubr.bf16.mxu1 %v6021_v35  ;;  %v742_v57 = vsel %vm7828_vm2, %v737_v46, %v741_v37  ;;  %v614_v35 = vld [vmem:[%s7805_s18 + $0x48] sm:$0xf]  ;;  %v7645_v36 = vld [vmem:[%s8944_s1 + $0xb0] sm:$0xff]   ;;  %v3472_v40 = vrot.slane %v6299_v20, 5 }
  0x6a   : > { %7120 = vmatmul.mubr.bf16.gmra.mrb[16].mxu0 %v6348_v56  ;;  %v6297_v56 = vld [vmem:[%s7805_s18 + $0xa4] sm:$0x1]  ;;  %v751_v10 = vrot.slane %v750_v1, 4  ;;  %v773_v23 = vrot.slane %v771_v13, 5  ;;  %v3475_v44 = vrot.slane %v6300_v24, 5  ;;  %v792_v45 = vshrl.u32 %v614_v35, 16 }
  0x6b   : > { %7123 = vmatprep.mubr.bf16.mxu0 %v6349_v29  ;;  %v3459_v48 = vsel %vm7928_vm5, %v6318_v31, %v3458_v38  ;;  %v3460_v49 = vrot.slane %v3458_v38, 4  ;;  %v732_v52 = vsel %vm7828_vm2, %v727_v41, %v731_v22  ;;  %v3468_v9 = vrot.slane %v6297_v56, 5  ;;  %v615_v41 = vld [vmem:[%s7805_s18 + $0x4c] sm:$0xf]  ;;  %v6302_v53 = vld [vmem:[%s7805_s18 + $0xb8] sm:$0xf] }
  0x6c   : > { %6946 = vmatpush3.bf16.msra.mxu1 %v7630_v2  ;;  %v6022_v63 = vcombine.low %v732_v52, %v742_v57  ;;  %v759_v2 = vrot.slane %v757_v55, 4  ;;  %v756_v21 = vsel %vm7828_vm2, %v751_v10, %v755_v59  ;;  %v787_v29 = vshll.u32 %v613_v3, 16 }
  0x6d   : > { %6947 = vmatprep.subr.bf16.mxu1 %v7632_v12  ;;  %v3462_v58 = vsel %vm7928_vm5, %v3460_v49, %v3461_v42  ;;  %v3469_v26 = vsel %vm7928_vm5, %v3467_v16, %v3468_v9  ;;  %v784_v38 = vor.u32 %v783_v28, %v779_v27  ;;  %v616_v42 = vld [vmem:[%s7805_s18 + $0x50] sm:$0x1]  ;;  %v795_v46 = vshll.u32 %v614_v35, 16  ;;  %v6304_v16 = vld [vmem:[%s7805_s18 + $0xc0] sm:$0xe] }
  0x6e   : > { %v6350_v0 = vcombine.low %v3459_v48, %v3462_v58  ;;  %v760_v11 = vor.u32 %v759_v2, %v755_v59  ;;  %v6351_v31 = vcombine.low %v3466_v15, %v3469_v26  ;;  %v789_v39 = vrot.slane %v787_v29, 5  ;;  %v6301_v48 = vld [vmem:[%s7805_s18 + $0xb4] sm:$0xe]  ;;  %v6303_v58 = vld [vmem:[%s7805_s18 + $0xbc] sm:$0x1] }
  0x6f   : > { %6916 = vmatmul.mubr.bf16.gmra.mrb[4].mxu1 %v6022_v63  ;;  %v785_v49 = vrot.slane %v784_v38, 4  ;;  %v3474_v51 = vrot.slane %v3472_v40, 4  ;;  %v801_v52 = vshll.u32 %v615_v41, 16  ;;  %v794_v55 = vrot.slane %v792_v45, 4  ;;  %v617_v63 = vld [vmem:[%s7805_s18 + $0x54] sm:$0xf] }
  0x70   : > { %6948 = vmatpush3.bf16.msra.mxu1 %v7632_v12  ;;  %v768_v12 = vshrl.u32 %v611_v61, 16  ;;  %v761_v22 = vrot.slane %v760_v11, 4  ;;  %v797_v56 = vrot.slane %v795_v46, 5  ;;  %v805_v57 = vshrl.u32 %v615_v41, 16  ;;  %v6306_v26 = vld [vmem:[%s7805_s18 + $0xc8] sm:$0x1] }
  0x71   : > { %6949 = vmatprep.subr.bf16.mxu1 %v7634_v34  ;;  %v790_v59 = vsel %vm7828_vm2, %v785_v49, %v789_v39  ;;  %v3476_v60 = vsel %vm7928_vm5, %v3474_v51, %v3475_v44  ;;  %v803_v61 = vrot.slane %v801_v52, 5  ;;  %v811_v62 = vshll.u32 %v616_v42, 16  ;;  %v621_v42 = vld [vmem:[%s7805_s18 + $0x64] sm:$0xf] }
  0x72   : > { %7124 = vmatmul.mubr.bf16.gmra.mrb[20].mxu0 %v6350_v0  ;;  %v770_v47 = vrot.slane %v768_v12, 4  ;;  %v766_v30 = vsel %vm7828_vm2, %v761_v22, %v765_v6  ;;  %v618_v0 = vld [vmem:[%s7805_s18 + $0x58] sm:$0xf]  ;;  %v798_v3 = vor.u32 %v797_v56, %v794_v55  ;;  %v619_v6 = vld [vmem:[%s7805_s18 + $0x5c] sm:$0x1]  ;;  %v6321_v9 = vrot.slane %v6301_v48, 9 }
  0x73   : > { %v6023_v37 = vcombine.low %v756_v21, %v766_v30  ;;  %7127 = vmatprep.mubr.bf16.mxu0 %v6351_v31  ;;  %v813_v8 = vrot.slane %v811_v62, 5  ;;  %v3479_v10 = vrot.slane %v6302_v53, 5  ;;  %v3482_v11 = vrot.slane %v6303_v58, 5  ;;  %v6305_v22 = vld [vmem:[%s7805_s18 + $0xc4] sm:$0xf] }
  0x74   : > { %6950 = vmatpush3.bf16.msra.mxu1 %v7634_v34  ;;  %v774_v32 = vor.u32 %v773_v23, %v770_v47  ;;  %v6320_v34 = vrot.slane %v6298_v14, 9  ;;  %v799_v12 = vrot.slane %v798_v3, 4  ;;  %v816_v14 = vshrl.u32 %v617_v63, 16  ;;  %v623_v58 = vld [vmem:[%s7805_s18 + $0x6c] sm:$0xf] }
  0x75   : > { %6951 = vmatprep.subr.bf16.mxu1 %v7637_v5  ;;  %6919 = vmatprep.mubr.bf16.mxu1 %v6023_v37  ;;  %v819_v15 = vshll.u32 %v617_v63, 16  ;;  %v3480_v17 = vsel %vm7928_vm5, %v6321_v9, %v3479_v10  ;;  %v3481_v19 = vrot.slane %v3479_v10, 4  ;;  %v825_v20 = vshll.u32 %v618_v0, 16  ;;  %v620_v37 = vld [vmem:[%s7805_s18 + $0x60] sm:$0xf] }
  0x76   : > { %v775_v43 = vrot.slane %v774_v32, 4  ;;  %v3473_v50 = vsel %vm7928_vm5, %v6320_v34, %v3472_v40  ;;  %v829_v21 = vshrl.u32 %v618_v0, 16  ;;  %v804_v47 = vsel %vm7828_vm2, %v799_v12, %v803_v61  ;;  %v624_v63 = vld [vmem:[%s7805_s18 + $0x70] sm:$0xf]  ;;  %v625_v0 = vld [vmem:[%s7805_s18 + $0x74] sm:$0x1] }
  0x77   : > { %v6352_v2 = vcombine.low %v3473_v50, %v3476_v60  ;;  %v818_v24 = vrot.slane %v816_v14, 4  ;;  %v3483_v28 = vsel %vm7928_vm5, %v3481_v19, %v3482_v11  ;;  %v827_v29 = vrot.slane %v825_v20, 5 }
  0x78   : > { %6952 = vmatpush3.bf16.msra.mxu1 %v7637_v5  ;;  %v780_v54 = vsel %vm7828_vm2, %v775_v43, %v779_v27  ;;  %v807_v5 = vrot.slane %v805_v57, 4  ;;  %v8174_v27 = vld [vmem:[%s8944_s1 + $0xc0] sm:$0xff]   ;;  %v831_v30 = vrot.slane %v829_v21, 4  ;;  %v835_v31 = vshll.u32 %v619_v6, 16  ;;  %v622_v43 = vld [vmem:[%s7805_s18 + $0x68] sm:$0x1] }
  0x79   : > { %6953 = vmatprep.subr.bf16.mxu1 %v7641_v25  ;;  %v6024_v1 = vcombine.low %v780_v54, %v790_v59  ;;  %v6353_v34 = vcombine.low %v3480_v17, %v3483_v28  ;;  %v3486_v41 = vrot.slane %v6305_v22, 5  ;;  %v3489_v45 = vrot.slane %v6306_v26, 5  ;;  %v7636_v57 = vld [vmem:[%s7805_s18 + $0x18] sm:$0xff]   ;;  %v7638_v22 = vld [vmem:[%s7805_s18 + $0x24] sm:$0xff]   ;;  %v7640_v26 = vld [vmem:[%s7805_s18 + $0x30] sm:$0xff]  }
  0x7a   : > { %7128 = vmatmul.mubr.bf16.gmra.mrb[24].mxu0 %v6352_v2  ;;  %v808_v13 = vor.u32 %v807_v5, %v803_v61  ;;  %v832_v39 = vor.u32 %v831_v30, %v827_v29  ;;  %v837_v40 = vrot.slane %v835_v31, 5  ;;  %v840_v46 = vshrl.u32 %v620_v37, 16 }
  0x7b   : > { %6920 = vmatmul.mubr.bf16.gmra.mrb[8].mxu1 %v6024_v1  ;;  %7131 = vmatprep.mubr.bf16.mxu0 %v6353_v34  ;;  %v843_v48 = vshll.u32 %v620_v37, 16  ;;  %v3488_v51 = vrot.slane %v3486_v41, 4  ;;  %v849_v52 = vshll.u32 %v621_v42, 16  ;;  %v853_v56 = vshrl.u32 %v621_v42, 16  ;;  %v629_v37 = vld [vmem:[%s7805_s18 + $0x84] sm:$0xf] }
  0x7c   : > { %6954 = vmatpush3.bf16.msra.mxu1 %v7641_v25  ;;  %v809_v23 = vrot.slane %v808_v13, 4  ;;  %v821_v25 = vrot.slane %v819_v15, 5  ;;  %v833_v49 = vrot.slane %v832_v39, 4  ;;  %v842_v54 = vrot.slane %v840_v46, 4 }
  0x7d   : > { %6955 = vmatprep.subr.bf16.mxu1 %v7645_v36  ;;  %v845_v55 = vrot.slane %v843_v48, 5  ;;  %v3490_v60 = vsel %vm7928_vm5, %v3488_v51, %v3489_v45  ;;  %v851_v61 = vrot.slane %v849_v52, 5  ;;  %v859_v62 = vshll.u32 %v622_v43, 16  ;;  %v630_v43 = vld [vmem:[%s7805_s18 + $0x88] sm:$0xf] }
  0x7e   : > { %v814_v32 = vsel %vm7828_vm2, %v809_v23, %v813_v8  ;;  %v822_v35 = vor.u32 %v821_v25, %v818_v24  ;;  %v838_v59 = vsel %vm7828_vm2, %v833_v49, %v837_v40  ;;  %v855_v5 = vrot.slane %v853_v56, 4  ;;  %v626_v23 = vld [vmem:[%s7805_s18 + $0x78] sm:$0xf]  ;;  %v627_v24 = vld [vmem:[%s7805_s18 + $0x7c] sm:$0xf] }
  0x7f   : > { %v6025_v38 = vcombine.low %v804_v47, %v814_v32  ;;  %v846_v3 = vor.u32 %v845_v55, %v842_v54  ;;  %v861_v6 = vrot.slane %v859_v62, 5  ;;  %v867_v8 = vshll.u32 %v623_v58, 16  ;;  %v628_v25 = vld [vmem:[%s7805_s18 + $0x80] sm:$0x1]  ;;  %v631_v48 = vld [vmem:[%s7805_s18 + $0x8c] sm:$0x1] }
  0x80   : > { %6956 = vmatpush3.bf16.msra.mxu1 %v7645_v36  ;;  %v6322_v36 = vrot.slane %v6304_v16, 9  ;;  %v823_v44 = vrot.slane %v822_v35, 4  ;;  %v873_v9 = vshll.u32 %v624_v63, 16  ;;  %v856_v11 = vor.u32 %v855_v5, %v851_v61  ;;  %v7647_v54 = vld [vmem:[%s8944_s1 + $0x1d0] sm:$0xff]  }
  0x81   : > { %6957 = vmatprep.subr.bf16.mxu1 %v7649_v7  ;;  %6923 = vmatprep.mubr.bf16.mxu1 %v6025_v38  ;;  %v847_v10 = vrot.slane %v846_v3, 4  ;;  %v877_v12 = vshrl.u32 %v624_v63, 16  ;;  %v883_v13 = vshll.u32 %v625_v0, 16  ;;  %v869_v15 = vrot.slane %v867_v8, 5  ;;  %v7643_v38 = vld [vmem:[%s8944_s1 + $0x1c8] sm:$0xff]   ;;  %v7642_v63 = vld [vmem:[%s7805_s18 + $0x3c] sm:$0xff]  }
  0x82   : > { %v3487_v50 = vsel %vm7928_vm5, %v6322_v36, %v3486_v41  ;;  %v828_v53 = vsel %vm7828_vm2, %v823_v44, %v827_v29  ;;  %v875_v16 = vrot.slane %v873_v9, 5  ;;  %v857_v19 = vrot.slane %v856_v11, 4  ;;  %v7644_v3 = vld [vmem:[%s7805_s18 + $0x48] sm:$0xff]   ;;  %v633_v8 = vld [vmem:[%s7805_s18 + $0x94] sm:$0xf] }
  0x83   : > { %v6026_v1 = vcombine.low %v828_v53, %v838_v59  ;;  %v6354_v2 = vcombine.low %v3487_v50, %v3490_v60  ;;  %v852_v17 = vsel %vm7828_vm2, %v847_v10, %v851_v61  ;;  %v879_v20 = vrot.slane %v877_v12, 4  ;;  %v634_v9 = vld [vmem:[%s7805_s18 + $0x98] sm:$0x1] }
  0x84   : > { %6958 = vmatpush3.bf16.msra.mxu1 %v7649_v7  ;;  %v864_v7 = vshrl.u32 %v623_v58, 16  ;;  %v885_v21 = vrot.slane %v883_v13, 5  ;;  %v862_v28 = vsel %vm7828_vm2, %v857_v19, %v861_v6  ;;  %v888_v30 = vshrl.u32 %v626_v23, 16 }
  0x85   : > { %6991 = vmatprep.subr.bf16.mxu1 %v8174_v27  ;;  %6924 = vmatmul.mubr.bf16.gmra.mrb[12].mxu1 %v6026_v1  ;;  %v880_v29 = vor.u32 %v879_v20, %v875_v16  ;;  %v891_v31 = vshll.u32 %v626_v23, 16  ;;  %v6027_v32 = vcombine.low %v852_v17, %v862_v28  ;;  %v897_v35 = vshll.u32 %v627_v24, 16  ;;  %v635_v20 = vld [vmem:[%s7805_s18 + $0x9c] sm:$0xf] }
  0x86   : > { %7132 = vmatmul.mubr.bf16.gmra.mrb[28].mxu0 %v6354_v2  ;;  %v866_v14 = vrot.slane %v864_v7, 4  ;;  %v901_v36 = vshrl.u32 %v627_v24, 16  ;;  %v890_v40 = vrot.slane %v888_v30, 4  ;;  %v907_v42 = vshll.u32 %v628_v25, 16  ;;  %v632_v2 = vld [vmem:[%s7805_s18 + $0x90] sm:$0xf] }
  0x87   : > { %7151 = vmatprep.mubr.bf16.mxu0 %v7636_v57  ;;  %v881_v39 = vrot.slane %v880_v29, 4  ;;  %v893_v41 = vrot.slane %v891_v31, 5  ;;  %6927 = vmatprep.mubr.bf16.mxu1 %v6027_v32  ;;  %v899_v45 = vrot.slane %v897_v35, 5  ;;  %v912_v49 = vshrl.u32 %v629_v37, 16  ;;  %v636_v24 = vld [vmem:[%s7805_s18 + $0xa0] sm:$0xf] }
  0x88   : > { %v870_v47 = vor.u32 %v869_v15, %v866_v14  ;;  %v903_v46 = vrot.slane %v901_v36, 4  ;;  %v909_v52 = vrot.slane %v907_v42, 5  ;;  %v915_v53 = vshll.u32 %v629_v37, 16  ;;  %v7651_v14 = vld [vmem:[%s8944_s1 + $0x1d8] sm:$0xff]   ;;  %v637_v29 = vld [vmem:[%s7805_s18 + $0xa4] sm:$0x1] }
  0x89   : > { %v886_v50 = vsel %vm7828_vm2, %v881_v39, %v885_v21  ;;  %v894_v51 = vor.u32 %v893_v41, %v890_v40  ;;  %v914_v57 = vrot.slane %v912_v49, 4  ;;  %v921_v58 = vshll.u32 %v630_v43, 16  ;;  %v7655_v36 = vld [vmem:[%s8944_s1 + $0x1e0] sm:$0xff]  }
  0x8a   : > { %v871_v34 = vrot.slane %v870_v47, 4  ;;  %v904_v56 = vor.u32 %v903_v46, %v899_v45  ;;  %v917_v60 = vrot.slane %v915_v53, 5  ;;  %v925_v61 = vshrl.u32 %v630_v43, 16  ;;  %v638_v53 = vld [vmem:[%s7805_s18 + $0xa8] sm:$0xf] }
  0x8b   : > { %v895_v59 = vrot.slane %v894_v51, 4  ;;  %v931_v62 = vshll.u32 %v631_v48, 16  ;;  %v923_v1 = vrot.slane %v921_v58, 5  ;;  %v936_v11 = vshrl.u32 %v632_v2, 16  ;;  %v640_v58 = vld [vmem:[%s7805_s18 + $0xb0] sm:$0x1] }
  0x8c   : > { %v876_v44 = vsel %vm7828_vm2, %v871_v34, %v875_v16  ;;  %v905_v0 = vrot.slane %v904_v56, 4  ;;  %v918_v5 = vor.u32 %v917_v60, %v914_v57  ;;  %v927_v6 = vrot.slane %v925_v61, 4 }
  0x8d   : > { %v6028_v55 = vcombine.low %v876_v44, %v886_v50  ;;  %v933_v7 = vrot.slane %v931_v62, 5  ;;  %v939_v12 = vshll.u32 %v632_v2, 16  ;;  %v945_v13 = vshll.u32 %v633_v8, 16  ;;  %v7648_v50 = vld [vmem:[%s7805_s18 + $0x60] sm:$0xff]  }
  0x8e   : > { %7152 = vmatmul.mubr.bf16.vlgmr.msra.gmra.mrb[0].mxu0 %v7638_v22  ;;  %v910_v10 = vsel %vm7828_vm2, %v905_v0, %v909_v52  ;;  %v919_v16 = vrot.slane %v918_v5, 4  ;;  %v928_v17 = vor.u32 %v927_v6, %v923_v1  ;;  %v949_v19 = vshrl.u32 %v633_v8, 16  ;;  %v7659_v0 = vld [vmem:[%s8944_s1 + $0x1e8] sm:$0xff]   ;;  %v641_v5 = vld [vmem:[%s7805_s18 + $0xb4] sm:$0xf] }
  0x8f   : > { %7184 = vmatpush3.bf16.msra.mxu0 %v8093_v18  ;;  %7155 = vmatprep.mubr.bf16.mxu0 %v7640_v26  ;;  %v900_v18 = vsel %vm7828_vm2, %v895_v59, %v899_v45  ;;  %v938_v21 = vrot.slane %v936_v11, 4  ;;  %v941_v22 = vrot.slane %v939_v12, 5  ;;  %v947_v47 = vrot.slane %v945_v13, 5  ;;  %v7646_v45 = vld [vmem:[%s7805_s18 + $0x54] sm:$0xff]  }
  0x90   : > { %7185 = vmatprep.subr.bf16.mxu0 %v7643_v38  ;;  %6928 = vmatmul.mubr.bf16.gmra.mrb[16].mxu1 %v6028_v55  ;;  %v6029_v15 = vcombine.low %v900_v18, %v910_v10  ;;  %v955_v23 = vshll.u32 %v634_v9, 16  ;;  %v924_v25 = vsel %vm7828_vm2, %v919_v16, %v923_v1  ;;  %v929_v26 = vrot.slane %v928_v17, 4  ;;  %v642_v9 = vld [vmem:[%s7805_s18 + $0xb8] sm:$0xf]  ;;  %v643_v10 = vld [vmem:[%s7805_s18 + $0xbc] sm:$0x1] }
  0x91   : > { %v951_v28 = vrot.slane %v949_v19, 4  ;;  %v960_v30 = vshrl.u32 %v635_v20, 16  ;;  %v942_v31 = vor.u32 %v941_v22, %v938_v21  ;;  %v963_v34 = vshll.u32 %v635_v20, 16 }
  0x92   : > { %6931 = vmatprep.mubr.bf16.mxu1 %v6029_v15  ;;  %v957_v32 = vrot.slane %v955_v23, 5  ;;  %v969_v35 = vshll.u32 %v636_v24, 16  ;;  %v934_v37 = vsel %vm7828_vm2, %v929_v26, %v933_v7  ;;  %v973_v40 = vshrl.u32 %v636_v24, 16  ;;  %v7663_v15 = vld [vmem:[%s8944_s1 + $0x1f0] sm:$0xff]  }
  0x93   : > { %7186 = vmatpush3.bf16.msra.mxu0 %v7643_v38  ;;  %v952_v38 = vor.u32 %v951_v28, %v947_v47  ;;  %v962_v39 = vrot.slane %v960_v30, 4  ;;  %v6030_v41 = vcombine.low %v924_v25, %v934_v37  ;;  %v943_v42 = vrot.slane %v942_v31, 4  ;;  %v7650_v24 = vld [vmem:[%s7805_s18 + $0x6c] sm:$0xff]   ;;  %v1417_v37 = vld [vmem:[%s7805_s18] sm:$0xe] }
  0x94   : > { %7187 = vmatprep.subr.bf16.mxu0 %v7647_v54  ;;  %v965_v43 = vrot.slane %v963_v34, 5  ;;  %v971_v44 = vrot.slane %v969_v35, 5  ;;  %v975_v48 = vrot.slane %v973_v40, 4  ;;  %v979_v49 = vshll.u32 %v637_v29, 16  ;;  %v7652_v29 = vld [vmem:[%s7805_s18 + $0x78] sm:$0xff]  }
  0x95   : > { %v953_v46 = vrot.slane %v952_v38, 4  ;;  %v948_v51 = vsel %vm7828_vm2, %v943_v42, %v947_v47  ;;  %v984_v59 = vshrl.u32 %v638_v53, 16  ;;  %v987_v62 = vshll.u32 %v638_v53, 16  ;;  %v7667_v34 = vld [vmem:[%s8944_s1 + $0x1f8] sm:$0xff]   ;;  %v1418_v38 = vld [vmem:[%s7805_s18 + $0x4] sm:$0xf] }
  0x96   : > { %7156 = vmatmul.mubr.bf16.gmra.mrb[4].mxu0 %v7642_v63  ;;  %v966_v52 = vor.u32 %v965_v43, %v962_v39  ;;  %v976_v56 = vor.u32 %v975_v48, %v971_v44  ;;  %v981_v57 = vrot.slane %v979_v49, 5  ;;  %v1003_v18 = vshll.u32 %v640_v58, 16  ;;  %v1419_v39 = vld [vmem:[%s7805_s18 + $0x8] sm:$0x1]  ;;  %v1420_v48 = vld [vmem:[%s7805_s18 + $0xc] sm:$0xe] }
  0x97   : > { %7159 = vmatprep.mubr.bf16.mxu0 %v7644_v3  ;;  %7188 = vmatpush3.bf16.msra.mxu0 %v7647_v54  ;;  %v639_v54 = vld [vmem:[%s7805_s18 + $0xac] sm:$0xf]  ;;  %v958_v55 = vsel %vm7828_vm2, %v953_v46, %v957_v32  ;;  %v986_v2 = vrot.slane %v984_v59, 4  ;;  %v989_v7 = vrot.slane %v987_v62, 5  ;;  %v1011_v19 = vshll.u32 %v641_v5, 16 }
  0x98   : > { %7189 = vmatprep.subr.bf16.mxu0 %v7651_v14  ;;  %6932 = vmatmul.mubr.bf16.gmra.mrb[20].mxu1 %v6030_v41  ;;  %v6031_v60 = vcombine.low %v948_v51, %v958_v55  ;;  %v967_v61 = vrot.slane %v966_v52, 4  ;;  %v993_v63 = vshll.u32 %v639_v54, 16  ;;  %v977_v1 = vrot.slane %v976_v56, 4  ;;  %v1421_v49 = vld [vmem:[%s7805_s18 + $0x10] sm:$0xf]  ;;  %v7654_v55 = vld [vmem:[%s7805_s18 + $0x84] sm:$0xff]  }
  0x99   : > { %v997_v3 = vshrl.u32 %v639_v54, 16  ;;  %v1005_v13 = vrot.slane %v1003_v18, 5  ;;  %v990_v17 = vor.u32 %v989_v7, %v986_v2  ;;  %v1017_v20 = vshll.u32 %v642_v9, 16  ;;  %v1422_v53 = vld [vmem:[%s7805_s18 + $0x14] sm:$0x1]  ;;  %v8284_v56 = vld [vmem:[%s8944_s1 + $0x200] sm:$0xff]  }
  0x9a   : > { %6935 = vmatprep.mubr.bf16.mxu1 %v6031_v60  ;;  %v972_v6 = vsel %vm7828_vm2, %v967_v61, %v971_v44  ;;  %v995_v8 = vrot.slane %v993_v63, 5  ;;  %v982_v11 = vsel %vm7828_vm2, %v977_v1, %v981_v57  ;;  %v1021_v47 = vshrl.u32 %v642_v9, 16  ;;  %v1423_v1 = vld [vmem:[%s7805_s18 + $0x18] sm:$0xe]  ;;  %v7656_v2 = vld [vmem:[%s7805_s18 + $0x90] sm:$0xff]  }
  0x9b   : > { %7190 = vmatpush3.bf16.msra.mxu0 %v7651_v14  ;;  %v999_v12 = vrot.slane %v997_v3, 4  ;;  %v1008_v14 = vshrl.u32 %v641_v5, 16  ;;  %v6032_v16 = vcombine.low %v972_v6, %v982_v11  ;;  %v1027_v23 = vshll.u32 %v643_v10, 16  ;;  %v1424_v3 = vld [vmem:[%s7805_s18 + $0x1c] sm:$0xf] }
  0x9c   : > { %7191 = vmatprep.subr.bf16.mxu0 %v7655_v36  ;;  %v991_v25 = vrot.slane %v990_v17, 4  ;;  %v1013_v26 = vrot.slane %v1011_v19, 5  ;;  %v1019_v28 = vrot.slane %v1017_v20, 5  ;;  %v1023_v31 = vrot.slane %v1021_v47, 4  ;;  %v1425_v18 = vld [vmem:[%s7805_s18 + $0x20] sm:$0x1] }
  0x9d   : > { %v1000_v21 = vor.u32 %v999_v12, %v995_v8  ;;  %v1010_v22 = vrot.slane %v1008_v14, 4  ;;  %v1029_v32 = vrot.slane %v1027_v23, 5  ;;  %v6043_v42 = vrot.slane %v1417_v37, 9  ;;  %v1426_v10 = vld [vmem:[%s7805_s18 + $0x24] sm:$0xe]  ;;  %v7658_v47 = vld [vmem:[%s7805_s18 + $0x9c] sm:$0xff]  }
  0x9e   : > { %7160 = vmatmul.mubr.bf16.gmra.mrb[8].mxu0 %v7646_v45  ;;  %v996_v35 = vsel %vm7828_vm2, %v991_v25, %v995_v8  ;;  %v1024_v41 = vor.u32 %v1023_v31, %v1019_v28  ;;  %v1518_v43 = vrot.slane %v1418_v38, 5  ;;  %v1521_v46 = vrot.slane %v1419_v39, 5  ;;  %v1427_v11 = vld [vmem:[%s7805_s18 + $0x28] sm:$0xf]  ;;  %v1428_v12 = vld [vmem:[%s7805_s18 + $0x2c] sm:$0x1] }
  0x9f   : > { %7163 = vmatprep.mubr.bf16.mxu0 %v7648_v50  ;;  %7192 = vmatpush3.bf16.msra.mxu0 %v7655_v36  ;;  %v1001_v30 = vrot.slane %v1000_v21, 4  ;;  %v1014_v36 = vor.u32 %v1013_v26, %v1010_v22  ;;  %v6044_v54 = vrot.slane %v1420_v48, 9  ;;  %v1525_v58 = vrot.slane %v1421_v49, 5  ;;  %v7657_v22 = vld [vmem:[%s8944_s1 + $0xc8] sm:$0xff]   ;;  %v1430_v25 = vld [vmem:[%s7805_s18 + $0x34] sm:$0xf] }
  0xa0   : > { %7193 = vmatprep.subr.bf16.mxu0 %v7659_v0  ;;  %6936 = vmatmul.mubr.bf16.gmra.mrb[24].mxu1 %v6032_v16  ;;  %v1025_v50 = vrot.slane %v1024_v41, 4  ;;  %v1519_v51 = vsel %vm7928_vm5, %v6043_v42, %v1518_v43  ;;  %v1520_v52 = vrot.slane %v1518_v43, 4  ;;  %v1528_v59 = vrot.slane %v1422_v53, 5  ;;  %v1431_v26 = vld [vmem:[%s7805_s18 + $0x38] sm:$0x1]  ;;  %v7660_v31 = vld [vmem:[%s7805_s18 + $0xa8] sm:$0xff]  }
  0xa1   : > { %v1006_v40 = vsel %vm7828_vm2, %v1001_v30, %v1005_v13  ;;  %v1015_v45 = vrot.slane %v1014_v36, 4  ;;  %v6045_v5 = vrot.slane %v1423_v1, 9  ;;  %v1532_v6 = vrot.slane %v1424_v3, 5  ;;  %v1434_v36 = vld [vmem:[%s7805_s18 + $0x44] sm:$0x1]  ;;  %v7662_v48 = vld [vmem:[%s7805_s18 + $0xb4] sm:$0xff]  }
  0xa2   : > { %v6033_v44 = vcombine.low %v996_v35, %v1006_v40  ;;  %v1030_v60 = vsel %vm7828_vm2, %v1025_v50, %v1029_v32  ;;  %v1522_v61 = vsel %vm7928_vm5, %v1520_v52, %v1521_v46  ;;  %v1535_v7 = vrot.slane %v1425_v18, 5  ;;  %v1432_v32 = vld [vmem:[%s7805_s18 + $0x3c] sm:$0xe]  ;;  %v1433_v35 = vld [vmem:[%s7805_s18 + $0x40] sm:$0xf]  ;;  %v7661_v40 = vld [vmem:[%s8944_s1 + $0xd0] sm:$0xff]  }
  0xa3   : > { %7194 = vmatpush3.bf16.msra.mxu0 %v7659_v0  ;;  %v1020_v57 = vsel %vm7828_vm2, %v1015_v45, %v1019_v28  ;;  %v6075_v63 = vcombine.low %v1519_v51, %v1522_v61  ;;  %v1527_v0 = vrot.slane %v1525_v58, 4  ;;  %v1526_v8 = vsel %vm7928_vm5, %v6044_v54, %v1525_v58  ;;  %v1436_v49 = vld [vmem:[%s7805_s18 + $0x4c] sm:$0xf]  ;;  %v1437_v50 = vld [vmem:[%s7805_s18 + $0x50] sm:$0x1]  ;;  %v7665_v52 = vld [vmem:[%s8944_s1 + $0xd8] sm:$0xff]  }
  0xa4   : > { %7195 = vmatprep.subr.bf16.mxu0 %v7663_v15  ;;  %6939 = vmatprep.mubr.bf16.mxu1 %v6033_v44  ;;  %v6034_v62 = vcombine.low %v1020_v57, %v1030_v60  ;;  %v1533_v13 = vsel %vm7928_vm5, %v6045_v5, %v1532_v6  ;;  %v1534_v14 = vrot.slane %v1532_v6, 4  ;;  %v6046_v16 = vrot.slane %v1426_v10, 9  ;;  %v1435_v44 = vld [vmem:[%s7805_s18 + $0x48] sm:$0xe]  ;;  %v1438_v57 = vld [vmem:[%s7805_s18 + $0x54] sm:$0xe] }
  0xa5   : > { %v1529_v9 = vsel %vm7928_vm5, %v1527_v0, %v1528_v59  ;;  %v1542_v21 = vrot.slane %v1428_v12, 5  ;;  %v1549_v30 = vrot.slane %v1431_v26, 5  ;;  %v1553_v39 = vrot.slane %v1433_v35, 5  ;;  %v1439_v58 = vld [vmem:[%s7805_s18 + $0x58] sm:$0xf]  ;;  %v7664_v61 = vld [vmem:[%s7805_s18 + $0xc0] sm:$0xff]  }
  0xa6   : > { %7164 = vmatmul.mubr.bf16.gmra.mrb[12].mxu0 %v7650_v24  ;;  %v6076_v17 = vcombine.low %v1526_v8, %v1529_v9  ;;  %v1536_v19 = vsel %vm7928_vm5, %v1534_v14, %v1535_v7  ;;  %v1429_v24 = vld [vmem:[%s7805_s18 + $0x30] sm:$0xe]  ;;  %v6048_v42 = vrot.slane %v1432_v32, 9  ;;  %v1556_v43 = vrot.slane %v1434_v36, 5  ;;  %v1440_v59 = vld [vmem:[%s7805_s18 + $0x5c] sm:$0x1] }
  0xa7   : > { %7167 = vmatprep.mubr.bf16.mxu0 %v7652_v29  ;;  %7196 = vmatpush3.bf16.msra.mxu0 %v7663_v15  ;;  %v1539_v15 = vrot.slane %v1427_v11, 5  ;;  %v6077_v23 = vcombine.low %v1533_v13, %v1536_v19  ;;  %v6047_v28 = vrot.slane %v1429_v24, 9  ;;  %v1546_v29 = vrot.slane %v1430_v25, 5  ;;  %v7668_v6 = vld [vmem:[%s8944_s1 + $0xe0] sm:$0xff]   ;;  %v1443_v11 = vld [vmem:[%s7805_s18 + $0x68] sm:$0x1] }
  0xa8   : > { %7197 = vmatprep.subr.bf16.mxu0 %v7667_v34  ;;  %6940 = vmatmul.mubr.bf16.gmra.mrb[28].mxu1 %v6034_v62  ;;  %v1555_v46 = vrot.slane %v1553_v39, 4  ;;  %v6049_v51 = vrot.slane %v1435_v44, 9  ;;  %v1560_v54 = vrot.slane %v1436_v49, 5  ;;  %v6050_v62 = vrot.slane %v1438_v57, 9  ;;  %v1441_v7 = vld [vmem:[%s7805_s18 + $0x60] sm:$0xe] }
  0xa9   : > { %6959 = vmatprep.mubr.bf16.mxu1 %v6075_v63  ;;  %v1541_v20 = vrot.slane %v1539_v15, 4  ;;  %v1540_v37 = vsel %vm7928_vm5, %v6046_v16, %v1539_v15  ;;  %v1567_v63 = vrot.slane %v1439_v58, 5  ;;  %v1554_v0 = vsel %vm7928_vm5, %v6048_v42, %v1553_v39  ;;  %v1442_v8 = vld [vmem:[%s7805_s18 + $0x64] sm:$0xf]  ;;  %v6435_v13 = vld [vmem:[%s7805_s18 + $0x18] sm:$0xf] }
  0xaa   : > { %v1562_v60 = vrot.slane %v1560_v54, 4  ;;  %v1557_v1 = vsel %vm7928_vm5, %v1555_v46, %v1556_v43  ;;  %v1561_v3 = vsel %vm7928_vm5, %v6049_v51, %v1560_v54  ;;  %v1574_v12 = vrot.slane %v1442_v8, 5  ;;  %v7666_v16 = vld [vmem:[%s7805_s18 + $0xcc] sm:$0xff]   ;;  %v6436_v19 = vld [vmem:[%s7805_s18 + $0x1c] sm:$0xf] }
  0xab   : > { %7198 = vmatpush3.bf16.msra.mxu0 %v7667_v34  ;;  %v1548_v34 = vrot.slane %v1546_v29, 4  ;;  %v1543_v38 = vsel %vm7928_vm5, %v1541_v20, %v1542_v21  ;;  %v1569_v5 = vrot.slane %v1567_v63, 4  ;;  %v6080_v9 = vcombine.low %v1554_v0, %v1557_v1  ;;  %v6437_v20 = vld [vmem:[%s7805_s18 + $0x20] sm:$0x1]  ;;  %v1444_v26 = vld [vmem:[%s7805_s18 + $0x6c] sm:$0xe] }
  0xac   : > { %7231 = vmatprep.subr.bf16.mxu0 %v8284_v56  ;;  %v6078_v45 = vcombine.low %v1540_v37, %v1543_v38  ;;  %v8357_v10 = vsel %vm7928_vm5, %v6050_v62, %v1567_v63  ;;  %v4377_v21 = vshrl.u32 %v6435_v13, 16  ;;  %v4380_v24 = vshll.u32 %v6435_v13, 16  ;;  %v1446_v36 = vld [vmem:[%s7805_s18 + $0x74] sm:$0x1]  ;;  %v6438_v46 = vld [vmem:[%s7805_s18 + $0x24] sm:$0xf] }
  0xad   : > { %v1550_v41 = vsel %vm7928_vm5, %v1548_v34, %v1549_v30  ;;  %v4386_v25 = vshll.u32 %v6436_v19, 16  ;;  %v4396_v30 = vshll.u32 %v6437_v20, 16  ;;  %v6052_v32 = vrot.slane %v1444_v26, 9  ;;  %v6440_v51 = vld [vmem:[%s7805_s18 + $0x2c] sm:$0x1] }
  0xae   : > { %7168 = vmatmul.mubr.bf16.gmra.mrb[16].mxu0 %v7654_v55  ;;  %v1563_v55 = vrot.slane %v1437_v50, 5  ;;  %v4382_v34 = vrot.slane %v4380_v24, 5  ;;  %v6439_v50 = vld [vmem:[%s7805_s18 + $0x28] sm:$0xf]  ;;  %v1449_v8 = vld [vmem:[%s7805_s18 + $0x80] sm:$0x1] }
  0xaf   : > { %7171 = vmatprep.mubr.bf16.mxu0 %v7656_v2  ;;  %v1570_v2 = vrot.slane %v1440_v59, 5  ;;  %v4388_v35 = vrot.slane %v4386_v25, 5  ;;  %v4398_v44 = vrot.slane %v4396_v30, 5  ;;  %v4410_v57 = vshll.u32 %v6439_v50, 16  ;;  %v6443_v20 = vld [vmem:[%s7805_s18 + $0x38] sm:$0x1] }
  0xb0   : > { %6960 = vmatmul.mubr.bf16.vlgmr.msra.gmra.mrb[0].mxu1 %v6076_v17  ;;  %v1564_v18 = vsel %vm7928_vm5, %v1562_v60, %v1563_v55  ;;  %v6051_v17 = vrot.slane %v1441_v7, 9  ;;  %v4414_v58 = vshrl.u32 %v6439_v50, 16  ;;  %v1448_v7 = vld [vmem:[%s7805_s18 + $0x7c] sm:$0xf]  ;;  %v1450_v26 = vld [vmem:[%s7805_s18 + $0x84] sm:$0xe] }
  0xb1   : > { %6992 = vmatpush3.bf16.msra.mxu1 %v8174_v27  ;;  %6963 = vmatprep.mubr.bf16.mxu1 %v6077_v23  ;;  %v1547_v27 = vsel %vm7928_vm5, %v6047_v28, %v1546_v29  ;;  %v6081_v14 = vcombine.low %v1561_v3, %v1564_v18  ;;  %v8363_v15 = vsel %vm7928_vm5, %v1569_v5, %v1570_v2  ;;  %v1577_v23 = vrot.slane %v1443_v11, 5  ;;  %v1447_v3 = vld [vmem:[%s7805_s18 + $0x78] sm:$0xe] }
  0xb2   : > { %6993 = vmatprep.subr.bf16.mxu1 %v7657_v22  ;;  %v6079_v53 = vcombine.low %v1547_v27, %v1550_v41  ;;  %v4379_v28 = vrot.slane %v4377_v21, 4  ;;  %v4390_v29 = vshrl.u32 %v6436_v19, 16  ;;  %v6082_v38 = vcombine.low %v8357_v10, %v8363_v15  ;;  %v7672_v41 = vld [vmem:[%s8944_s1 + $0xf0] sm:$0xff]   ;;  %v7674_v10 = vld [vmem:[%s8944_s1 + $0xf8] sm:$0xff]  }
  0xb3   : > { %v1575_v39 = vsel %vm7928_vm5, %v6051_v17, %v1574_v12  ;;  %v1584_v27 = vrot.slane %v1446_v36, 5  ;;  %v4412_v0 = vrot.slane %v4410_v57, 5  ;;  %v4416_v1 = vrot.slane %v4414_v58, 4  ;;  %v6441_v15 = vld [vmem:[%s7805_s18 + $0x30] sm:$0xf] }
  0xb4   : > { %v4383_v43 = vor.u32 %v4382_v34, %v4379_v28  ;;  %v4420_v2 = vshll.u32 %v6440_v51, 16  ;;  %v1591_v19 = vrot.slane %v1449_v8, 5  ;;  %v4425_v21 = vshrl.u32 %v6441_v15, 16 }
  0xb5   : > { %6994 = vmatpush3.bf16.msra.mxu1 %v7657_v22  ;;  %v7670_v22 = vld [vmem:[%s8944_s1 + $0xe8] sm:$0xff]  }
  0xb6   : > { %7172 = vmatmul.mubr.bf16.gmra.mrb[20].mxu0 %v7658_v47  ;;  %6995 = vmatprep.subr.bf16.mxu1 %v7661_v40  ;;  %v1576_v47 = vrot.slane %v1574_v12, 4  ;;  %v4384_v54 = vrot.slane %v4383_v43, 4  ;;  %v4417_v12 = vor.u32 %v4416_v1, %v4412_v0  ;;  %v4422_v13 = vrot.slane %v4420_v2, 5  ;;  %v6444_v43 = vld [vmem:[%s7805_s18 + $0x3c] sm:$0xf] }
  0xb7   : > { %7175 = vmatprep.mubr.bf16.mxu0 %v7660_v31  ;;  %v1445_v31 = vld [vmem:[%s7805_s18 + $0x70] sm:$0xf] }
  0xb8   : > { %6964 = vmatmul.mubr.bf16.gmra.mrb[4].mxu1 %v6078_v45  ;;  %v1581_v37 = vrot.slane %v1445_v31, 5  ;;  %v1578_v42 = vsel %vm7928_vm5, %v1576_v47, %v1577_v23  ;;  %v4389_v63 = vsel %vm7828_vm2, %v4384_v54, %v4388_v35  ;;  %v4418_v47 = vrot.slane %v4417_v12, 4  ;;  %v7675_v12 = vld [vmem:[%s8944_s1 + $0x218] sm:$0xff]  }
  0xb9   : > { %6967 = vmatprep.mubr.bf16.mxu1 %v6079_v53  ;;  %6996 = vmatpush3.bf16.msra.mxu1 %v7661_v40  ;;  %v4392_v40 = vrot.slane %v4390_v29, 4  ;;  %v4404_v53 = vshll.u32 %v6438_v46, 16  ;;  %v6083_v59 = vcombine.low %v1575_v39, %v1578_v42  ;;  %v4427_v29 = vrot.slane %v4425_v21, 4 }
  0xba   : > { %6997 = vmatprep.subr.bf16.mxu1 %v7665_v52  ;;  %v1583_v45 = vrot.slane %v1581_v37, 4  ;;  %v8386_v49 = vsel %vm7928_vm5, %v6052_v32, %v1581_v37  ;;  %v1451_v32 = vld [vmem:[%s7805_s18 + $0x88] sm:$0xf]  ;;  %v4423_v34 = vsel %vm7828_vm2, %v4418_v47, %v4422_v13  ;;  %v4444_v37 = vshll.u32 %v6443_v20, 16 }
  0xbb   : > { %v4406_v62 = vrot.slane %v4404_v53, 5  ;;  %v4449_v53 = vshrl.u32 %v6444_v43, 16  ;;  %v4452_v54 = vshll.u32 %v6444_v43, 16 }
  0xbc   : > { %v8392_v55 = vsel %vm7928_vm5, %v1583_v45, %v1584_v27  ;;  %v6054_v45 = vrot.slane %v1450_v26, 9 }
  0xbd   : > { %6998 = vmatpush3.bf16.msra.mxu1 %v7665_v52  ;;  %v4401_v52 = vshrl.u32 %v6438_v46, 16  ;;  %v6084_v5 = vcombine.low %v8386_v49, %v8392_v55  ;;  %v1595_v46 = vrot.slane %v1451_v32, 5  ;;  %v6445_v49 = vld [vmem:[%s7805_s18 + $0x40] sm:$0xf] }
  0xbe   : > { %7176 = vmatmul.mubr.bf16.gmra.mrb[24].mxu0 %v7662_v48  ;;  %6999 = vmatprep.subr.bf16.mxu1 %v7668_v6  ;;  %v4393_v48 = vor.u32 %v4392_v40, %v4388_v35  ;;  %v4458_v58 = vshll.u32 %v6445_v49, 16 }
  0xbf   : > { %7179 = vmatprep.mubr.bf16.mxu0 %v7664_v61  ;;  %v4403_v61 = vrot.slane %v4401_v52, 4  ;;  %v6446_v52 = vld [vmem:[%s7805_s18 + $0x44] sm:$0x1]  ;;  %v1596_v55 = vsel %vm7928_vm5, %v6054_v45, %v1595_v46  ;;  %v1597_v57 = vrot.slane %v1595_v46, 4 }
  0xc0   : > { %6968 = vmatmul.mubr.bf16.gmra.mrb[8].mxu1 %v6080_v9  ;;  %v4394_v60 = vrot.slane %v4393_v48, 4  ;;  %v6053_v9 = vrot.slane %v1447_v3, 9  ;;  %v4460_v2 = vrot.slane %v4458_v58, 5  ;;  %v7678_v45 = vld [vmem:[%s8944_s1 + $0x220] sm:$0xff]  }
  0xc1   : > { %6971 = vmatprep.mubr.bf16.mxu1 %v6081_v14  ;;  %7000 = vmatpush3.bf16.msra.mxu1 %v7668_v6  ;;  %v4407_v6 = vor.u32 %v4406_v62, %v4403_v61  ;;  %v1588_v14 = vrot.slane %v1448_v7, 5  ;;  %v4451_v62 = vrot.slane %v4449_v53, 4 }
  0xc2   : > { %7001 = vmatprep.subr.bf16.mxu1 %v7670_v22  ;;  %v4399_v18 = vsel %vm7828_vm2, %v4394_v60, %v4398_v44  ;;  %v4446_v44 = vrot.slane %v4444_v37, 5  ;;  %v8432_v60 = vld [vmem:[%s8944_s1 + $0x100] sm:$0xff]  }
  0xc3   : > { %v6499_v11 = vcombine.low %v4389_v63, %v4399_v18  ;;  %v4408_v17 = vrot.slane %v4407_v6, 4  ;;  %v1589_v23 = vsel %vm7928_vm5, %v6053_v9, %v1588_v14  ;;  %v1590_v24 = vrot.slane %v1588_v14, 4  ;;  %v1454_v9 = vld [vmem:[%s7805_s18 + $0x94] sm:$0xf] }
  0xc4   : > { %v4454_v63 = vrot.slane %v4452_v54, 5  ;;  %v4468_v18 = vshll.u32 %v6446_v52, 16  ;;  %v6452_v54 = vld [vmem:[%s7805_s18 + $0x5c] sm:$0x1] }
  0xc5   : > { %7002 = vmatpush3.bf16.msra.mxu1 %v7670_v22  ;;  %v4428_v22 = vshll.u32 %v6441_v15, 16  ;;  %v4413_v28 = vsel %vm7828_vm2, %v4408_v17, %v4412_v0  ;;  %v1592_v35 = vsel %vm7928_vm5, %v1590_v24, %v1591_v19  ;;  %v7673_v0 = vld [vmem:[%s8944_s1 + $0x210] sm:$0xff]   ;;  %v6447_v17 = vld [vmem:[%s7805_s18 + $0x48] sm:$0xf]  ;;  %v6448_v19 = vld [vmem:[%s7805_s18 + $0x4c] sm:$0xf] }
  0xc6   : > { %7180 = vmatmul.mubr.bf16.gmra.mrb[28].mxu0 %v7666_v16  ;;  %7003 = vmatprep.subr.bf16.mxu1 %v7672_v41  ;;  %v6442_v16 = vld [vmem:[%s7805_s18 + $0x34] sm:$0xf]  ;;  %v6500_v39 = vcombine.low %v4413_v28, %v4423_v34  ;;  %v6085_v40 = vcombine.low %v1589_v23, %v1592_v35  ;;  %v4455_v8 = vor.u32 %v4454_v63, %v4451_v62  ;;  %v4470_v15 = vrot.slane %v4468_v18, 5  ;;  %v1457_v35 = vld [vmem:[%s7805_s18 + $0xa0] sm:$0xf] }
  0xc7   : > { %7199 = vmatprep.mubr.bf16.mxu0 %v6499_v11  ;;  %v4434_v25 = vshll.u32 %v6442_v16, 16  ;;  %v4430_v30 = vrot.slane %v4428_v22, 5  ;;  %v4438_v31 = vshrl.u32 %v6442_v16, 16  ;;  %v1602_v16 = vrot.slane %v1454_v9, 5  ;;  %v6449_v22 = vld [vmem:[%s7805_s18 + $0x50] sm:$0x1] }
  0xc8   : > { %6972 = vmatmul.mubr.bf16.gmra.mrb[12].mxu1 %v6082_v38  ;;  %v1452_v38 = vld [vmem:[%s7805_s18 + $0x8c] sm:$0x1]  ;;  %v4456_v20 = vrot.slane %v4455_v8, 4  ;;  %v4473_v47 = vshrl.u32 %v6447_v17, 16  ;;  %v4476_v23 = vshll.u32 %v6447_v17, 16  ;;  %v4482_v28 = vshll.u32 %v6448_v19, 16 }
  0xc9   : > { %6975 = vmatprep.mubr.bf16.mxu1 %v6083_v59  ;;  %7004 = vmatpush3.bf16.msra.mxu1 %v7672_v41  ;;  %v4436_v36 = vrot.slane %v4434_v25, 5  ;;  %v4431_v27 = vor.u32 %v4430_v30, %v4427_v29  ;;  %v4440_v42 = vrot.slane %v4438_v31, 4  ;;  %v7671_v41 = vld [vmem:[%s8944_s1 + $0x208] sm:$0xff]   ;;  %v1598_v48 = vrot.slane %v1452_v38, 5  ;;  %v1456_v29 = vld [vmem:[%s7805_s18 + $0x9c] sm:$0xe] }
  0xca   : > { %7005 = vmatprep.subr.bf16.mxu1 %v7674_v10  ;;  %v4462_v59 = vshrl.u32 %v6445_v49, 16  ;;  %v1604_v26 = vrot.slane %v1602_v16, 4  ;;  %v4461_v30 = vsel %vm7828_vm2, %v4456_v20, %v4460_v2  ;;  %v4475_v31 = vrot.slane %v4473_v47, 4  ;;  %v6453_v20 = vld [vmem:[%s7805_s18 + $0x60] sm:$0xf] }
  0xcb   : > { %v4432_v50 = vrot.slane %v4431_v27, 4  ;;  %v4441_v51 = vor.u32 %v4440_v42, %v4436_v36  ;;  %v1599_v1 = vsel %vm7928_vm5, %v1597_v57, %v1598_v48  ;;  %v4478_v32 = vrot.slane %v4476_v23, 5  ;;  %v6455_v23 = vld [vmem:[%s7805_s18 + $0x68] sm:$0x1] }
  0xcc   : > { %v4464_v3 = vrot.slane %v4462_v59, 4  ;;  %v6086_v7 = vcombine.low %v1596_v55, %v1599_v1  ;;  %v4486_v34 = vshrl.u32 %v6448_v19, 16  ;;  %v4484_v38 = vrot.slane %v4482_v28, 5 }
  0xcd   : > { %7006 = vmatpush3.bf16.msra.mxu1 %v7674_v10  ;;  %v4437_v61 = vsel %vm7828_vm2, %v4432_v50, %v4436_v36  ;;  %v1455_v10 = vld [vmem:[%s7805_s18 + $0x98] sm:$0x1]  ;;  %v4479_v43 = vor.u32 %v4478_v32, %v4475_v31  ;;  %v6056_v48 = vrot.slane %v1456_v29, 9  ;;  %v1609_v49 = vrot.slane %v1457_v35, 5  ;;  %v1462_v31 = vld [vmem:[%s7805_s18 + $0xb4] sm:$0xe] }
  0xce   : > { %7200 = vmatmul.mubr.bf16.vlgmr.msra.gmra.mrb[0].mxu0 %v6500_v39  ;;  %7279 = vmatprep.subr.bf16.mxu1 %v8432_v60  ;;  %v4465_v14 = vor.u32 %v4464_v3, %v4460_v2  ;;  %v1605_v21 = vrot.slane %v1455_v10, 5  ;;  %v4492_v39 = vshll.u32 %v6449_v22, 16  ;;  %v7681_v2 = vld [vmem:[%s8944_s1 + $0x228] sm:$0xff]  }
  0xcf   : > { %7232 = vmatpush3.bf16.msra.mxu0 %v8284_v56  ;;  %v4442_v56 = vrot.slane %v4441_v51, 4  ;;  %v6451_v51 = vld [vmem:[%s7805_s18 + $0x58] sm:$0xf]  ;;  %v4480_v52 = vrot.slane %v4479_v43, 4  ;;  %v1610_v58 = vsel %vm7928_vm5, %v6056_v48, %v1609_v49  ;;  %v1611_v59 = vrot.slane %v1609_v49, 4 }
  0xd0   : > { %6976 = vmatmul.mubr.bf16.gmra.mrb[16].mxu1 %v6084_v5  ;;  %7233 = vmatprep.subr.bf16.mxu0 %v7671_v41  ;;  %v1453_v5 = vld [vmem:[%s7805_s18 + $0x90] sm:$0xe]  ;;  %v4466_v24 = vrot.slane %v4465_v14, 4  ;;  %v1606_v37 = vsel %vm7928_vm5, %v1604_v26, %v1605_v21  ;;  %v4494_v46 = vrot.slane %v4492_v39, 5  ;;  %v6454_v21 = vld [vmem:[%s7805_s18 + $0x64] sm:$0xf] }
  0xd1   : > { %6979 = vmatprep.mubr.bf16.mxu1 %v6085_v40  ;;  %v4447_v6 = vsel %vm7828_vm2, %v4442_v56, %v4446_v44  ;;  %v6055_v11 = vrot.slane %v1453_v5, 9  ;;  %v1458_v40 = vld [vmem:[%s7805_s18 + $0xa4] sm:$0x1]  ;;  %v6450_v44 = vld [vmem:[%s7805_s18 + $0x54] sm:$0xf]  ;;  %v4510_v56 = vshrl.u32 %v6451_v51, 16  ;;  %v4485_v62 = vsel %vm7828_vm2, %v4480_v52, %v4484_v38 }
  0xd2   : > { %v6501_v13 = vcombine.low %v4437_v61, %v4447_v6  ;;  %v4471_v36 = vsel %vm7828_vm2, %v4466_v24, %v4470_v15  ;;  %v1612_v50 = vrot.slane %v1458_v40, 5  ;;  %v4497_v55 = vshrl.u32 %v6450_v44, 16  ;;  %v7684_v14 = vld [vmem:[%s8944_s1 + $0x230] sm:$0xff]   ;;  %v7687_v48 = vld [vmem:[%s8944_s1 + $0x238] sm:$0xff]  }
  0xd3   : > { %7234 = vmatpush3.bf16.msra.mxu0 %v7671_v41  ;;  %v1603_v25 = vsel %vm7928_vm5, %v6055_v11, %v1602_v16  ;;  %v6502_v27 = vcombine.low %v4461_v30, %v4471_v36  ;;  %v4488_v41 = vrot.slane %v4486_v34, 4  ;;  %v4500_v57 = vshll.u32 %v6450_v44, 16  ;;  %v1460_v11 = vld [vmem:[%s7805_s18 + $0xac] sm:$0xf] }
  0xd4   : > { %7235 = vmatprep.subr.bf16.mxu0 %v7673_v0  ;;  %7203 = vmatprep.mubr.bf16.mxu0 %v6501_v13  ;;  %v6087_v42 = vcombine.low %v1603_v25, %v1606_v37  ;;  %v4506_v61 = vshll.u32 %v6451_v51, 16  ;;  %v1613_v3 = vsel %vm7928_vm5, %v1611_v59, %v1612_v50  ;;  %v4512_v5 = vrot.slane %v4510_v56, 4  ;;  %v1463_v37 = vld [vmem:[%s7805_s18 + $0xb8] sm:$0xf] }
  0xd5   : > { %v4489_v53 = vor.u32 %v4488_v41, %v4484_v38  ;;  %v4502_v1 = vrot.slane %v4500_v57, 5  ;;  %v4516_v6 = vshll.u32 %v6452_v54, 16  ;;  %v6088_v9 = vcombine.low %v1610_v58, %v1613_v3  ;;  %v6458_v57 = vld [vmem:[%s7805_s18 + $0x74] sm:$0x1] }
  0xd6   : > { %7204 = vmatmul.mubr.bf16.gmra.mrb[4].mxu0 %v6502_v27  ;;  %v4508_v18 = vrot.slane %v4506_v61, 5  ;;  %v1616_v19 = vrot.slane %v1460_v11, 5  ;;  %v4521_v24 = vshrl.u32 %v6453_v20, 16  ;;  %v4524_v25 = vshll.u32 %v6453_v20, 16 }
  0xd7   : > { %7236 = vmatpush3.bf16.msra.mxu0 %v7673_v0  ;;  %v4490_v63 = vrot.slane %v4489_v53, 4  ;;  %v4499_v0 = vrot.slane %v4497_v55, 4  ;;  %v4518_v17 = vrot.slane %v4516_v6, 5  ;;  %v4530_v30 = vshll.u32 %v6454_v21, 16  ;;  %v6457_v53 = vld [vmem:[%s7805_s18 + $0x70] sm:$0xf] }
  0xd8   : > { %6980 = vmatmul.mubr.bf16.gmra.mrb[20].mxu1 %v6086_v7  ;;  %7237 = vmatprep.subr.bf16.mxu0 %v7675_v12  ;;  %v1459_v7 = vld [vmem:[%s7805_s18 + $0xa8] sm:$0xe]  ;;  %v4513_v16 = vor.u32 %v4512_v5, %v4508_v18  ;;  %v1618_v29 = vrot.slane %v1616_v19, 4  ;;  %v4523_v34 = vrot.slane %v4521_v24, 4  ;;  %v4526_v35 = vrot.slane %v4524_v25, 5 }
  0xd9   : > { %6983 = vmatprep.mubr.bf16.mxu1 %v6087_v42  ;;  %v4495_v8 = vsel %vm7828_vm2, %v4490_v63, %v4494_v46  ;;  %v4503_v10 = vor.u32 %v4502_v1, %v4499_v0  ;;  %v6057_v13 = vrot.slane %v1459_v7, 9  ;;  %v4534_v36 = vshrl.u32 %v6454_v21, 16  ;;  %v1464_v42 = vld [vmem:[%s7805_s18 + $0xbc] sm:$0x1]  ;;  %v6456_v46 = vld [vmem:[%s7805_s18 + $0x6c] sm:$0xf] }
  0xda   : > { %v6503_v15 = vcombine.low %v4485_v62, %v4495_v8  ;;  %v4514_v26 = vrot.slane %v4513_v16, 4  ;;  %v4532_v40 = vrot.slane %v4530_v30, 5  ;;  %v4540_v27 = vshll.u32 %v6455_v23, 16  ;;  %v7676_v8 = vld [vmem:[%s7805_s18 + $0xc] sm:$0xff]  }
  0xdb   : > { %7238 = vmatpush3.bf16.msra.mxu0 %v7675_v12  ;;  %v1461_v12 = vld [vmem:[%s7805_s18 + $0xb0] sm:$0x1]  ;;  %v4504_v22 = vrot.slane %v4503_v10, 4  ;;  %v1617_v28 = vsel %vm7928_vm5, %v6057_v13, %v1616_v19  ;;  %v4527_v44 = vor.u32 %v4526_v35, %v4523_v34  ;;  %v6058_v50 = vrot.slane %v1462_v31, 9  ;;  %v6460_v13 = vld [vmem:[%s7805_s18 + $0x7c] sm:$0xf] }
  0xdc   : > { %7239 = vmatprep.subr.bf16.mxu0 %v7678_v45  ;;  %v1619_v47 = vrot.slane %v1461_v12, 5  ;;  %7207 = vmatprep.mubr.bf16.mxu0 %v6503_v15  ;;  %v4519_v38 = vsel %vm7828_vm2, %v4514_v26, %v4518_v17  ;;  %v4542_v49 = vrot.slane %v4540_v27, 5  ;;  %v1623_v51 = vrot.slane %v1463_v37, 5  ;;  %v6459_v12 = vld [vmem:[%s7805_s18 + $0x78] sm:$0xf] }
  0xdd   : > { %v4509_v32 = vsel %vm7828_vm2, %v4504_v22, %v4508_v18  ;;  %v1626_v52 = vrot.slane %v1464_v42, 5  ;;  %v4528_v54 = vrot.slane %v4527_v44, 4  ;;  %v4545_v58 = vshrl.u32 %v6456_v46, 16  ;;  %v6461_v17 = vld [vmem:[%s7805_s18 + $0x80] sm:$0x1] }
  0xde   : > { %v1620_v39 = vsel %vm7928_vm5, %v1618_v29, %v1619_v47  ;;  %v6504_v43 = vcombine.low %v4509_v32, %v4519_v38  ;;  %v4548_v59 = vshll.u32 %v6456_v46, 16  ;;  %v1624_v61 = vsel %vm7928_vm5, %v6058_v50, %v1623_v51  ;;  %v6462_v26 = vld [vmem:[%s7805_s18 + $0x84] sm:$0xf]  ;;  %v6463_v32 = vld [vmem:[%s7805_s18 + $0x88] sm:$0xf] }
  0xdf   : > { %7240 = vmatpush3.bf16.msra.mxu0 %v7678_v45  ;;  %v6089_v41 = vcombine.low %v1617_v28, %v1620_v39  ;;  %v4536_v45 = vrot.slane %v4534_v36, 4  ;;  %v1625_v56 = vrot.slane %v1623_v51, 4  ;;  %v4554_v62 = vshll.u32 %v6457_v53, 16  ;;  %v7677_v36 = vld [vmem:[%s7805_s18 + $0x18] sm:$0xff]   ;;  %v6464_v37 = vld [vmem:[%s7805_s18 + $0x8c] sm:$0x1] }
  0xe0   : > { %6984 = vmatmul.mubr.bf16.gmra.mrb[24].mxu1 %v6088_v9  ;;  %7241 = vmatprep.subr.bf16.mxu0 %v7681_v2  ;;  %v4558_v63 = vshrl.u32 %v6457_v53, 16  ;;  %v4533_v0 = vsel %vm7828_vm2, %v4528_v54, %v4532_v40  ;;  %v4550_v3 = vrot.slane %v4548_v59, 5  ;;  %v4564_v7 = vshll.u32 %v6458_v57, 16  ;;  %v6466_v57 = vld [vmem:[%s7805_s18 + $0x94] sm:$0xf] }
  0xe1   : > { %7208 = vmatmul.mubr.bf16.gmra.mrb[8].mxu0 %v6504_v43  ;;  %6987 = vmatprep.mubr.bf16.mxu1 %v6089_v41  ;;  %v4537_v55 = vor.u32 %v4536_v45, %v4532_v40  ;;  %v1627_v18 = vsel %vm7928_vm5, %v1625_v56, %v1626_v52  ;;  %v4556_v5 = vrot.slane %v4554_v62, 5  ;;  %v4569_v19 = vshrl.u32 %v6459_v12, 16  ;;  %v7679_v41 = vld [vmem:[%s7805_s18 + $0x24] sm:$0xff]  }
  0xe2   : > { %v4560_v6 = vrot.slane %v4558_v63, 4  ;;  %v6090_v10 = vcombine.low %v1624_v61, %v1627_v18  ;;  %v4566_v16 = vrot.slane %v4564_v7, 5  ;;  %v4572_v21 = vshll.u32 %v6459_v12, 16  ;;  %v6467_v61 = vld [vmem:[%s7805_s18 + $0x98] sm:$0x1] }
  0xe3   : > { %7242 = vmatpush3.bf16.msra.mxu0 %v7681_v2  ;;  %v4538_v1 = vrot.slane %v4537_v55, 4  ;;  %v4547_v2 = vrot.slane %v4545_v58, 4  ;;  %v4578_v22 = vshll.u32 %v6460_v13, 16  ;;  %v4582_v47 = vshrl.u32 %v6460_v13, 16  ;;  %v6465_v55 = vld [vmem:[%s7805_s18 + $0x90] sm:$0xf] }
  0xe4   : > { %7243 = vmatprep.subr.bf16.mxu0 %v7684_v14  ;;  %v4561_v15 = vor.u32 %v4560_v6, %v4556_v5  ;;  %v4571_v24 = vrot.slane %v4569_v19, 4  ;;  %v4588_v25 = vshll.u32 %v6461_v17, 16  ;;  %v4574_v29 = vrot.slane %v4572_v21, 5  ;;  %v6470_v12 = vld [vmem:[%s7805_s18 + $0xa4] sm:$0x1]  ;;  %v7680_v17 = vld [vmem:[%s7805_s18 + $0x30] sm:$0xff]  }
  0xe5   : > { %v4543_v9 = vsel %vm7828_vm2, %v4538_v1, %v4542_v49  ;;  %v4551_v11 = vor.u32 %v4550_v3, %v4547_v2  ;;  %v4580_v30 = vrot.slane %v4578_v22, 5  ;;  %v4584_v31 = vrot.slane %v4582_v47, 4  ;;  %v6468_v3 = vld [vmem:[%s7805_s18 + $0x9c] sm:$0xf] }
  0xe6   : > { %v4562_v23 = vrot.slane %v4561_v15, 4  ;;  %v4590_v35 = vrot.slane %v4588_v25, 5  ;;  %v4593_v38 = vshrl.u32 %v6462_v26, 16  ;;  %v4596_v39 = vshll.u32 %v6462_v26, 16 }
  0xe7   : > { %7244 = vmatpush3.bf16.msra.mxu0 %v7684_v14  ;;  %v6505_v14 = vcombine.low %v4533_v0, %v4543_v9  ;;  %v4552_v20 = vrot.slane %v4551_v11, 4  ;;  %v4575_v27 = vor.u32 %v4574_v29, %v4571_v24  ;;  %v4585_v42 = vor.u32 %v4584_v31, %v4580_v30  ;;  %v6469_v9 = vld [vmem:[%s7805_s18 + $0xa0] sm:$0xf]  ;;  %v7698_v29 = vld [vmem:[%s8944_s1 + $0x110] sm:$0xff]  }
  0xe8   : > { %7245 = vmatprep.subr.bf16.mxu0 %v7687_v48  ;;  %6988 = vmatmul.mubr.bf16.gmra.mrb[28].mxu1 %v6090_v10  ;;  %v4567_v34 = vsel %vm7828_vm2, %v4562_v23, %v4566_v16  ;;  %v4602_v43 = vshll.u32 %v6463_v32, 16  ;;  %v4595_v44 = vrot.slane %v4593_v38, 4  ;;  %v4598_v45 = vrot.slane %v4596_v39, 5  ;;  %v7682_v23 = vld [vmem:[%s7805_s18 + $0x3c] sm:$0xff]   ;;  %v6472_v38 = vld [vmem:[%s7805_s18 + $0xac] sm:$0xf] }
  0xe9   : > { %7211 = vmatprep.mubr.bf16.mxu0 %v6505_v14  ;;  %7007 = vmatprep.mubr.bf16.mxu1 %v7676_v8  ;;  %v4557_v28 = vsel %vm7828_vm2, %v4552_v20, %v4556_v5  ;;  %v4606_v46 = vshrl.u32 %v6463_v32, 16  ;;  %v4576_v49 = vrot.slane %v4575_v27, 4  ;;  %v4586_v50 = vrot.slane %v4585_v42, 4  ;;  %v7697_v8 = vld [vmem:[%s8944_s1 + $0x108] sm:$0xff]   ;;  %v6473_v39 = vld [vmem:[%s7805_s18 + $0xb0] sm:$0x1] }
  0xea   : > { %v6506_v40 = vcombine.low %v4557_v28, %v4567_v34  ;;  %v4604_v51 = vrot.slane %v4602_v43, 5  ;;  %v4599_v52 = vor.u32 %v4598_v45, %v4595_v44  ;;  %v4617_v56 = vshrl.u32 %v6465_v55, 16  ;;  %v6471_v34 = vld [vmem:[%s7805_s18 + $0xa8] sm:$0xf] }
  0xeb   : > { %7246 = vmatpush3.bf16.msra.mxu0 %v7687_v48  ;;  %v4612_v48 = vshll.u32 %v6464_v37, 16  ;;  %v4608_v53 = vrot.slane %v4606_v46, 4  ;;  %v4581_v58 = vsel %vm7828_vm2, %v4576_v49, %v4580_v30  ;;  %v4591_v59 = vsel %vm7828_vm2, %v4586_v50, %v4590_v35  ;;  %v7683_v49 = vld [vmem:[%s7805_s18 + $0x48] sm:$0xff]   ;;  %v7699_v50 = vld [vmem:[%s8944_s1 + $0x118] sm:$0xff]  }
  0xec   : > { %7212 = vmatmul.mubr.bf16.gmra.mrb[12].mxu0 %v6506_v40  ;;  %v4620_v62 = vshll.u32 %v6465_v55, 16  ;;  %v6507_v63 = vcombine.low %v4581_v58, %v4591_v59  ;;  %v4600_v0 = vrot.slane %v4599_v52, 4  ;;  %v4626_v2 = vshll.u32 %v6466_v57, 16  ;;  %v6474_v55 = vld [vmem:[%s7805_s18 + $0xb4] sm:$0xf] }
  0xed   : > { %v4614_v54 = vrot.slane %v4612_v48, 5  ;;  %v4609_v1 = vor.u32 %v4608_v53, %v4604_v51  ;;  %v4619_v18 = vrot.slane %v4617_v56, 4  ;;  %v4630_v6 = vshrl.u32 %v6466_v57, 16  ;;  %v7685_v57 = vld [vmem:[%s7805_s18 + $0x54] sm:$0xff]  }
  0xee   : > { %v4622_v5 = vrot.slane %v4620_v62, 5  ;;  %v4636_v7 = vshll.u32 %v6467_v61, 16  ;;  %7215 = vmatprep.mubr.bf16.mxu0 %v6507_v63  ;;  %v4605_v10 = vsel %vm7828_vm2, %v4600_v0, %v4604_v51  ;;  %v4628_v11 = vrot.slane %v4626_v2, 5  ;;  %v6475_v56 = vld [vmem:[%s7805_s18 + $0xb8] sm:$0xf] }
  0xef   : > { %v4641_v13 = vshrl.u32 %v6468_v3, 16  ;;  %v4632_v15 = vrot.slane %v4630_v6, 4  ;;  %v4644_v19 = vshll.u32 %v6468_v3, 16  ;;  %v4650_v22 = vshll.u32 %v6469_v9, 16  ;;  %v6476_v62 = vld [vmem:[%s7805_s18 + $0xbc] sm:$0x1] }
  0xf0   : > { %7008 = vmatmul.mubr.bf16.vlgmr.msra.gmra.mrb[0].mxu1 %v7677_v36  ;;  %v4623_v14 = vor.u32 %v4622_v5, %v4619_v18  ;;  %v4638_v16 = vrot.slane %v4636_v7, 5  ;;  %v4654_v47 = vshrl.u32 %v6469_v9, 16  ;;  %v4660_v32 = vshll.u32 %v6470_v12, 16  ;;  %v7700_v7 = vld [vmem:[%s8944_s1 + $0x120] sm:$0xff]  }
  0xf1   : > { %7287 = vmatpush3.bf16.msra.mxu1 %v8432_v60  ;;  %7011 = vmatprep.mubr.bf16.mxu1 %v7679_v41  ;;  %v4610_v60 = vrot.slane %v4609_v1, 4  ;;  %v4643_v21 = vrot.slane %v4641_v13, 4  ;;  %v4633_v26 = vor.u32 %v4632_v15, %v4628_v11  ;;  %v4646_v28 = vrot.slane %v4644_v19, 5  ;;  %v6478_v15 = vld [vmem:[%s7805_s18 + $0xc4] sm:$0xf] }
  0xf2   : > { %7280 = vmatprep.subr.bf16.mxu1 %v7697_v8  ;;  %v4624_v25 = vrot.slane %v4623_v14, 4  ;;  %v4652_v30 = vrot.slane %v4650_v22, 5  ;;  %v4656_v31 = vrot.slane %v4654_v47, 4  ;;  %v4665_v40 = vshrl.u32 %v6471_v34, 16 }
  0xf3   : > { %v4615_v20 = vsel %vm7828_vm2, %v4610_v60, %v4614_v54  ;;  %v4634_v36 = vrot.slane %v4633_v26, 4  ;;  %v4647_v37 = vor.u32 %v4646_v28, %v4643_v21  ;;  %v4662_v42 = vrot.slane %v4660_v32, 5  ;;  %v6479_v21 = vld [vmem:[%s7805_s18 + $0xc8] sm:$0x1]  ;;  %v7686_v26 = vld [vmem:[%s7805_s18 + $0x60] sm:$0xff]  }
  0xf4   : > { %v6508_v24 = vcombine.low %v4605_v10, %v4615_v20  ;;  %v4629_v35 = vsel %vm7828_vm2, %v4624_v25, %v4628_v11  ;;  %v4657_v27 = vor.u32 %v4656_v31, %v4652_v30  ;;  %v4668_v43 = vshll.u32 %v6471_v34, 16  ;;  %v6477_v11 = vld [vmem:[%s7805_s18 + $0xc0] sm:$0xf]  ;;  %v7701_v28 = vld [vmem:[%s8944_s1 + $0x128] sm:$0xff]  }
  0xf5   : > { %7288 = vmatpush3.bf16.msra.mxu1 %v7697_v8  ;;  %v4674_v41 = vshll.u32 %v6472_v38, 16  ;;  %v4639_v44 = vsel %vm7828_vm2, %v4634_v36, %v4638_v16  ;;  %v4648_v45 = vrot.slane %v4647_v37, 4  ;;  %v4667_v46 = vrot.slane %v4665_v40, 4  ;;  %v6480_v34 = vld [vmem:[%s7805_s18 + $0xcc] sm:$0xf] }
  0xf6   : > { %7281 = vmatprep.subr.bf16.mxu1 %v7698_v29  ;;  %7216 = vmatmul.mubr.bf16.gmra.mrb[16].mxu0 %v6508_v24  ;;  %v4678_v48 = vshrl.u32 %v6472_v38, 16  ;;  %v6509_v51 = vcombine.low %v4629_v35, %v4639_v44  ;;  %v4658_v52 = vrot.slane %v4657_v27, 4  ;;  %v4670_v53 = vrot.slane %v4668_v43, 5  ;;  %v6481_v35 = vld [vmem:[%s7805_s18 + $0xd0] sm:$0xf] }
  0xf7   : > { %v4676_v54 = vrot.slane %v4674_v41, 5  ;;  %v4653_v58 = vsel %vm7828_vm2, %v4648_v45, %v4652_v30  ;;  %v4684_v61 = vshll.u32 %v6473_v39, 16  ;;  %v4689_v1 = vshrl.u32 %v6474_v55, 16  ;;  %v7688_v36 = vld [vmem:[%s7805_s18 + $0x6c] sm:$0xff]   ;;  %v6482_v40 = vld [vmem:[%s7805_s18 + $0xd4] sm:$0x1] }
  0xf8   : > { %7012 = vmatmul.mubr.bf16.gmra.mrb[4].mxu1 %v7680_v17  ;;  %v4680_v59 = vrot.slane %v4678_v48, 4  ;;  %7219 = vmatprep.mubr.bf16.mxu0 %v6509_v51  ;;  %v4663_v63 = vsel %vm7828_vm2, %v4658_v52, %v4662_v42  ;;  %v4671_v0 = vor.u32 %v4670_v53, %v4667_v46  ;;  %v4692_v2 = vshll.u32 %v6474_v55, 16 }
  0xf9   : > { %7015 = vmatprep.mubr.bf16.mxu1 %v7682_v23  ;;  %7289 = vmatpush3.bf16.msra.mxu1 %v7698_v29  ;;  %v6510_v3 = vcombine.low %v4653_v58, %v4663_v63  ;;  %v4686_v5 = vrot.slane %v4684_v61, 5  ;;  %v4698_v6 = vshll.u32 %v6475_v56, 16  ;;  %v4691_v9 = vrot.slane %v4689_v1, 4  ;;  %v6523_v61 = vld [vmem:[%s7805_s18 + $0x18] sm:$0xe] }
  0xfa   : > { %7282 = vmatprep.subr.bf16.mxu1 %v7699_v50  ;;  %v4681_v18 = vor.u32 %v4680_v59, %v4676_v54  ;;  %v4672_v8 = vrot.slane %v4671_v0, 4  ;;  %v4694_v10 = vrot.slane %v4692_v2, 5  ;;  %v4702_v60 = vshrl.u32 %v6475_v56, 16  ;;  %v6524_v56 = vld [vmem:[%s7805_s18 + $0x1c] sm:$0xf] }
  0xfb   : > { %v4700_v13 = vrot.slane %v4698_v6, 5  ;;  %v4708_v14 = vshll.u32 %v6476_v62, 16  ;;  %v4713_v16 = vshrl.u32 %v6477_v11, 16  ;;  %v4716_v22 = vshll.u32 %v6477_v11, 16  ;;  %v6525_v0 = vld [vmem:[%s7805_s18 + $0x20] sm:$0x1] }
  0xfc   : > { %v4682_v12 = vrot.slane %v4681_v18, 4  ;;  %v4677_v17 = vsel %vm7828_vm2, %v4672_v8, %v4676_v54  ;;  %v4695_v19 = vor.u32 %v4694_v10, %v4691_v9  ;;  %v4704_v20 = vrot.slane %v4702_v60, 4  ;;  %v7689_v6 = vld [vmem:[%s7805_s18 + $0x78] sm:$0xff]   ;;  %v6526_v60 = vld [vmem:[%s7805_s18 + $0x24] sm:$0xe] }
  0xfd   : > { %7290 = vmatpush3.bf16.msra.mxu1 %v7699_v50  ;;  %v4710_v23 = vrot.slane %v4708_v14, 5  ;;  %v4715_v24 = vrot.slane %v4713_v16, 4  ;;  %v4722_v25 = vshll.u32 %v6478_v15, 16  ;;  %v4718_v32 = vrot.slane %v4716_v22, 5  ;;  %v7702_v50 = vld [vmem:[%s8944_s1 + $0x130] sm:$0xff]   ;;  %v7690_v16 = vld [vmem:[%s7805_s18 + $0x84] sm:$0xff]  }
  0xfe   : > { %7283 = vmatprep.subr.bf16.mxu1 %v7700_v7  ;;  %7220 = vmatmul.mubr.bf16.gmra.mrb[20].mxu0 %v6510_v3  ;;  %v4687_v47 = vsel %vm7828_vm2, %v4682_v12, %v4686_v5  ;;  %v4696_v30 = vrot.slane %v4695_v19, 4  ;;  %v4705_v31 = vor.u32 %v4704_v20, %v4700_v13  ;;  %v4726_v38 = vshrl.u32 %v6478_v15, 16  ;;  %v6527_v11 = vld [vmem:[%s7805_s18 + $0x28] sm:$0xf]  ;;  %v6528_v15 = vld [vmem:[%s7805_s18 + $0x2c] sm:$0x1] }
  0xff   : > { %v6511_v29 = vcombine.low %v4677_v17, %v4687_v47  ;;  %v4724_v37 = vrot.slane %v4722_v25, 5  ;;  %v4732_v39 = vshll.u32 %v6479_v21, 16  ;;  %v4737_v27 = vshrl.u32 %v6480_v34, 16  ;;  %v6529_v22 = vld [vmem:[%s7805_s18 + $0x30] sm:$0xe] }
 0x100   : > { %7016 = vmatmul.mubr.bf16.gmra.mrb[8].mxu1 %v7683_v49  ;;  %v4701_v42 = vsel %vm7828_vm2, %v4696_v30, %v4700_v13  ;;  %v4706_v43 = vrot.slane %v4705_v31, 4  ;;  %v4719_v41 = vor.u32 %v4718_v32, %v4715_v24  ;;  %v4740_v44 = vshll.u32 %v6480_v34, 16  ;;  %v6530_v25 = vld [vmem:[%s7805_s18 + $0x34] sm:$0xf] }
 0x101   : > { %7019 = vmatprep.mubr.bf16.mxu1 %v7685_v57  ;;  %7291 = vmatpush3.bf16.msra.mxu1 %v7700_v7  ;;  %v4728_v45 = vrot.slane %v4726_v38, 4  ;;  %v4734_v46 = vrot.slane %v4732_v39, 5  ;;  %v4739_v48 = vrot.slane %v4737_v27, 4  ;;  %v4746_v49 = vshll.u32 %v6481_v35, 16  ;;  %v7703_v7 = vld [vmem:[%s8944_s1 + $0x138] sm:$0xff]  }
 0x102   : > { %7284 = vmatprep.subr.bf16.mxu1 %v7701_v28  ;;  %7223 = vmatprep.mubr.bf16.mxu0 %v6511_v29  ;;  %v4711_v51 = vsel %vm7828_vm2, %v4706_v43, %v4710_v23  ;;  %v4720_v52 = vrot.slane %v4719_v41, 4  ;;  %v4742_v53 = vrot.slane %v4740_v44, 5  ;;  %v4750_v54 = vshrl.u32 %v6481_v35, 16  ;;  %v6534_v38 = vld [vmem:[%s7805_s18 + $0x44] sm:$0x1] }
 0x103   : > { %v6512_v55 = vcombine.low %v4701_v42, %v4711_v51  ;;  %v4729_v57 = vor.u32 %v4728_v45, %v4724_v37  ;;  %v4748_v58 = vrot.slane %v4746_v49, 5  ;;  %v4756_v59 = vshll.u32 %v6482_v40, 16  ;;  %v7691_v42 = vld [vmem:[%s7805_s18 + $0x90] sm:$0xff]   ;;  %v6535_v41 = vld [vmem:[%s7805_s18 + $0x48] sm:$0xe] }
 0x104   : > { %v4743_v62 = vor.u32 %v4742_v53, %v4739_v48  ;;  %v4752_v63 = vrot.slane %v4750_v54, 4  ;;  %v6571_v1 = vrot.slane %v6523_v61, 9  ;;  %v4725_v2 = vsel %vm7828_vm2, %v4720_v52, %v4724_v37  ;;  %v6533_v37 = vld [vmem:[%s7805_s18 + $0x40] sm:$0xf]  ;;  %v6536_v49 = vld [vmem:[%s7805_s18 + $0x4c] sm:$0xf] }
 0x105   : > { %7292 = vmatpush3.bf16.msra.mxu1 %v7701_v28  ;;  %v4730_v3 = vrot.slane %v4729_v57, 4  ;;  %v5244_v18 = vrot.slane %v6524_v56, 5  ;;  %v5247_v5 = vrot.slane %v6525_v0, 5  ;;  %v4758_v10 = vrot.slane %v4756_v59, 5  ;;  %v7692_v48 = vld [vmem:[%s7805_s18 + $0x9c] sm:$0xff]  }
 0x106   : > { %7285 = vmatprep.subr.bf16.mxu1 %v7702_v50  ;;  %7224 = vmatmul.mubr.bf16.gmra.mrb[24].mxu0 %v6512_v55  ;;  %v4744_v8 = vrot.slane %v4743_v62, 4  ;;  %v4753_v9 = vor.u32 %v4752_v63, %v4748_v58  ;;  %v5251_v21 = vrot.slane %v6527_v11, 5  ;;  %v6572_v23 = vrot.slane %v6526_v60, 9  ;;  %v6538_v57 = vld [vmem:[%s7805_s18 + $0x54] sm:$0xe] }
 0x107   : > { %v4735_v12 = vsel %vm7828_vm2, %v4730_v3, %v4734_v46  ;;  %v5245_v13 = vsel %vm7928_vm5, %v6571_v1, %v5244_v18  ;;  %v5246_v14 = vrot.slane %v5244_v18, 4  ;;  %v5254_v24 = vrot.slane %v6528_v15, 5  ;;  %v6540_v59 = vld [vmem:[%s7805_s18 + $0x5c] sm:$0x1]  ;;  %v6541_v18 = vld [vmem:[%s7805_s18 + $0x60] sm:$0xe] }
 0x108   : > { %7020 = vmatmul.mubr.bf16.gmra.mrb[12].mxu1 %v7686_v26  ;;  %v6513_v17 = vcombine.low %v4725_v2, %v4735_v12  ;;  %v4749_v19 = vsel %vm7828_vm2, %v4744_v8, %v4748_v58  ;;  %v4754_v20 = vrot.slane %v4753_v9, 4  ;;  %v6531_v26 = vld [vmem:[%s7805_s18 + $0x38] sm:$0x1]  ;;  %v5253_v30 = vrot.slane %v5251_v21, 4  ;;  %v6543_v8 = vld [vmem:[%s7805_s18 + $0x68] sm:$0x1] }
 0x109   : > { %7023 = vmatprep.mubr.bf16.mxu1 %v7688_v36  ;;  %7293 = vmatpush3.bf16.msra.mxu1 %v7702_v50  ;;  %v5248_v47 = vsel %vm7928_vm5, %v5246_v14, %v5247_v5  ;;  %v6573_v31 = vrot.slane %v6529_v22, 9  ;;  %v5258_v34 = vrot.slane %v6530_v25, 5  ;;  %v5261_v35 = vrot.slane %v6531_v26, 5  ;;  %v6532_v36 = vld [vmem:[%s7805_s18 + $0x3c] sm:$0xe]  ;;  %v7693_v15 = vld [vmem:[%s7805_s18 + $0xa8] sm:$0xff]  }
 0x10a   : > { %7286 = vmatprep.subr.bf16.mxu1 %v7703_v7  ;;  %7227 = vmatprep.mubr.bf16.mxu0 %v6513_v17  ;;  %v4759_v28 = vsel %vm7828_vm2, %v4754_v20, %v4758_v10  ;;  %v6603_v29 = vcombine.low %v5245_v13, %v5248_v47  ;;  %v6574_v39 = vrot.slane %v6532_v36, 9  ;;  %v5265_v40 = vrot.slane %v6533_v37, 5  ;;  %v6537_v50 = vld [vmem:[%s7805_s18 + $0x50] sm:$0x1]  ;;  %v6539_v58 = vld [vmem:[%s7805_s18 + $0x58] sm:$0xf] }
 0x10b   : > { %v6514_v32 = vcombine.low %v4749_v19, %v4759_v28  ;;  %v5260_v27 = vrot.slane %v5258_v34, 4  ;;  %v5268_v43 = vrot.slane %v6534_v38, 5  ;;  %v5252_v44 = vsel %vm7928_vm5, %v6572_v23, %v5251_v21  ;;  %v6542_v5 = vld [vmem:[%s7805_s18 + $0x64] sm:$0xf]  ;;  %v6544_v13 = vld [vmem:[%s7805_s18 + $0x6c] sm:$0xe] }
 0x10c   : > { %v5255_v45 = vsel %vm7928_vm5, %v5253_v30, %v5254_v24  ;;  %v5267_v46 = vrot.slane %v5265_v40, 4  ;;  %v6575_v51 = vrot.slane %v6535_v41, 9  ;;  %v5259_v52 = vsel %vm7928_vm5, %v6573_v31, %v5258_v34  ;;  %v6545_v19 = vld [vmem:[%s7805_s18 + $0x70] sm:$0xf]  ;;  %v6546_v20 = vld [vmem:[%s7805_s18 + $0x74] sm:$0x1] }
 0x10d   : > { %7294 = vmatpush3.bf16.msra.mxu1 %v7703_v7  ;;  %v5262_v53 = vsel %vm7928_vm5, %v5260_v27, %v5261_v35  ;;  %v5272_v54 = vrot.slane %v6536_v49, 5  ;;  %v5275_v55 = vrot.slane %v6537_v50, 5  ;;  %v6604_v61 = vcombine.low %v5252_v44, %v5255_v45  ;;  %v7694_v23 = vld [vmem:[%s7805_s18 + $0xb4] sm:$0xff]   ;;  %v6195_v26 = vld [vmem:[%s7805_s18 + $0x6c] sm:$0xf] }
 0x10e   : > { %7228 = vmatmul.mubr.bf16.gmra.mrb[28].mxu0 %v6514_v32  ;;  %v8642_v56 = vsel %vm7928_vm5, %v6574_v39, %v5265_v40  ;;  %v6576_v63 = vrot.slane %v6538_v57, 9  ;;  %v6605_v0 = vcombine.low %v5259_v52, %v5262_v53  ;;  %v8646_v1 = vsel %vm7928_vm5, %v5267_v46, %v5268_v43  ;;  %v6196_v28 = vld [vmem:[%s7805_s18 + $0x70] sm:$0xf]  ;;  %v6197_v31 = vld [vmem:[%s7805_s18 + $0x74] sm:$0x1] }
 0x10f   : > { %7247 = vmatprep.mubr.bf16.mxu0 %v6603_v29  ;;  %v5274_v62 = vrot.slane %v5272_v54, 4  ;;  %v5279_v2 = vrot.slane %v6539_v58, 5  ;;  %v5282_v3 = vrot.slane %v6540_v59, 5  ;;  %v6577_v9 = vrot.slane %v6541_v18, 9  ;;  %v6547_v35 = vld [vmem:[%s7805_s18 + $0x78] sm:$0xe] }
 0x110   : > { %7024 = vmatmul.mubr.bf16.gmra.mrb[16].mxu1 %v7689_v6  ;;  %v8652_v6 = vsel %vm7928_vm5, %v6575_v51, %v5272_v54  ;;  %v5286_v10 = vrot.slane %v6542_v5, 5  ;;  %v5289_v12 = vrot.slane %v6543_v8, 5  ;;  %v6606_v14 = vcombine.low %v8642_v56, %v8646_v1  ;;  %v6548_v40 = vld [vmem:[%s7805_s18 + $0x7c] sm:$0xf]  ;;  %v6549_v27 = vld [vmem:[%s7805_s18 + $0x80] sm:$0x1] }
 0x111   : > { %7027 = vmatprep.mubr.bf16.mxu1 %v7690_v16  ;;  %v8656_v7 = vsel %vm7928_vm5, %v5274_v62, %v5275_v55  ;;  %v8661_v60 = vsel %vm7928_vm5, %v6576_v63, %v5279_v2  ;;  %v5281_v11 = vrot.slane %v5279_v2, 4  ;;  %v6578_v21 = vrot.slane %v6544_v13, 9  ;;  %v6198_v45 = vld [vmem:[%s7805_s18 + $0x78] sm:$0xf]  ;;  %v6199_v51 = vld [vmem:[%s7805_s18 + $0x7c] sm:$0xf] }
 0x112   : > { %v8669_v16 = vsel %vm7928_vm5, %v6577_v9, %v5286_v10  ;;  %v5288_v17 = vrot.slane %v5286_v10, 4  ;;  %v6607_v22 = vcombine.low %v8652_v6, %v8656_v7  ;;  %v5293_v24 = vrot.slane %v6545_v19, 5  ;;  %v6200_v57 = vld [vmem:[%s7805_s18 + $0x80] sm:$0x1]  ;;  %v6550_v62 = vld [vmem:[%s7805_s18 + $0x84] sm:$0xe] }
 0x113   : > { %v8677_v47 = vsel %vm7928_vm5, %v5281_v11, %v5282_v3  ;;  %v5296_v25 = vrot.slane %v6546_v20, 5  ;;  %v2706_v32 = vshrl.u32 %v6195_v26, 16  ;;  %v2709_v34 = vshll.u32 %v6195_v26, 16  ;;  %v6551_v3 = vld [vmem:[%s7805_s18 + $0x88] sm:$0xf]  ;;  %v7695_v9 = vld [vmem:[%s7805_s18 + $0xc0] sm:$0xff]  }
 0x114   : > { %v6608_v29 = vcombine.low %v8661_v60, %v8677_v47  ;;  %v8686_v30 = vsel %vm7928_vm5, %v5288_v17, %v5289_v12  ;;  %v8694_v37 = vsel %vm7928_vm5, %v6578_v21, %v5293_v24  ;;  %v5295_v38 = vrot.slane %v5293_v24, 4  ;;  %v6552_v8 = vld [vmem:[%s7805_s18 + $0x8c] sm:$0x1]  ;;  %v6202_v21 = vld [vmem:[%s7805_s18 + $0x88] sm:$0xf] }
 0x115   : > { %v6609_v36 = vcombine.low %v8669_v16, %v8686_v30  ;;  %v2715_v39 = vshll.u32 %v6196_v28, 16  ;;  %v2711_v43 = vrot.slane %v2709_v34, 5  ;;  %v2719_v41 = vshrl.u32 %v6196_v28, 16 }
 0x116   : > { %7248 = vmatmul.mubr.bf16.vlgmr.msra.gmra.mrb[0].mxu0 %v6604_v61  ;;  %v2725_v44 = vshll.u32 %v6197_v31, 16  ;;  %v8701_v46 = vsel %vm7928_vm5, %v5295_v38, %v5296_v25  ;;  %v6579_v49 = vrot.slane %v6547_v35, 9  ;;  %v5300_v50 = vrot.slane %v6548_v40, 5  ;;  %v6203_v31 = vld [vmem:[%s7805_s18 + $0x8c] sm:$0x1] }
 0x117   : > { %7251 = vmatprep.mubr.bf16.mxu0 %v6605_v0  ;;  %v6610_v52 = vcombine.low %v8694_v37, %v8701_v46  ;;  %v2721_v54 = vrot.slane %v2719_v41, 4  ;;  %v5303_v61 = vrot.slane %v6549_v27, 5  ;;  %v2730_v56 = vshrl.u32 %v6198_v45, 16  ;;  %v6553_v27 = vld [vmem:[%s7805_s18 + $0x90] sm:$0xe] }
 0x118   : > { %7028 = vmatmul.mubr.bf16.gmra.mrb[20].mxu1 %v7691_v42  ;;  %v2708_v42 = vrot.slane %v2706_v32, 4  ;;  %v2727_v55 = vrot.slane %v2725_v44, 5  ;;  %v8709_v58 = vsel %vm7928_vm5, %v6579_v49, %v5300_v50  ;;  %v5302_v59 = vrot.slane %v5300_v50, 4 }
 0x119   : > { %7031 = vmatprep.mubr.bf16.mxu1 %v7692_v48  ;;  %v2717_v48 = vrot.slane %v2715_v39, 5  ;;  %v2733_v1 = vshll.u32 %v6198_v45, 16  ;;  %v2739_v2 = vshll.u32 %v6199_v51, 16  ;;  %v2732_v5 = vrot.slane %v2730_v56, 4  ;;  %v6554_v45 = vld [vmem:[%s7805_s18 + $0x94] sm:$0xf] }
 0x11a   : > { %v2712_v53 = vor.u32 %v2711_v43, %v2708_v42  ;;  %v8715_v18 = vsel %vm7928_vm5, %v5302_v59, %v5303_v61  ;;  %v2743_v6 = vshrl.u32 %v6199_v51, 16  ;;  %v2749_v7 = vshll.u32 %v6200_v57, 16  ;;  %v6205_v57 = vld [vmem:[%s7805_s18 + $0x94] sm:$0xf] }
 0x11b   : > { %v2722_v0 = vor.u32 %v2721_v54, %v2717_v48  ;;  %v6611_v12 = vcombine.low %v8709_v58, %v8715_v18  ;;  %v2735_v13 = vrot.slane %v2733_v1, 5  ;;  %v6580_v20 = vrot.slane %v6550_v62, 9  ;;  %v6204_v54 = vld [vmem:[%s7805_s18 + $0x90] sm:$0xf]  ;;  %v6556_v1 = vld [vmem:[%s7805_s18 + $0x9c] sm:$0xe] }
 0x11c   : > { %v2713_v63 = vrot.slane %v2712_v53, 4  ;;  %v2745_v17 = vrot.slane %v2743_v6, 4  ;;  %v2751_v19 = vrot.slane %v2749_v7, 5  ;;  %v5307_v24 = vrot.slane %v6551_v3, 5  ;;  %v6555_v53 = vld [vmem:[%s7805_s18 + $0x98] sm:$0x1] }
 0x11d   : > { %v2723_v11 = vrot.slane %v2722_v0, 4  ;;  %v5310_v25 = vrot.slane %v6552_v8, 5  ;;  %v2763_v40 = vshll.u32 %v6202_v21, 16  ;;  %v2767_v44 = vshrl.u32 %v6202_v21, 16  ;;  %v6557_v7 = vld [vmem:[%s7805_s18 + $0xa0] sm:$0xf] }
 0x11e   : > { %7252 = vmatmul.mubr.bf16.gmra.mrb[4].mxu0 %v6606_v14  ;;  %v2718_v10 = vsel %vm7828_vm2, %v2713_v63, %v2717_v48  ;;  %v6201_v14 = vld [vmem:[%s7805_s18 + $0x84] sm:$0xf]  ;;  %v8730_v38 = vsel %vm7928_vm5, %v6580_v20, %v5307_v24  ;;  %v5309_v39 = vrot.slane %v5307_v24, 4  ;;  %v2773_v51 = vshll.u32 %v6203_v31, 16  ;;  %v6206_v63 = vld [vmem:[%s7805_s18 + $0x98] sm:$0x1] }
 0x11f   : > { %7255 = vmatprep.mubr.bf16.mxu0 %v6607_v22  ;;  %v2728_v22 = vsel %vm7828_vm2, %v2723_v11, %v2727_v55  ;;  %v2754_v32 = vshrl.u32 %v6201_v14, 16  ;;  %v2757_v34 = vshll.u32 %v6201_v14, 16  ;;  %v2765_v50 = vrot.slane %v2763_v40, 5  ;;  %v6207_v20 = vld [vmem:[%s7805_s18 + $0x9c] sm:$0xf] }
 0x120   : > { %7032 = vmatmul.mubr.bf16.gmra.mrb[24].mxu1 %v7693_v15  ;;  %v2741_v15 = vrot.slane %v2739_v2, 5  ;;  %v6243_v26 = vcombine.low %v2718_v10, %v2728_v22  ;;  %v8741_v49 = vsel %vm7928_vm5, %v5309_v39, %v5310_v25  ;;  %v2769_v55 = vrot.slane %v2767_v44, 4  ;;  %v6208_v25 = vld [vmem:[%s7805_s18 + $0xa0] sm:$0xf]  ;;  %v6209_v39 = vld [vmem:[%s7805_s18 + $0xa4] sm:$0x1] }
 0x121   : > { %7035 = vmatprep.mubr.bf16.mxu1 %v7694_v23  ;;  %v2736_v23 = vor.u32 %v2735_v13, %v2732_v5  ;;  %v2756_v43 = vrot.slane %v2754_v32, 4  ;;  %v2759_v41 = vrot.slane %v2757_v34, 5  ;;  %v6612_v47 = vcombine.low %v8730_v38, %v8741_v49  ;;  %v6558_v13 = vld [vmem:[%s7805_s18 + $0xa4] sm:$0x1]  ;;  %v6560_v44 = vld [vmem:[%s7805_s18 + $0xac] sm:$0xf] }
 0x122   : > { %v2746_v28 = vor.u32 %v2745_v17, %v2741_v15  ;;  %v2775_v61 = vrot.slane %v2773_v51, 5  ;;  %v6581_v56 = vrot.slane %v6553_v27, 9  ;;  %v5314_v62 = vrot.slane %v6554_v45, 5 }
 0x123   : > { %v2737_v35 = vrot.slane %v2736_v23, 4  ;;  %v2770_v16 = vor.u32 %v2769_v55, %v2765_v50  ;;  %v5317_v30 = vrot.slane %v6555_v53, 5  ;;  %v2781_v5 = vshll.u32 %v6204_v54, 16  ;;  %v6561_v53 = vld [vmem:[%s7805_s18 + $0xb0] sm:$0x1] }
 0x124   : > { %v2747_v42 = vrot.slane %v2746_v28, 4  ;;  %v8757_v2 = vsel %vm7928_vm5, %v6581_v56, %v5314_v62  ;;  %v5316_v3 = vrot.slane %v5314_v62, 4  ;;  %v2787_v6 = vshll.u32 %v6205_v57, 16 }
 0x125   : > { %v2742_v48 = vsel %vm7828_vm2, %v2737_v35, %v2741_v15  ;;  %v2791_v11 = vshrl.u32 %v6205_v57, 16  ;;  %v2783_v15 = vrot.slane %v2781_v5, 5  ;;  %v6582_v24 = vrot.slane %v6556_v1, 9 }
 0x126   : > { %7256 = vmatmul.mubr.bf16.gmra.mrb[8].mxu0 %v6608_v29  ;;  %v2752_v60 = vsel %vm7828_vm2, %v2747_v42, %v2751_v19  ;;  %v2760_v29 = vor.u32 %v2759_v41, %v2756_v43  ;;  %v5318_v14 = vsel %vm7928_vm5, %v5316_v3, %v5317_v30  ;;  %v2789_v17 = vrot.slane %v2787_v6, 5  ;;  %v6559_v43 = vld [vmem:[%s7805_s18 + $0xa8] sm:$0xe] }
 0x127   : > { %7259 = vmatprep.mubr.bf16.mxu0 %v6609_v36  ;;  %v6244_v59 = vcombine.low %v2742_v48, %v2752_v60  ;;  %v2778_v36 = vshrl.u32 %v6204_v54, 16  ;;  %v2797_v19 = vshll.u32 %v6206_v63, 16  ;;  %v6613_v22 = vcombine.low %v8757_v2, %v5318_v14  ;;  %v6210_v54 = vld [vmem:[%s7805_s18 + $0xa8] sm:$0xf]  ;;  %v6562_v2 = vld [vmem:[%s7805_s18 + $0xb4] sm:$0xe] }
 0x128   : > { %7036 = vmatmul.mubr.bf16.gmra.mrb[28].mxu1 %v7695_v9  ;;  %v2761_v0 = vrot.slane %v2760_v29, 4  ;;  %v2771_v9 = vrot.slane %v2770_v16, 4  ;;  %v2793_v23 = vrot.slane %v2791_v11, 4  ;;  %v5321_v32 = vrot.slane %v6557_v7, 5  ;;  %v6564_v14 = vld [vmem:[%s7805_s18 + $0xbc] sm:$0x1] }
 0x129   : > { %7071 = vmatprep.mubr.bf16.mxu1 %v6243_v26  ;;  %v2780_v10 = vrot.slane %v2778_v36, 4  ;;  %v2799_v31 = vrot.slane %v2797_v19, 5  ;;  %v5324_v35 = vrot.slane %v6558_v13, 5  ;;  %v2802_v40 = vshrl.u32 %v6207_v20, 16 }
 0x12a   : > { %v2766_v8 = vsel %vm7828_vm2, %v2761_v0, %v2765_v50  ;;  %v2776_v21 = vsel %vm7828_vm2, %v2771_v9, %v2775_v61  ;;  %v2794_v34 = vor.u32 %v2793_v23, %v2789_v17  ;;  %v2805_v27 = vshll.u32 %v6207_v20, 16  ;;  %v6212_v0 = vld [vmem:[%s7805_s18 + $0xb0] sm:$0x1]  ;;  %v6214_v23 = vld [vmem:[%s7805_s18 + $0xb8] sm:$0xf] }
 0x12b   : > { %v6245_v26 = vcombine.low %v2766_v8, %v2776_v21  ;;  %v2784_v28 = vor.u32 %v2783_v15, %v2780_v10  ;;  %v8779_v46 = vsel %vm7928_vm5, %v6582_v24, %v5321_v32  ;;  %v2811_v42 = vshll.u32 %v6208_v25, 16  ;;  %v6563_v8 = vld [vmem:[%s7805_s18 + $0xb8] sm:$0xf] }
 0x12c   : > { %v2795_v58 = vrot.slane %v2794_v34, 4  ;;  %v2804_v18 = vrot.slane %v2802_v40, 4  ;;  %v2815_v41 = vshrl.u32 %v6208_v25, 16  ;;  %v2821_v51 = vshll.u32 %v6209_v39, 16  ;;  %v6215_v34 = vld [vmem:[%s7805_s18 + $0xbc] sm:$0x1] }
 0x12d   : > { %v2785_v37 = vrot.slane %v2784_v28, 4  ;;  %v2813_v50 = vrot.slane %v2811_v42, 5  ;;  %v6583_v62 = vrot.slane %v6559_v43, 9  ;;  %v5328_v63 = vrot.slane %v6560_v44, 5 }
 0x12e   : > { %7260 = vmatmul.mubr.bf16.gmra.mrb[12].mxu0 %v6610_v52  ;;  %v5323_v52 = vrot.slane %v5321_v32, 4  ;;  %v2800_v60 = vsel %vm7828_vm2, %v2795_v58, %v2799_v31  ;;  %v2817_v57 = vrot.slane %v2815_v41, 4  ;;  %v2823_v56 = vrot.slane %v2821_v51, 5  ;;  %v6216_v51 = vld [vmem:[%s7805_s18 + $0xc0] sm:$0xf] }
 0x12f   : > { %7263 = vmatprep.mubr.bf16.mxu0 %v6611_v12  ;;  %v2807_v12 = vrot.slane %v2805_v27, 5  ;;  %v2790_v45 = vsel %vm7828_vm2, %v2785_v37, %v2789_v17  ;;  %v5331_v36 = vrot.slane %v6561_v53, 5  ;;  %v2826_v1 = vshrl.u32 %v6210_v54, 16  ;;  %v6213_v17 = vld [vmem:[%s7805_s18 + $0xb4] sm:$0xf] }
 0x130   : > { %7072 = vmatmul.mubr.bf16.vlgmr.msra.gmra.mrb[16].mxu1 %v6244_v59  ;;  %v8787_v48 = vsel %vm7928_vm5, %v5323_v52, %v5324_v35  ;;  %v6211_v59 = vld [vmem:[%s7805_s18 + $0xac] sm:$0xf]  ;;  %v6246_v61 = vcombine.low %v2790_v45, %v2800_v60  ;;  %v2818_v30 = vor.u32 %v2817_v57, %v2813_v50  ;;  %v5329_v3 = vsel %vm7928_vm5, %v6583_v62, %v5328_v63  ;;  %v6565_v52 = vld [vmem:[%s7805_s18 + $0xc0] sm:$0xe] }
 0x131   : > { %7075 = vmatprep.mubr.bf16.mxu1 %v6245_v26  ;;  %v6614_v29 = vcombine.low %v8779_v46, %v8787_v48  ;;  %v2808_v55 = vor.u32 %v2807_v12, %v2804_v18  ;;  %v5330_v5 = vrot.slane %v5328_v63, 4  ;;  %v2829_v6 = vshll.u32 %v6210_v54, 16  ;;  %v6566_v12 = vld [vmem:[%s7805_s18 + $0xc4] sm:$0xf] }
 0x132   : > { %v2835_v7 = vshll.u32 %v6211_v59, 16  ;;  %v2819_v10 = vrot.slane %v2818_v30, 4  ;;  %v2828_v11 = vrot.slane %v2826_v1, 4  ;;  %v2839_v13 = vshrl.u32 %v6211_v59, 16 }
 0x133   : > { %v2809_v16 = vrot.slane %v2808_v55, 4  ;;  %v5332_v38 = vsel %vm7928_vm5, %v5330_v5, %v5331_v36  ;;  %v2831_v49 = vrot.slane %v2829_v6, 5  ;;  %v2845_v15 = vshll.u32 %v6212_v0, 16  ;;  %v6568_v5 = vld [vmem:[%s7805_s18 + $0xcc] sm:$0xe] }
 0x134   : > { %v2824_v19 = vsel %vm7828_vm2, %v2819_v10, %v2823_v56  ;;  %v6615_v20 = vcombine.low %v5329_v3, %v5332_v38  ;;  %v2841_v21 = vrot.slane %v2839_v13, 4  ;;  %v5335_v28 = vrot.slane %v6563_v8, 5  ;;  %v6569_v10 = vld [vmem:[%s7805_s18 + $0xd0] sm:$0xf] }
 0x135   : > { %v2814_v9 = vsel %vm7828_vm2, %v2809_v16, %v2813_v50  ;;  %v2832_v25 = vor.u32 %v2831_v49, %v2828_v11  ;;  %v2847_v26 = vrot.slane %v2845_v15, 5  ;;  %v5338_v32 = vrot.slane %v6564_v14, 5  ;;  %v6567_v50 = vld [vmem:[%s7805_s18 + $0xc8] sm:$0x1]  ;;  %v6570_v49 = vld [vmem:[%s7805_s18 + $0xd4] sm:$0x1] }
 0x136   : > { %7264 = vmatmul.mubr.bf16.gmra.mrb[16].mxu0 %v6612_v47  ;;  %v2837_v47 = vrot.slane %v2835_v7, 5  ;;  %v6247_v24 = vcombine.low %v2814_v9, %v2824_v19  ;;  %v2850_v35 = vshrl.u32 %v6213_v17, 16  ;;  %v2853_v39 = vshll.u32 %v6213_v17, 16  ;;  %v6218_v16 = vld [vmem:[%s7805_s18 + $0xc8] sm:$0x1] }
 0x137   : > { %7267 = vmatprep.mubr.bf16.mxu0 %v6613_v22  ;;  %v6584_v22 = vrot.slane %v6562_v2, 9  ;;  %v2833_v40 = vrot.slane %v2832_v25, 4  ;;  %v5337_v37 = vrot.slane %v5335_v28, 4  ;;  %v2859_v46 = vshll.u32 %v6214_v23, 16 }
 0x138   : > { %7076 = vmatmul.mubr.bf16.gmra.mrb[20].mxu1 %v6246_v61  ;;  %v2842_v31 = vor.u32 %v2841_v21, %v2837_v47  ;;  %v2852_v43 = vrot.slane %v2850_v35, 4  ;;  %v2855_v58 = vrot.slane %v2853_v39, 5  ;;  %v2863_v18 = vshrl.u32 %v6214_v23, 16 }
 0x139   : > { %7079 = vmatprep.mubr.bf16.mxu1 %v6247_v24  ;;  %v5336_v27 = vsel %vm7928_vm5, %v6584_v22, %v5335_v28  ;;  %v2838_v41 = vsel %vm7828_vm2, %v2833_v40, %v2837_v47  ;;  %v5339_v44 = vsel %vm7928_vm5, %v5337_v37, %v5338_v32  ;;  %v2861_v45 = vrot.slane %v2859_v46, 5 }
 0x13a   : > { %v2843_v42 = vrot.slane %v2842_v31, 4  ;;  %v2869_v48 = vshll.u32 %v6215_v34, 16  ;;  %v6616_v54 = vcombine.low %v5336_v27, %v5339_v44  ;;  %v2856_v60 = vor.u32 %v2855_v58, %v2852_v43 }
 0x13b   : > { %v2865_v55 = vrot.slane %v2863_v18, 4  ;;  %v6585_v61 = vrot.slane %v6565_v52, 9  ;;  %v5342_v56 = vrot.slane %v6566_v12, 5  ;;  %v5345_v0 = vrot.slane %v6567_v50, 5 }
 0x13c   : > { %v2848_v53 = vsel %vm7828_vm2, %v2843_v42, %v2847_v26  ;;  %v2871_v59 = vrot.slane %v2869_v48, 5  ;;  %v2857_v62 = vrot.slane %v2856_v60, 4  ;;  %v2874_v30 = vshrl.u32 %v6216_v51, 16 }
 0x13d   : > { %v6248_v57 = vcombine.low %v2838_v41, %v2848_v53  ;;  %v2866_v63 = vor.u32 %v2865_v55, %v2861_v45  ;;  %v5343_v36 = vsel %vm7928_vm5, %v6585_v61, %v5342_v56  ;;  %v5344_v1 = vrot.slane %v5342_v56, 4 }
 0x13e   : > { %7268 = vmatmul.mubr.bf16.gmra.mrb[20].mxu0 %v6614_v29  ;;  %v6217_v29 = vld [vmem:[%s7805_s18 + $0xc4] sm:$0xf]  ;;  %v2877_v2 = vshll.u32 %v6216_v51, 16  ;;  %v2862_v6 = vsel %vm7828_vm2, %v2857_v62, %v2861_v45  ;;  %v2876_v8 = vrot.slane %v2874_v30, 4  ;;  %v2893_v38 = vshll.u32 %v6218_v16, 16 }
 0x13f   : > { %7271 = vmatprep.mubr.bf16.mxu0 %v6615_v20  ;;  %v2883_v3 = vshll.u32 %v6217_v29, 16  ;;  %v2867_v7 = vrot.slane %v2866_v63, 4  ;;  %v2887_v9 = vshrl.u32 %v6217_v29, 16  ;;  %v5346_v11 = vsel %vm7928_vm5, %v5344_v1, %v5345_v0 }
 0x140   : > { %7080 = vmatmul.mubr.bf16.gmra.mrb[24].mxu1 %v6248_v57  ;;  %v2879_v13 = vrot.slane %v2877_v2, 5  ;;  %v6617_v15 = vcombine.low %v5343_v36, %v5346_v11  ;;  %v6586_v19 = vrot.slane %v6568_v5, 9  ;;  %v5349_v22 = vrot.slane %v6569_v10, 5 }
 0x141   : > { %v2885_v14 = vrot.slane %v2883_v3, 5  ;;  %v2872_v47 = vsel %vm7828_vm2, %v2867_v7, %v2871_v59  ;;  %v2889_v17 = vrot.slane %v2887_v9, 4  ;;  %v2895_v24 = vrot.slane %v2893_v38, 5 }
 0x142   : > { %v6249_v20 = vcombine.low %v2862_v6, %v2872_v47  ;;  %v2880_v21 = vor.u32 %v2879_v13, %v2876_v8  ;;  %v5352_v25 = vrot.slane %v6570_v49, 5  ;;  %v5350_v28 = vsel %vm7928_vm5, %v6586_v19, %v5349_v22 }
 0x143   : > { %v2890_v23 = vor.u32 %v2889_v17, %v2885_v14  ;;  %v5351_v31 = vrot.slane %v5349_v22, 4 }
 0x144   : > { %7083 = vmatprep.mubr.bf16.mxu1 %v6249_v20  ;;  %v2881_v26 = vrot.slane %v2880_v21, 4 }
 0x145   : > { %v2891_v32 = vrot.slane %v2890_v23, 4  ;;  %v5353_v35 = vsel %vm7928_vm5, %v5351_v31, %v5352_v25 }
 0x146   : > { %7272 = vmatmul.mubr.bf16.gmra.mrb[24].mxu0 %v6616_v54  ;;  %v2886_v34 = vsel %vm7828_vm2, %v2881_v26, %v2885_v14  ;;  %v6618_v40 = vcombine.low %v5350_v28, %v5353_v35  ;;  %v8858_v54 = vld [vmem:[%s8945_s2] ss:$0 sm:$0xff] }
 0x147   : > { %7275 = vmatprep.mubr.bf16.mxu0 %v6617_v15  ;;  %v2896_v39 = vsel %vm7828_vm2, %v2891_v32, %v2895_v24 }
 0x148   : > { %v6250_v27 = vcombine.low %v2886_v34, %v2896_v39 }
 0x14a   : > { %7084 = vmatmul.mubr.bf16.gmra.mrb[28].mxu1 %v6250_v27 }
 0x14e   : > { %7276 = vmatmul.mubr.bf16.gmra.mrb[28].mxu0 %v6618_v40 }
 0x1c3   : > { %v7009_v37 = vpop.f32.mrb[0].mxu1 }
 0x1c4   : > { %v2242_v46 = vpop.f32.mrb[1].mxu1 }
 0x1c5   : > { %v7010_v52 = vpop.f32.mrb[2].mxu1 }
 0x1c6   : > { %v2245_v42 = vpop.f32.mrb[3].mxu1 }
 0x1cb   : > { %v7013_v43 = vpop.f32.mrb[4].mxu1 }
 0x1cc   : > { %v2258_v58 = vpop.f32.mrb[5].mxu1 }
 0x1cd   : > { %v7014_v18 = vpop.f32.mrb[6].mxu1 }
 0x1ce   : > { %v2261_v12 = vpop.f32.mrb[7].mxu1 }
 0x1d3   : > { %v7017_v41 = vpop.f32.mrb[8].mxu1 }
 0x1d4   : > { %v2274_v44 = vpop.f32.mrb[9].mxu1 }
 0x1d5   : > { %v7018_v4 = vpop.f32.mrb[10].mxu1 }
 0x1d6   : > { %v2277_v45 = vpop.f32.mrb[11].mxu1 }
 0x1db   : > { %v8847_v48 = vpop.f32.mrb[12].mxu1 }
 0x1dc   : > { %v8849_v33 = vpop.f32.mrb[13].mxu1 }
 0x1dd   : > { %v8851_v50 = vpop.f32.mrb[14].mxu1 }
 0x1de   : > { %v8853_v51 = vpop.f32.mrb[15].mxu1 }
 0x1e9   : > { %v7249_v53 = vpop.f32.mrb[0].mxu0 }
 0x1ea   : > { %v7295_v60 = vadd.f32 %v7249_v53, %v7009_v37  ;;  %v5517_v55 = vpop.f32.mrb[1].mxu0 }
 0x1eb   : > { %v7296_v29 = vadd.f32 %v5517_v55, %v2242_v46  ;;  %v7250_v57 = vpop.f32.mrb[2].mxu0 }
 0x1ec   : > { %v5781_v59 = vadd.f32 %v7295_v60, %v8858_v54  ;;  %v7297_v61 = vadd.f32 %v7250_v57, %v7010_v52  ;;  %v5520_v56 = vpop.f32.mrb[3].mxu0 }
 0x1ed   : > { %v5779_v62 = vadd.f32 %v7296_v29, %v8858_v54  ;;  %v7298_v63 = vadd.f32 %v5520_v56, %v2245_v42 }
 0x1ee   : > { %v5813_v0 = vmax.f32 %v5781_v59, 0.0  ;;  %v5782_v16 = vadd.f32 %v7297_v61, %v8858_v54 }
 0x1ef   : > { %v5811_v30 = vmax.f32 %v5779_v62, 0.0  ;;  %v5780_v36 = vadd.f32 %v7298_v63, %v8858_v54 }
 0x1f0   : > { %5845 = vst [vmem:[%s8865_s29 + $0x10] sm:$0xff] %v5813_v0  ;;  %v5814_v1 = vmax.f32 %v5782_v16, 0.0 }
 0x1f1   : > { %5843 = vst [vmem:[%s8865_s29] sm:$0xff] %v5811_v30  ;;  %v5812_v2 = vmax.f32 %v5780_v36, 0.0  ;;  %v7253_v3 = vpop.f32.mrb[4].mxu0 }
 0x1f2   : > { %5846 = vst [vmem:[%s8865_s29 + $0x18] sm:$0xff] %v5814_v1  ;;  %v7299_v5 = vadd.f32 %v7253_v3, %v7013_v43  ;;  %v5533_v6 = vpop.f32.mrb[5].mxu0 }
 0x1f3   : > { %5844 = vst [vmem:[%s8865_s29 + $0x8] sm:$0xff] %v5812_v2  ;;  %v7300_v7 = vadd.f32 %v5533_v6, %v2258_v58  ;;  %v7254_v8 = vpop.f32.mrb[6].mxu0 }
 0x1f4   : > { %v5785_v9 = vadd.f32 %v7299_v5, %v8858_v54  ;;  %v7301_v10 = vadd.f32 %v7254_v8, %v7014_v18  ;;  %v5536_v11 = vpop.f32.mrb[7].mxu0 }
 0x1f5   : > { %v5783_v13 = vadd.f32 %v7300_v7, %v8858_v54  ;;  %v7302_v14 = vadd.f32 %v5536_v11, %v2261_v12 }
 0x1f6   : > { %v5817_v38 = vmax.f32 %v5785_v9, 0.0  ;;  %v5786_v49 = vadd.f32 %v7301_v10, %v8858_v54 }
 0x1f7   : > { %v5815_v47 = vmax.f32 %v5783_v13, 0.0  ;;  %v5784_v15 = vadd.f32 %v7302_v14, %v8858_v54 }
 0x1f8   : > { %5849 = vst [vmem:[%s8865_s29 + $0x30] sm:$0xff] %v5817_v38  ;;  %v5818_v17 = vmax.f32 %v5786_v49, 0.0 }
 0x1f9   : > { %5847 = vst [vmem:[%s8865_s29 + $0x20] sm:$0xff] %v5815_v47  ;;  %v5816_v19 = vmax.f32 %v5784_v15, 0.0  ;;  %v7257_v20 = vpop.f32.mrb[8].mxu0 }
 0x1fa   : > { %5850 = vst [vmem:[%s8865_s29 + $0x38] sm:$0xff] %v5818_v17  ;;  %v7303_v21 = vadd.f32 %v7257_v20, %v7017_v41  ;;  %v5549_v22 = vpop.f32.mrb[9].mxu0 }
 0x1fb   : > { %5848 = vst [vmem:[%s8865_s29 + $0x28] sm:$0xff] %v5816_v19  ;;  %v7304_v23 = vadd.f32 %v5549_v22, %v2274_v44  ;;  %v7258_v24 = vpop.f32.mrb[10].mxu0 }
 0x1fc   : > { %v5789_v25 = vadd.f32 %v7303_v21, %v8858_v54  ;;  %v7305_v26 = vadd.f32 %v7258_v24, %v7018_v4  ;;  %v5552_v28 = vpop.f32.mrb[11].mxu0 }
 0x1fd   : > { %v5787_v31 = vadd.f32 %v7304_v23, %v8858_v54  ;;  %v7306_v32 = vadd.f32 %v5552_v28, %v2277_v45 }
 0x1fe   : > { %v5821_v34 = vmax.f32 %v5789_v25, 0.0  ;;  %v5790_v35 = vadd.f32 %v7305_v26, %v8858_v54 }
 0x1ff   : > { %v5819_v39 = vmax.f32 %v5787_v31, 0.0  ;;  %v5788_v40 = vadd.f32 %v7306_v32, %v8858_v54 }
 0x200   : > { %5853 = vst [vmem:[%s8865_s29 + $0x50] sm:$0xff] %v5821_v34  ;;  %v5822_v37 = vmax.f32 %v5790_v35, 0.0 }
 0x201   : > { %5851 = vst [vmem:[%s8865_s29 + $0x40] sm:$0xff] %v5819_v39  ;;  %v5820_v52 = vmax.f32 %v5788_v40, 0.0  ;;  %v7261_v42 = vpop.f32.mrb[12].mxu0 }
 0x202   : > { %5854 = vst [vmem:[%s8865_s29 + $0x58] sm:$0xff] %v5822_v37  ;;  %v7307_v58 = vadd.f32 %v7261_v42, %v8847_v48  ;;  %v5565_v18 = vpop.f32.mrb[13].mxu0 }
 0x203   : > { %v7073_v27 = vpop.f32.mrb[16].mxu1  ;;  %5852 = vst [vmem:[%s8865_s29 + $0x48] sm:$0xff] %v5820_v52  ;;  %v7308_v41 = vadd.f32 %v5565_v18, %v8849_v33  ;;  %v7262_v44 = vpop.f32.mrb[14].mxu0 }
 0x204   : > { %v3124_v46 = vpop.f32.mrb[17].mxu1  ;;  %v5793_v4 = vadd.f32 %v7307_v58, %v8858_v54  ;;  %v7309_v45 = vadd.f32 %v7262_v44, %v8851_v50  ;;  %v5568_v53 = vpop.f32.mrb[15].mxu0 }
 0x205   : > { %v7074_v43 = vpop.f32.mrb[18].mxu1  ;;  %v5791_v60 = vadd.f32 %v7308_v41, %v8858_v54  ;;  %v7310_v55 = vadd.f32 %v5568_v53, %v8853_v51 }
 0x206   : > { %v3127_v12 = vpop.f32.mrb[19].mxu1  ;;  %v5825_v29 = vmax.f32 %v5793_v4, 0.0  ;;  %v5794_v48 = vadd.f32 %v7309_v45, %v8858_v54 }
 0x207   : > { %v5823_v57 = vmax.f32 %v5791_v60, 0.0  ;;  %v5792_v59 = vadd.f32 %v7310_v55, %v8858_v54 }
 0x208   : > { %5857 = vst [vmem:[%s8865_s29 + $0x70] sm:$0xff] %v5825_v29  ;;  %v5826_v33 = vmax.f32 %v5794_v48, 0.0 }
 0x209   : > { %5855 = vst [vmem:[%s8865_s29 + $0x60] sm:$0xff] %v5823_v57  ;;  %v5824_v61 = vmax.f32 %v5792_v59, 0.0  ;;  %v7265_v56 = vpop.f32.mrb[16].mxu0 }
 0x20a   : > { %5858 = vst [vmem:[%s8865_s29 + $0x78] sm:$0xff] %v5826_v33  ;;  %v7311_v50 = vadd.f32 %v7265_v56, %v7073_v27  ;;  %v5581_v63 = vpop.f32.mrb[17].mxu0 }
 0x20b   : > { %v7077_v62 = vpop.f32.mrb[20].mxu1  ;;  %5856 = vst [vmem:[%s8865_s29 + $0x68] sm:$0xff] %v5824_v61  ;;  %v7312_v51 = vadd.f32 %v5581_v63, %v3124_v46  ;;  %v7266_v16 = vpop.f32.mrb[18].mxu0 }
 0x20c   : > { %v3140_v0 = vpop.f32.mrb[21].mxu1  ;;  %v5797_v36 = vadd.f32 %v7311_v50, %v8858_v54  ;;  %v7313_v1 = vadd.f32 %v7266_v16, %v7074_v43  ;;  %v5584_v2 = vpop.f32.mrb[19].mxu0 }
 0x20d   : > { %v7078_v30 = vpop.f32.mrb[22].mxu1  ;;  %v5795_v5 = vadd.f32 %v7312_v51, %v8858_v54  ;;  %v7314_v6 = vadd.f32 %v5584_v2, %v3127_v12 }
 0x20e   : > { %v3143_v3 = vpop.f32.mrb[23].mxu1  ;;  %v5829_v7 = vmax.f32 %v5797_v36, 0.0  ;;  %v5798_v8 = vadd.f32 %v7313_v1, %v8858_v54 }
 0x20f   : > { %v5827_v9 = vmax.f32 %v5795_v5, 0.0  ;;  %v5796_v10 = vadd.f32 %v7314_v6, %v8858_v54 }
 0x210   : > { %5861 = vst [vmem:[%s8865_s29 + $0x90] sm:$0xff] %v5829_v7  ;;  %v5830_v11 = vmax.f32 %v5798_v8, 0.0 }
 0x211   : > { %5859 = vst [vmem:[%s8865_s29 + $0x80] sm:$0xff] %v5827_v9  ;;  %v5828_v13 = vmax.f32 %v5796_v10, 0.0  ;;  %v7269_v14 = vpop.f32.mrb[20].mxu0 }
 0x212   : > { %5862 = vst [vmem:[%s8865_s29 + $0x98] sm:$0xff] %v5830_v11  ;;  %v7315_v38 = vadd.f32 %v7269_v14, %v7077_v62  ;;  %v5597_v49 = vpop.f32.mrb[21].mxu0 }
 0x213   : > { %5860 = vst [vmem:[%s8865_s29 + $0x88] sm:$0xff] %v5828_v13  ;;  %v7316_v47 = vadd.f32 %v5597_v49, %v3140_v0  ;;  %v7270_v15 = vpop.f32.mrb[22].mxu0  ;;  %v7081_v23 = vpop.f32.mrb[24].mxu1 }
 0x214   : > { %v5801_v17 = vadd.f32 %v7315_v38, %v8858_v54  ;;  %v7317_v19 = vadd.f32 %v7270_v15, %v7078_v30  ;;  %v5600_v20 = vpop.f32.mrb[23].mxu0  ;;  %v3156_v26 = vpop.f32.mrb[25].mxu1 }
 0x215   : > { %v5799_v21 = vadd.f32 %v7316_v47, %v8858_v54  ;;  %v7318_v22 = vadd.f32 %v5600_v20, %v3143_v3  ;;  %v7082_v32 = vpop.f32.mrb[26].mxu1 }
 0x216   : > { %v5833_v24 = vmax.f32 %v5801_v17, 0.0  ;;  %v5802_v25 = vadd.f32 %v7317_v19, %v8858_v54  ;;  %v3159_v35 = vpop.f32.mrb[27].mxu1 }
 0x217   : > { %v5831_v28 = vmax.f32 %v5799_v21, 0.0  ;;  %v5800_v31 = vadd.f32 %v7318_v22, %v8858_v54 }
 0x218   : > { %5865 = vst [vmem:[%s8865_s29 + $0xb0] sm:$0xff] %v5833_v24  ;;  %v5834_v34 = vmax.f32 %v5802_v25, 0.0 }
 0x219   : > { %5863 = vst [vmem:[%s8865_s29 + $0xa0] sm:$0xff] %v5831_v28  ;;  %v5832_v39 = vmax.f32 %v5800_v31, 0.0  ;;  %v7273_v40 = vpop.f32.mrb[24].mxu0 }
 0x21a   : > { %5866 = vst [vmem:[%s8865_s29 + $0xb8] sm:$0xff] %v5834_v34  ;;  %v7319_v27 = vadd.f32 %v7273_v40, %v7081_v23  ;;  %v5613_v37 = vpop.f32.mrb[25].mxu0 }
 0x21b   : > { %5864 = vst [vmem:[%s8865_s29 + $0xa8] sm:$0xff] %v5832_v39  ;;  %v7320_v46 = vadd.f32 %v5613_v37, %v3156_v26  ;;  %v7274_v52 = vpop.f32.mrb[26].mxu0 }
 0x21c   : > { %v5805_v42 = vadd.f32 %v7319_v27, %v8858_v54  ;;  %v7321_v43 = vadd.f32 %v7274_v52, %v7082_v32  ;;  %v5616_v58 = vpop.f32.mrb[27].mxu0 }
 0x21d   : > { %v5803_v18 = vadd.f32 %v7320_v46, %v8858_v54  ;;  %v7322_v12 = vadd.f32 %v5616_v58, %v3159_v35  ;;  %v7085_v55 = vpop.f32.mrb[28].mxu1 }
 0x21e   : > { %v5837_v41 = vmax.f32 %v5805_v42, 0.0  ;;  %v5806_v44 = vadd.f32 %v7321_v43, %v8858_v54  ;;  %v3172_v57 = vpop.f32.mrb[29].mxu1 }
 0x21f   : > { %v5835_v4 = vmax.f32 %v5803_v18, 0.0  ;;  %v5804_v45 = vadd.f32 %v7322_v12, %v8858_v54  ;;  %v7086_v61 = vpop.f32.mrb[30].mxu1 }
 0x220   : > { %5869 = vst [vmem:[%s8865_s29 + $0xd0] sm:$0xff] %v5837_v41  ;;  %v5838_v53 = vmax.f32 %v5806_v44, 0.0  ;;  %v3175_v63 = vpop.f32.mrb[31].mxu1 }
 0x221   : > { %5867 = vst [vmem:[%s8865_s29 + $0xc0] sm:$0xff] %v5835_v4  ;;  %v5836_v60 = vmax.f32 %v5804_v45, 0.0  ;;  %v7277_v29 = vpop.f32.mrb[28].mxu0 }
 0x222   : > { %5870 = vst [vmem:[%s8865_s29 + $0xd8] sm:$0xff] %v5838_v53  ;;  %v7323_v48 = vadd.f32 %v7277_v29, %v7085_v55  ;;  %v5629_v59 = vpop.f32.mrb[29].mxu0 }
 0x223   : > { %5868 = vst [vmem:[%s8865_s29 + $0xc8] sm:$0xff] %v5836_v60  ;;  %v7324_v33 = vadd.f32 %v5629_v59, %v3172_v57  ;;  %v7278_v56 = vpop.f32.mrb[30].mxu0 }
 0x224   : > { %v5809_v62 = vadd.f32 %v7323_v48, %v8858_v54  ;;  %v7325_v50 = vadd.f32 %v7278_v56, %v7086_v61  ;;  %v5632_v0 = vpop.f32.mrb[31].mxu0 }
 0x225   : > { %v5807_v51 = vadd.f32 %v7324_v33, %v8858_v54  ;;  %v7326_v16 = vadd.f32 %v5632_v0, %v3175_v63 }
 0x226   : > { %v5841_v30 = vmax.f32 %v5809_v62, 0.0  ;;  %v5810_v36 = vadd.f32 %v7325_v50, %v8858_v54 }
 0x227   : > { %v5839_v1 = vmax.f32 %v5807_v51, 0.0  ;;  %v5808_v2 = vadd.f32 %v7326_v16, %v8858_v54 }
 0x228   : > { %5873 = vst [vmem:[%s8865_s29 + $0xf0] sm:$0xff] %v5841_v30  ;;  %v5842_v3 = vmax.f32 %v5810_v36, 0.0 }
 0x229   : > { %5871 = vst [vmem:[%s8865_s29 + $0xe0] sm:$0xff] %v5839_v1  ;;  %v5840_v5 = vmax.f32 %v5808_v2, 0.0 }
 0x22a   : > { %5874 = vst [vmem:[%s8865_s29 + $0xf8] sm:$0xff] %v5842_v3 }
 0x22b   : > { %5872 = vst [vmem:[%s8865_s29 + $0xe8] sm:$0xff] %v5840_v5 }
 0x22c PF: > { %s13_s14 = sadd.s32 1, %s7726_s14   ;;  %s8951_s12 = smov %s7722_s13 }
 0x22d   : > { %p10_p5 = scmp.ge.s32.totalorder %s13_s14, 4   ;;  %s8952_s13 = smov %s8954_s15 }
 0x22f   :  { %12 = sbr.rel (!%p10_p5) target bundleno = 2 (0x2), region = 72 }

</bundles_post_ra>
